<compile_context>
chip_gen: v6e
topology: v6e:2x2x1
jax: 0.10.0
libtpu: 0.0.40
codegen_flags: <defaults>
</compile_context>

<pallas_src>
import functools

import jax
import jax.numpy as jnp
from jax import lax
from jax.experimental import pallas as pl
from jax.experimental.pallas import tpu as pltpu

_LANE = 128
_BATCH_TILE_ALIGN = 16   # bf16 sublane packing wants M a multiple of 16


def _round_up(x, m):
    return (x + m - 1) // m * m


def _auto_num_batch_tiles():
    """1 tile on 1-TC chips (v5e/v6e); 2 tiles on 2-TC chips (v7x-class)."""
    try:
        kind = jax.devices()[0].device_kind.lower()
    except Exception:
        return 1
    return 2 if "v7" in kind else 1


# --------------------------------------------------------------------------
# Fused Pallas kernel: biGRU -> GRU -> Linear
# --------------------------------------------------------------------------
def _gru_cell(gi, gh, b_hn, h, Hp):
    """One GRU step.  gi/gh: (B, 3*Hp), b_hn: (B, Hp) pre-broadcast, h: (B, Hp).

    Gate order (r, z, n); each gate occupies a lane-aligned Hp-wide block.
    b_ih (all gates) and b_hh (r, z gates) are already folded into gi.
    """
    r = jax.nn.sigmoid(gi[:, 0:Hp] + gh[:, 0:Hp])
    z = jax.nn.sigmoid(gi[:, Hp:2 * Hp] + gh[:, Hp:2 * Hp])
    n = jnp.tanh(gi[:, 2 * Hp:3 * Hp] + r * (gh[:, 2 * Hp:3 * Hp] + b_hn))
    return (1.0 - z) * n + z * h


def _fused_rnn_kernel(x_ref, w1ih_ref, w1hh_ref, b1gi_ref, b1hn_ref,
                      w2ih_ref, w2hh_ref, b2gi_ref, b2hn_ref,
                      wl_ref, bl_ref,
                      out_ref,
                      gi1f_s, gi1b_s, out1_s):
    T, Bt, D = x_ref.shape
    Hp = w1hh_ref.shape[1]        # lane-padded hidden of GRU1
    H2p = w2hh_ref.shape[0]       # lane-padded hidden of GRU2
    G2 = 3 * H2p
    f32 = jnp.float32
    bf16 = jnp.bfloat16
    unroll = T if T <= 32 else 8

    # ---- Stage 1: GRU1 input projections, hoisted out of the recurrence ----
    x2d = x_ref[...].reshape(T * Bt, D)            # already bf16 (wrapper cast)
    gi1f_s[...] = (jnp.dot(x2d, w1ih_ref[0], preferred_element_type=f32)
                   + b1gi_ref[0]).reshape(T, Bt, 3 * Hp)
    gi1b_s[...] = (jnp.dot(x2d, w1ih_ref[1], preferred_element_type=f32)
                   + b1gi_ref[1]).reshape(T, Bt, 3 * Hp)

    # ---- Stage 2: GRU1 recurrence (fwd + bwd fused, one time loop) ----------
    w1hh_f = w1hh_ref[0]
    w1hh_b = w1hh_ref[1]
    # Hoist the (1, Hp) -> (Bt, Hp) broadcasts out of the unrolled loop.
    b1hn_f = jnp.broadcast_to(b1hn_ref[0], (Bt, Hp))
    b1hn_b = jnp.broadcast_to(b1hn_ref[1], (Bt, Hp))

    def gru1_step(t, carry):
        h_f, h_b = carry
        gi_f = gi1f_s[t]                       # forward direction: time t
        gi_b = gi1b_s[T - 1 - t]               # backward direction: time T-1-t
        gh_f = jnp.dot(h_f.astype(bf16), w1hh_f, preferred_element_type=f32)
        gh_b = jnp.dot(h_b.astype(bf16), w1hh_b, preferred_element_type=f32)
        h_f = _gru_cell(gi_f, gh_f, b1hn_f, h_f, Hp)
        h_b = _gru_cell(gi_b, gh_b, b1hn_b, h_b, Hp)
        out1_s[t, :, 0:Hp] = h_f               # [fwd | bwd] in one scratch
        out1_s[T - 1 - t, :, Hp:2 * Hp] = h_b
        return (h_f, h_b)

    h0 = jnp.zeros((Bt, Hp), f32)
    lax.fori_loop(0, T, gru1_step, (h0, h0), unroll=unroll)

    # ---- Stage 3: GRU2 input projection, hoisted; ONE matmul with K = 2*Hp --
    o1 = out1_s[...].reshape(T * Bt, 2 * Hp).astype(bf16)
    gi2 = (jnp.dot(o1, w2ih_ref[...], preferred_element_type=f32)
           + b2gi_ref[...])
    # gi1f_s is dead after Stage 2 -> reuse its leading lanes for gi2 (cuts
    # peak VMEM scratch; G2 <= 3*Hp always since H2 <= H).
    gi1f_s[:, :, 0:G2] = gi2.reshape(T, Bt, G2)

    # ---- Stage 4: GRU2 recurrence -------------------------------------------
    w2hh = w2hh_ref[...]
    b2hn = jnp.broadcast_to(b2hn_ref[...], (Bt, H2p))

    def gru2_step(t, h):
        gi = gi1f_s[t, :, 0:G2]
        gh = jnp.dot(h.astype(bf16), w2hh, preferred_element_type=f32)
        return _gru_cell(gi, gh, b2hn, h, H2p)

    h2 = lax.fori_loop(0, T, gru2_step, jnp.zeros((Bt, H2p), f32),
                       unroll=unroll)

    # ---- Stage 5: Linear head (lane-padded, bf16 MXU matmul) ----------------
    out_ref[...] = (jnp.dot(h2.astype(bf16), wl_ref[...],
                            preferred_element_type=f32) + bl_ref[...])


# --------------------------------------------------------------------------
# Wrapper
# --------------------------------------------------------------------------
def _full_spec(shape):
    return pl.BlockSpec(shape, lambda b: (0,) * len(shape))


def rnn_gru_forward(x, kp, *, num_classes, num_batch_tiles=None):
    """x: (B, T, input_size) f32 -> logits (B, num_classes) f32."""
    B, T, D = x.shape
    Hp = kp["w1hh"].shape[1]
    H2p = kp["w2hh"].shape[0]
    Cp = kp["bl"].shape[1]

    # Generation-aware batch tiling: full batch on 1-TC chips, 2-way on v7x.
    if num_batch_tiles is None:
        num_batch_tiles = _auto_num_batch_tiles()
    num_batch_tiles = max(1, min(int(num_batch_tiles),
                                 -(-B // _BATCH_TILE_ALIGN)))
    b_tile = _round_up(-(-B // num_batch_tiles), _BATCH_TILE_ALIGN)
    Bp = b_tile * num_batch_tiles

    # bf16 cast fused with the time-major transpose (halves streamed HBM bytes).
    xb = x.astype(jnp.bfloat16)
    if Bp != B:
        xb = jnp.pad(xb, ((0, Bp - B), (0, 0), (0, 0)))
    x_t = jnp.transpose(xb, (1, 0, 2))          # (T, Bp, D) bf16

    grid = (num_batch_tiles,)
    in_specs = [
        pl.BlockSpec((T, b_tile, D), lambda b: (0, b, 0)),
        _full_spec(kp["w1ih"].shape), _full_spec(kp["w1hh"].shape),
        _full_spec(kp["b1gi"].shape), _full_spec(kp["b1hn"].shape),
        _full_spec(kp["w2ih"].shape), _full_spec(kp["w2hh"].shape),
        _full_spec(kp["b2gi"].shape), _full_spec(kp["b2hn"].shape),
        _full_spec(kp["wl"].shape), _full_spec(kp["bl"].shape),
    ]
    out_specs = pl.BlockSpec((b_tile, Cp), lambda b: (b, 0))
    scratch_shapes = [
        pltpu.VMEM((T, b_tile, 3 * Hp), jnp.float32),   # GI1 fwd (reused as GI2)
        pltpu.VMEM((T, b_tile, 3 * Hp), jnp.float32),   # GI1 bwd
        pltpu.VMEM((T, b_tile, 2 * Hp), jnp.float32),   # out1 = [fwd | bwd]
    ]

    # Derive the VMEM budget from actual block + scratch sizes (double-buffered
    # inputs/outputs), capped at 64 MiB so it also fits v7x's physical VMEM.
    weight_bytes = sum(int(v.size) * v.dtype.itemsize for v in kp.values())
    block_bytes = T * b_tile * D * 2 + b_tile * Cp * 4
    scratch_bytes = T * b_tile * (3 * Hp + 3 * Hp + 2 * Hp) * 4
    est = 2 * (weight_bytes + block_bytes) + scratch_bytes
    vmem_limit = int(min(max(est + (8 << 20), 32 << 20), 64 << 20))

    out = pl.pallas_call(
        _fused_rnn_kernel,
        out_shape=jax.ShapeDtypeStruct((Bp, Cp), jnp.float32),
        grid=grid,
        in_specs=in_specs,
        out_specs=out_specs,
        scratch_shapes=scratch_shapes,
        compiler_params=pltpu.CompilerParams(
            dimension_semantics=("parallel",),
            vmem_limit_bytes=vmem_limit),
    )(x_t, kp["w1ih"], kp["w1hh"], kp["b1gi"], kp["b1hn"],
      kp["w2ih"], kp["w2hh"], kp["b2gi"], kp["b2hn"],
      kp["wl"], kp["bl"])
    return out[:B, :num_classes]


# --------------------------------------------------------------------------
# One-time weight preparation: transpose, gate-pad to 128 lanes, bf16-cast,
# fold b_hh (r,z) into the hoisted input-projection bias, stack GRU2's two
# input-projection halves into one K=2*Hp weight, pad the linear head.
# --------------------------------------------------------------------------
def _gate_pad_cols(w, H, Hp):
    """(R, 3H) -> (R, 3*Hp); gate g occupies cols [g*Hp, g*Hp+H), rest zero."""
    out = jnp.zeros((w.shape[0], 3 * Hp), w.dtype)
    for g in range(3):
        out = out.at[:, g * Hp:g * Hp + H].set(w[:, g * H:(g + 1) * H])
    return out


def _gate_pad_vec(b, H, Hp):
    out = jnp.zeros((1, 3 * Hp), b.dtype)
    for g in range(3):
        out = out.at[0, g * Hp:g * Hp + H].set(b[g * H:(g + 1) * H])
    return out


def _row_pad(w, Rp):
    out = jnp.zeros((Rp,) + w.shape[1:], w.dtype)
    return out.at[:w.shape[0]].set(w)


def prepare_params(p, input_size, hidden_size, num_classes):
    H = hidden_size
    H2 = round(hidden_size / 2)      # matches the PyTorch module's round(H/2)
    Hp = _round_up(H, _LANE)
    H2p = _round_up(H2, _LANE)
    Cp = _round_up(num_classes, _LANE)
    bf16 = jnp.bfloat16

    def prep_dir(w_ih, w_hh, b_ih, b_hh, h, hp):
        wih = _gate_pad_cols(w_ih.T, h, hp).astype(bf16)                 # (Din, 3hp)
        whh = _row_pad(_gate_pad_cols(w_hh.T, h, hp), hp).astype(bf16)   # (hp, 3hp)
        bgi = _gate_pad_vec(b_ih, h, hp)                                 # fold r,z of b_hh
        bgi = bgi.at[0, 0:h].add(b_hh[0:h])
        bgi = bgi.at[0, hp:hp + h].add(b_hh[h:2 * h])
        bhn = jnp.zeros((1, hp), jnp.float32).at[0, :h].set(b_hh[2 * h:3 * h])
        return wih, whh, bgi, bhn

    f = prep_dir(p["g1_wih_f"], p["g1_whh_f"], p["g1_bih_f"], p["g1_bhh_f"], H, Hp)
    b = prep_dir(p["g1_wih_b"], p["g1_whh_b"], p["g1_bih_b"], p["g1_bhh_b"], H, Hp)

    # GRU2: input is [out_fwd | out_bwd] laid out as one (2*Hp)-wide slab, so
    # stack both halves of W_ih^T into ONE (2*Hp, 3*H2p) weight (single matmul).
    w2t = _gate_pad_cols(p["g2_wih"].T, H2, H2p)                         # (2H, 3*H2p)
    w2ih = jnp.zeros((2 * Hp, 3 * H2p), jnp.float32)
    w2ih = w2ih.at[0:H].set(w2t[:H])
    w2ih = w2ih.at[Hp:Hp + H].set(w2t[H:2 * H])
    w2ih = w2ih.astype(bf16)
    w2hh = _row_pad(_gate_pad_cols(p["g2_whh"].T, H2, H2p), H2p).astype(bf16)
    b2gi = _gate_pad_vec(p["g2_bih"], H2, H2p)
    b2gi = b2gi.at[0, 0:H2].add(p["g2_bhh"][0:H2])
    b2gi = b2gi.at[0, H2p:H2p + H2].add(p["g2_bhh"][H2:2 * H2])
    b2hn = jnp.zeros((1, H2p), jnp.float32).at[0, :H2].set(p["g2_bhh"][2 * H2:])

    # Linear head padded to a full 128-lane group (lane-dense output block).
    wl = jnp.zeros((H2p, Cp), jnp.float32)
    wl = wl.at[:H2, :num_classes].set(p["lin_w"].T)
    wl = wl.astype(bf16)
    bl = jnp.zeros((1, Cp), jnp.float32).at[0, :num_classes].set(p["lin_b"])

    return {
        "w1ih": jnp.stack([f[0], b[0]]),   # (2, Din, 3Hp) bf16
        "w1hh": jnp.stack([f[1], b[1]]),   # (2, Hp, 3Hp)  bf16
        "b1gi": jnp.stack([f[2], b[2]]),   # (2, 1, 3Hp)   f32
        "b1hn": jnp.stack([f[3], b[3]]),   # (2, 1, Hp)    f32
        "w2ih": w2ih,                      # (2Hp, 3H2p)   bf16
        "w2hh": w2hh,                      # (H2p, 3H2p)   bf16
        "b2gi": b2gi, "b2hn": b2hn,        # f32
        "wl": wl, "bl": bl,                # (H2p, Cp) bf16 / (1, Cp) f32
    }


# --------------------------------------------------------------------------
# Deterministic PyTorch-layout parameter init (uniform(-1/sqrt(H), 1/sqrt(H)))
# --------------------------------------------------------------------------
def init_params(key, input_size, hidden_size, num_classes):
    H = hidden_size
    H2 = round(hidden_size / 2)
    D2 = 2 * hidden_size

    def u(k, shape, fan):
        bound = 1.0 / jnp.sqrt(float(fan))
        return jax.random.uniform(k, shape, jnp.float32, -bound, bound)

    ks = jax.random.split(key, 16)
    return {
        "g1_wih_f": u(ks[0], (3 * H, input_size), H),
        "g1_whh_f": u(ks[1], (3 * H, H), H),
        "g1_bih_f": u(ks[2], (3 * H,), H),
        "g1_bhh_f": u(ks[3], (3 * H,), H),
        "g1_wih_b": u(ks[4], (3 * H, input_size), H),
        "g1_whh_b": u(ks[5], (3 * H, H), H),
        "g1_bih_b": u(ks[6], (3 * H,), H),
        "g1_bhh_b": u(ks[7], (3 * H,), H),
        "g2_wih": u(ks[8], (3 * H2, D2), H2),
        "g2_whh": u(ks[9], (3 * H2, H2), H2),
        "g2_bih": u(ks[10], (3 * H2,), H2),
        "g2_bhh": u(ks[11], (3 * H2,), H2),
        "lin_w": u(ks[12], (num_classes, H2), H2),
        "lin_b": u(ks[13], (num_classes,), H2),
    }


# --------------------------------------------------------------------------
# Pure-JAX reference (f32) for a sanity check
# --------------------------------------------------------------------------
def _gru_ref(x_tbd, w_ih, w_hh, b_ih, b_hh):
    T, B, _ = x_tbd.shape
    H = w_hh.shape[1]

    def cell(h, x_t):
        gi = x_t @ w_ih.T + b_ih
        gh = h @ w_hh.T + b_hh
        r = jax.nn.sigmoid(gi[:, :H] + gh[:, :H])
        z = jax.nn.sigmoid(gi[:, H:2 * H] + gh[:, H:2 * H])
        n = jnp.tanh(gi[:, 2 * H:] + r * gh[:, 2 * H:])
        h = (1.0 - z) * n + z * h
        return h, h

    h_last, hs = lax.scan(cell, jnp.zeros((B, H), jnp.float32), x_tbd)
    return hs, h_last


def rnn_gru_reference(x, p):
    x_t = jnp.transpose(x, (1, 0, 2))
    of, _ = _gru_ref(x_t, p["g1_wih_f"], p["g1_whh_f"], p["g1_bih_f"], p["g1_bhh_f"])
    ob, _ = _gru_ref(x_t[::-1], p["g1_wih_b"], p["g1_whh_b"], p["g1_bih_b"], p["g1_bhh_b"])
    out1 = jnp.concatenate([of, ob[::-1]], axis=-1)
    _, h2 = _gru_ref(out1, p["g2_wih"], p["g2_whh"], p["g2_bih"], p["g2_bhh"])
    return h2 @ p["lin_w"].T + p["lin_b"]


# --------------------------------------------------------------------------
if __name__ == "__main__":
    # Small shapes consistent with the module's forward.
    batch_size, sequence_length, input_size = 16, 12, 64
    hidden_size, num_classes = 32, 7

    key = jax.random.PRNGKey(0)
    k_x, k_p = jax.random.split(key)
    x = jax.random.normal(k_x, (batch_size, sequence_length, input_size),
                          dtype=jnp.float32)
    params = init_params(k_p, input_size, hidden_size, num_classes)
    kparams = prepare_params(params, input_size, hidden_size, num_classes)

    fwd = jax.jit(functools.partial(rnn_gru_forward, num_classes=num_classes))
    out = jax.block_until_ready(fwd(x, kparams))

    assert out.shape == (batch_size, num_classes)
    assert bool(jnp.all(jnp.isfinite(out)))

    # Numerical sanity check vs. f32 reference (kernel uses bf16 MXU operands).
    ref = rnn_gru_reference(x, params)
    err = float(jnp.max(jnp.abs(out - ref)))
    assert err < 1e-1, f"mismatch vs reference: {err}"

    print("KERNEL_OK")
</pallas_src>

<mosaic_0001>
module attributes {stable_mosaic.version = 11 : i64} {
  func.func @_fused_rnn_kernel(%arg0: i32, %arg1: memref<12x16x64xbf16, #tpu.memory_space<vmem>>, %arg2: memref<2x64x384xbf16, #tpu.memory_space<vmem>>, %arg3: memref<2x128x384xbf16, #tpu.memory_space<vmem>>, %arg4: memref<2x1x384xf32, #tpu.memory_space<vmem>>, %arg5: memref<2x1x128xf32, #tpu.memory_space<vmem>>, %arg6: memref<256x384xbf16, #tpu.memory_space<vmem>>, %arg7: memref<128x384xbf16, #tpu.memory_space<vmem>>, %arg8: memref<1x384xf32, #tpu.memory_space<vmem>>, %arg9: memref<1x128xf32, #tpu.memory_space<vmem>>, %arg10: memref<128x128xbf16, #tpu.memory_space<vmem>>, %arg11: memref<1x128xf32, #tpu.memory_space<vmem>>, %arg12: memref<16x128xf32, #tpu.memory_space<vmem>>, %arg13: memref<12x16x384xf32, #tpu.memory_space<vmem>>, %arg14: memref<12x16x384xf32, #tpu.memory_space<vmem>>, %arg15: memref<12x16x256xf32, #tpu.memory_space<vmem>>) attributes {dimension_semantics = [#tpu.dimension_semantics<parallel>], iteration_bounds = array<i64: 1>, scalar_prefetch = 0 : i64, scratch_operands = 3 : i64, tpu.core_type = #tpu.core_type<tc>, window_params = [{transform_indices = @transform_0, window_bounds = array<i64: 12, 16, 64>}, {pipeline_mode = #tpu.pipeline_mode<synchronous>, transform_indices = @transform_1, window_bounds = array<i64: 2, 64, 384>}, {pipeline_mode = #tpu.pipeline_mode<synchronous>, transform_indices = @transform_2, window_bounds = array<i64: 2, 128, 384>}, {pipeline_mode = #tpu.pipeline_mode<synchronous>, transform_indices = @transform_3, window_bounds = array<i64: 2, 1, 384>}, {pipeline_mode = #tpu.pipeline_mode<synchronous>, transform_indices = @transform_4, window_bounds = array<i64: 2, 1, 128>}, {pipeline_mode = #tpu.pipeline_mode<synchronous>, transform_indices = @transform_5, window_bounds = array<i64: 256, 384>}, {pipeline_mode = #tpu.pipeline_mode<synchronous>, transform_indices = @transform_6, window_bounds = array<i64: 128, 384>}, {pipeline_mode = #tpu.pipeline_mode<synchronous>, transform_indices = @transform_7, window_bounds = array<i64: 1, 384>}, {pipeline_mode = #tpu.pipeline_mode<synchronous>, transform_indices = @transform_8, window_bounds = array<i64: 1, 128>}, {pipeline_mode = #tpu.pipeline_mode<synchronous>, transform_indices = @transform_9, window_bounds = array<i64: 128, 128>}, {pipeline_mode = #tpu.pipeline_mode<synchronous>, transform_indices = @transform_10, window_bounds = array<i64: 1, 128>}, {transform_indices = @transform_11, window_bounds = array<i64: 16, 128>}]} {
    %c0 = arith.constant 0 : index
    %c0_0 = arith.constant 0 : index
    %c0_1 = arith.constant 0 : index
    %0 = vector.load %arg1[%c0, %c0_0, %c0_1] : memref<12x16x64xbf16, #tpu.memory_space<vmem>>, vector<12x16x64xbf16>
    %1 = vector.shape_cast %0 : vector<12x16x64xbf16> to vector<192x64xbf16>
    %c0_2 = arith.constant 0 : index
    %c0_3 = arith.constant 0 : index
    %c0_4 = arith.constant 0 : index
    %2 = vector.load %arg2[%c0_2, %c0_3, %c0_4] : memref<2x64x384xbf16, #tpu.memory_space<vmem>>, vector<1x64x384xbf16>
    %3 = vector.shape_cast %2 : vector<1x64x384xbf16> to vector<64x384xbf16>
    %cst = arith.constant dense<0.000000e+00> : vector<192x384xf32>
    %4 = tpu.matmul %1, %3, %cst {dimension_numbers = #tpu.dot_dimension_numbers<[1], [0], [0], [1], [0, 0, 1, 1], [], []>} : vector<192x64xbf16>, vector<64x384xbf16>, vector<192x384xf32> -> vector<192x384xf32>
    %c0_5 = arith.constant 0 : index
    %c0_6 = arith.constant 0 : index
    %c0_7 = arith.constant 0 : index
    %5 = vector.load %arg4[%c0_5, %c0_6, %c0_7] : memref<2x1x384xf32, #tpu.memory_space<vmem>>, vector<1x1x384xf32>
    %6 = vector.shape_cast %5 : vector<1x1x384xf32> to vector<1x384xf32>
    %7 = vector.broadcast %6 : vector<1x384xf32> to vector<192x384xf32>
    %8 = arith.addf %4, %7 : vector<192x384xf32>
    %9 = vector.shape_cast %8 : vector<192x384xf32> to vector<12x16x384xf32>
    %c0_8 = arith.constant 0 : index
    %c0_9 = arith.constant 0 : index
    %c0_10 = arith.constant 0 : index
    %10 = vector.load %arg13[%c0_8, %c0_9, %c0_10] : memref<12x16x384xf32, #tpu.memory_space<vmem>>, vector<12x16x384xf32>
    tpu.vector_store %arg13[%c0_8, %c0_9, %c0_10], %9 {strides = array<i32>} : memref<12x16x384xf32, #tpu.memory_space<vmem>>, vector<12x16x384xf32>,
    %c1 = arith.constant 1 : index
    %c0_11 = arith.constant 0 : index
    %c0_12 = arith.constant 0 : index
    %11 = vector.load %arg2[%c1, %c0_11, %c0_12] : memref<2x64x384xbf16, #tpu.memory_space<vmem>>, vector<1x64x384xbf16>
    %12 = vector.shape_cast %11 : vector<1x64x384xbf16> to vector<64x384xbf16>
    %cst_13 = arith.constant dense<0.000000e+00> : vector<192x384xf32>
    %13 = tpu.matmul %1, %12, %cst_13 {dimension_numbers = #tpu.dot_dimension_numbers<[1], [0], [0], [1], [0, 0, 1, 1], [], []>} : vector<192x64xbf16>, vector<64x384xbf16>, vector<192x384xf32> -> vector<192x384xf32>
    %c1_14 = arith.constant 1 : index
    %c0_15 = arith.constant 0 : index
    %c0_16 = arith.constant 0 : index
    %14 = vector.load %arg4[%c1_14, %c0_15, %c0_16] : memref<2x1x384xf32, #tpu.memory_space<vmem>>, vector<1x1x384xf32>
    %15 = vector.shape_cast %14 : vector<1x1x384xf32> to vector<1x384xf32>
    %16 = vector.broadcast %15 : vector<1x384xf32> to vector<192x384xf32>
    %17 = arith.addf %13, %16 : vector<192x384xf32>
    %18 = vector.shape_cast %17 : vector<192x384xf32> to vector<12x16x384xf32>
    %c0_17 = arith.constant 0 : index
    %c0_18 = arith.constant 0 : index
    %c0_19 = arith.constant 0 : index
    %19 = vector.load %arg14[%c0_17, %c0_18, %c0_19] : memref<12x16x384xf32, #tpu.memory_space<vmem>>, vector<12x16x384xf32>
    tpu.vector_store %arg14[%c0_17, %c0_18, %c0_19], %18 {strides = array<i32>} : memref<12x16x384xf32, #tpu.memory_space<vmem>>, vector<12x16x384xf32>,
    %c0_20 = arith.constant 0 : index
    %c0_21 = arith.constant 0 : index
    %c0_22 = arith.constant 0 : index
    %20 = vector.load %arg3[%c0_20, %c0_21, %c0_22] : memref<2x128x384xbf16, #tpu.memory_space<vmem>>, vector<1x128x384xbf16>
    %21 = vector.shape_cast %20 : vector<1x128x384xbf16> to vector<128x384xbf16>
    %c1_23 = arith.constant 1 : index
    %c0_24 = arith.constant 0 : index
    %c0_25 = arith.constant 0 : index
    %22 = vector.load %arg3[%c1_23, %c0_24, %c0_25] : memref<2x128x384xbf16, #tpu.memory_space<vmem>>, vector<1x128x384xbf16>
    %23 = vector.shape_cast %22 : vector<1x128x384xbf16> to vector<128x384xbf16>
    %c0_26 = arith.constant 0 : index
    %c0_27 = arith.constant 0 : index
    %c0_28 = arith.constant 0 : index
    %24 = vector.load %arg5[%c0_26, %c0_27, %c0_28] : memref<2x1x128xf32, #tpu.memory_space<vmem>>, vector<1x1x128xf32>
    %25 = vector.shape_cast %24 : vector<1x1x128xf32> to vector<1x128xf32>
    %26 = vector.shape_cast %25 : vector<1x128xf32> to vector<1x128xf32>
    %27 = vector.broadcast %26 : vector<1x128xf32> to vector<16x128xf32>
    %c1_29 = arith.constant 1 : index
    %c0_30 = arith.constant 0 : index
    %c0_31 = arith.constant 0 : index
    %28 = vector.load %arg5[%c1_29, %c0_30, %c0_31] : memref<2x1x128xf32, #tpu.memory_space<vmem>>, vector<1x1x128xf32>
    %29 = vector.shape_cast %28 : vector<1x1x128xf32> to vector<1x128xf32>
    %30 = vector.shape_cast %29 : vector<1x128xf32> to vector<1x128xf32>
    %31 = vector.broadcast %30 : vector<1x128xf32> to vector<16x128xf32>
    %cst_32 = arith.constant 0.000000e+00 : f32
    %32 = vector.broadcast %cst_32 : f32 to vector<16x128xf32>
    %c0_i32 = arith.constant 0 : i32
    %33 = arith.index_cast %c0_i32 : i32 to index
    %c0_33 = arith.constant 0 : index
    %c0_34 = arith.constant 0 : index
    %34 = vector.load %arg13[%33, %c0_33, %c0_34] : memref<12x16x384xf32, #tpu.memory_space<vmem>>, vector<1x16x384xf32>
    %35 = vector.shape_cast %34 : vector<1x16x384xf32> to vector<16x384xf32>
    %c11_i32 = arith.constant 11 : i32
    %36 = arith.subi %c11_i32, %c0_i32 : i32
    %37 = arith.index_cast %36 : i32 to index
    %c0_35 = arith.constant 0 : index
    %c0_36 = arith.constant 0 : index
    %38 = vector.load %arg14[%37, %c0_35, %c0_36] : memref<12x16x384xf32, #tpu.memory_space<vmem>>, vector<1x16x384xf32>
    %39 = vector.shape_cast %38 : vector<1x16x384xf32> to vector<16x384xf32>
    %40 = arith.truncf %32 : vector<16x128xf32> to vector<16x128xbf16>
    %cst_37 = arith.constant dense<0.000000e+00> : vector<16x384xf32>
    %41 = tpu.matmul %40, %21, %cst_37 {dimension_numbers = #tpu.dot_dimension_numbers<[1], [0], [0], [1], [0, 0, 1, 1], [], []>} : vector<16x128xbf16>, vector<128x384xbf16>, vector<16x384xf32> -> vector<16x384xf32>
    %42 = arith.truncf %32 : vector<16x128xf32> to vector<16x128xbf16>
    %cst_38 = arith.constant dense<0.000000e+00> : vector<16x384xf32>
    %43 = tpu.matmul %42, %23, %cst_38 {dimension_numbers = #tpu.dot_dimension_numbers<[1], [0], [0], [1], [0, 0, 1, 1], [], []>} : vector<16x128xbf16>, vector<128x384xbf16>, vector<16x384xf32> -> vector<16x384xf32>
    %44 = vector.extract_strided_slice %35 {offsets = [0, 0], sizes = [16, 128], strides = [1, 1]} : vector<16x384xf32> to vector<16x128xf32>
    %45 = vector.extract_strided_slice %41 {offsets = [0, 0], sizes = [16, 128], strides = [1, 1]} : vector<16x384xf32> to vector<16x128xf32>
    %46 = arith.addf %44, %45 : vector<16x128xf32>
    %47 = arith.negf %46 : vector<16x128xf32>
    %48 = math.exp %47 : vector<16x128xf32>
    %cst_39 = arith.constant 1.000000e+00 : f32
    %49 = vector.broadcast %cst_39 : f32 to vector<16x128xf32>
    %50 = arith.addf %49, %48 : vector<16x128xf32>
    %51 = arith.divf %49, %50 : vector<16x128xf32>
    %52 = vector.extract_strided_slice %35 {offsets = [0, 128], sizes = [16, 128], strides = [1, 1]} : vector<16x384xf32> to vector<16x128xf32>
    %53 = vector.extract_strided_slice %41 {offsets = [0, 128], sizes = [16, 128], strides = [1, 1]} : vector<16x384xf32> to vector<16x128xf32>
    %54 = arith.addf %52, %53 : vector<16x128xf32>
    %55 = arith.negf %54 : vector<16x128xf32>
    %56 = math.exp %55 : vector<16x128xf32>
    %cst_40 = arith.constant 1.000000e+00 : f32
    %57 = vector.broadcast %cst_40 : f32 to vector<16x128xf32>
    %58 = arith.addf %57, %56 : vector<16x128xf32>
    %59 = arith.divf %57, %58 : vector<16x128xf32>
    %60 = vector.extract_strided_slice %35 {offsets = [0, 256], sizes = [16, 128], strides = [1, 1]} : vector<16x384xf32> to vector<16x128xf32>
    %61 = vector.extract_strided_slice %41 {offsets = [0, 256], sizes = [16, 128], strides = [1, 1]} : vector<16x384xf32> to vector<16x128xf32>
    %62 = arith.addf %61, %27 : vector<16x128xf32>
    %63 = arith.mulf %51, %62 : vector<16x128xf32>
    %64 = arith.addf %60, %63 : vector<16x128xf32>
    %65 = math.tanh %64 : vector<16x128xf32>
    %cst_41 = arith.constant 1.000000e+00 : f32
    %66 = vector.broadcast %cst_41 : f32 to vector<16x128xf32>
    %67 = arith.subf %66, %59 : vector<16x128xf32>
    %68 = arith.mulf %67, %65 : vector<16x128xf32>
    %69 = arith.mulf %59, %32 : vector<16x128xf32>
    %70 = arith.addf %68, %69 : vector<16x128xf32>
    %71 = vector.extract_strided_slice %39 {offsets = [0, 0], sizes = [16, 128], strides = [1, 1]} : vector<16x384xf32> to vector<16x128xf32>
    %72 = vector.extract_strided_slice %43 {offsets = [0, 0], sizes = [16, 128], strides = [1, 1]} : vector<16x384xf32> to vector<16x128xf32>
    %73 = arith.addf %71, %72 : vector<16x128xf32>
    %74 = arith.negf %73 : vector<16x128xf32>
    %75 = math.exp %74 : vector<16x128xf32>
    %cst_42 = arith.constant 1.000000e+00 : f32
    %76 = vector.broadcast %cst_42 : f32 to vector<16x128xf32>
    %77 = arith.addf %76, %75 : vector<16x128xf32>
    %78 = arith.divf %76, %77 : vector<16x128xf32>
    %79 = vector.extract_strided_slice %39 {offsets = [0, 128], sizes = [16, 128], strides = [1, 1]} : vector<16x384xf32> to vector<16x128xf32>
    %80 = vector.extract_strided_slice %43 {offsets = [0, 128], sizes = [16, 128], strides = [1, 1]} : vector<16x384xf32> to vector<16x128xf32>
    %81 = arith.addf %79, %80 : vector<16x128xf32>
    %82 = arith.negf %81 : vector<16x128xf32>
    %83 = math.exp %82 : vector<16x128xf32>
    %cst_43 = arith.constant 1.000000e+00 : f32
    %84 = vector.broadcast %cst_43 : f32 to vector<16x128xf32>
    %85 = arith.addf %84, %83 : vector<16x128xf32>
    %86 = arith.divf %84, %85 : vector<16x128xf32>
    %87 = vector.extract_strided_slice %39 {offsets = [0, 256], sizes = [16, 128], strides = [1, 1]} : vector<16x384xf32> to vector<16x128xf32>
    %88 = vector.extract_strided_slice %43 {offsets = [0, 256], sizes = [16, 128], strides = [1, 1]} : vector<16x384xf32> to vector<16x128xf32>
    %89 = arith.addf %88, %31 : vector<16x128xf32>
    %90 = arith.mulf %78, %89 : vector<16x128xf32>
    %91 = arith.addf %87, %90 : vector<16x128xf32>
    %92 = math.tanh %91 : vector<16x128xf32>
    %cst_44 = arith.constant 1.000000e+00 : f32
    %93 = vector.broadcast %cst_44 : f32 to vector<16x128xf32>
    %94 = arith.subf %93, %86 : vector<16x128xf32>
    %95 = arith.mulf %94, %92 : vector<16x128xf32>
    %96 = arith.mulf %86, %32 : vector<16x128xf32>
    %97 = arith.addf %95, %96 : vector<16x128xf32>
    %98 = arith.index_cast %c0_i32 : i32 to index
    %c0_45 = arith.constant 0 : index
    %c0_46 = arith.constant 0 : index
    %99 = vector.load %arg15[%98, %c0_45, %c0_46] : memref<12x16x256xf32, #tpu.memory_space<vmem>>, vector<1x16x128xf32>
    %100 = vector.shape_cast %99 : vector<1x16x128xf32> to vector<16x128xf32>
    %101 = vector.shape_cast %70 : vector<16x128xf32> to vector<1x16x128xf32>
    tpu.vector_store %arg15[%98, %c0_45, %c0_46], %101 {strides = array<i32>} : memref<12x16x256xf32, #tpu.memory_space<vmem>>, vector<1x16x128xf32>,
    %c11_i32_47 = arith.constant 11 : i32
    %102 = arith.subi %c11_i32_47, %c0_i32 : i32
    %103 = arith.index_cast %102 : i32 to index
    %c0_48 = arith.constant 0 : index
    %c128 = arith.constant 128 : index
    %104 = vector.load %arg15[%103, %c0_48, %c128] : memref<12x16x256xf32, #tpu.memory_space<vmem>>, vector<1x16x128xf32>
    %105 = vector.shape_cast %104 : vector<1x16x128xf32> to vector<16x128xf32>
    %106 = vector.shape_cast %97 : vector<16x128xf32> to vector<1x16x128xf32>
    tpu.vector_store %arg15[%103, %c0_48, %c128], %106 {strides = array<i32>} : memref<12x16x256xf32, #tpu.memory_space<vmem>>, vector<1x16x128xf32>,
    %c1_i32 = arith.constant 1 : i32
    %107 = arith.index_cast %c1_i32 : i32 to index
    %c0_49 = arith.constant 0 : index
    %c0_50 = arith.constant 0 : index
    %108 = vector.load %arg13[%107, %c0_49, %c0_50] : memref<12x16x384xf32, #tpu.memory_space<vmem>>, vector<1x16x384xf32>
    %109 = vector.shape_cast %108 : vector<1x16x384xf32> to vector<16x384xf32>
    %c11_i32_51 = arith.constant 11 : i32
    %110 = arith.subi %c11_i32_51, %c1_i32 : i32
    %111 = arith.index_cast %110 : i32 to index
    %c0_52 = arith.constant 0 : index
    %c0_53 = arith.constant 0 : index
    %112 = vector.load %arg14[%111, %c0_52, %c0_53] : memref<12x16x384xf32, #tpu.memory_space<vmem>>, vector<1x16x384xf32>
    %113 = vector.shape_cast %112 : vector<1x16x384xf32> to vector<16x384xf32>
    %114 = arith.truncf %70 : vector<16x128xf32> to vector<16x128xbf16>
    %cst_54 = arith.constant dense<0.000000e+00> : vector<16x384xf32>
    %115 = tpu.matmul %114, %21, %cst_54 {dimension_numbers = #tpu.dot_dimension_numbers<[1], [0], [0], [1], [0, 0, 1, 1], [], []>} : vector<16x128xbf16>, vector<128x384xbf16>, vector<16x384xf32> -> vector<16x384xf32>
    %116 = arith.truncf %97 : vector<16x128xf32> to vector<16x128xbf16>
    %cst_55 = arith.constant dense<0.000000e+00> : vector<16x384xf32>
    %117 = tpu.matmul %116, %23, %cst_55 {dimension_numbers = #tpu.dot_dimension_numbers<[1], [0], [0], [1], [0, 0, 1, 1], [], []>} : vector<16x128xbf16>, vector<128x384xbf16>, vector<16x384xf32> -> vector<16x384xf32>
    %118 = vector.extract_strided_slice %109 {offsets = [0, 0], sizes = [16, 128], strides = [1, 1]} : vector<16x384xf32> to vector<16x128xf32>
    %119 = vector.extract_strided_slice %115 {offsets = [0, 0], sizes = [16, 128], strides = [1, 1]} : vector<16x384xf32> to vector<16x128xf32>
    %120 = arith.addf %118, %119 : vector<16x128xf32>
    %121 = arith.negf %120 : vector<16x128xf32>
    %122 = math.exp %121 : vector<16x128xf32>
    %cst_56 = arith.constant 1.000000e+00 : f32
    %123 = vector.broadcast %cst_56 : f32 to vector<16x128xf32>
    %124 = arith.addf %123, %122 : vector<16x128xf32>
    %125 = arith.divf %123, %124 : vector<16x128xf32>
    %126 = vector.extract_strided_slice %109 {offsets = [0, 128], sizes = [16, 128], strides = [1, 1]} : vector<16x384xf32> to vector<16x128xf32>
    %127 = vector.extract_strided_slice %115 {offsets = [0, 128], sizes = [16, 128], strides = [1, 1]} : vector<16x384xf32> to vector<16x128xf32>
    %128 = arith.addf %126, %127 : vector<16x128xf32>
    %129 = arith.negf %128 : vector<16x128xf32>
    %130 = math.exp %129 : vector<16x128xf32>
    %cst_57 = arith.constant 1.000000e+00 : f32
    %131 = vector.broadcast %cst_57 : f32 to vector<16x128xf32>
    %132 = arith.addf %131, %130 : vector<16x128xf32>
    %133 = arith.divf %131, %132 : vector<16x128xf32>
    %134 = vector.extract_strided_slice %109 {offsets = [0, 256], sizes = [16, 128], strides = [1, 1]} : vector<16x384xf32> to vector<16x128xf32>
    %135 = vector.extract_strided_slice %115 {offsets = [0, 256], sizes = [16, 128], strides = [1, 1]} : vector<16x384xf32> to vector<16x128xf32>
    %136 = arith.addf %135, %27 : vector<16x128xf32>
    %137 = arith.mulf %125, %136 : vector<16x128xf32>
    %138 = arith.addf %134, %137 : vector<16x128xf32>
    %139 = math.tanh %138 : vector<16x128xf32>
    %cst_58 = arith.constant 1.000000e+00 : f32
    %140 = vector.broadcast %cst_58 : f32 to vector<16x128xf32>
    %141 = arith.subf %140, %133 : vector<16x128xf32>
    %142 = arith.mulf %141, %139 : vector<16x128xf32>
    %143 = arith.mulf %133, %70 : vector<16x128xf32>
    %144 = arith.addf %142, %143 : vector<16x128xf32>
    %145 = vector.extract_strided_slice %113 {offsets = [0, 0], sizes = [16, 128], strides = [1, 1]} : vector<16x384xf32> to vector<16x128xf32>
    %146 = vector.extract_strided_slice %117 {offsets = [0, 0], sizes = [16, 128], strides = [1, 1]} : vector<16x384xf32> to vector<16x128xf32>
    %147 = arith.addf %145, %146 : vector<16x128xf32>
    %148 = arith.negf %147 : vector<16x128xf32>
    %149 = math.exp %148 : vector<16x128xf32>
    %cst_59 = arith.constant 1.000000e+00 : f32
    %150 = vector.broadcast %cst_59 : f32 to vector<16x128xf32>
    %151 = arith.addf %150, %149 : vector<16x128xf32>
    %152 = arith.divf %150, %151 : vector<16x128xf32>
    %153 = vector.extract_strided_slice %113 {offsets = [0, 128], sizes = [16, 128], strides = [1, 1]} : vector<16x384xf32> to vector<16x128xf32>
    %154 = vector.extract_strided_slice %117 {offsets = [0, 128], sizes = [16, 128], strides = [1, 1]} : vector<16x384xf32> to vector<16x128xf32>
    %155 = arith.addf %153, %154 : vector<16x128xf32>
    %156 = arith.negf %155 : vector<16x128xf32>
    %157 = math.exp %156 : vector<16x128xf32>
    %cst_60 = arith.constant 1.000000e+00 : f32
    %158 = vector.broadcast %cst_60 : f32 to vector<16x128xf32>
    %159 = arith.addf %158, %157 : vector<16x128xf32>
    %160 = arith.divf %158, %159 : vector<16x128xf32>
    %161 = vector.extract_strided_slice %113 {offsets = [0, 256], sizes = [16, 128], strides = [1, 1]} : vector<16x384xf32> to vector<16x128xf32>
    %162 = vector.extract_strided_slice %117 {offsets = [0, 256], sizes = [16, 128], strides = [1, 1]} : vector<16x384xf32> to vector<16x128xf32>
    %163 = arith.addf %162, %31 : vector<16x128xf32>
    %164 = arith.mulf %152, %163 : vector<16x128xf32>
    %165 = arith.addf %161, %164 : vector<16x128xf32>
    %166 = math.tanh %165 : vector<16x128xf32>
    %cst_61 = arith.constant 1.000000e+00 : f32
    %167 = vector.broadcast %cst_61 : f32 to vector<16x128xf32>
    %168 = arith.subf %167, %160 : vector<16x128xf32>
    %169 = arith.mulf %168, %166 : vector<16x128xf32>
    %170 = arith.mulf %160, %97 : vector<16x128xf32>
    %171 = arith.addf %169, %170 : vector<16x128xf32>
    %172 = arith.index_cast %c1_i32 : i32 to index
    %c0_62 = arith.constant 0 : index
    %c0_63 = arith.constant 0 : index
    %173 = vector.load %arg15[%172, %c0_62, %c0_63] : memref<12x16x256xf32, #tpu.memory_space<vmem>>, vector<1x16x128xf32>
    %174 = vector.shape_cast %173 : vector<1x16x128xf32> to vector<16x128xf32>
    %175 = vector.shape_cast %144 : vector<16x128xf32> to vector<1x16x128xf32>
    tpu.vector_store %arg15[%172, %c0_62, %c0_63], %175 {strides = array<i32>} : memref<12x16x256xf32, #tpu.memory_space<vmem>>, vector<1x16x128xf32>,
    %c11_i32_64 = arith.constant 11 : i32
    %176 = arith.subi %c11_i32_64, %c1_i32 : i32
    %177 = arith.index_cast %176 : i32 to index
    %c0_65 = arith.constant 0 : index
    %c128_66 = arith.constant 128 : index
    %178 = vector.load %arg15[%177, %c0_65, %c128_66] : memref<12x16x256xf32, #tpu.memory_space<vmem>>, vector<1x16x128xf32>
    %179 = vector.shape_cast %178 : vector<1x16x128xf32> to vector<16x128xf32>
    %180 = vector.shape_cast %171 : vector<16x128xf32> to vector<1x16x128xf32>
    tpu.vector_store %arg15[%177, %c0_65, %c128_66], %180 {strides = array<i32>} : memref<12x16x256xf32, #tpu.memory_space<vmem>>, vector<1x16x128xf32>,
    %c2_i32 = arith.constant 2 : i32
    %181 = arith.index_cast %c2_i32 : i32 to index
    %c0_67 = arith.constant 0 : index
    %c0_68 = arith.constant 0 : index
    %182 = vector.load %arg13[%181, %c0_67, %c0_68] : memref<12x16x384xf32, #tpu.memory_space<vmem>>, vector<1x16x384xf32>
    %183 = vector.shape_cast %182 : vector<1x16x384xf32> to vector<16x384xf32>
    %c11_i32_69 = arith.constant 11 : i32
    %184 = arith.subi %c11_i32_69, %c2_i32 : i32
    %185 = arith.index_cast %184 : i32 to index
    %c0_70 = arith.constant 0 : index
    %c0_71 = arith.constant 0 : index
    %186 = vector.load %arg14[%185, %c0_70, %c0_71] : memref<12x16x384xf32, #tpu.memory_space<vmem>>, vector<1x16x384xf32>
    %187 = vector.shape_cast %186 : vector<1x16x384xf32> to vector<16x384xf32>
    %188 = arith.truncf %144 : vector<16x128xf32> to vector<16x128xbf16>
    %cst_72 = arith.constant dense<0.000000e+00> : vector<16x384xf32>
    %189 = tpu.matmul %188, %21, %cst_72 {dimension_numbers = #tpu.dot_dimension_numbers<[1], [0], [0], [1], [0, 0, 1, 1], [], []>} : vector<16x128xbf16>, vector<128x384xbf16>, vector<16x384xf32> -> vector<16x384xf32>
    %190 = arith.truncf %171 : vector<16x128xf32> to vector<16x128xbf16>
    %cst_73 = arith.constant dense<0.000000e+00> : vector<16x384xf32>
    %191 = tpu.matmul %190, %23, %cst_73 {dimension_numbers = #tpu.dot_dimension_numbers<[1], [0], [0], [1], [0, 0, 1, 1], [], []>} : vector<16x128xbf16>, vector<128x384xbf16>, vector<16x384xf32> -> vector<16x384xf32>
    %192 = vector.extract_strided_slice %183 {offsets = [0, 0], sizes = [16, 128], strides = [1, 1]} : vector<16x384xf32> to vector<16x128xf32>
    %193 = vector.extract_strided_slice %189 {offsets = [0, 0], sizes = [16, 128], strides = [1, 1]} : vector<16x384xf32> to vector<16x128xf32>
    %194 = arith.addf %192, %193 : vector<16x128xf32>
    %195 = arith.negf %194 : vector<16x128xf32>
    %196 = math.exp %195 : vector<16x128xf32>
    %cst_74 = arith.constant 1.000000e+00 : f32
    %197 = vector.broadcast %cst_74 : f32 to vector<16x128xf32>
    %198 = arith.addf %197, %196 : vector<16x128xf32>
    %199 = arith.divf %197, %198 : vector<16x128xf32>
    %200 = vector.extract_strided_slice %183 {offsets = [0, 128], sizes = [16, 128], strides = [1, 1]} : vector<16x384xf32> to vector<16x128xf32>
    %201 = vector.extract_strided_slice %189 {offsets = [0, 128], sizes = [16, 128], strides = [1, 1]} : vector<16x384xf32> to vector<16x128xf32>
    %202 = arith.addf %200, %201 : vector<16x128xf32>
    %203 = arith.negf %202 : vector<16x128xf32>
    %204 = math.exp %203 : vector<16x128xf32>
    %cst_75 = arith.constant 1.000000e+00 : f32
    %205 = vector.broadcast %cst_75 : f32 to vector<16x128xf32>
    %206 = arith.addf %205, %204 : vector<16x128xf32>
    %207 = arith.divf %205, %206 : vector<16x128xf32>
    %208 = vector.extract_strided_slice %183 {offsets = [0, 256], sizes = [16, 128], strides = [1, 1]} : vector<16x384xf32> to vector<16x128xf32>
    %209 = vector.extract_strided_slice %189 {offsets = [0, 256], sizes = [16, 128], strides = [1, 1]} : vector<16x384xf32> to vector<16x128xf32>
    %210 = arith.addf %209, %27 : vector<16x128xf32>
    %211 = arith.mulf %199, %210 : vector<16x128xf32>
    %212 = arith.addf %208, %211 : vector<16x128xf32>
    %213 = math.tanh %212 : vector<16x128xf32>
    %cst_76 = arith.constant 1.000000e+00 : f32
    %214 = vector.broadcast %cst_76 : f32 to vector<16x128xf32>
    %215 = arith.subf %214, %207 : vector<16x128xf32>
    %216 = arith.mulf %215, %213 : vector<16x128xf32>
    %217 = arith.mulf %207, %144 : vector<16x128xf32>
    %218 = arith.addf %216, %217 : vector<16x128xf32>
    %219 = vector.extract_strided_slice %187 {offsets = [0, 0], sizes = [16, 128], strides = [1, 1]} : vector<16x384xf32> to vector<16x128xf32>
    %220 = vector.extract_strided_slice %191 {offsets = [0, 0], sizes = [16, 128], strides = [1, 1]} : vector<16x384xf32> to vector<16x128xf32>
    %221 = arith.addf %219, %220 : vector<16x128xf32>
    %222 = arith.negf %221 : vector<16x128xf32>
    %223 = math.exp %222 : vector<16x128xf32>
    %cst_77 = arith.constant 1.000000e+00 : f32
    %224 = vector.broadcast %cst_77 : f32 to vector<16x128xf32>
    %225 = arith.addf %224, %223 : vector<16x128xf32>
    %226 = arith.divf %224, %225 : vector<16x128xf32>
    %227 = vector.extract_strided_slice %187 {offsets = [0, 128], sizes = [16, 128], strides = [1, 1]} : vector<16x384xf32> to vector<16x128xf32>
    %228 = vector.extract_strided_slice %191 {offsets = [0, 128], sizes = [16, 128], strides = [1, 1]} : vector<16x384xf32> to vector<16x128xf32>
    %229 = arith.addf %227, %228 : vector<16x128xf32>
    %230 = arith.negf %229 : vector<16x128xf32>
    %231 = math.exp %230 : vector<16x128xf32>
    %cst_78 = arith.constant 1.000000e+00 : f32
    %232 = vector.broadcast %cst_78 : f32 to vector<16x128xf32>
    %233 = arith.addf %232, %231 : vector<16x128xf32>
    %234 = arith.divf %232, %233 : vector<16x128xf32>
    %235 = vector.extract_strided_slice %187 {offsets = [0, 256], sizes = [16, 128], strides = [1, 1]} : vector<16x384xf32> to vector<16x128xf32>
    %236 = vector.extract_strided_slice %191 {offsets = [0, 256], sizes = [16, 128], strides = [1, 1]} : vector<16x384xf32> to vector<16x128xf32>
    %237 = arith.addf %236, %31 : vector<16x128xf32>
    %238 = arith.mulf %226, %237 : vector<16x128xf32>
    %239 = arith.addf %235, %238 : vector<16x128xf32>
    %240 = math.tanh %239 : vector<16x128xf32>
    %cst_79 = arith.constant 1.000000e+00 : f32
    %241 = vector.broadcast %cst_79 : f32 to vector<16x128xf32>
    %242 = arith.subf %241, %234 : vector<16x128xf32>
    %243 = arith.mulf %242, %240 : vector<16x128xf32>
    %244 = arith.mulf %234, %171 : vector<16x128xf32>
    %245 = arith.addf %243, %244 : vector<16x128xf32>
    %246 = arith.index_cast %c2_i32 : i32 to index
    %c0_80 = arith.constant 0 : index
    %c0_81 = arith.constant 0 : index
    %247 = vector.load %arg15[%246, %c0_80, %c0_81] : memref<12x16x256xf32, #tpu.memory_space<vmem>>, vector<1x16x128xf32>
    %248 = vector.shape_cast %247 : vector<1x16x128xf32> to vector<16x128xf32>
    %249 = vector.shape_cast %218 : vector<16x128xf32> to vector<1x16x128xf32>
    tpu.vector_store %arg15[%246, %c0_80, %c0_81], %249 {strides = array<i32>} : memref<12x16x256xf32, #tpu.memory_space<vmem>>, vector<1x16x128xf32>,
    %c11_i32_82 = arith.constant 11 : i32
    %250 = arith.subi %c11_i32_82, %c2_i32 : i32
    %251 = arith.index_cast %250 : i32 to index
    %c0_83 = arith.constant 0 : index
    %c128_84 = arith.constant 128 : index
    %252 = vector.load %arg15[%251, %c0_83, %c128_84] : memref<12x16x256xf32, #tpu.memory_space<vmem>>, vector<1x16x128xf32>
    %253 = vector.shape_cast %252 : vector<1x16x128xf32> to vector<16x128xf32>
    %254 = vector.shape_cast %245 : vector<16x128xf32> to vector<1x16x128xf32>
    tpu.vector_store %arg15[%251, %c0_83, %c128_84], %254 {strides = array<i32>} : memref<12x16x256xf32, #tpu.memory_space<vmem>>, vector<1x16x128xf32>,
    %c3_i32 = arith.constant 3 : i32
    %255 = arith.index_cast %c3_i32 : i32 to index
    %c0_85 = arith.constant 0 : index
    %c0_86 = arith.constant 0 : index
    %256 = vector.load %arg13[%255, %c0_85, %c0_86] : memref<12x16x384xf32, #tpu.memory_space<vmem>>, vector<1x16x384xf32>
    %257 = vector.shape_cast %256 : vector<1x16x384xf32> to vector<16x384xf32>
    %c11_i32_87 = arith.constant 11 : i32
    %258 = arith.subi %c11_i32_87, %c3_i32 : i32
    %259 = arith.index_cast %258 : i32 to index
    %c0_88 = arith.constant 0 : index
    %c0_89 = arith.constant 0 : index
    %260 = vector.load %arg14[%259, %c0_88, %c0_89] : memref<12x16x384xf32, #tpu.memory_space<vmem>>, vector<1x16x384xf32>
    %261 = vector.shape_cast %260 : vector<1x16x384xf32> to vector<16x384xf32>
    %262 = arith.truncf %218 : vector<16x128xf32> to vector<16x128xbf16>
    %cst_90 = arith.constant dense<0.000000e+00> : vector<16x384xf32>
    %263 = tpu.matmul %262, %21, %cst_90 {dimension_numbers = #tpu.dot_dimension_numbers<[1], [0], [0], [1], [0, 0, 1, 1], [], []>} : vector<16x128xbf16>, vector<128x384xbf16>, vector<16x384xf32> -> vector<16x384xf32>
    %264 = arith.truncf %245 : vector<16x128xf32> to vector<16x128xbf16>
    %cst_91 = arith.constant dense<0.000000e+00> : vector<16x384xf32>
    %265 = tpu.matmul %264, %23, %cst_91 {dimension_numbers = #tpu.dot_dimension_numbers<[1], [0], [0], [1], [0, 0, 1, 1], [], []>} : vector<16x128xbf16>, vector<128x384xbf16>, vector<16x384xf32> -> vector<16x384xf32>
    %266 = vector.extract_strided_slice %257 {offsets = [0, 0], sizes = [16, 128], strides = [1, 1]} : vector<16x384xf32> to vector<16x128xf32>
    %267 = vector.extract_strided_slice %263 {offsets = [0, 0], sizes = [16, 128], strides = [1, 1]} : vector<16x384xf32> to vector<16x128xf32>
    %268 = arith.addf %266, %267 : vector<16x128xf32>
    %269 = arith.negf %268 : vector<16x128xf32>
    %270 = math.exp %269 : vector<16x128xf32>
    %cst_92 = arith.constant 1.000000e+00 : f32
    %271 = vector.broadcast %cst_92 : f32 to vector<16x128xf32>
    %272 = arith.addf %271, %270 : vector<16x128xf32>
    %273 = arith.divf %271, %272 : vector<16x128xf32>
    %274 = vector.extract_strided_slice %257 {offsets = [0, 128], sizes = [16, 128], strides = [1, 1]} : vector<16x384xf32> to vector<16x128xf32>
    %275 = vector.extract_strided_slice %263 {offsets = [0, 128], sizes = [16, 128], strides = [1, 1]} : vector<16x384xf32> to vector<16x128xf32>
    %276 = arith.addf %274, %275 : vector<16x128xf32>
    %277 = arith.negf %276 : vector<16x128xf32>
    %278 = math.exp %277 : vector<16x128xf32>
    %cst_93 = arith.constant 1.000000e+00 : f32
    %279 = vector.broadcast %cst_93 : f32 to vector<16x128xf32>
    %280 = arith.addf %279, %278 : vector<16x128xf32>
    %281 = arith.divf %279, %280 : vector<16x128xf32>
    %282 = vector.extract_strided_slice %257 {offsets = [0, 256], sizes = [16, 128], strides = [1, 1]} : vector<16x384xf32> to vector<16x128xf32>
    %283 = vector.extract_strided_slice %263 {offsets = [0, 256], sizes = [16, 128], strides = [1, 1]} : vector<16x384xf32> to vector<16x128xf32>
    %284 = arith.addf %283, %27 : vector<16x128xf32>
    %285 = arith.mulf %273, %284 : vector<16x128xf32>
    %286 = arith.addf %282, %285 : vector<16x128xf32>
    %287 = math.tanh %286 : vector<16x128xf32>
    %cst_94 = arith.constant 1.000000e+00 : f32
    %288 = vector.broadcast %cst_94 : f32 to vector<16x128xf32>
    %289 = arith.subf %288, %281 : vector<16x128xf32>
    %290 = arith.mulf %289, %287 : vector<16x128xf32>
    %291 = arith.mulf %281, %218 : vector<16x128xf32>
    %292 = arith.addf %290, %291 : vector<16x128xf32>
    %293 = vector.extract_strided_slice %261 {offsets = [0, 0], sizes = [16, 128], strides = [1, 1]} : vector<16x384xf32> to vector<16x128xf32>
    %294 = vector.extract_strided_slice %265 {offsets = [0, 0], sizes = [16, 128], strides = [1, 1]} : vector<16x384xf32> to vector<16x128xf32>
    %295 = arith.addf %293, %294 : vector<16x128xf32>
    %296 = arith.negf %295 : vector<16x128xf32>
    %297 = math.exp %296 : vector<16x128xf32>
    %cst_95 = arith.constant 1.000000e+00 : f32
    %298 = vector.broadcast %cst_95 : f32 to vector<16x128xf32>
    %299 = arith.addf %298, %297 : vector<16x128xf32>
    %300 = arith.divf %298, %299 : vector<16x128xf32>
    %301 = vector.extract_strided_slice %261 {offsets = [0, 128], sizes = [16, 128], strides = [1, 1]} : vector<16x384xf32> to vector<16x128xf32>
    %302 = vector.extract_strided_slice %265 {offsets = [0, 128], sizes = [16, 128], strides = [1, 1]} : vector<16x384xf32> to vector<16x128xf32>
    %303 = arith.addf %301, %302 : vector<16x128xf32>
    %304 = arith.negf %303 : vector<16x128xf32>
    %305 = math.exp %304 : vector<16x128xf32>
    %cst_96 = arith.constant 1.000000e+00 : f32
    %306 = vector.broadcast %cst_96 : f32 to vector<16x128xf32>
    %307 = arith.addf %306, %305 : vector<16x128xf32>
    %308 = arith.divf %306, %307 : vector<16x128xf32>
    %309 = vector.extract_strided_slice %261 {offsets = [0, 256], sizes = [16, 128], strides = [1, 1]} : vector<16x384xf32> to vector<16x128xf32>
    %310 = vector.extract_strided_slice %265 {offsets = [0, 256], sizes = [16, 128], strides = [1, 1]} : vector<16x384xf32> to vector<16x128xf32>
    %311 = arith.addf %310, %31 : vector<16x128xf32>
    %312 = arith.mulf %300, %311 : vector<16x128xf32>
    %313 = arith.addf %309, %312 : vector<16x128xf32>
    %314 = math.tanh %313 : vector<16x128xf32>
    %cst_97 = arith.constant 1.000000e+00 : f32
    %315 = vector.broadcast %cst_97 : f32 to vector<16x128xf32>
    %316 = arith.subf %315, %308 : vector<16x128xf32>
    %317 = arith.mulf %316, %314 : vector<16x128xf32>
    %318 = arith.mulf %308, %245 : vector<16x128xf32>
    %319 = arith.addf %317, %318 : vector<16x128xf32>
    %320 = arith.index_cast %c3_i32 : i32 to index
    %c0_98 = arith.constant 0 : index
    %c0_99 = arith.constant 0 : index
    %321 = vector.load %arg15[%320, %c0_98, %c0_99] : memref<12x16x256xf32, #tpu.memory_space<vmem>>, vector<1x16x128xf32>
    %322 = vector.shape_cast %321 : vector<1x16x128xf32> to vector<16x128xf32>
    %323 = vector.shape_cast %292 : vector<16x128xf32> to vector<1x16x128xf32>
    tpu.vector_store %arg15[%320, %c0_98, %c0_99], %323 {strides = array<i32>} : memref<12x16x256xf32, #tpu.memory_space<vmem>>, vector<1x16x128xf32>,
    %c11_i32_100 = arith.constant 11 : i32
    %324 = arith.subi %c11_i32_100, %c3_i32 : i32
    %325 = arith.index_cast %324 : i32 to index
    %c0_101 = arith.constant 0 : index
    %c128_102 = arith.constant 128 : index
    %326 = vector.load %arg15[%325, %c0_101, %c128_102] : memref<12x16x256xf32, #tpu.memory_space<vmem>>, vector<1x16x128xf32>
    %327 = vector.shape_cast %326 : vector<1x16x128xf32> to vector<16x128xf32>
    %328 = vector.shape_cast %319 : vector<16x128xf32> to vector<1x16x128xf32>
    tpu.vector_store %arg15[%325, %c0_101, %c128_102], %328 {strides = array<i32>} : memref<12x16x256xf32, #tpu.memory_space<vmem>>, vector<1x16x128xf32>,
    %c4_i32 = arith.constant 4 : i32
    %329 = arith.index_cast %c4_i32 : i32 to index
    %c0_103 = arith.constant 0 : index
    %c0_104 = arith.constant 0 : index
    %330 = vector.load %arg13[%329, %c0_103, %c0_104] : memref<12x16x384xf32, #tpu.memory_space<vmem>>, vector<1x16x384xf32>
    %331 = vector.shape_cast %330 : vector<1x16x384xf32> to vector<16x384xf32>
    %c11_i32_105 = arith.constant 11 : i32
    %332 = arith.subi %c11_i32_105, %c4_i32 : i32
    %333 = arith.index_cast %332 : i32 to index
    %c0_106 = arith.constant 0 : index
    %c0_107 = arith.constant 0 : index
    %334 = vector.load %arg14[%333, %c0_106, %c0_107] : memref<12x16x384xf32, #tpu.memory_space<vmem>>, vector<1x16x384xf32>
    %335 = vector.shape_cast %334 : vector<1x16x384xf32> to vector<16x384xf32>
    %336 = arith.truncf %292 : vector<16x128xf32> to vector<16x128xbf16>
    %cst_108 = arith.constant dense<0.000000e+00> : vector<16x384xf32>
    %337 = tpu.matmul %336, %21, %cst_108 {dimension_numbers = #tpu.dot_dimension_numbers<[1], [0], [0], [1], [0, 0, 1, 1], [], []>} : vector<16x128xbf16>, vector<128x384xbf16>, vector<16x384xf32> -> vector<16x384xf32>
    %338 = arith.truncf %319 : vector<16x128xf32> to vector<16x128xbf16>
    %cst_109 = arith.constant dense<0.000000e+00> : vector<16x384xf32>
    %339 = tpu.matmul %338, %23, %cst_109 {dimension_numbers = #tpu.dot_dimension_numbers<[1], [0], [0], [1], [0, 0, 1, 1], [], []>} : vector<16x128xbf16>, vector<128x384xbf16>, vector<16x384xf32> -> vector<16x384xf32>
    %340 = vector.extract_strided_slice %331 {offsets = [0, 0], sizes = [16, 128], strides = [1, 1]} : vector<16x384xf32> to vector<16x128xf32>
    %341 = vector.extract_strided_slice %337 {offsets = [0, 0], sizes = [16, 128], strides = [1, 1]} : vector<16x384xf32> to vector<16x128xf32>
    %342 = arith.addf %340, %341 : vector<16x128xf32>
    %343 = arith.negf %342 : vector<16x128xf32>
    %344 = math.exp %343 : vector<16x128xf32>
    %cst_110 = arith.constant 1.000000e+00 : f32
    %345 = vector.broadcast %cst_110 : f32 to vector<16x128xf32>
    %346 = arith.addf %345, %344 : vector<16x128xf32>
    %347 = arith.divf %345, %346 : vector<16x128xf32>
    %348 = vector.extract_strided_slice %331 {offsets = [0, 128], sizes = [16, 128], strides = [1, 1]} : vector<16x384xf32> to vector<16x128xf32>
    %349 = vector.extract_strided_slice %337 {offsets = [0, 128], sizes = [16, 128], strides = [1, 1]} : vector<16x384xf32> to vector<16x128xf32>
    %350 = arith.addf %348, %349 : vector<16x128xf32>
    %351 = arith.negf %350 : vector<16x128xf32>
    %352 = math.exp %351 : vector<16x128xf32>
    %cst_111 = arith.constant 1.000000e+00 : f32
    %353 = vector.broadcast %cst_111 : f32 to vector<16x128xf32>
    %354 = arith.addf %353, %352 : vector<16x128xf32>
    %355 = arith.divf %353, %354 : vector<16x128xf32>
    %356 = vector.extract_strided_slice %331 {offsets = [0, 256], sizes = [16, 128], strides = [1, 1]} : vector<16x384xf32> to vector<16x128xf32>
    %357 = vector.extract_strided_slice %337 {offsets = [0, 256], sizes = [16, 128], strides = [1, 1]} : vector<16x384xf32> to vector<16x128xf32>
    %358 = arith.addf %357, %27 : vector<16x128xf32>
    %359 = arith.mulf %347, %358 : vector<16x128xf32>
    %360 = arith.addf %356, %359 : vector<16x128xf32>
    %361 = math.tanh %360 : vector<16x128xf32>
    %cst_112 = arith.constant 1.000000e+00 : f32
    %362 = vector.broadcast %cst_112 : f32 to vector<16x128xf32>
    %363 = arith.subf %362, %355 : vector<16x128xf32>
    %364 = arith.mulf %363, %361 : vector<16x128xf32>
    %365 = arith.mulf %355, %292 : vector<16x128xf32>
    %366 = arith.addf %364, %365 : vector<16x128xf32>
    %367 = vector.extract_strided_slice %335 {offsets = [0, 0], sizes = [16, 128], strides = [1, 1]} : vector<16x384xf32> to vector<16x128xf32>
    %368 = vector.extract_strided_slice %339 {offsets = [0, 0], sizes = [16, 128], strides = [1, 1]} : vector<16x384xf32> to vector<16x128xf32>
    %369 = arith.addf %367, %368 : vector<16x128xf32>
    %370 = arith.negf %369 : vector<16x128xf32>
    %371 = math.exp %370 : vector<16x128xf32>
    %cst_113 = arith.constant 1.000000e+00 : f32
    %372 = vector.broadcast %cst_113 : f32 to vector<16x128xf32>
    %373 = arith.addf %372, %371 : vector<16x128xf32>
    %374 = arith.divf %372, %373 : vector<16x128xf32>
    %375 = vector.extract_strided_slice %335 {offsets = [0, 128], sizes = [16, 128], strides = [1, 1]} : vector<16x384xf32> to vector<16x128xf32>
    %376 = vector.extract_strided_slice %339 {offsets = [0, 128], sizes = [16, 128], strides = [1, 1]} : vector<16x384xf32> to vector<16x128xf32>
    %377 = arith.addf %375, %376 : vector<16x128xf32>
    %378 = arith.negf %377 : vector<16x128xf32>
    %379 = math.exp %378 : vector<16x128xf32>
    %cst_114 = arith.constant 1.000000e+00 : f32
    %380 = vector.broadcast %cst_114 : f32 to vector<16x128xf32>
    %381 = arith.addf %380, %379 : vector<16x128xf32>
    %382 = arith.divf %380, %381 : vector<16x128xf32>
    %383 = vector.extract_strided_slice %335 {offsets = [0, 256], sizes = [16, 128], strides = [1, 1]} : vector<16x384xf32> to vector<16x128xf32>
    %384 = vector.extract_strided_slice %339 {offsets = [0, 256], sizes = [16, 128], strides = [1, 1]} : vector<16x384xf32> to vector<16x128xf32>
    %385 = arith.addf %384, %31 : vector<16x128xf32>
    %386 = arith.mulf %374, %385 : vector<16x128xf32>
    %387 = arith.addf %383, %386 : vector<16x128xf32>
    %388 = math.tanh %387 : vector<16x128xf32>
    %cst_115 = arith.constant 1.000000e+00 : f32
    %389 = vector.broadcast %cst_115 : f32 to vector<16x128xf32>
    %390 = arith.subf %389, %382 : vector<16x128xf32>
    %391 = arith.mulf %390, %388 : vector<16x128xf32>
    %392 = arith.mulf %382, %319 : vector<16x128xf32>
    %393 = arith.addf %391, %392 : vector<16x128xf32>
    %394 = arith.index_cast %c4_i32 : i32 to index
    %c0_116 = arith.constant 0 : index
    %c0_117 = arith.constant 0 : index
    %395 = vector.load %arg15[%394, %c0_116, %c0_117] : memref<12x16x256xf32, #tpu.memory_space<vmem>>, vector<1x16x128xf32>
    %396 = vector.shape_cast %395 : vector<1x16x128xf32> to vector<16x128xf32>
    %397 = vector.shape_cast %366 : vector<16x128xf32> to vector<1x16x128xf32>
    tpu.vector_store %arg15[%394, %c0_116, %c0_117], %397 {strides = array<i32>} : memref<12x16x256xf32, #tpu.memory_space<vmem>>, vector<1x16x128xf32>,
    %c11_i32_118 = arith.constant 11 : i32
    %398 = arith.subi %c11_i32_118, %c4_i32 : i32
    %399 = arith.index_cast %398 : i32 to index
    %c0_119 = arith.constant 0 : index
    %c128_120 = arith.constant 128 : index
    %400 = vector.load %arg15[%399, %c0_119, %c128_120] : memref<12x16x256xf32, #tpu.memory_space<vmem>>, vector<1x16x128xf32>
    %401 = vector.shape_cast %400 : vector<1x16x128xf32> to vector<16x128xf32>
    %402 = vector.shape_cast %393 : vector<16x128xf32> to vector<1x16x128xf32>
    tpu.vector_store %arg15[%399, %c0_119, %c128_120], %402 {strides = array<i32>} : memref<12x16x256xf32, #tpu.memory_space<vmem>>, vector<1x16x128xf32>,
    %c5_i32 = arith.constant 5 : i32
    %403 = arith.index_cast %c5_i32 : i32 to index
    %c0_121 = arith.constant 0 : index
    %c0_122 = arith.constant 0 : index
    %404 = vector.load %arg13[%403, %c0_121, %c0_122] : memref<12x16x384xf32, #tpu.memory_space<vmem>>, vector<1x16x384xf32>
    %405 = vector.shape_cast %404 : vector<1x16x384xf32> to vector<16x384xf32>
    %c11_i32_123 = arith.constant 11 : i32
    %406 = arith.subi %c11_i32_123, %c5_i32 : i32
    %407 = arith.index_cast %406 : i32 to index
    %c0_124 = arith.constant 0 : index
    %c0_125 = arith.constant 0 : index
    %408 = vector.load %arg14[%407, %c0_124, %c0_125] : memref<12x16x384xf32, #tpu.memory_space<vmem>>, vector<1x16x384xf32>
    %409 = vector.shape_cast %408 : vector<1x16x384xf32> to vector<16x384xf32>
    %410 = arith.truncf %366 : vector<16x128xf32> to vector<16x128xbf16>
    %cst_126 = arith.constant dense<0.000000e+00> : vector<16x384xf32>
    %411 = tpu.matmul %410, %21, %cst_126 {dimension_numbers = #tpu.dot_dimension_numbers<[1], [0], [0], [1], [0, 0, 1, 1], [], []>} : vector<16x128xbf16>, vector<128x384xbf16>, vector<16x384xf32> -> vector<16x384xf32>
    %412 = arith.truncf %393 : vector<16x128xf32> to vector<16x128xbf16>
    %cst_127 = arith.constant dense<0.000000e+00> : vector<16x384xf32>
    %413 = tpu.matmul %412, %23, %cst_127 {dimension_numbers = #tpu.dot_dimension_numbers<[1], [0], [0], [1], [0, 0, 1, 1], [], []>} : vector<16x128xbf16>, vector<128x384xbf16>, vector<16x384xf32> -> vector<16x384xf32>
    %414 = vector.extract_strided_slice %405 {offsets = [0, 0], sizes = [16, 128], strides = [1, 1]} : vector<16x384xf32> to vector<16x128xf32>
    %415 = vector.extract_strided_slice %411 {offsets = [0, 0], sizes = [16, 128], strides = [1, 1]} : vector<16x384xf32> to vector<16x128xf32>
    %416 = arith.addf %414, %415 : vector<16x128xf32>
    %417 = arith.negf %416 : vector<16x128xf32>
    %418 = math.exp %417 : vector<16x128xf32>
    %cst_128 = arith.constant 1.000000e+00 : f32
    %419 = vector.broadcast %cst_128 : f32 to vector<16x128xf32>
    %420 = arith.addf %419, %418 : vector<16x128xf32>
    %421 = arith.divf %419, %420 : vector<16x128xf32>
    %422 = vector.extract_strided_slice %405 {offsets = [0, 128], sizes = [16, 128], strides = [1, 1]} : vector<16x384xf32> to vector<16x128xf32>
    %423 = vector.extract_strided_slice %411 {offsets = [0, 128], sizes = [16, 128], strides = [1, 1]} : vector<16x384xf32> to vector<16x128xf32>
    %424 = arith.addf %422, %423 : vector<16x128xf32>
    %425 = arith.negf %424 : vector<16x128xf32>
    %426 = math.exp %425 : vector<16x128xf32>
    %cst_129 = arith.constant 1.000000e+00 : f32
    %427 = vector.broadcast %cst_129 : f32 to vector<16x128xf32>
    %428 = arith.addf %427, %426 : vector<16x128xf32>
    %429 = arith.divf %427, %428 : vector<16x128xf32>
    %430 = vector.extract_strided_slice %405 {offsets = [0, 256], sizes = [16, 128], strides = [1, 1]} : vector<16x384xf32> to vector<16x128xf32>
    %431 = vector.extract_strided_slice %411 {offsets = [0, 256], sizes = [16, 128], strides = [1, 1]} : vector<16x384xf32> to vector<16x128xf32>
    %432 = arith.addf %431, %27 : vector<16x128xf32>
    %433 = arith.mulf %421, %432 : vector<16x128xf32>
    %434 = arith.addf %430, %433 : vector<16x128xf32>
    %435 = math.tanh %434 : vector<16x128xf32>
    %cst_130 = arith.constant 1.000000e+00 : f32
    %436 = vector.broadcast %cst_130 : f32 to vector<16x128xf32>
    %437 = arith.subf %436, %429 : vector<16x128xf32>
    %438 = arith.mulf %437, %435 : vector<16x128xf32>
    %439 = arith.mulf %429, %366 : vector<16x128xf32>
    %440 = arith.addf %438, %439 : vector<16x128xf32>
    %441 = vector.extract_strided_slice %409 {offsets = [0, 0], sizes = [16, 128], strides = [1, 1]} : vector<16x384xf32> to vector<16x128xf32>
    %442 = vector.extract_strided_slice %413 {offsets = [0, 0], sizes = [16, 128], strides = [1, 1]} : vector<16x384xf32> to vector<16x128xf32>
    %443 = arith.addf %441, %442 : vector<16x128xf32>
    %444 = arith.negf %443 : vector<16x128xf32>
    %445 = math.exp %444 : vector<16x128xf32>
    %cst_131 = arith.constant 1.000000e+00 : f32
    %446 = vector.broadcast %cst_131 : f32 to vector<16x128xf32>
    %447 = arith.addf %446, %445 : vector<16x128xf32>
    %448 = arith.divf %446, %447 : vector<16x128xf32>
    %449 = vector.extract_strided_slice %409 {offsets = [0, 128], sizes = [16, 128], strides = [1, 1]} : vector<16x384xf32> to vector<16x128xf32>
    %450 = vector.extract_strided_slice %413 {offsets = [0, 128], sizes = [16, 128], strides = [1, 1]} : vector<16x384xf32> to vector<16x128xf32>
    %451 = arith.addf %449, %450 : vector<16x128xf32>
    %452 = arith.negf %451 : vector<16x128xf32>
    %453 = math.exp %452 : vector<16x128xf32>
    %cst_132 = arith.constant 1.000000e+00 : f32
    %454 = vector.broadcast %cst_132 : f32 to vector<16x128xf32>
    %455 = arith.addf %454, %453 : vector<16x128xf32>
    %456 = arith.divf %454, %455 : vector<16x128xf32>
    %457 = vector.extract_strided_slice %409 {offsets = [0, 256], sizes = [16, 128], strides = [1, 1]} : vector<16x384xf32> to vector<16x128xf32>
    %458 = vector.extract_strided_slice %413 {offsets = [0, 256], sizes = [16, 128], strides = [1, 1]} : vector<16x384xf32> to vector<16x128xf32>
    %459 = arith.addf %458, %31 : vector<16x128xf32>
    %460 = arith.mulf %448, %459 : vector<16x128xf32>
    %461 = arith.addf %457, %460 : vector<16x128xf32>
    %462 = math.tanh %461 : vector<16x128xf32>
    %cst_133 = arith.constant 1.000000e+00 : f32
    %463 = vector.broadcast %cst_133 : f32 to vector<16x128xf32>
    %464 = arith.subf %463, %456 : vector<16x128xf32>
    %465 = arith.mulf %464, %462 : vector<16x128xf32>
    %466 = arith.mulf %456, %393 : vector<16x128xf32>
    %467 = arith.addf %465, %466 : vector<16x128xf32>
    %468 = arith.index_cast %c5_i32 : i32 to index
    %c0_134 = arith.constant 0 : index
    %c0_135 = arith.constant 0 : index
    %469 = vector.load %arg15[%468, %c0_134, %c0_135] : memref<12x16x256xf32, #tpu.memory_space<vmem>>, vector<1x16x128xf32>
    %470 = vector.shape_cast %469 : vector<1x16x128xf32> to vector<16x128xf32>
    %471 = vector.shape_cast %440 : vector<16x128xf32> to vector<1x16x128xf32>
    tpu.vector_store %arg15[%468, %c0_134, %c0_135], %471 {strides = array<i32>} : memref<12x16x256xf32, #tpu.memory_space<vmem>>, vector<1x16x128xf32>,
    %c11_i32_136 = arith.constant 11 : i32
    %472 = arith.subi %c11_i32_136, %c5_i32 : i32
    %473 = arith.index_cast %472 : i32 to index
    %c0_137 = arith.constant 0 : index
    %c128_138 = arith.constant 128 : index
    %474 = vector.load %arg15[%473, %c0_137, %c128_138] : memref<12x16x256xf32, #tpu.memory_space<vmem>>, vector<1x16x128xf32>
    %475 = vector.shape_cast %474 : vector<1x16x128xf32> to vector<16x128xf32>
    %476 = vector.shape_cast %467 : vector<16x128xf32> to vector<1x16x128xf32>
    tpu.vector_store %arg15[%473, %c0_137, %c128_138], %476 {strides = array<i32>} : memref<12x16x256xf32, #tpu.memory_space<vmem>>, vector<1x16x128xf32>,
    %c6_i32 = arith.constant 6 : i32
    %477 = arith.index_cast %c6_i32 : i32 to index
    %c0_139 = arith.constant 0 : index
    %c0_140 = arith.constant 0 : index
    %478 = vector.load %arg13[%477, %c0_139, %c0_140] : memref<12x16x384xf32, #tpu.memory_space<vmem>>, vector<1x16x384xf32>
    %479 = vector.shape_cast %478 : vector<1x16x384xf32> to vector<16x384xf32>
    %c11_i32_141 = arith.constant 11 : i32
    %480 = arith.subi %c11_i32_141, %c6_i32 : i32
    %481 = arith.index_cast %480 : i32 to index
    %c0_142 = arith.constant 0 : index
    %c0_143 = arith.constant 0 : index
    %482 = vector.load %arg14[%481, %c0_142, %c0_143] : memref<12x16x384xf32, #tpu.memory_space<vmem>>, vector<1x16x384xf32>
    %483 = vector.shape_cast %482 : vector<1x16x384xf32> to vector<16x384xf32>
    %484 = arith.truncf %440 : vector<16x128xf32> to vector<16x128xbf16>
    %cst_144 = arith.constant dense<0.000000e+00> : vector<16x384xf32>
    %485 = tpu.matmul %484, %21, %cst_144 {dimension_numbers = #tpu.dot_dimension_numbers<[1], [0], [0], [1], [0, 0, 1, 1], [], []>} : vector<16x128xbf16>, vector<128x384xbf16>, vector<16x384xf32> -> vector<16x384xf32>
    %486 = arith.truncf %467 : vector<16x128xf32> to vector<16x128xbf16>
    %cst_145 = arith.constant dense<0.000000e+00> : vector<16x384xf32>
    %487 = tpu.matmul %486, %23, %cst_145 {dimension_numbers = #tpu.dot_dimension_numbers<[1], [0], [0], [1], [0, 0, 1, 1], [], []>} : vector<16x128xbf16>, vector<128x384xbf16>, vector<16x384xf32> -> vector<16x384xf32>
    %488 = vector.extract_strided_slice %479 {offsets = [0, 0], sizes = [16, 128], strides = [1, 1]} : vector<16x384xf32> to vector<16x128xf32>
    %489 = vector.extract_strided_slice %485 {offsets = [0, 0], sizes = [16, 128], strides = [1, 1]} : vector<16x384xf32> to vector<16x128xf32>
    %490 = arith.addf %488, %489 : vector<16x128xf32>
    %491 = arith.negf %490 : vector<16x128xf32>
    %492 = math.exp %491 : vector<16x128xf32>
    %cst_146 = arith.constant 1.000000e+00 : f32
    %493 = vector.broadcast %cst_146 : f32 to vector<16x128xf32>
    %494 = arith.addf %493, %492 : vector<16x128xf32>
    %495 = arith.divf %493, %494 : vector<16x128xf32>
    %496 = vector.extract_strided_slice %479 {offsets = [0, 128], sizes = [16, 128], strides = [1, 1]} : vector<16x384xf32> to vector<16x128xf32>
    %497 = vector.extract_strided_slice %485 {offsets = [0, 128], sizes = [16, 128], strides = [1, 1]} : vector<16x384xf32> to vector<16x128xf32>
    %498 = arith.addf %496, %497 : vector<16x128xf32>
    %499 = arith.negf %498 : vector<16x128xf32>
    %500 = math.exp %499 : vector<16x128xf32>
    %cst_147 = arith.constant 1.000000e+00 : f32
    %501 = vector.broadcast %cst_147 : f32 to vector<16x128xf32>
    %502 = arith.addf %501, %500 : vector<16x128xf32>
    %503 = arith.divf %501, %502 : vector<16x128xf32>
    %504 = vector.extract_strided_slice %479 {offsets = [0, 256], sizes = [16, 128], strides = [1, 1]} : vector<16x384xf32> to vector<16x128xf32>
    %505 = vector.extract_strided_slice %485 {offsets = [0, 256], sizes = [16, 128], strides = [1, 1]} : vector<16x384xf32> to vector<16x128xf32>
    %506 = arith.addf %505, %27 : vector<16x128xf32>
    %507 = arith.mulf %495, %506 : vector<16x128xf32>
    %508 = arith.addf %504, %507 : vector<16x128xf32>
    %509 = math.tanh %508 : vector<16x128xf32>
    %cst_148 = arith.constant 1.000000e+00 : f32
    %510 = vector.broadcast %cst_148 : f32 to vector<16x128xf32>
    %511 = arith.subf %510, %503 : vector<16x128xf32>
    %512 = arith.mulf %511, %509 : vector<16x128xf32>
    %513 = arith.mulf %503, %440 : vector<16x128xf32>
    %514 = arith.addf %512, %513 : vector<16x128xf32>
    %515 = vector.extract_strided_slice %483 {offsets = [0, 0], sizes = [16, 128], strides = [1, 1]} : vector<16x384xf32> to vector<16x128xf32>
    %516 = vector.extract_strided_slice %487 {offsets = [0, 0], sizes = [16, 128], strides = [1, 1]} : vector<16x384xf32> to vector<16x128xf32>
    %517 = arith.addf %515, %516 : vector<16x128xf32>
    %518 = arith.negf %517 : vector<16x128xf32>
    %519 = math.exp %518 : vector<16x128xf32>
    %cst_149 = arith.constant 1.000000e+00 : f32
    %520 = vector.broadcast %cst_149 : f32 to vector<16x128xf32>
    %521 = arith.addf %520, %519 : vector<16x128xf32>
    %522 = arith.divf %520, %521 : vector<16x128xf32>
    %523 = vector.extract_strided_slice %483 {offsets = [0, 128], sizes = [16, 128], strides = [1, 1]} : vector<16x384xf32> to vector<16x128xf32>
    %524 = vector.extract_strided_slice %487 {offsets = [0, 128], sizes = [16, 128], strides = [1, 1]} : vector<16x384xf32> to vector<16x128xf32>
    %525 = arith.addf %523, %524 : vector<16x128xf32>
    %526 = arith.negf %525 : vector<16x128xf32>
    %527 = math.exp %526 : vector<16x128xf32>
    %cst_150 = arith.constant 1.000000e+00 : f32
    %528 = vector.broadcast %cst_150 : f32 to vector<16x128xf32>
    %529 = arith.addf %528, %527 : vector<16x128xf32>
    %530 = arith.divf %528, %529 : vector<16x128xf32>
    %531 = vector.extract_strided_slice %483 {offsets = [0, 256], sizes = [16, 128], strides = [1, 1]} : vector<16x384xf32> to vector<16x128xf32>
    %532 = vector.extract_strided_slice %487 {offsets = [0, 256], sizes = [16, 128], strides = [1, 1]} : vector<16x384xf32> to vector<16x128xf32>
    %533 = arith.addf %532, %31 : vector<16x128xf32>
    %534 = arith.mulf %522, %533 : vector<16x128xf32>
    %535 = arith.addf %531, %534 : vector<16x128xf32>
    %536 = math.tanh %535 : vector<16x128xf32>
    %cst_151 = arith.constant 1.000000e+00 : f32
    %537 = vector.broadcast %cst_151 : f32 to vector<16x128xf32>
    %538 = arith.subf %537, %530 : vector<16x128xf32>
    %539 = arith.mulf %538, %536 : vector<16x128xf32>
    %540 = arith.mulf %530, %467 : vector<16x128xf32>
    %541 = arith.addf %539, %540 : vector<16x128xf32>
    %542 = arith.index_cast %c6_i32 : i32 to index
    %c0_152 = arith.constant 0 : index
    %c0_153 = arith.constant 0 : index
    %543 = vector.load %arg15[%542, %c0_152, %c0_153] : memref<12x16x256xf32, #tpu.memory_space<vmem>>, vector<1x16x128xf32>
    %544 = vector.shape_cast %543 : vector<1x16x128xf32> to vector<16x128xf32>
    %545 = vector.shape_cast %514 : vector<16x128xf32> to vector<1x16x128xf32>
    tpu.vector_store %arg15[%542, %c0_152, %c0_153], %545 {strides = array<i32>} : memref<12x16x256xf32, #tpu.memory_space<vmem>>, vector<1x16x128xf32>,
    %c11_i32_154 = arith.constant 11 : i32
    %546 = arith.subi %c11_i32_154, %c6_i32 : i32
    %547 = arith.index_cast %546 : i32 to index
    %c0_155 = arith.constant 0 : index
    %c128_156 = arith.constant 128 : index
    %548 = vector.load %arg15[%547, %c0_155, %c128_156] : memref<12x16x256xf32, #tpu.memory_space<vmem>>, vector<1x16x128xf32>
    %549 = vector.shape_cast %548 : vector<1x16x128xf32> to vector<16x128xf32>
    %550 = vector.shape_cast %541 : vector<16x128xf32> to vector<1x16x128xf32>
    tpu.vector_store %arg15[%547, %c0_155, %c128_156], %550 {strides = array<i32>} : memref<12x16x256xf32, #tpu.memory_space<vmem>>, vector<1x16x128xf32>,
    %c7_i32 = arith.constant 7 : i32
    %551 = arith.index_cast %c7_i32 : i32 to index
    %c0_157 = arith.constant 0 : index
    %c0_158 = arith.constant 0 : index
    %552 = vector.load %arg13[%551, %c0_157, %c0_158] : memref<12x16x384xf32, #tpu.memory_space<vmem>>, vector<1x16x384xf32>
    %553 = vector.shape_cast %552 : vector<1x16x384xf32> to vector<16x384xf32>
    %c11_i32_159 = arith.constant 11 : i32
    %554 = arith.subi %c11_i32_159, %c7_i32 : i32
    %555 = arith.index_cast %554 : i32 to index
    %c0_160 = arith.constant 0 : index
    %c0_161 = arith.constant 0 : index
    %556 = vector.load %arg14[%555, %c0_160, %c0_161] : memref<12x16x384xf32, #tpu.memory_space<vmem>>, vector<1x16x384xf32>
    %557 = vector.shape_cast %556 : vector<1x16x384xf32> to vector<16x384xf32>
    %558 = arith.truncf %514 : vector<16x128xf32> to vector<16x128xbf16>
    %cst_162 = arith.constant dense<0.000000e+00> : vector<16x384xf32>
    %559 = tpu.matmul %558, %21, %cst_162 {dimension_numbers = #tpu.dot_dimension_numbers<[1], [0], [0], [1], [0, 0, 1, 1], [], []>} : vector<16x128xbf16>, vector<128x384xbf16>, vector<16x384xf32> -> vector<16x384xf32>
    %560 = arith.truncf %541 : vector<16x128xf32> to vector<16x128xbf16>
    %cst_163 = arith.constant dense<0.000000e+00> : vector<16x384xf32>
    %561 = tpu.matmul %560, %23, %cst_163 {dimension_numbers = #tpu.dot_dimension_numbers<[1], [0], [0], [1], [0, 0, 1, 1], [], []>} : vector<16x128xbf16>, vector<128x384xbf16>, vector<16x384xf32> -> vector<16x384xf32>
    %562 = vector.extract_strided_slice %553 {offsets = [0, 0], sizes = [16, 128], strides = [1, 1]} : vector<16x384xf32> to vector<16x128xf32>
    %563 = vector.extract_strided_slice %559 {offsets = [0, 0], sizes = [16, 128], strides = [1, 1]} : vector<16x384xf32> to vector<16x128xf32>
    %564 = arith.addf %562, %563 : vector<16x128xf32>
    %565 = arith.negf %564 : vector<16x128xf32>
    %566 = math.exp %565 : vector<16x128xf32>
    %cst_164 = arith.constant 1.000000e+00 : f32
    %567 = vector.broadcast %cst_164 : f32 to vector<16x128xf32>
    %568 = arith.addf %567, %566 : vector<16x128xf32>
    %569 = arith.divf %567, %568 : vector<16x128xf32>
    %570 = vector.extract_strided_slice %553 {offsets = [0, 128], sizes = [16, 128], strides = [1, 1]} : vector<16x384xf32> to vector<16x128xf32>
    %571 = vector.extract_strided_slice %559 {offsets = [0, 128], sizes = [16, 128], strides = [1, 1]} : vector<16x384xf32> to vector<16x128xf32>
    %572 = arith.addf %570, %571 : vector<16x128xf32>
    %573 = arith.negf %572 : vector<16x128xf32>
    %574 = math.exp %573 : vector<16x128xf32>
    %cst_165 = arith.constant 1.000000e+00 : f32
    %575 = vector.broadcast %cst_165 : f32 to vector<16x128xf32>
    %576 = arith.addf %575, %574 : vector<16x128xf32>
    %577 = arith.divf %575, %576 : vector<16x128xf32>
    %578 = vector.extract_strided_slice %553 {offsets = [0, 256], sizes = [16, 128], strides = [1, 1]} : vector<16x384xf32> to vector<16x128xf32>
    %579 = vector.extract_strided_slice %559 {offsets = [0, 256], sizes = [16, 128], strides = [1, 1]} : vector<16x384xf32> to vector<16x128xf32>
    %580 = arith.addf %579, %27 : vector<16x128xf32>
    %581 = arith.mulf %569, %580 : vector<16x128xf32>
    %582 = arith.addf %578, %581 : vector<16x128xf32>
    %583 = math.tanh %582 : vector<16x128xf32>
    %cst_166 = arith.constant 1.000000e+00 : f32
    %584 = vector.broadcast %cst_166 : f32 to vector<16x128xf32>
    %585 = arith.subf %584, %577 : vector<16x128xf32>
    %586 = arith.mulf %585, %583 : vector<16x128xf32>
    %587 = arith.mulf %577, %514 : vector<16x128xf32>
    %588 = arith.addf %586, %587 : vector<16x128xf32>
    %589 = vector.extract_strided_slice %557 {offsets = [0, 0], sizes = [16, 128], strides = [1, 1]} : vector<16x384xf32> to vector<16x128xf32>
    %590 = vector.extract_strided_slice %561 {offsets = [0, 0], sizes = [16, 128], strides = [1, 1]} : vector<16x384xf32> to vector<16x128xf32>
    %591 = arith.addf %589, %590 : vector<16x128xf32>
    %592 = arith.negf %591 : vector<16x128xf32>
    %593 = math.exp %592 : vector<16x128xf32>
    %cst_167 = arith.constant 1.000000e+00 : f32
    %594 = vector.broadcast %cst_167 : f32 to vector<16x128xf32>
    %595 = arith.addf %594, %593 : vector<16x128xf32>
    %596 = arith.divf %594, %595 : vector<16x128xf32>
    %597 = vector.extract_strided_slice %557 {offsets = [0, 128], sizes = [16, 128], strides = [1, 1]} : vector<16x384xf32> to vector<16x128xf32>
    %598 = vector.extract_strided_slice %561 {offsets = [0, 128], sizes = [16, 128], strides = [1, 1]} : vector<16x384xf32> to vector<16x128xf32>
    %599 = arith.addf %597, %598 : vector<16x128xf32>
    %600 = arith.negf %599 : vector<16x128xf32>
    %601 = math.exp %600 : vector<16x128xf32>
    %cst_168 = arith.constant 1.000000e+00 : f32
    %602 = vector.broadcast %cst_168 : f32 to vector<16x128xf32>
    %603 = arith.addf %602, %601 : vector<16x128xf32>
    %604 = arith.divf %602, %603 : vector<16x128xf32>
    %605 = vector.extract_strided_slice %557 {offsets = [0, 256], sizes = [16, 128], strides = [1, 1]} : vector<16x384xf32> to vector<16x128xf32>
    %606 = vector.extract_strided_slice %561 {offsets = [0, 256], sizes = [16, 128], strides = [1, 1]} : vector<16x384xf32> to vector<16x128xf32>
    %607 = arith.addf %606, %31 : vector<16x128xf32>
    %608 = arith.mulf %596, %607 : vector<16x128xf32>
    %609 = arith.addf %605, %608 : vector<16x128xf32>
    %610 = math.tanh %609 : vector<16x128xf32>
    %cst_169 = arith.constant 1.000000e+00 : f32
    %611 = vector.broadcast %cst_169 : f32 to vector<16x128xf32>
    %612 = arith.subf %611, %604 : vector<16x128xf32>
    %613 = arith.mulf %612, %610 : vector<16x128xf32>
    %614 = arith.mulf %604, %541 : vector<16x128xf32>
    %615 = arith.addf %613, %614 : vector<16x128xf32>
    %616 = arith.index_cast %c7_i32 : i32 to index
    %c0_170 = arith.constant 0 : index
    %c0_171 = arith.constant 0 : index
    %617 = vector.load %arg15[%616, %c0_170, %c0_171] : memref<12x16x256xf32, #tpu.memory_space<vmem>>, vector<1x16x128xf32>
    %618 = vector.shape_cast %617 : vector<1x16x128xf32> to vector<16x128xf32>
    %619 = vector.shape_cast %588 : vector<16x128xf32> to vector<1x16x128xf32>
    tpu.vector_store %arg15[%616, %c0_170, %c0_171], %619 {strides = array<i32>} : memref<12x16x256xf32, #tpu.memory_space<vmem>>, vector<1x16x128xf32>,
    %c11_i32_172 = arith.constant 11 : i32
    %620 = arith.subi %c11_i32_172, %c7_i32 : i32
    %621 = arith.index_cast %620 : i32 to index
    %c0_173 = arith.constant 0 : index
    %c128_174 = arith.constant 128 : index
    %622 = vector.load %arg15[%621, %c0_173, %c128_174] : memref<12x16x256xf32, #tpu.memory_space<vmem>>, vector<1x16x128xf32>
    %623 = vector.shape_cast %622 : vector<1x16x128xf32> to vector<16x128xf32>
    %624 = vector.shape_cast %615 : vector<16x128xf32> to vector<1x16x128xf32>
    tpu.vector_store %arg15[%621, %c0_173, %c128_174], %624 {strides = array<i32>} : memref<12x16x256xf32, #tpu.memory_space<vmem>>, vector<1x16x128xf32>,
    %c8_i32 = arith.constant 8 : i32
    %625 = arith.index_cast %c8_i32 : i32 to index
    %c0_175 = arith.constant 0 : index
    %c0_176 = arith.constant 0 : index
    %626 = vector.load %arg13[%625, %c0_175, %c0_176] : memref<12x16x384xf32, #tpu.memory_space<vmem>>, vector<1x16x384xf32>
    %627 = vector.shape_cast %626 : vector<1x16x384xf32> to vector<16x384xf32>
    %c11_i32_177 = arith.constant 11 : i32
    %628 = arith.subi %c11_i32_177, %c8_i32 : i32
    %629 = arith.index_cast %628 : i32 to index
    %c0_178 = arith.constant 0 : index
    %c0_179 = arith.constant 0 : index
    %630 = vector.load %arg14[%629, %c0_178, %c0_179] : memref<12x16x384xf32, #tpu.memory_space<vmem>>, vector<1x16x384xf32>
    %631 = vector.shape_cast %630 : vector<1x16x384xf32> to vector<16x384xf32>
    %632 = arith.truncf %588 : vector<16x128xf32> to vector<16x128xbf16>
    %cst_180 = arith.constant dense<0.000000e+00> : vector<16x384xf32>
    %633 = tpu.matmul %632, %21, %cst_180 {dimension_numbers = #tpu.dot_dimension_numbers<[1], [0], [0], [1], [0, 0, 1, 1], [], []>} : vector<16x128xbf16>, vector<128x384xbf16>, vector<16x384xf32> -> vector<16x384xf32>
    %634 = arith.truncf %615 : vector<16x128xf32> to vector<16x128xbf16>
    %cst_181 = arith.constant dense<0.000000e+00> : vector<16x384xf32>
    %635 = tpu.matmul %634, %23, %cst_181 {dimension_numbers = #tpu.dot_dimension_numbers<[1], [0], [0], [1], [0, 0, 1, 1], [], []>} : vector<16x128xbf16>, vector<128x384xbf16>, vector<16x384xf32> -> vector<16x384xf32>
    %636 = vector.extract_strided_slice %627 {offsets = [0, 0], sizes = [16, 128], strides = [1, 1]} : vector<16x384xf32> to vector<16x128xf32>
    %637 = vector.extract_strided_slice %633 {offsets = [0, 0], sizes = [16, 128], strides = [1, 1]} : vector<16x384xf32> to vector<16x128xf32>
    %638 = arith.addf %636, %637 : vector<16x128xf32>
    %639 = arith.negf %638 : vector<16x128xf32>
    %640 = math.exp %639 : vector<16x128xf32>
    %cst_182 = arith.constant 1.000000e+00 : f32
    %641 = vector.broadcast %cst_182 : f32 to vector<16x128xf32>
    %642 = arith.addf %641, %640 : vector<16x128xf32>
    %643 = arith.divf %641, %642 : vector<16x128xf32>
    %644 = vector.extract_strided_slice %627 {offsets = [0, 128], sizes = [16, 128], strides = [1, 1]} : vector<16x384xf32> to vector<16x128xf32>
    %645 = vector.extract_strided_slice %633 {offsets = [0, 128], sizes = [16, 128], strides = [1, 1]} : vector<16x384xf32> to vector<16x128xf32>
    %646 = arith.addf %644, %645 : vector<16x128xf32>
    %647 = arith.negf %646 : vector<16x128xf32>
    %648 = math.exp %647 : vector<16x128xf32>
    %cst_183 = arith.constant 1.000000e+00 : f32
    %649 = vector.broadcast %cst_183 : f32 to vector<16x128xf32>
    %650 = arith.addf %649, %648 : vector<16x128xf32>
    %651 = arith.divf %649, %650 : vector<16x128xf32>
    %652 = vector.extract_strided_slice %627 {offsets = [0, 256], sizes = [16, 128], strides = [1, 1]} : vector<16x384xf32> to vector<16x128xf32>
    %653 = vector.extract_strided_slice %633 {offsets = [0, 256], sizes = [16, 128], strides = [1, 1]} : vector<16x384xf32> to vector<16x128xf32>
    %654 = arith.addf %653, %27 : vector<16x128xf32>
    %655 = arith.mulf %643, %654 : vector<16x128xf32>
    %656 = arith.addf %652, %655 : vector<16x128xf32>
    %657 = math.tanh %656 : vector<16x128xf32>
    %cst_184 = arith.constant 1.000000e+00 : f32
    %658 = vector.broadcast %cst_184 : f32 to vector<16x128xf32>
    %659 = arith.subf %658, %651 : vector<16x128xf32>
    %660 = arith.mulf %659, %657 : vector<16x128xf32>
    %661 = arith.mulf %651, %588 : vector<16x128xf32>
    %662 = arith.addf %660, %661 : vector<16x128xf32>
    %663 = vector.extract_strided_slice %631 {offsets = [0, 0], sizes = [16, 128], strides = [1, 1]} : vector<16x384xf32> to vector<16x128xf32>
    %664 = vector.extract_strided_slice %635 {offsets = [0, 0], sizes = [16, 128], strides = [1, 1]} : vector<16x384xf32> to vector<16x128xf32>
    %665 = arith.addf %663, %664 : vector<16x128xf32>
    %666 = arith.negf %665 : vector<16x128xf32>
    %667 = math.exp %666 : vector<16x128xf32>
    %cst_185 = arith.constant 1.000000e+00 : f32
    %668 = vector.broadcast %cst_185 : f32 to vector<16x128xf32>
    %669 = arith.addf %668, %667 : vector<16x128xf32>
    %670 = arith.divf %668, %669 : vector<16x128xf32>
    %671 = vector.extract_strided_slice %631 {offsets = [0, 128], sizes = [16, 128], strides = [1, 1]} : vector<16x384xf32> to vector<16x128xf32>
    %672 = vector.extract_strided_slice %635 {offsets = [0, 128], sizes = [16, 128], strides = [1, 1]} : vector<16x384xf32> to vector<16x128xf32>
    %673 = arith.addf %671, %672 : vector<16x128xf32>
    %674 = arith.negf %673 : vector<16x128xf32>
    %675 = math.exp %674 : vector<16x128xf32>
    %cst_186 = arith.constant 1.000000e+00 : f32
    %676 = vector.broadcast %cst_186 : f32 to vector<16x128xf32>
    %677 = arith.addf %676, %675 : vector<16x128xf32>
    %678 = arith.divf %676, %677 : vector<16x128xf32>
    %679 = vector.extract_strided_slice %631 {offsets = [0, 256], sizes = [16, 128], strides = [1, 1]} : vector<16x384xf32> to vector<16x128xf32>
    %680 = vector.extract_strided_slice %635 {offsets = [0, 256], sizes = [16, 128], strides = [1, 1]} : vector<16x384xf32> to vector<16x128xf32>
    %681 = arith.addf %680, %31 : vector<16x128xf32>
    %682 = arith.mulf %670, %681 : vector<16x128xf32>
    %683 = arith.addf %679, %682 : vector<16x128xf32>
    %684 = math.tanh %683 : vector<16x128xf32>
    %cst_187 = arith.constant 1.000000e+00 : f32
    %685 = vector.broadcast %cst_187 : f32 to vector<16x128xf32>
    %686 = arith.subf %685, %678 : vector<16x128xf32>
    %687 = arith.mulf %686, %684 : vector<16x128xf32>
    %688 = arith.mulf %678, %615 : vector<16x128xf32>
    %689 = arith.addf %687, %688 : vector<16x128xf32>
    %690 = arith.index_cast %c8_i32 : i32 to index
    %c0_188 = arith.constant 0 : index
    %c0_189 = arith.constant 0 : index
    %691 = vector.load %arg15[%690, %c0_188, %c0_189] : memref<12x16x256xf32, #tpu.memory_space<vmem>>, vector<1x16x128xf32>
    %692 = vector.shape_cast %691 : vector<1x16x128xf32> to vector<16x128xf32>
    %693 = vector.shape_cast %662 : vector<16x128xf32> to vector<1x16x128xf32>
    tpu.vector_store %arg15[%690, %c0_188, %c0_189], %693 {strides = array<i32>} : memref<12x16x256xf32, #tpu.memory_space<vmem>>, vector<1x16x128xf32>,
    %c11_i32_190 = arith.constant 11 : i32
    %694 = arith.subi %c11_i32_190, %c8_i32 : i32
    %695 = arith.index_cast %694 : i32 to index
    %c0_191 = arith.constant 0 : index
    %c128_192 = arith.constant 128 : index
    %696 = vector.load %arg15[%695, %c0_191, %c128_192] : memref<12x16x256xf32, #tpu.memory_space<vmem>>, vector<1x16x128xf32>
    %697 = vector.shape_cast %696 : vector<1x16x128xf32> to vector<16x128xf32>
    %698 = vector.shape_cast %689 : vector<16x128xf32> to vector<1x16x128xf32>
    tpu.vector_store %arg15[%695, %c0_191, %c128_192], %698 {strides = array<i32>} : memref<12x16x256xf32, #tpu.memory_space<vmem>>, vector<1x16x128xf32>,
    %c9_i32 = arith.constant 9 : i32
    %699 = arith.index_cast %c9_i32 : i32 to index
    %c0_193 = arith.constant 0 : index
    %c0_194 = arith.constant 0 : index
    %700 = vector.load %arg13[%699, %c0_193, %c0_194] : memref<12x16x384xf32, #tpu.memory_space<vmem>>, vector<1x16x384xf32>
    %701 = vector.shape_cast %700 : vector<1x16x384xf32> to vector<16x384xf32>
    %c11_i32_195 = arith.constant 11 : i32
    %702 = arith.subi %c11_i32_195, %c9_i32 : i32
    %703 = arith.index_cast %702 : i32 to index
    %c0_196 = arith.constant 0 : index
    %c0_197 = arith.constant 0 : index
    %704 = vector.load %arg14[%703, %c0_196, %c0_197] : memref<12x16x384xf32, #tpu.memory_space<vmem>>, vector<1x16x384xf32>
    %705 = vector.shape_cast %704 : vector<1x16x384xf32> to vector<16x384xf32>
    %706 = arith.truncf %662 : vector<16x128xf32> to vector<16x128xbf16>
    %cst_198 = arith.constant dense<0.000000e+00> : vector<16x384xf32>
    %707 = tpu.matmul %706, %21, %cst_198 {dimension_numbers = #tpu.dot_dimension_numbers<[1], [0], [0], [1], [0, 0, 1, 1], [], []>} : vector<16x128xbf16>, vector<128x384xbf16>, vector<16x384xf32> -> vector<16x384xf32>
    %708 = arith.truncf %689 : vector<16x128xf32> to vector<16x128xbf16>
    %cst_199 = arith.constant dense<0.000000e+00> : vector<16x384xf32>
    %709 = tpu.matmul %708, %23, %cst_199 {dimension_numbers = #tpu.dot_dimension_numbers<[1], [0], [0], [1], [0, 0, 1, 1], [], []>} : vector<16x128xbf16>, vector<128x384xbf16>, vector<16x384xf32> -> vector<16x384xf32>
    %710 = vector.extract_strided_slice %701 {offsets = [0, 0], sizes = [16, 128], strides = [1, 1]} : vector<16x384xf32> to vector<16x128xf32>
    %711 = vector.extract_strided_slice %707 {offsets = [0, 0], sizes = [16, 128], strides = [1, 1]} : vector<16x384xf32> to vector<16x128xf32>
    %712 = arith.addf %710, %711 : vector<16x128xf32>
    %713 = arith.negf %712 : vector<16x128xf32>
    %714 = math.exp %713 : vector<16x128xf32>
    %cst_200 = arith.constant 1.000000e+00 : f32
    %715 = vector.broadcast %cst_200 : f32 to vector<16x128xf32>
    %716 = arith.addf %715, %714 : vector<16x128xf32>
    %717 = arith.divf %715, %716 : vector<16x128xf32>
    %718 = vector.extract_strided_slice %701 {offsets = [0, 128], sizes = [16, 128], strides = [1, 1]} : vector<16x384xf32> to vector<16x128xf32>
    %719 = vector.extract_strided_slice %707 {offsets = [0, 128], sizes = [16, 128], strides = [1, 1]} : vector<16x384xf32> to vector<16x128xf32>
    %720 = arith.addf %718, %719 : vector<16x128xf32>
    %721 = arith.negf %720 : vector<16x128xf32>
    %722 = math.exp %721 : vector<16x128xf32>
    %cst_201 = arith.constant 1.000000e+00 : f32
    %723 = vector.broadcast %cst_201 : f32 to vector<16x128xf32>
    %724 = arith.addf %723, %722 : vector<16x128xf32>
    %725 = arith.divf %723, %724 : vector<16x128xf32>
    %726 = vector.extract_strided_slice %701 {offsets = [0, 256], sizes = [16, 128], strides = [1, 1]} : vector<16x384xf32> to vector<16x128xf32>
    %727 = vector.extract_strided_slice %707 {offsets = [0, 256], sizes = [16, 128], strides = [1, 1]} : vector<16x384xf32> to vector<16x128xf32>
    %728 = arith.addf %727, %27 : vector<16x128xf32>
    %729 = arith.mulf %717, %728 : vector<16x128xf32>
    %730 = arith.addf %726, %729 : vector<16x128xf32>
    %731 = math.tanh %730 : vector<16x128xf32>
    %cst_202 = arith.constant 1.000000e+00 : f32
    %732 = vector.broadcast %cst_202 : f32 to vector<16x128xf32>
    %733 = arith.subf %732, %725 : vector<16x128xf32>
    %734 = arith.mulf %733, %731 : vector<16x128xf32>
    %735 = arith.mulf %725, %662 : vector<16x128xf32>
    %736 = arith.addf %734, %735 : vector<16x128xf32>
    %737 = vector.extract_strided_slice %705 {offsets = [0, 0], sizes = [16, 128], strides = [1, 1]} : vector<16x384xf32> to vector<16x128xf32>
    %738 = vector.extract_strided_slice %709 {offsets = [0, 0], sizes = [16, 128], strides = [1, 1]} : vector<16x384xf32> to vector<16x128xf32>
    %739 = arith.addf %737, %738 : vector<16x128xf32>
    %740 = arith.negf %739 : vector<16x128xf32>
    %741 = math.exp %740 : vector<16x128xf32>
    %cst_203 = arith.constant 1.000000e+00 : f32
    %742 = vector.broadcast %cst_203 : f32 to vector<16x128xf32>
    %743 = arith.addf %742, %741 : vector<16x128xf32>
    %744 = arith.divf %742, %743 : vector<16x128xf32>
    %745 = vector.extract_strided_slice %705 {offsets = [0, 128], sizes = [16, 128], strides = [1, 1]} : vector<16x384xf32> to vector<16x128xf32>
    %746 = vector.extract_strided_slice %709 {offsets = [0, 128], sizes = [16, 128], strides = [1, 1]} : vector<16x384xf32> to vector<16x128xf32>
    %747 = arith.addf %745, %746 : vector<16x128xf32>
    %748 = arith.negf %747 : vector<16x128xf32>
    %749 = math.exp %748 : vector<16x128xf32>
    %cst_204 = arith.constant 1.000000e+00 : f32
    %750 = vector.broadcast %cst_204 : f32 to vector<16x128xf32>
    %751 = arith.addf %750, %749 : vector<16x128xf32>
    %752 = arith.divf %750, %751 : vector<16x128xf32>
    %753 = vector.extract_strided_slice %705 {offsets = [0, 256], sizes = [16, 128], strides = [1, 1]} : vector<16x384xf32> to vector<16x128xf32>
    %754 = vector.extract_strided_slice %709 {offsets = [0, 256], sizes = [16, 128], strides = [1, 1]} : vector<16x384xf32> to vector<16x128xf32>
    %755 = arith.addf %754, %31 : vector<16x128xf32>
    %756 = arith.mulf %744, %755 : vector<16x128xf32>
    %757 = arith.addf %753, %756 : vector<16x128xf32>
    %758 = math.tanh %757 : vector<16x128xf32>
    %cst_205 = arith.constant 1.000000e+00 : f32
    %759 = vector.broadcast %cst_205 : f32 to vector<16x128xf32>
    %760 = arith.subf %759, %752 : vector<16x128xf32>
    %761 = arith.mulf %760, %758 : vector<16x128xf32>
    %762 = arith.mulf %752, %689 : vector<16x128xf32>
    %763 = arith.addf %761, %762 : vector<16x128xf32>
    %764 = arith.index_cast %c9_i32 : i32 to index
    %c0_206 = arith.constant 0 : index
    %c0_207 = arith.constant 0 : index
    %765 = vector.load %arg15[%764, %c0_206, %c0_207] : memref<12x16x256xf32, #tpu.memory_space<vmem>>, vector<1x16x128xf32>
    %766 = vector.shape_cast %765 : vector<1x16x128xf32> to vector<16x128xf32>
    %767 = vector.shape_cast %736 : vector<16x128xf32> to vector<1x16x128xf32>
    tpu.vector_store %arg15[%764, %c0_206, %c0_207], %767 {strides = array<i32>} : memref<12x16x256xf32, #tpu.memory_space<vmem>>, vector<1x16x128xf32>,
    %c11_i32_208 = arith.constant 11 : i32
    %768 = arith.subi %c11_i32_208, %c9_i32 : i32
    %769 = arith.index_cast %768 : i32 to index
    %c0_209 = arith.constant 0 : index
    %c128_210 = arith.constant 128 : index
    %770 = vector.load %arg15[%769, %c0_209, %c128_210] : memref<12x16x256xf32, #tpu.memory_space<vmem>>, vector<1x16x128xf32>
    %771 = vector.shape_cast %770 : vector<1x16x128xf32> to vector<16x128xf32>
    %772 = vector.shape_cast %763 : vector<16x128xf32> to vector<1x16x128xf32>
    tpu.vector_store %arg15[%769, %c0_209, %c128_210], %772 {strides = array<i32>} : memref<12x16x256xf32, #tpu.memory_space<vmem>>, vector<1x16x128xf32>,
    %c10_i32 = arith.constant 10 : i32
    %773 = arith.index_cast %c10_i32 : i32 to index
    %c0_211 = arith.constant 0 : index
    %c0_212 = arith.constant 0 : index
    %774 = vector.load %arg13[%773, %c0_211, %c0_212] : memref<12x16x384xf32, #tpu.memory_space<vmem>>, vector<1x16x384xf32>
    %775 = vector.shape_cast %774 : vector<1x16x384xf32> to vector<16x384xf32>
    %c11_i32_213 = arith.constant 11 : i32
    %776 = arith.subi %c11_i32_213, %c10_i32 : i32
    %777 = arith.index_cast %776 : i32 to index
    %c0_214 = arith.constant 0 : index
    %c0_215 = arith.constant 0 : index
    %778 = vector.load %arg14[%777, %c0_214, %c0_215] : memref<12x16x384xf32, #tpu.memory_space<vmem>>, vector<1x16x384xf32>
    %779 = vector.shape_cast %778 : vector<1x16x384xf32> to vector<16x384xf32>
    %780 = arith.truncf %736 : vector<16x128xf32> to vector<16x128xbf16>
    %cst_216 = arith.constant dense<0.000000e+00> : vector<16x384xf32>
    %781 = tpu.matmul %780, %21, %cst_216 {dimension_numbers = #tpu.dot_dimension_numbers<[1], [0], [0], [1], [0, 0, 1, 1], [], []>} : vector<16x128xbf16>, vector<128x384xbf16>, vector<16x384xf32> -> vector<16x384xf32>
    %782 = arith.truncf %763 : vector<16x128xf32> to vector<16x128xbf16>
    %cst_217 = arith.constant dense<0.000000e+00> : vector<16x384xf32>
    %783 = tpu.matmul %782, %23, %cst_217 {dimension_numbers = #tpu.dot_dimension_numbers<[1], [0], [0], [1], [0, 0, 1, 1], [], []>} : vector<16x128xbf16>, vector<128x384xbf16>, vector<16x384xf32> -> vector<16x384xf32>
    %784 = vector.extract_strided_slice %775 {offsets = [0, 0], sizes = [16, 128], strides = [1, 1]} : vector<16x384xf32> to vector<16x128xf32>
    %785 = vector.extract_strided_slice %781 {offsets = [0, 0], sizes = [16, 128], strides = [1, 1]} : vector<16x384xf32> to vector<16x128xf32>
    %786 = arith.addf %784, %785 : vector<16x128xf32>
    %787 = arith.negf %786 : vector<16x128xf32>
    %788 = math.exp %787 : vector<16x128xf32>
    %cst_218 = arith.constant 1.000000e+00 : f32
    %789 = vector.broadcast %cst_218 : f32 to vector<16x128xf32>
    %790 = arith.addf %789, %788 : vector<16x128xf32>
    %791 = arith.divf %789, %790 : vector<16x128xf32>
    %792 = vector.extract_strided_slice %775 {offsets = [0, 128], sizes = [16, 128], strides = [1, 1]} : vector<16x384xf32> to vector<16x128xf32>
    %793 = vector.extract_strided_slice %781 {offsets = [0, 128], sizes = [16, 128], strides = [1, 1]} : vector<16x384xf32> to vector<16x128xf32>
    %794 = arith.addf %792, %793 : vector<16x128xf32>
    %795 = arith.negf %794 : vector<16x128xf32>
    %796 = math.exp %795 : vector<16x128xf32>
    %cst_219 = arith.constant 1.000000e+00 : f32
    %797 = vector.broadcast %cst_219 : f32 to vector<16x128xf32>
    %798 = arith.addf %797, %796 : vector<16x128xf32>
    %799 = arith.divf %797, %798 : vector<16x128xf32>
    %800 = vector.extract_strided_slice %775 {offsets = [0, 256], sizes = [16, 128], strides = [1, 1]} : vector<16x384xf32> to vector<16x128xf32>
    %801 = vector.extract_strided_slice %781 {offsets = [0, 256], sizes = [16, 128], strides = [1, 1]} : vector<16x384xf32> to vector<16x128xf32>
    %802 = arith.addf %801, %27 : vector<16x128xf32>
    %803 = arith.mulf %791, %802 : vector<16x128xf32>
    %804 = arith.addf %800, %803 : vector<16x128xf32>
    %805 = math.tanh %804 : vector<16x128xf32>
    %cst_220 = arith.constant 1.000000e+00 : f32
    %806 = vector.broadcast %cst_220 : f32 to vector<16x128xf32>
    %807 = arith.subf %806, %799 : vector<16x128xf32>
    %808 = arith.mulf %807, %805 : vector<16x128xf32>
    %809 = arith.mulf %799, %736 : vector<16x128xf32>
    %810 = arith.addf %808, %809 : vector<16x128xf32>
    %811 = vector.extract_strided_slice %779 {offsets = [0, 0], sizes = [16, 128], strides = [1, 1]} : vector<16x384xf32> to vector<16x128xf32>
    %812 = vector.extract_strided_slice %783 {offsets = [0, 0], sizes = [16, 128], strides = [1, 1]} : vector<16x384xf32> to vector<16x128xf32>
    %813 = arith.addf %811, %812 : vector<16x128xf32>
    %814 = arith.negf %813 : vector<16x128xf32>
    %815 = math.exp %814 : vector<16x128xf32>
    %cst_221 = arith.constant 1.000000e+00 : f32
    %816 = vector.broadcast %cst_221 : f32 to vector<16x128xf32>
    %817 = arith.addf %816, %815 : vector<16x128xf32>
    %818 = arith.divf %816, %817 : vector<16x128xf32>
    %819 = vector.extract_strided_slice %779 {offsets = [0, 128], sizes = [16, 128], strides = [1, 1]} : vector<16x384xf32> to vector<16x128xf32>
    %820 = vector.extract_strided_slice %783 {offsets = [0, 128], sizes = [16, 128], strides = [1, 1]} : vector<16x384xf32> to vector<16x128xf32>
    %821 = arith.addf %819, %820 : vector<16x128xf32>
    %822 = arith.negf %821 : vector<16x128xf32>
    %823 = math.exp %822 : vector<16x128xf32>
    %cst_222 = arith.constant 1.000000e+00 : f32
    %824 = vector.broadcast %cst_222 : f32 to vector<16x128xf32>
    %825 = arith.addf %824, %823 : vector<16x128xf32>
    %826 = arith.divf %824, %825 : vector<16x128xf32>
    %827 = vector.extract_strided_slice %779 {offsets = [0, 256], sizes = [16, 128], strides = [1, 1]} : vector<16x384xf32> to vector<16x128xf32>
    %828 = vector.extract_strided_slice %783 {offsets = [0, 256], sizes = [16, 128], strides = [1, 1]} : vector<16x384xf32> to vector<16x128xf32>
    %829 = arith.addf %828, %31 : vector<16x128xf32>
    %830 = arith.mulf %818, %829 : vector<16x128xf32>
    %831 = arith.addf %827, %830 : vector<16x128xf32>
    %832 = math.tanh %831 : vector<16x128xf32>
    %cst_223 = arith.constant 1.000000e+00 : f32
    %833 = vector.broadcast %cst_223 : f32 to vector<16x128xf32>
    %834 = arith.subf %833, %826 : vector<16x128xf32>
    %835 = arith.mulf %834, %832 : vector<16x128xf32>
    %836 = arith.mulf %826, %763 : vector<16x128xf32>
    %837 = arith.addf %835, %836 : vector<16x128xf32>
    %838 = arith.index_cast %c10_i32 : i32 to index
    %c0_224 = arith.constant 0 : index
    %c0_225 = arith.constant 0 : index
    %839 = vector.load %arg15[%838, %c0_224, %c0_225] : memref<12x16x256xf32, #tpu.memory_space<vmem>>, vector<1x16x128xf32>
    %840 = vector.shape_cast %839 : vector<1x16x128xf32> to vector<16x128xf32>
    %841 = vector.shape_cast %810 : vector<16x128xf32> to vector<1x16x128xf32>
    tpu.vector_store %arg15[%838, %c0_224, %c0_225], %841 {strides = array<i32>} : memref<12x16x256xf32, #tpu.memory_space<vmem>>, vector<1x16x128xf32>,
    %c11_i32_226 = arith.constant 11 : i32
    %842 = arith.subi %c11_i32_226, %c10_i32 : i32
    %843 = arith.index_cast %842 : i32 to index
    %c0_227 = arith.constant 0 : index
    %c128_228 = arith.constant 128 : index
    %844 = vector.load %arg15[%843, %c0_227, %c128_228] : memref<12x16x256xf32, #tpu.memory_space<vmem>>, vector<1x16x128xf32>
    %845 = vector.shape_cast %844 : vector<1x16x128xf32> to vector<16x128xf32>
    %846 = vector.shape_cast %837 : vector<16x128xf32> to vector<1x16x128xf32>
    tpu.vector_store %arg15[%843, %c0_227, %c128_228], %846 {strides = array<i32>} : memref<12x16x256xf32, #tpu.memory_space<vmem>>, vector<1x16x128xf32>,
    %c11_i32_229 = arith.constant 11 : i32
    %847 = arith.index_cast %c11_i32_229 : i32 to index
    %c0_230 = arith.constant 0 : index
    %c0_231 = arith.constant 0 : index
    %848 = vector.load %arg13[%847, %c0_230, %c0_231] : memref<12x16x384xf32, #tpu.memory_space<vmem>>, vector<1x16x384xf32>
    %849 = vector.shape_cast %848 : vector<1x16x384xf32> to vector<16x384xf32>
    %c11_i32_232 = arith.constant 11 : i32
    %850 = arith.subi %c11_i32_232, %c11_i32_229 : i32
    %851 = arith.index_cast %850 : i32 to index
    %c0_233 = arith.constant 0 : index
    %c0_234 = arith.constant 0 : index
    %852 = vector.load %arg14[%851, %c0_233, %c0_234] : memref<12x16x384xf32, #tpu.memory_space<vmem>>, vector<1x16x384xf32>
    %853 = vector.shape_cast %852 : vector<1x16x384xf32> to vector<16x384xf32>
    %854 = arith.truncf %810 : vector<16x128xf32> to vector<16x128xbf16>
    %cst_235 = arith.constant dense<0.000000e+00> : vector<16x384xf32>
    %855 = tpu.matmul %854, %21, %cst_235 {dimension_numbers = #tpu.dot_dimension_numbers<[1], [0], [0], [1], [0, 0, 1, 1], [], []>} : vector<16x128xbf16>, vector<128x384xbf16>, vector<16x384xf32> -> vector<16x384xf32>
    %856 = arith.truncf %837 : vector<16x128xf32> to vector<16x128xbf16>
    %cst_236 = arith.constant dense<0.000000e+00> : vector<16x384xf32>
    %857 = tpu.matmul %856, %23, %cst_236 {dimension_numbers = #tpu.dot_dimension_numbers<[1], [0], [0], [1], [0, 0, 1, 1], [], []>} : vector<16x128xbf16>, vector<128x384xbf16>, vector<16x384xf32> -> vector<16x384xf32>
    %858 = vector.extract_strided_slice %849 {offsets = [0, 0], sizes = [16, 128], strides = [1, 1]} : vector<16x384xf32> to vector<16x128xf32>
    %859 = vector.extract_strided_slice %855 {offsets = [0, 0], sizes = [16, 128], strides = [1, 1]} : vector<16x384xf32> to vector<16x128xf32>
    %860 = arith.addf %858, %859 : vector<16x128xf32>
    %861 = arith.negf %860 : vector<16x128xf32>
    %862 = math.exp %861 : vector<16x128xf32>
    %cst_237 = arith.constant 1.000000e+00 : f32
    %863 = vector.broadcast %cst_237 : f32 to vector<16x128xf32>
    %864 = arith.addf %863, %862 : vector<16x128xf32>
    %865 = arith.divf %863, %864 : vector<16x128xf32>
    %866 = vector.extract_strided_slice %849 {offsets = [0, 128], sizes = [16, 128], strides = [1, 1]} : vector<16x384xf32> to vector<16x128xf32>
    %867 = vector.extract_strided_slice %855 {offsets = [0, 128], sizes = [16, 128], strides = [1, 1]} : vector<16x384xf32> to vector<16x128xf32>
    %868 = arith.addf %866, %867 : vector<16x128xf32>
    %869 = arith.negf %868 : vector<16x128xf32>
    %870 = math.exp %869 : vector<16x128xf32>
    %cst_238 = arith.constant 1.000000e+00 : f32
    %871 = vector.broadcast %cst_238 : f32 to vector<16x128xf32>
    %872 = arith.addf %871, %870 : vector<16x128xf32>
    %873 = arith.divf %871, %872 : vector<16x128xf32>
    %874 = vector.extract_strided_slice %849 {offsets = [0, 256], sizes = [16, 128], strides = [1, 1]} : vector<16x384xf32> to vector<16x128xf32>
    %875 = vector.extract_strided_slice %855 {offsets = [0, 256], sizes = [16, 128], strides = [1, 1]} : vector<16x384xf32> to vector<16x128xf32>
    %876 = arith.addf %875, %27 : vector<16x128xf32>
    %877 = arith.mulf %865, %876 : vector<16x128xf32>
    %878 = arith.addf %874, %877 : vector<16x128xf32>
    %879 = math.tanh %878 : vector<16x128xf32>
    %cst_239 = arith.constant 1.000000e+00 : f32
    %880 = vector.broadcast %cst_239 : f32 to vector<16x128xf32>
    %881 = arith.subf %880, %873 : vector<16x128xf32>
    %882 = arith.mulf %881, %879 : vector<16x128xf32>
    %883 = arith.mulf %873, %810 : vector<16x128xf32>
    %884 = arith.addf %882, %883 : vector<16x128xf32>
    %885 = vector.extract_strided_slice %853 {offsets = [0, 0], sizes = [16, 128], strides = [1, 1]} : vector<16x384xf32> to vector<16x128xf32>
    %886 = vector.extract_strided_slice %857 {offsets = [0, 0], sizes = [16, 128], strides = [1, 1]} : vector<16x384xf32> to vector<16x128xf32>
    %887 = arith.addf %885, %886 : vector<16x128xf32>
    %888 = arith.negf %887 : vector<16x128xf32>
    %889 = math.exp %888 : vector<16x128xf32>
    %cst_240 = arith.constant 1.000000e+00 : f32
    %890 = vector.broadcast %cst_240 : f32 to vector<16x128xf32>
    %891 = arith.addf %890, %889 : vector<16x128xf32>
    %892 = arith.divf %890, %891 : vector<16x128xf32>
    %893 = vector.extract_strided_slice %853 {offsets = [0, 128], sizes = [16, 128], strides = [1, 1]} : vector<16x384xf32> to vector<16x128xf32>
    %894 = vector.extract_strided_slice %857 {offsets = [0, 128], sizes = [16, 128], strides = [1, 1]} : vector<16x384xf32> to vector<16x128xf32>
    %895 = arith.addf %893, %894 : vector<16x128xf32>
    %896 = arith.negf %895 : vector<16x128xf32>
    %897 = math.exp %896 : vector<16x128xf32>
    %cst_241 = arith.constant 1.000000e+00 : f32
    %898 = vector.broadcast %cst_241 : f32 to vector<16x128xf32>
    %899 = arith.addf %898, %897 : vector<16x128xf32>
    %900 = arith.divf %898, %899 : vector<16x128xf32>
    %901 = vector.extract_strided_slice %853 {offsets = [0, 256], sizes = [16, 128], strides = [1, 1]} : vector<16x384xf32> to vector<16x128xf32>
    %902 = vector.extract_strided_slice %857 {offsets = [0, 256], sizes = [16, 128], strides = [1, 1]} : vector<16x384xf32> to vector<16x128xf32>
    %903 = arith.addf %902, %31 : vector<16x128xf32>
    %904 = arith.mulf %892, %903 : vector<16x128xf32>
    %905 = arith.addf %901, %904 : vector<16x128xf32>
    %906 = math.tanh %905 : vector<16x128xf32>
    %cst_242 = arith.constant 1.000000e+00 : f32
    %907 = vector.broadcast %cst_242 : f32 to vector<16x128xf32>
    %908 = arith.subf %907, %900 : vector<16x128xf32>
    %909 = arith.mulf %908, %906 : vector<16x128xf32>
    %910 = arith.mulf %900, %837 : vector<16x128xf32>
    %911 = arith.addf %909, %910 : vector<16x128xf32>
    %912 = arith.index_cast %c11_i32_229 : i32 to index
    %c0_243 = arith.constant 0 : index
    %c0_244 = arith.constant 0 : index
    %913 = vector.load %arg15[%912, %c0_243, %c0_244] : memref<12x16x256xf32, #tpu.memory_space<vmem>>, vector<1x16x128xf32>
    %914 = vector.shape_cast %913 : vector<1x16x128xf32> to vector<16x128xf32>
    %915 = vector.shape_cast %884 : vector<16x128xf32> to vector<1x16x128xf32>
    tpu.vector_store %arg15[%912, %c0_243, %c0_244], %915 {strides = array<i32>} : memref<12x16x256xf32, #tpu.memory_space<vmem>>, vector<1x16x128xf32>,
    %c11_i32_245 = arith.constant 11 : i32
    %916 = arith.subi %c11_i32_245, %c11_i32_229 : i32
    %917 = arith.index_cast %916 : i32 to index
    %c0_246 = arith.constant 0 : index
    %c128_247 = arith.constant 128 : index
    %918 = vector.load %arg15[%917, %c0_246, %c128_247] : memref<12x16x256xf32, #tpu.memory_space<vmem>>, vector<1x16x128xf32>
    %919 = vector.shape_cast %918 : vector<1x16x128xf32> to vector<16x128xf32>
    %920 = vector.shape_cast %911 : vector<16x128xf32> to vector<1x16x128xf32>
    tpu.vector_store %arg15[%917, %c0_246, %c128_247], %920 {strides = array<i32>} : memref<12x16x256xf32, #tpu.memory_space<vmem>>, vector<1x16x128xf32>,
    %c12_i32 = arith.constant 12 : i32
    %c0_248 = arith.constant 0 : index
    %c0_249 = arith.constant 0 : index
    %c0_250 = arith.constant 0 : index
    %921 = vector.load %arg15[%c0_248, %c0_249, %c0_250] : memref<12x16x256xf32, #tpu.memory_space<vmem>>, vector<12x16x256xf32>
    %922 = vector.shape_cast %921 : vector<12x16x256xf32> to vector<192x256xf32>
    %923 = arith.truncf %922 : vector<192x256xf32> to vector<192x256xbf16>
    %c0_251 = arith.constant 0 : index
    %c0_252 = arith.constant 0 : index
    %924 = vector.load %arg6[%c0_251, %c0_252] : memref<256x384xbf16, #tpu.memory_space<vmem>>, vector<256x384xbf16>
    %cst_253 = arith.constant dense<0.000000e+00> : vector<192x384xf32>
    %925 = tpu.matmul %923, %924, %cst_253 {dimension_numbers = #tpu.dot_dimension_numbers<[1], [0], [0], [1], [0, 0, 1, 1], [], []>} : vector<192x256xbf16>, vector<256x384xbf16>, vector<192x384xf32> -> vector<192x384xf32>
    %c0_254 = arith.constant 0 : index
    %c0_255 = arith.constant 0 : index
    %926 = vector.load %arg8[%c0_254, %c0_255] : memref<1x384xf32, #tpu.memory_space<vmem>>, vector<1x384xf32>
    %927 = vector.broadcast %926 : vector<1x384xf32> to vector<192x384xf32>
    %928 = arith.addf %925, %927 : vector<192x384xf32>
    %929 = vector.shape_cast %928 : vector<192x384xf32> to vector<12x16x384xf32>
    %c0_256 = arith.constant 0 : index
    %c0_257 = arith.constant 0 : index
    %c0_258 = arith.constant 0 : index
    %930 = vector.load %arg13[%c0_256, %c0_257, %c0_258] : memref<12x16x384xf32, #tpu.memory_space<vmem>>, vector<12x16x384xf32>
    tpu.vector_store %arg13[%c0_256, %c0_257, %c0_258], %929 {strides = array<i32>} : memref<12x16x384xf32, #tpu.memory_space<vmem>>, vector<12x16x384xf32>,
    %c0_259 = arith.constant 0 : index
    %c0_260 = arith.constant 0 : index
    %931 = vector.load %arg7[%c0_259, %c0_260] : memref<128x384xbf16, #tpu.memory_space<vmem>>, vector<128x384xbf16>
    %c0_261 = arith.constant 0 : index
    %c0_262 = arith.constant 0 : index
    %932 = vector.load %arg9[%c0_261, %c0_262] : memref<1x128xf32, #tpu.memory_space<vmem>>, vector<1x128xf32>
    %933 = vector.shape_cast %932 : vector<1x128xf32> to vector<1x128xf32>
    %934 = vector.broadcast %933 : vector<1x128xf32> to vector<16x128xf32>
    %cst_263 = arith.constant 0.000000e+00 : f32
    %935 = vector.broadcast %cst_263 : f32 to vector<16x128xf32>
    %c0_i32_264 = arith.constant 0 : i32
    %936 = arith.index_cast %c0_i32_264 : i32 to index
    %c0_265 = arith.constant 0 : index
    %c0_266 = arith.constant 0 : index
    %937 = vector.load %arg13[%936, %c0_265, %c0_266] : memref<12x16x384xf32, #tpu.memory_space<vmem>>, vector<1x16x384xf32>
    %938 = vector.shape_cast %937 : vector<1x16x384xf32> to vector<16x384xf32>
    %939 = arith.truncf %935 : vector<16x128xf32> to vector<16x128xbf16>
    %cst_267 = arith.constant dense<0.000000e+00> : vector<16x384xf32>
    %940 = tpu.matmul %939, %931, %cst_267 {dimension_numbers = #tpu.dot_dimension_numbers<[1], [0], [0], [1], [0, 0, 1, 1], [], []>} : vector<16x128xbf16>, vector<128x384xbf16>, vector<16x384xf32> -> vector<16x384xf32>
    %941 = vector.extract_strided_slice %938 {offsets = [0, 0], sizes = [16, 128], strides = [1, 1]} : vector<16x384xf32> to vector<16x128xf32>
    %942 = vector.extract_strided_slice %940 {offsets = [0, 0], sizes = [16, 128], strides = [1, 1]} : vector<16x384xf32> to vector<16x128xf32>
    %943 = arith.addf %941, %942 : vector<16x128xf32>
    %944 = arith.negf %943 : vector<16x128xf32>
    %945 = math.exp %944 : vector<16x128xf32>
    %cst_268 = arith.constant 1.000000e+00 : f32
    %946 = vector.broadcast %cst_268 : f32 to vector<16x128xf32>
    %947 = arith.addf %946, %945 : vector<16x128xf32>
    %948 = arith.divf %946, %947 : vector<16x128xf32>
    %949 = vector.extract_strided_slice %938 {offsets = [0, 128], sizes = [16, 128], strides = [1, 1]} : vector<16x384xf32> to vector<16x128xf32>
    %950 = vector.extract_strided_slice %940 {offsets = [0, 128], sizes = [16, 128], strides = [1, 1]} : vector<16x384xf32> to vector<16x128xf32>
    %951 = arith.addf %949, %950 : vector<16x128xf32>
    %952 = arith.negf %951 : vector<16x128xf32>
    %953 = math.exp %952 : vector<16x128xf32>
    %cst_269 = arith.constant 1.000000e+00 : f32
    %954 = vector.broadcast %cst_269 : f32 to vector<16x128xf32>
    %955 = arith.addf %954, %953 : vector<16x128xf32>
    %956 = arith.divf %954, %955 : vector<16x128xf32>
    %957 = vector.extract_strided_slice %938 {offsets = [0, 256], sizes = [16, 128], strides = [1, 1]} : vector<16x384xf32> to vector<16x128xf32>
    %958 = vector.extract_strided_slice %940 {offsets = [0, 256], sizes = [16, 128], strides = [1, 1]} : vector<16x384xf32> to vector<16x128xf32>
    %959 = arith.addf %958, %934 : vector<16x128xf32>
    %960 = arith.mulf %948, %959 : vector<16x128xf32>
    %961 = arith.addf %957, %960 : vector<16x128xf32>
    %962 = math.tanh %961 : vector<16x128xf32>
    %cst_270 = arith.constant 1.000000e+00 : f32
    %963 = vector.broadcast %cst_270 : f32 to vector<16x128xf32>
    %964 = arith.subf %963, %956 : vector<16x128xf32>
    %965 = arith.mulf %964, %962 : vector<16x128xf32>
    %966 = arith.mulf %956, %935 : vector<16x128xf32>
    %967 = arith.addf %965, %966 : vector<16x128xf32>
    %c1_i32_271 = arith.constant 1 : i32
    %968 = arith.index_cast %c1_i32_271 : i32 to index
    %c0_272 = arith.constant 0 : index
    %c0_273 = arith.constant 0 : index
    %969 = vector.load %arg13[%968, %c0_272, %c0_273] : memref<12x16x384xf32, #tpu.memory_space<vmem>>, vector<1x16x384xf32>
    %970 = vector.shape_cast %969 : vector<1x16x384xf32> to vector<16x384xf32>
    %971 = arith.truncf %967 : vector<16x128xf32> to vector<16x128xbf16>
    %cst_274 = arith.constant dense<0.000000e+00> : vector<16x384xf32>
    %972 = tpu.matmul %971, %931, %cst_274 {dimension_numbers = #tpu.dot_dimension_numbers<[1], [0], [0], [1], [0, 0, 1, 1], [], []>} : vector<16x128xbf16>, vector<128x384xbf16>, vector<16x384xf32> -> vector<16x384xf32>
    %973 = vector.extract_strided_slice %970 {offsets = [0, 0], sizes = [16, 128], strides = [1, 1]} : vector<16x384xf32> to vector<16x128xf32>
    %974 = vector.extract_strided_slice %972 {offsets = [0, 0], sizes = [16, 128], strides = [1, 1]} : vector<16x384xf32> to vector<16x128xf32>
    %975 = arith.addf %973, %974 : vector<16x128xf32>
    %976 = arith.negf %975 : vector<16x128xf32>
    %977 = math.exp %976 : vector<16x128xf32>
    %cst_275 = arith.constant 1.000000e+00 : f32
    %978 = vector.broadcast %cst_275 : f32 to vector<16x128xf32>
    %979 = arith.addf %978, %977 : vector<16x128xf32>
    %980 = arith.divf %978, %979 : vector<16x128xf32>
    %981 = vector.extract_strided_slice %970 {offsets = [0, 128], sizes = [16, 128], strides = [1, 1]} : vector<16x384xf32> to vector<16x128xf32>
    %982 = vector.extract_strided_slice %972 {offsets = [0, 128], sizes = [16, 128], strides = [1, 1]} : vector<16x384xf32> to vector<16x128xf32>
    %983 = arith.addf %981, %982 : vector<16x128xf32>
    %984 = arith.negf %983 : vector<16x128xf32>
    %985 = math.exp %984 : vector<16x128xf32>
    %cst_276 = arith.constant 1.000000e+00 : f32
    %986 = vector.broadcast %cst_276 : f32 to vector<16x128xf32>
    %987 = arith.addf %986, %985 : vector<16x128xf32>
    %988 = arith.divf %986, %987 : vector<16x128xf32>
    %989 = vector.extract_strided_slice %970 {offsets = [0, 256], sizes = [16, 128], strides = [1, 1]} : vector<16x384xf32> to vector<16x128xf32>
    %990 = vector.extract_strided_slice %972 {offsets = [0, 256], sizes = [16, 128], strides = [1, 1]} : vector<16x384xf32> to vector<16x128xf32>
    %991 = arith.addf %990, %934 : vector<16x128xf32>
    %992 = arith.mulf %980, %991 : vector<16x128xf32>
    %993 = arith.addf %989, %992 : vector<16x128xf32>
    %994 = math.tanh %993 : vector<16x128xf32>
    %cst_277 = arith.constant 1.000000e+00 : f32
    %995 = vector.broadcast %cst_277 : f32 to vector<16x128xf32>
    %996 = arith.subf %995, %988 : vector<16x128xf32>
    %997 = arith.mulf %996, %994 : vector<16x128xf32>
    %998 = arith.mulf %988, %967 : vector<16x128xf32>
    %999 = arith.addf %997, %998 : vector<16x128xf32>
    %c2_i32_278 = arith.constant 2 : i32
    %1000 = arith.index_cast %c2_i32_278 : i32 to index
    %c0_279 = arith.constant 0 : index
    %c0_280 = arith.constant 0 : index
    %1001 = vector.load %arg13[%1000, %c0_279, %c0_280] : memref<12x16x384xf32, #tpu.memory_space<vmem>>, vector<1x16x384xf32>
    %1002 = vector.shape_cast %1001 : vector<1x16x384xf32> to vector<16x384xf32>
    %1003 = arith.truncf %999 : vector<16x128xf32> to vector<16x128xbf16>
    %cst_281 = arith.constant dense<0.000000e+00> : vector<16x384xf32>
    %1004 = tpu.matmul %1003, %931, %cst_281 {dimension_numbers = #tpu.dot_dimension_numbers<[1], [0], [0], [1], [0, 0, 1, 1], [], []>} : vector<16x128xbf16>, vector<128x384xbf16>, vector<16x384xf32> -> vector<16x384xf32>
    %1005 = vector.extract_strided_slice %1002 {offsets = [0, 0], sizes = [16, 128], strides = [1, 1]} : vector<16x384xf32> to vector<16x128xf32>
    %1006 = vector.extract_strided_slice %1004 {offsets = [0, 0], sizes = [16, 128], strides = [1, 1]} : vector<16x384xf32> to vector<16x128xf32>
    %1007 = arith.addf %1005, %1006 : vector<16x128xf32>
    %1008 = arith.negf %1007 : vector<16x128xf32>
    %1009 = math.exp %1008 : vector<16x128xf32>
    %cst_282 = arith.constant 1.000000e+00 : f32
    %1010 = vector.broadcast %cst_282 : f32 to vector<16x128xf32>
    %1011 = arith.addf %1010, %1009 : vector<16x128xf32>
    %1012 = arith.divf %1010, %1011 : vector<16x128xf32>
    %1013 = vector.extract_strided_slice %1002 {offsets = [0, 128], sizes = [16, 128], strides = [1, 1]} : vector<16x384xf32> to vector<16x128xf32>
    %1014 = vector.extract_strided_slice %1004 {offsets = [0, 128], sizes = [16, 128], strides = [1, 1]} : vector<16x384xf32> to vector<16x128xf32>
    %1015 = arith.addf %1013, %1014 : vector<16x128xf32>
    %1016 = arith.negf %1015 : vector<16x128xf32>
    %1017 = math.exp %1016 : vector<16x128xf32>
    %cst_283 = arith.constant 1.000000e+00 : f32
    %1018 = vector.broadcast %cst_283 : f32 to vector<16x128xf32>
    %1019 = arith.addf %1018, %1017 : vector<16x128xf32>
    %1020 = arith.divf %1018, %1019 : vector<16x128xf32>
    %1021 = vector.extract_strided_slice %1002 {offsets = [0, 256], sizes = [16, 128], strides = [1, 1]} : vector<16x384xf32> to vector<16x128xf32>
    %1022 = vector.extract_strided_slice %1004 {offsets = [0, 256], sizes = [16, 128], strides = [1, 1]} : vector<16x384xf32> to vector<16x128xf32>
    %1023 = arith.addf %1022, %934 : vector<16x128xf32>
    %1024 = arith.mulf %1012, %1023 : vector<16x128xf32>
    %1025 = arith.addf %1021, %1024 : vector<16x128xf32>
    %1026 = math.tanh %1025 : vector<16x128xf32>
    %cst_284 = arith.constant 1.000000e+00 : f32
    %1027 = vector.broadcast %cst_284 : f32 to vector<16x128xf32>
    %1028 = arith.subf %1027, %1020 : vector<16x128xf32>
    %1029 = arith.mulf %1028, %1026 : vector<16x128xf32>
    %1030 = arith.mulf %1020, %999 : vector<16x128xf32>
    %1031 = arith.addf %1029, %1030 : vector<16x128xf32>
    %c3_i32_285 = arith.constant 3 : i32
    %1032 = arith.index_cast %c3_i32_285 : i32 to index
    %c0_286 = arith.constant 0 : index
    %c0_287 = arith.constant 0 : index
    %1033 = vector.load %arg13[%1032, %c0_286, %c0_287] : memref<12x16x384xf32, #tpu.memory_space<vmem>>, vector<1x16x384xf32>
    %1034 = vector.shape_cast %1033 : vector<1x16x384xf32> to vector<16x384xf32>
    %1035 = arith.truncf %1031 : vector<16x128xf32> to vector<16x128xbf16>
    %cst_288 = arith.constant dense<0.000000e+00> : vector<16x384xf32>
    %1036 = tpu.matmul %1035, %931, %cst_288 {dimension_numbers = #tpu.dot_dimension_numbers<[1], [0], [0], [1], [0, 0, 1, 1], [], []>} : vector<16x128xbf16>, vector<128x384xbf16>, vector<16x384xf32> -> vector<16x384xf32>
    %1037 = vector.extract_strided_slice %1034 {offsets = [0, 0], sizes = [16, 128], strides = [1, 1]} : vector<16x384xf32> to vector<16x128xf32>
    %1038 = vector.extract_strided_slice %1036 {offsets = [0, 0], sizes = [16, 128], strides = [1, 1]} : vector<16x384xf32> to vector<16x128xf32>
    %1039 = arith.addf %1037, %1038 : vector<16x128xf32>
    %1040 = arith.negf %1039 : vector<16x128xf32>
    %1041 = math.exp %1040 : vector<16x128xf32>
    %cst_289 = arith.constant 1.000000e+00 : f32
    %1042 = vector.broadcast %cst_289 : f32 to vector<16x128xf32>
    %1043 = arith.addf %1042, %1041 : vector<16x128xf32>
    %1044 = arith.divf %1042, %1043 : vector<16x128xf32>
    %1045 = vector.extract_strided_slice %1034 {offsets = [0, 128], sizes = [16, 128], strides = [1, 1]} : vector<16x384xf32> to vector<16x128xf32>
    %1046 = vector.extract_strided_slice %1036 {offsets = [0, 128], sizes = [16, 128], strides = [1, 1]} : vector<16x384xf32> to vector<16x128xf32>
    %1047 = arith.addf %1045, %1046 : vector<16x128xf32>
    %1048 = arith.negf %1047 : vector<16x128xf32>
    %1049 = math.exp %1048 : vector<16x128xf32>
    %cst_290 = arith.constant 1.000000e+00 : f32
    %1050 = vector.broadcast %cst_290 : f32 to vector<16x128xf32>
    %1051 = arith.addf %1050, %1049 : vector<16x128xf32>
    %1052 = arith.divf %1050, %1051 : vector<16x128xf32>
    %1053 = vector.extract_strided_slice %1034 {offsets = [0, 256], sizes = [16, 128], strides = [1, 1]} : vector<16x384xf32> to vector<16x128xf32>
    %1054 = vector.extract_strided_slice %1036 {offsets = [0, 256], sizes = [16, 128], strides = [1, 1]} : vector<16x384xf32> to vector<16x128xf32>
    %1055 = arith.addf %1054, %934 : vector<16x128xf32>
    %1056 = arith.mulf %1044, %1055 : vector<16x128xf32>
    %1057 = arith.addf %1053, %1056 : vector<16x128xf32>
    %1058 = math.tanh %1057 : vector<16x128xf32>
    %cst_291 = arith.constant 1.000000e+00 : f32
    %1059 = vector.broadcast %cst_291 : f32 to vector<16x128xf32>
    %1060 = arith.subf %1059, %1052 : vector<16x128xf32>
    %1061 = arith.mulf %1060, %1058 : vector<16x128xf32>
    %1062 = arith.mulf %1052, %1031 : vector<16x128xf32>
    %1063 = arith.addf %1061, %1062 : vector<16x128xf32>
    %c4_i32_292 = arith.constant 4 : i32
    %1064 = arith.index_cast %c4_i32_292 : i32 to index
    %c0_293 = arith.constant 0 : index
    %c0_294 = arith.constant 0 : index
    %1065 = vector.load %arg13[%1064, %c0_293, %c0_294] : memref<12x16x384xf32, #tpu.memory_space<vmem>>, vector<1x16x384xf32>
    %1066 = vector.shape_cast %1065 : vector<1x16x384xf32> to vector<16x384xf32>
    %1067 = arith.truncf %1063 : vector<16x128xf32> to vector<16x128xbf16>
    %cst_295 = arith.constant dense<0.000000e+00> : vector<16x384xf32>
    %1068 = tpu.matmul %1067, %931, %cst_295 {dimension_numbers = #tpu.dot_dimension_numbers<[1], [0], [0], [1], [0, 0, 1, 1], [], []>} : vector<16x128xbf16>, vector<128x384xbf16>, vector<16x384xf32> -> vector<16x384xf32>
    %1069 = vector.extract_strided_slice %1066 {offsets = [0, 0], sizes = [16, 128], strides = [1, 1]} : vector<16x384xf32> to vector<16x128xf32>
    %1070 = vector.extract_strided_slice %1068 {offsets = [0, 0], sizes = [16, 128], strides = [1, 1]} : vector<16x384xf32> to vector<16x128xf32>
    %1071 = arith.addf %1069, %1070 : vector<16x128xf32>
    %1072 = arith.negf %1071 : vector<16x128xf32>
    %1073 = math.exp %1072 : vector<16x128xf32>
    %cst_296 = arith.constant 1.000000e+00 : f32
    %1074 = vector.broadcast %cst_296 : f32 to vector<16x128xf32>
    %1075 = arith.addf %1074, %1073 : vector<16x128xf32>
    %1076 = arith.divf %1074, %1075 : vector<16x128xf32>
    %1077 = vector.extract_strided_slice %1066 {offsets = [0, 128], sizes = [16, 128], strides = [1, 1]} : vector<16x384xf32> to vector<16x128xf32>
    %1078 = vector.extract_strided_slice %1068 {offsets = [0, 128], sizes = [16, 128], strides = [1, 1]} : vector<16x384xf32> to vector<16x128xf32>
    %1079 = arith.addf %1077, %1078 : vector<16x128xf32>
    %1080 = arith.negf %1079 : vector<16x128xf32>
    %1081 = math.exp %1080 : vector<16x128xf32>
    %cst_297 = arith.constant 1.000000e+00 : f32
    %1082 = vector.broadcast %cst_297 : f32 to vector<16x128xf32>
    %1083 = arith.addf %1082, %1081 : vector<16x128xf32>
    %1084 = arith.divf %1082, %1083 : vector<16x128xf32>
    %1085 = vector.extract_strided_slice %1066 {offsets = [0, 256], sizes = [16, 128], strides = [1, 1]} : vector<16x384xf32> to vector<16x128xf32>
    %1086 = vector.extract_strided_slice %1068 {offsets = [0, 256], sizes = [16, 128], strides = [1, 1]} : vector<16x384xf32> to vector<16x128xf32>
    %1087 = arith.addf %1086, %934 : vector<16x128xf32>
    %1088 = arith.mulf %1076, %1087 : vector<16x128xf32>
    %1089 = arith.addf %1085, %1088 : vector<16x128xf32>
    %1090 = math.tanh %1089 : vector<16x128xf32>
    %cst_298 = arith.constant 1.000000e+00 : f32
    %1091 = vector.broadcast %cst_298 : f32 to vector<16x128xf32>
    %1092 = arith.subf %1091, %1084 : vector<16x128xf32>
    %1093 = arith.mulf %1092, %1090 : vector<16x128xf32>
    %1094 = arith.mulf %1084, %1063 : vector<16x128xf32>
    %1095 = arith.addf %1093, %1094 : vector<16x128xf32>
    %c5_i32_299 = arith.constant 5 : i32
    %1096 = arith.index_cast %c5_i32_299 : i32 to index
    %c0_300 = arith.constant 0 : index
    %c0_301 = arith.constant 0 : index
    %1097 = vector.load %arg13[%1096, %c0_300, %c0_301] : memref<12x16x384xf32, #tpu.memory_space<vmem>>, vector<1x16x384xf32>
    %1098 = vector.shape_cast %1097 : vector<1x16x384xf32> to vector<16x384xf32>
    %1099 = arith.truncf %1095 : vector<16x128xf32> to vector<16x128xbf16>
    %cst_302 = arith.constant dense<0.000000e+00> : vector<16x384xf32>
    %1100 = tpu.matmul %1099, %931, %cst_302 {dimension_numbers = #tpu.dot_dimension_numbers<[1], [0], [0], [1], [0, 0, 1, 1], [], []>} : vector<16x128xbf16>, vector<128x384xbf16>, vector<16x384xf32> -> vector<16x384xf32>
    %1101 = vector.extract_strided_slice %1098 {offsets = [0, 0], sizes = [16, 128], strides = [1, 1]} : vector<16x384xf32> to vector<16x128xf32>
    %1102 = vector.extract_strided_slice %1100 {offsets = [0, 0], sizes = [16, 128], strides = [1, 1]} : vector<16x384xf32> to vector<16x128xf32>
    %1103 = arith.addf %1101, %1102 : vector<16x128xf32>
    %1104 = arith.negf %1103 : vector<16x128xf32>
    %1105 = math.exp %1104 : vector<16x128xf32>
    %cst_303 = arith.constant 1.000000e+00 : f32
    %1106 = vector.broadcast %cst_303 : f32 to vector<16x128xf32>
    %1107 = arith.addf %1106, %1105 : vector<16x128xf32>
    %1108 = arith.divf %1106, %1107 : vector<16x128xf32>
    %1109 = vector.extract_strided_slice %1098 {offsets = [0, 128], sizes = [16, 128], strides = [1, 1]} : vector<16x384xf32> to vector<16x128xf32>
    %1110 = vector.extract_strided_slice %1100 {offsets = [0, 128], sizes = [16, 128], strides = [1, 1]} : vector<16x384xf32> to vector<16x128xf32>
    %1111 = arith.addf %1109, %1110 : vector<16x128xf32>
    %1112 = arith.negf %1111 : vector<16x128xf32>
    %1113 = math.exp %1112 : vector<16x128xf32>
    %cst_304 = arith.constant 1.000000e+00 : f32
    %1114 = vector.broadcast %cst_304 : f32 to vector<16x128xf32>
    %1115 = arith.addf %1114, %1113 : vector<16x128xf32>
    %1116 = arith.divf %1114, %1115 : vector<16x128xf32>
    %1117 = vector.extract_strided_slice %1098 {offsets = [0, 256], sizes = [16, 128], strides = [1, 1]} : vector<16x384xf32> to vector<16x128xf32>
    %1118 = vector.extract_strided_slice %1100 {offsets = [0, 256], sizes = [16, 128], strides = [1, 1]} : vector<16x384xf32> to vector<16x128xf32>
    %1119 = arith.addf %1118, %934 : vector<16x128xf32>
    %1120 = arith.mulf %1108, %1119 : vector<16x128xf32>
    %1121 = arith.addf %1117, %1120 : vector<16x128xf32>
    %1122 = math.tanh %1121 : vector<16x128xf32>
    %cst_305 = arith.constant 1.000000e+00 : f32
    %1123 = vector.broadcast %cst_305 : f32 to vector<16x128xf32>
    %1124 = arith.subf %1123, %1116 : vector<16x128xf32>
    %1125 = arith.mulf %1124, %1122 : vector<16x128xf32>
    %1126 = arith.mulf %1116, %1095 : vector<16x128xf32>
    %1127 = arith.addf %1125, %1126 : vector<16x128xf32>
    %c6_i32_306 = arith.constant 6 : i32
    %1128 = arith.index_cast %c6_i32_306 : i32 to index
    %c0_307 = arith.constant 0 : index
    %c0_308 = arith.constant 0 : index
    %1129 = vector.load %arg13[%1128, %c0_307, %c0_308] : memref<12x16x384xf32, #tpu.memory_space<vmem>>, vector<1x16x384xf32>
    %1130 = vector.shape_cast %1129 : vector<1x16x384xf32> to vector<16x384xf32>
    %1131 = arith.truncf %1127 : vector<16x128xf32> to vector<16x128xbf16>
    %cst_309 = arith.constant dense<0.000000e+00> : vector<16x384xf32>
    %1132 = tpu.matmul %1131, %931, %cst_309 {dimension_numbers = #tpu.dot_dimension_numbers<[1], [0], [0], [1], [0, 0, 1, 1], [], []>} : vector<16x128xbf16>, vector<128x384xbf16>, vector<16x384xf32> -> vector<16x384xf32>
    %1133 = vector.extract_strided_slice %1130 {offsets = [0, 0], sizes = [16, 128], strides = [1, 1]} : vector<16x384xf32> to vector<16x128xf32>
    %1134 = vector.extract_strided_slice %1132 {offsets = [0, 0], sizes = [16, 128], strides = [1, 1]} : vector<16x384xf32> to vector<16x128xf32>
    %1135 = arith.addf %1133, %1134 : vector<16x128xf32>
    %1136 = arith.negf %1135 : vector<16x128xf32>
    %1137 = math.exp %1136 : vector<16x128xf32>
    %cst_310 = arith.constant 1.000000e+00 : f32
    %1138 = vector.broadcast %cst_310 : f32 to vector<16x128xf32>
    %1139 = arith.addf %1138, %1137 : vector<16x128xf32>
    %1140 = arith.divf %1138, %1139 : vector<16x128xf32>
    %1141 = vector.extract_strided_slice %1130 {offsets = [0, 128], sizes = [16, 128], strides = [1, 1]} : vector<16x384xf32> to vector<16x128xf32>
    %1142 = vector.extract_strided_slice %1132 {offsets = [0, 128], sizes = [16, 128], strides = [1, 1]} : vector<16x384xf32> to vector<16x128xf32>
    %1143 = arith.addf %1141, %1142 : vector<16x128xf32>
    %1144 = arith.negf %1143 : vector<16x128xf32>
    %1145 = math.exp %1144 : vector<16x128xf32>
    %cst_311 = arith.constant 1.000000e+00 : f32
    %1146 = vector.broadcast %cst_311 : f32 to vector<16x128xf32>
    %1147 = arith.addf %1146, %1145 : vector<16x128xf32>
    %1148 = arith.divf %1146, %1147 : vector<16x128xf32>
    %1149 = vector.extract_strided_slice %1130 {offsets = [0, 256], sizes = [16, 128], strides = [1, 1]} : vector<16x384xf32> to vector<16x128xf32>
    %1150 = vector.extract_strided_slice %1132 {offsets = [0, 256], sizes = [16, 128], strides = [1, 1]} : vector<16x384xf32> to vector<16x128xf32>
    %1151 = arith.addf %1150, %934 : vector<16x128xf32>
    %1152 = arith.mulf %1140, %1151 : vector<16x128xf32>
    %1153 = arith.addf %1149, %1152 : vector<16x128xf32>
    %1154 = math.tanh %1153 : vector<16x128xf32>
    %cst_312 = arith.constant 1.000000e+00 : f32
    %1155 = vector.broadcast %cst_312 : f32 to vector<16x128xf32>
    %1156 = arith.subf %1155, %1148 : vector<16x128xf32>
    %1157 = arith.mulf %1156, %1154 : vector<16x128xf32>
    %1158 = arith.mulf %1148, %1127 : vector<16x128xf32>
    %1159 = arith.addf %1157, %1158 : vector<16x128xf32>
    %c7_i32_313 = arith.constant 7 : i32
    %1160 = arith.index_cast %c7_i32_313 : i32 to index
    %c0_314 = arith.constant 0 : index
    %c0_315 = arith.constant 0 : index
    %1161 = vector.load %arg13[%1160, %c0_314, %c0_315] : memref<12x16x384xf32, #tpu.memory_space<vmem>>, vector<1x16x384xf32>
    %1162 = vector.shape_cast %1161 : vector<1x16x384xf32> to vector<16x384xf32>
    %1163 = arith.truncf %1159 : vector<16x128xf32> to vector<16x128xbf16>
    %cst_316 = arith.constant dense<0.000000e+00> : vector<16x384xf32>
    %1164 = tpu.matmul %1163, %931, %cst_316 {dimension_numbers = #tpu.dot_dimension_numbers<[1], [0], [0], [1], [0, 0, 1, 1], [], []>} : vector<16x128xbf16>, vector<128x384xbf16>, vector<16x384xf32> -> vector<16x384xf32>
    %1165 = vector.extract_strided_slice %1162 {offsets = [0, 0], sizes = [16, 128], strides = [1, 1]} : vector<16x384xf32> to vector<16x128xf32>
    %1166 = vector.extract_strided_slice %1164 {offsets = [0, 0], sizes = [16, 128], strides = [1, 1]} : vector<16x384xf32> to vector<16x128xf32>
    %1167 = arith.addf %1165, %1166 : vector<16x128xf32>
    %1168 = arith.negf %1167 : vector<16x128xf32>
    %1169 = math.exp %1168 : vector<16x128xf32>
    %cst_317 = arith.constant 1.000000e+00 : f32
    %1170 = vector.broadcast %cst_317 : f32 to vector<16x128xf32>
    %1171 = arith.addf %1170, %1169 : vector<16x128xf32>
    %1172 = arith.divf %1170, %1171 : vector<16x128xf32>
    %1173 = vector.extract_strided_slice %1162 {offsets = [0, 128], sizes = [16, 128], strides = [1, 1]} : vector<16x384xf32> to vector<16x128xf32>
    %1174 = vector.extract_strided_slice %1164 {offsets = [0, 128], sizes = [16, 128], strides = [1, 1]} : vector<16x384xf32> to vector<16x128xf32>
    %1175 = arith.addf %1173, %1174 : vector<16x128xf32>
    %1176 = arith.negf %1175 : vector<16x128xf32>
    %1177 = math.exp %1176 : vector<16x128xf32>
    %cst_318 = arith.constant 1.000000e+00 : f32
    %1178 = vector.broadcast %cst_318 : f32 to vector<16x128xf32>
    %1179 = arith.addf %1178, %1177 : vector<16x128xf32>
    %1180 = arith.divf %1178, %1179 : vector<16x128xf32>
    %1181 = vector.extract_strided_slice %1162 {offsets = [0, 256], sizes = [16, 128], strides = [1, 1]} : vector<16x384xf32> to vector<16x128xf32>
    %1182 = vector.extract_strided_slice %1164 {offsets = [0, 256], sizes = [16, 128], strides = [1, 1]} : vector<16x384xf32> to vector<16x128xf32>
    %1183 = arith.addf %1182, %934 : vector<16x128xf32>
    %1184 = arith.mulf %1172, %1183 : vector<16x128xf32>
    %1185 = arith.addf %1181, %1184 : vector<16x128xf32>
    %1186 = math.tanh %1185 : vector<16x128xf32>
    %cst_319 = arith.constant 1.000000e+00 : f32
    %1187 = vector.broadcast %cst_319 : f32 to vector<16x128xf32>
    %1188 = arith.subf %1187, %1180 : vector<16x128xf32>
    %1189 = arith.mulf %1188, %1186 : vector<16x128xf32>
    %1190 = arith.mulf %1180, %1159 : vector<16x128xf32>
    %1191 = arith.addf %1189, %1190 : vector<16x128xf32>
    %c8_i32_320 = arith.constant 8 : i32
    %1192 = arith.index_cast %c8_i32_320 : i32 to index
    %c0_321 = arith.constant 0 : index
    %c0_322 = arith.constant 0 : index
    %1193 = vector.load %arg13[%1192, %c0_321, %c0_322] : memref<12x16x384xf32, #tpu.memory_space<vmem>>, vector<1x16x384xf32>
    %1194 = vector.shape_cast %1193 : vector<1x16x384xf32> to vector<16x384xf32>
    %1195 = arith.truncf %1191 : vector<16x128xf32> to vector<16x128xbf16>
    %cst_323 = arith.constant dense<0.000000e+00> : vector<16x384xf32>
    %1196 = tpu.matmul %1195, %931, %cst_323 {dimension_numbers = #tpu.dot_dimension_numbers<[1], [0], [0], [1], [0, 0, 1, 1], [], []>} : vector<16x128xbf16>, vector<128x384xbf16>, vector<16x384xf32> -> vector<16x384xf32>
    %1197 = vector.extract_strided_slice %1194 {offsets = [0, 0], sizes = [16, 128], strides = [1, 1]} : vector<16x384xf32> to vector<16x128xf32>
    %1198 = vector.extract_strided_slice %1196 {offsets = [0, 0], sizes = [16, 128], strides = [1, 1]} : vector<16x384xf32> to vector<16x128xf32>
    %1199 = arith.addf %1197, %1198 : vector<16x128xf32>
    %1200 = arith.negf %1199 : vector<16x128xf32>
    %1201 = math.exp %1200 : vector<16x128xf32>
    %cst_324 = arith.constant 1.000000e+00 : f32
    %1202 = vector.broadcast %cst_324 : f32 to vector<16x128xf32>
    %1203 = arith.addf %1202, %1201 : vector<16x128xf32>
    %1204 = arith.divf %1202, %1203 : vector<16x128xf32>
    %1205 = vector.extract_strided_slice %1194 {offsets = [0, 128], sizes = [16, 128], strides = [1, 1]} : vector<16x384xf32> to vector<16x128xf32>
    %1206 = vector.extract_strided_slice %1196 {offsets = [0, 128], sizes = [16, 128], strides = [1, 1]} : vector<16x384xf32> to vector<16x128xf32>
    %1207 = arith.addf %1205, %1206 : vector<16x128xf32>
    %1208 = arith.negf %1207 : vector<16x128xf32>
    %1209 = math.exp %1208 : vector<16x128xf32>
    %cst_325 = arith.constant 1.000000e+00 : f32
    %1210 = vector.broadcast %cst_325 : f32 to vector<16x128xf32>
    %1211 = arith.addf %1210, %1209 : vector<16x128xf32>
    %1212 = arith.divf %1210, %1211 : vector<16x128xf32>
    %1213 = vector.extract_strided_slice %1194 {offsets = [0, 256], sizes = [16, 128], strides = [1, 1]} : vector<16x384xf32> to vector<16x128xf32>
    %1214 = vector.extract_strided_slice %1196 {offsets = [0, 256], sizes = [16, 128], strides = [1, 1]} : vector<16x384xf32> to vector<16x128xf32>
    %1215 = arith.addf %1214, %934 : vector<16x128xf32>
    %1216 = arith.mulf %1204, %1215 : vector<16x128xf32>
    %1217 = arith.addf %1213, %1216 : vector<16x128xf32>
    %1218 = math.tanh %1217 : vector<16x128xf32>
    %cst_326 = arith.constant 1.000000e+00 : f32
    %1219 = vector.broadcast %cst_326 : f32 to vector<16x128xf32>
    %1220 = arith.subf %1219, %1212 : vector<16x128xf32>
    %1221 = arith.mulf %1220, %1218 : vector<16x128xf32>
    %1222 = arith.mulf %1212, %1191 : vector<16x128xf32>
    %1223 = arith.addf %1221, %1222 : vector<16x128xf32>
    %c9_i32_327 = arith.constant 9 : i32
    %1224 = arith.index_cast %c9_i32_327 : i32 to index
    %c0_328 = arith.constant 0 : index
    %c0_329 = arith.constant 0 : index
    %1225 = vector.load %arg13[%1224, %c0_328, %c0_329] : memref<12x16x384xf32, #tpu.memory_space<vmem>>, vector<1x16x384xf32>
    %1226 = vector.shape_cast %1225 : vector<1x16x384xf32> to vector<16x384xf32>
    %1227 = arith.truncf %1223 : vector<16x128xf32> to vector<16x128xbf16>
    %cst_330 = arith.constant dense<0.000000e+00> : vector<16x384xf32>
    %1228 = tpu.matmul %1227, %931, %cst_330 {dimension_numbers = #tpu.dot_dimension_numbers<[1], [0], [0], [1], [0, 0, 1, 1], [], []>} : vector<16x128xbf16>, vector<128x384xbf16>, vector<16x384xf32> -> vector<16x384xf32>
    %1229 = vector.extract_strided_slice %1226 {offsets = [0, 0], sizes = [16, 128], strides = [1, 1]} : vector<16x384xf32> to vector<16x128xf32>
    %1230 = vector.extract_strided_slice %1228 {offsets = [0, 0], sizes = [16, 128], strides = [1, 1]} : vector<16x384xf32> to vector<16x128xf32>
    %1231 = arith.addf %1229, %1230 : vector<16x128xf32>
    %1232 = arith.negf %1231 : vector<16x128xf32>
    %1233 = math.exp %1232 : vector<16x128xf32>
    %cst_331 = arith.constant 1.000000e+00 : f32
    %1234 = vector.broadcast %cst_331 : f32 to vector<16x128xf32>
    %1235 = arith.addf %1234, %1233 : vector<16x128xf32>
    %1236 = arith.divf %1234, %1235 : vector<16x128xf32>
    %1237 = vector.extract_strided_slice %1226 {offsets = [0, 128], sizes = [16, 128], strides = [1, 1]} : vector<16x384xf32> to vector<16x128xf32>
    %1238 = vector.extract_strided_slice %1228 {offsets = [0, 128], sizes = [16, 128], strides = [1, 1]} : vector<16x384xf32> to vector<16x128xf32>
    %1239 = arith.addf %1237, %1238 : vector<16x128xf32>
    %1240 = arith.negf %1239 : vector<16x128xf32>
    %1241 = math.exp %1240 : vector<16x128xf32>
    %cst_332 = arith.constant 1.000000e+00 : f32
    %1242 = vector.broadcast %cst_332 : f32 to vector<16x128xf32>
    %1243 = arith.addf %1242, %1241 : vector<16x128xf32>
    %1244 = arith.divf %1242, %1243 : vector<16x128xf32>
    %1245 = vector.extract_strided_slice %1226 {offsets = [0, 256], sizes = [16, 128], strides = [1, 1]} : vector<16x384xf32> to vector<16x128xf32>
    %1246 = vector.extract_strided_slice %1228 {offsets = [0, 256], sizes = [16, 128], strides = [1, 1]} : vector<16x384xf32> to vector<16x128xf32>
    %1247 = arith.addf %1246, %934 : vector<16x128xf32>
    %1248 = arith.mulf %1236, %1247 : vector<16x128xf32>
    %1249 = arith.addf %1245, %1248 : vector<16x128xf32>
    %1250 = math.tanh %1249 : vector<16x128xf32>
    %cst_333 = arith.constant 1.000000e+00 : f32
    %1251 = vector.broadcast %cst_333 : f32 to vector<16x128xf32>
    %1252 = arith.subf %1251, %1244 : vector<16x128xf32>
    %1253 = arith.mulf %1252, %1250 : vector<16x128xf32>
    %1254 = arith.mulf %1244, %1223 : vector<16x128xf32>
    %1255 = arith.addf %1253, %1254 : vector<16x128xf32>
    %c10_i32_334 = arith.constant 10 : i32
    %1256 = arith.index_cast %c10_i32_334 : i32 to index
    %c0_335 = arith.constant 0 : index
    %c0_336 = arith.constant 0 : index
    %1257 = vector.load %arg13[%1256, %c0_335, %c0_336] : memref<12x16x384xf32, #tpu.memory_space<vmem>>, vector<1x16x384xf32>
    %1258 = vector.shape_cast %1257 : vector<1x16x384xf32> to vector<16x384xf32>
    %1259 = arith.truncf %1255 : vector<16x128xf32> to vector<16x128xbf16>
    %cst_337 = arith.constant dense<0.000000e+00> : vector<16x384xf32>
    %1260 = tpu.matmul %1259, %931, %cst_337 {dimension_numbers = #tpu.dot_dimension_numbers<[1], [0], [0], [1], [0, 0, 1, 1], [], []>} : vector<16x128xbf16>, vector<128x384xbf16>, vector<16x384xf32> -> vector<16x384xf32>
    %1261 = vector.extract_strided_slice %1258 {offsets = [0, 0], sizes = [16, 128], strides = [1, 1]} : vector<16x384xf32> to vector<16x128xf32>
    %1262 = vector.extract_strided_slice %1260 {offsets = [0, 0], sizes = [16, 128], strides = [1, 1]} : vector<16x384xf32> to vector<16x128xf32>
    %1263 = arith.addf %1261, %1262 : vector<16x128xf32>
    %1264 = arith.negf %1263 : vector<16x128xf32>
    %1265 = math.exp %1264 : vector<16x128xf32>
    %cst_338 = arith.constant 1.000000e+00 : f32
    %1266 = vector.broadcast %cst_338 : f32 to vector<16x128xf32>
    %1267 = arith.addf %1266, %1265 : vector<16x128xf32>
    %1268 = arith.divf %1266, %1267 : vector<16x128xf32>
    %1269 = vector.extract_strided_slice %1258 {offsets = [0, 128], sizes = [16, 128], strides = [1, 1]} : vector<16x384xf32> to vector<16x128xf32>
    %1270 = vector.extract_strided_slice %1260 {offsets = [0, 128], sizes = [16, 128], strides = [1, 1]} : vector<16x384xf32> to vector<16x128xf32>
    %1271 = arith.addf %1269, %1270 : vector<16x128xf32>
    %1272 = arith.negf %1271 : vector<16x128xf32>
    %1273 = math.exp %1272 : vector<16x128xf32>
    %cst_339 = arith.constant 1.000000e+00 : f32
    %1274 = vector.broadcast %cst_339 : f32 to vector<16x128xf32>
    %1275 = arith.addf %1274, %1273 : vector<16x128xf32>
    %1276 = arith.divf %1274, %1275 : vector<16x128xf32>
    %1277 = vector.extract_strided_slice %1258 {offsets = [0, 256], sizes = [16, 128], strides = [1, 1]} : vector<16x384xf32> to vector<16x128xf32>
    %1278 = vector.extract_strided_slice %1260 {offsets = [0, 256], sizes = [16, 128], strides = [1, 1]} : vector<16x384xf32> to vector<16x128xf32>
    %1279 = arith.addf %1278, %934 : vector<16x128xf32>
    %1280 = arith.mulf %1268, %1279 : vector<16x128xf32>
    %1281 = arith.addf %1277, %1280 : vector<16x128xf32>
    %1282 = math.tanh %1281 : vector<16x128xf32>
    %cst_340 = arith.constant 1.000000e+00 : f32
    %1283 = vector.broadcast %cst_340 : f32 to vector<16x128xf32>
    %1284 = arith.subf %1283, %1276 : vector<16x128xf32>
    %1285 = arith.mulf %1284, %1282 : vector<16x128xf32>
    %1286 = arith.mulf %1276, %1255 : vector<16x128xf32>
    %1287 = arith.addf %1285, %1286 : vector<16x128xf32>
    %c11_i32_341 = arith.constant 11 : i32
    %1288 = arith.index_cast %c11_i32_341 : i32 to index
    %c0_342 = arith.constant 0 : index
    %c0_343 = arith.constant 0 : index
    %1289 = vector.load %arg13[%1288, %c0_342, %c0_343] : memref<12x16x384xf32, #tpu.memory_space<vmem>>, vector<1x16x384xf32>
    %1290 = vector.shape_cast %1289 : vector<1x16x384xf32> to vector<16x384xf32>
    %1291 = arith.truncf %1287 : vector<16x128xf32> to vector<16x128xbf16>
    %cst_344 = arith.constant dense<0.000000e+00> : vector<16x384xf32>
    %1292 = tpu.matmul %1291, %931, %cst_344 {dimension_numbers = #tpu.dot_dimension_numbers<[1], [0], [0], [1], [0, 0, 1, 1], [], []>} : vector<16x128xbf16>, vector<128x384xbf16>, vector<16x384xf32> -> vector<16x384xf32>
    %1293 = vector.extract_strided_slice %1290 {offsets = [0, 0], sizes = [16, 128], strides = [1, 1]} : vector<16x384xf32> to vector<16x128xf32>
    %1294 = vector.extract_strided_slice %1292 {offsets = [0, 0], sizes = [16, 128], strides = [1, 1]} : vector<16x384xf32> to vector<16x128xf32>
    %1295 = arith.addf %1293, %1294 : vector<16x128xf32>
    %1296 = arith.negf %1295 : vector<16x128xf32>
    %1297 = math.exp %1296 : vector<16x128xf32>
    %cst_345 = arith.constant 1.000000e+00 : f32
    %1298 = vector.broadcast %cst_345 : f32 to vector<16x128xf32>
    %1299 = arith.addf %1298, %1297 : vector<16x128xf32>
    %1300 = arith.divf %1298, %1299 : vector<16x128xf32>
    %1301 = vector.extract_strided_slice %1290 {offsets = [0, 128], sizes = [16, 128], strides = [1, 1]} : vector<16x384xf32> to vector<16x128xf32>
    %1302 = vector.extract_strided_slice %1292 {offsets = [0, 128], sizes = [16, 128], strides = [1, 1]} : vector<16x384xf32> to vector<16x128xf32>
    %1303 = arith.addf %1301, %1302 : vector<16x128xf32>
    %1304 = arith.negf %1303 : vector<16x128xf32>
    %1305 = math.exp %1304 : vector<16x128xf32>
    %cst_346 = arith.constant 1.000000e+00 : f32
    %1306 = vector.broadcast %cst_346 : f32 to vector<16x128xf32>
    %1307 = arith.addf %1306, %1305 : vector<16x128xf32>
    %1308 = arith.divf %1306, %1307 : vector<16x128xf32>
    %1309 = vector.extract_strided_slice %1290 {offsets = [0, 256], sizes = [16, 128], strides = [1, 1]} : vector<16x384xf32> to vector<16x128xf32>
    %1310 = vector.extract_strided_slice %1292 {offsets = [0, 256], sizes = [16, 128], strides = [1, 1]} : vector<16x384xf32> to vector<16x128xf32>
    %1311 = arith.addf %1310, %934 : vector<16x128xf32>
    %1312 = arith.mulf %1300, %1311 : vector<16x128xf32>
    %1313 = arith.addf %1309, %1312 : vector<16x128xf32>
    %1314 = math.tanh %1313 : vector<16x128xf32>
    %cst_347 = arith.constant 1.000000e+00 : f32
    %1315 = vector.broadcast %cst_347 : f32 to vector<16x128xf32>
    %1316 = arith.subf %1315, %1308 : vector<16x128xf32>
    %1317 = arith.mulf %1316, %1314 : vector<16x128xf32>
    %1318 = arith.mulf %1308, %1287 : vector<16x128xf32>
    %1319 = arith.addf %1317, %1318 : vector<16x128xf32>
    %c12_i32_348 = arith.constant 12 : i32
    %1320 = arith.truncf %1319 : vector<16x128xf32> to vector<16x128xbf16>
    %c0_349 = arith.constant 0 : index
    %c0_350 = arith.constant 0 : index
    %1321 = vector.load %arg10[%c0_349, %c0_350] : memref<128x128xbf16, #tpu.memory_space<vmem>>, vector<128x128xbf16>
    %cst_351 = arith.constant dense<0.000000e+00> : vector<16x128xf32>
    %1322 = tpu.matmul %1320, %1321, %cst_351 {dimension_numbers = #tpu.dot_dimension_numbers<[1], [0], [0], [1], [0, 0, 1, 1], [], []>} : vector<16x128xbf16>, vector<128x128xbf16>, vector<16x128xf32> -> vector<16x128xf32>
    %c0_352 = arith.constant 0 : index
    %c0_353 = arith.constant 0 : index
    %1323 = vector.load %arg11[%c0_352, %c0_353] : memref<1x128xf32, #tpu.memory_space<vmem>>, vector<1x128xf32>
    %1324 = vector.broadcast %1323 : vector<1x128xf32> to vector<16x128xf32>
    %1325 = arith.addf %1322, %1324 : vector<16x128xf32>
    %c0_354 = arith.constant 0 : index
    %c0_355 = arith.constant 0 : index
    %1326 = vector.load %arg12[%c0_354, %c0_355] : memref<16x128xf32, #tpu.memory_space<vmem>>, vector<16x128xf32>
    tpu.vector_store %arg12[%c0_354, %c0_355], %1325 {strides = array<i32>} : memref<16x128xf32, #tpu.memory_space<vmem>>, vector<16x128xf32>,
    return
  }
  func.func @transform_0(%arg0: i32) -> (i32, i32, i32) {
    %c0_i32 = arith.constant 0 : i32
    %c0_i32_0 = arith.constant 0 : i32
    %c0_i32_1 = arith.constant 0 : i32
    return %c0_i32, %arg0, %c0_i32_0 : i32, i32, i32
  }
  func.func @transform_1(%arg0: i32) -> (i32, i32, i32) {
    %c0_i32 = arith.constant 0 : i32
    %c0_i32_0 = arith.constant 0 : i32
    %c0_i32_1 = arith.constant 0 : i32
    %c0_i32_2 = arith.constant 0 : i32
    return %c0_i32, %c0_i32_0, %c0_i32_1 : i32, i32, i32
  }
  func.func @transform_2(%arg0: i32) -> (i32, i32, i32) {
    %c0_i32 = arith.constant 0 : i32
    %c0_i32_0 = arith.constant 0 : i32
    %c0_i32_1 = arith.constant 0 : i32
    %c0_i32_2 = arith.constant 0 : i32
    return %c0_i32, %c0_i32_0, %c0_i32_1 : i32, i32, i32
  }
  func.func @transform_3(%arg0: i32) -> (i32, i32, i32) {
    %c0_i32 = arith.constant 0 : i32
    %c0_i32_0 = arith.constant 0 : i32
    %c0_i32_1 = arith.constant 0 : i32
    %c0_i32_2 = arith.constant 0 : i32
    return %c0_i32, %c0_i32_0, %c0_i32_1 : i32, i32, i32
  }
  func.func @transform_4(%arg0: i32) -> (i32, i32, i32) {
    %c0_i32 = arith.constant 0 : i32
    %c0_i32_0 = arith.constant 0 : i32
    %c0_i32_1 = arith.constant 0 : i32
    %c0_i32_2 = arith.constant 0 : i32
    return %c0_i32, %c0_i32_0, %c0_i32_1 : i32, i32, i32
  }
  func.func @transform_5(%arg0: i32) -> (i32, i32) {
    %c0_i32 = arith.constant 0 : i32
    %c0_i32_0 = arith.constant 0 : i32
    %c0_i32_1 = arith.constant 0 : i32
    return %c0_i32, %c0_i32_0 : i32, i32
  }
  func.func @transform_6(%arg0: i32) -> (i32, i32) {
    %c0_i32 = arith.constant 0 : i32
    %c0_i32_0 = arith.constant 0 : i32
    %c0_i32_1 = arith.constant 0 : i32
    return %c0_i32, %c0_i32_0 : i32, i32
  }
  func.func @transform_7(%arg0: i32) -> (i32, i32) {
    %c0_i32 = arith.constant 0 : i32
    %c0_i32_0 = arith.constant 0 : i32
    %c0_i32_1 = arith.constant 0 : i32
    return %c0_i32, %c0_i32_0 : i32, i32
  }
  func.func @transform_8(%arg0: i32) -> (i32, i32) {
    %c0_i32 = arith.constant 0 : i32
    %c0_i32_0 = arith.constant 0 : i32
    %c0_i32_1 = arith.constant 0 : i32
    return %c0_i32, %c0_i32_0 : i32, i32
  }
  func.func @transform_9(%arg0: i32) -> (i32, i32) {
    %c0_i32 = arith.constant 0 : i32
    %c0_i32_0 = arith.constant 0 : i32
    %c0_i32_1 = arith.constant 0 : i32
    return %c0_i32, %c0_i32_0 : i32, i32
  }
  func.func @transform_10(%arg0: i32) -> (i32, i32) {
    %c0_i32 = arith.constant 0 : i32
    %c0_i32_0 = arith.constant 0 : i32
    %c0_i32_1 = arith.constant 0 : i32
    return %c0_i32, %c0_i32_0 : i32, i32
  }
  func.func @transform_11(%arg0: i32) -> (i32, i32) {
    %c0_i32 = arith.constant 0 : i32
    %c0_i32_0 = arith.constant 0 : i32
    return %arg0, %c0_i32 : i32, i32
  }
}

</mosaic_0001>

<bundles_post_ra>
// kernel: rnn_gru_forward.1
= control target key start
LH: loop header
LB: loop body
LE: loop exit
PB: predicated region body
PF: predicated region fallthrough
CT: control target
= control target key end

     0   :  { %16 = vsyncpa [#allocation6], 0  ;;  %s13856_s0 = inlined_call_operand.vmem [shape: bf16[12,16,64], index: 0, kind: input, shape index: {}]   ;;  %s13857_s1 = inlined_call_operand.vmem [shape: bf16[2,64,384], index: 1, kind: input, shape index: {}]   ;;  %s13858_s2 = inlined_call_operand.hbm [shape: bf16[2,128,384], index: 2, kind: input, shape index: {}]   ;;  %s13859_s3 = inlined_call_operand.vmem [shape: f32[2,1,384], index: 3, kind: input, shape index: {}]   ;;  %s13860_s4 = inlined_call_operand.vmem [shape: f32[2,1,128], index: 4, kind: input, shape index: {}]   ;;  %s13861_s5 = inlined_call_operand.hbm [shape: bf16[256,384], index: 5, kind: input, shape index: {}]   ;;  %s13862_s6 = inlined_call_operand.hbm [shape: bf16[128,384], index: 6, kind: input, shape index: {}]   ;;  %s13863_s7 = inlined_call_operand.vmem [shape: f32[1,384], index: 7, kind: input, shape index: {}]   ;;  %s13864_s8 = inlined_call_operand.vmem [shape: f32[1,128], index: 8, kind: input, shape index: {}]   ;;  %s13865_s9 = inlined_call_operand.vmem [shape: bf16[128,128], index: 9, kind: input, shape index: {}]   ;;  %s13866_s10 = inlined_call_operand.vmem [shape: f32[1,128], index: 10, kind: input, shape index: {}]   ;;  %s13867_s11 = inlined_call_operand.vmem [shape: f32[16,128], index: 11, kind: output, shape index: {}]  }
   0x1   :  { %17 = vsyncpa [#allocation8], 0  ;;  %s10300_s17 = smov [#allocation7]   ;;  %s10301_s19 = smov [#allocation5]  }
   0x2   :  { %s43_s18 = sshll.u32 %s10300_s17, 4  ;;  %s27_s20 = sshll.u32 %s10301_s19, 4  ;;  %s44_s18 = int_to_ptr.vmem [resolvable:$true] %s43_s18  ;;  %s28_s20 = int_to_ptr.vmem [resolvable:$true] %s27_s20 }
   0x3   :  { %s10244_s21 = scalar_lea.vmem %s44_s18, 6144  ;;  %p10249_p1 = scmp.lt.s32.totalorder %s44_s18, %s44_s18 }
   0x4   :  { %p10245_p0 = scmp.ne.s32.totalorder %s44_s18, %s10244_s21  ;;  %p10250_p2 = scmp.lt.s32.totalorder %s10244_s21, %s10244_s21 }
   0x6   :  { %p10251_p3 = por %p10250_p2, %p10249_p1 }
   0x8   :  { %p10252_p4 = pnand %p10251_p3, %p10245_p0 }
   0xa   :  { %10255 = shalt.err (!%p10252_p4)
}
   0xb   :  { %s10302_s22 = smov 192   ;;  %s10303_s23 = smov 12  }
   0xc   :  { %49 = dma.hbm_to_vmem [thread:$0]  %s13861_s5, 6144, %s44_s18, [#allocation8], %s10302_s22, %s10302_s22, %s10303_s23  }
   0xd   :  { %s10264_s26 = scalar_lea.vmem %s28_s20, 6144  ;;  %p10269_p6 = scmp.lt.s32.totalorder %s28_s20, %s28_s20 }
   0xe   :  { %p10265_p5 = scmp.ne.s32.totalorder %s28_s20, %s10264_s26  ;;  %p10270_p7 = scmp.lt.s32.totalorder %s10264_s26, %s10264_s26 }
  0x10   :  { %p10271_p8 = por %p10270_p7, %p10269_p6 }
  0x12   :  { %p10272_p9 = pnand %p10271_p8, %p10265_p5 }
  0x14   :  { %10275 = shalt.err (!%p10272_p9)
}
  0x15   :  { %33 = dma.hbm_to_vmem [thread:$0]  %s13858_s2, 6144, %s28_s20, [#allocation6], %s10302_s22, %s10302_s22, %s10303_s23  }
  0x16   :  { %s10304_s29 = smov [#allocation9]  }
  0x17   :  { %s55_s30 = sshll.u32 %s10304_s29, 4  ;;  %s56_s30 = int_to_ptr.vmem [resolvable:$true] %s55_s30 }
  0x18   :  { %s10284_s12 = scalar_lea.vmem %s56_s30, 3072  ;;  %p10289_p11 = scmp.lt.s32.totalorder %s56_s30, %s56_s30 }
  0x19   :  { %p10285_p10 = scmp.ne.s32.totalorder %s56_s30, %s10284_s12  ;;  %p10290_p12 = scmp.lt.s32.totalorder %s10284_s12, %s10284_s12 }
  0x1b   :  { %p10291_p13 = por %p10290_p12, %p10289_p11 }
  0x1d   :  { %p10292_p0 = pnand %p10291_p13, %p10285_p10 }
  0x1f   :  { %10295 = shalt.err (!%p10292_p0)
}
  0x20   :  { %61 = dma.hbm_to_vmem [thread:$0]  %s13862_s6, 3072, %s56_s30, [#allocation8], %s10302_s22, %s10302_s22, %s10303_s23  }
  0x21   :  { %10296 = dma.done.wait [#allocation6], 6144  }
  0x22   :  { %10297 = vsyncadd [#allocation6], 4294961152 }
  0x23   :  { %10298 = dma.done.wait [#allocation8], 9216  }
  0x24   :  { %10299 = vsyncadd [#allocation8], 4294958080  ;;  %v13868_v0 = vmov 0   ;;  %v9073_v1 = vld [vmem:[%s13857_s1 + $0x4c] ss:$12 sps:$4 sm:$0xff]   ;;  %v10396_v6 = vld [vmem:[%s13856_s0] sm:$0xff]  }
  0x25   :  { %330 = vmatprep.mubr.bf16.mxu0 %v13868_v0  ;;  %v9075_v2 = vld [vmem:[%s13857_s1 + $0x48] ss:$12 sps:$4 sm:$0xff]   ;;  %306 = vmatprep.subr.bf16.mxu0 %v9073_v1  ;;  %v9078_v4 = vld [vmem:[%s13857_s1 + $0x30] ss:$12 sps:$4 sm:$0xff]   ;;  %vm261_vm0 = vcmask 523264   ;;  %v10486_v29 = vld [vmem:[%s13856_s0 + $0x20] sm:$0xff]  }
  0x26   :  { %v9076_v3 = vld [vmem:[%s13857_s1 + $0x34] ss:$12 sps:$4 sm:$0xff]   ;;  %307 = vmatpush1.bf16.msra.mxu0 %v9075_v2  ;;  %v9079_v5 = vld [vmem:[%s13857_s1 + $0x1c] ss:$12 sps:$4 sm:$0xff]   ;;  %v9081_v7 = vld [vmem:[%s13857_s1 + $0x18] ss:$12 sps:$4 sm:$0xff]   ;;  %8269 = vmatprep.mubr.msk.bf16.mxu1 %vm261_vm0, %v10396_v6 }
  0x27   :  { %308 = vmatprep.subr.bf16.mxu0 %v9076_v3  ;;  %v9082_v8 = vld [vmem:[%s13857_s1 + $0x4] ss:$12 sps:$4 sm:$0xff]   ;;  %v9084_v11 = vld [vmem:[%s13857_s1] ss:$12 sps:$4 sm:$0xff]   ;;  %v9092_v15 = vld [vmem:[%s13857_s1 + $0x8] ss:$12 sps:$4 sm:$0xff]  }
  0x28   :  { %v9088_v9 = vld [vmem:[%s13857_s1 + $0x50] ss:$12 sps:$4 sm:$0xff]   ;;  %v9089_v10 = vld [vmem:[%s13857_s1 + $0x38] ss:$12 sps:$4 sm:$0xff]   ;;  %v9091_v13 = vld [vmem:[%s13857_s1 + $0x20] ss:$12 sps:$4 sm:$0xff]  }
  0x29   :  { %8261 = vmatprep.subr.bf16.mxu1 %v9088_v9  ;;  %v9086_v12 = vld [vmem:[%s13857_s1 + $0xb0] ss:$12 sps:$4 sm:$0xff]   ;;  %v9094_v14 = vld [vmem:[%s13857_s1 + $0x98] ss:$12 sps:$4 sm:$0xff]   ;;  %v9104_v17 = vld [vmem:[%s13857_s1 + $0x80] ss:$12 sps:$4 sm:$0xff]  }
  0x2a   :  { %309 = vmatpush1.bf16.msra.mxu0 %v9078_v4  ;;  %8262 = vmatpush3.bf16.msra.mxu1 %v9088_v9  ;;  %v9098_v16 = vld [vmem:[%s13857_s1 + $0xac] ss:$12 sps:$4 sm:$0xff]   ;;  %v9096_v19 = vld [vmem:[%s13857_s1 + $0xa8] ss:$12 sps:$4 sm:$0xff]   ;;  %v9100_v22 = vld [vmem:[%s13857_s1 + $0x90] ss:$12 sps:$4 sm:$0xff]  }
  0x2b   :  { %310 = vmatprep.subr.bf16.mxu0 %v9079_v5  ;;  %8263 = vmatprep.subr.bf16.mxu1 %v9089_v10  ;;  %v10439_v18 = vld [vmem:[%s13856_s0 + $0x8] sm:$0xff]   ;;  %v9102_v20 = vld [vmem:[%s13857_s1 + $0x94] ss:$12 sps:$4 sm:$0xff]   ;;  %v10471_v25 = vld [vmem:[%s13856_s0 + $0x18] sm:$0xff]   ;;  %v13870_v33 = vmov 0.0   ;;  %vm10307_vm1 = vmmov 0  }
  0x2c   :  { %v10452_v21 = vld [vmem:[%s13856_s0 + $0x10] sm:$0xff]   ;;  %v9108_v23 = vld [vmem:[%s13857_s1 + $0x7c] ss:$12 sps:$4 sm:$0xff]   ;;  %v9106_v26 = vld [vmem:[%s13857_s1 + $0x78] ss:$12 sps:$4 sm:$0xff]  }
  0x2d   :  { %v9116_v24 = vld [vmem:[%s13857_s1 + $0x68] ss:$12 sps:$4 sm:$0xff]   ;;  %v9115_v27 = vld [vmem:[%s13857_s1 + $0x64] ss:$12 sps:$4 sm:$0xff]   ;;  %v10479_v28 = vld [vmem:[#allocation5 + $0xac] ss:$12 sps:$4 sm:$0xff]  }
  0x2e   :  { %311 = vmatpush1.bf16.msra.mxu0 %v9081_v7  ;;  %8264 = vmatpush3.bf16.msra.mxu1 %v9089_v10  ;;  %v9113_v30 = vld [vmem:[%s13857_s1 + $0x60] ss:$12 sps:$4 sm:$0xff]   ;;  %v10500_v31 = vld [vmem:[%s13856_s0 + $0x30] sm:$0xff]   ;;  %v10518_v34 = vld [vmem:[%s13856_s0 + $0x38] sm:$0xff]  }
  0x2f   :  { %312 = vmatprep.subr.bf16.mxu0 %v9082_v8  ;;  %8265 = vmatprep.subr.bf16.mxu1 %v9091_v13  ;;  %v10505_v32 = vld [vmem:[%s13856_s0 + $0x28] sm:$0xff]   ;;  %v10523_v35 = vld [vmem:[%s13856_s0 + $0x40] sm:$0xff]   ;;  %v10540_v37 = vld [vmem:[%s13856_s0 + $0x50] sm:$0xff]  }
  0x30   :  { %v10535_v36 = vld [vmem:[%s13856_s0 + $0x48] sm:$0xff]   ;;  %v10552_v38 = vld [vmem:[%s13856_s0 + $0x58] sm:$0xff]   ;;  %v10625_v48 = vld [vmem:[#allocation5 + $0x94] ss:$12 sps:$4 sm:$0xff]  }
  0x31   :  { %v10560_v39 = vld [vmem:[#allocation5 + $0xb0] ss:$12 sps:$4 sm:$0xff]   ;;  %v10564_v40 = vld [vmem:[#allocation5 + $0x98] ss:$12 sps:$4 sm:$0xff]   ;;  %v10572_v41 = vld [vmem:[#allocation5 + $0x80] ss:$12 sps:$4 sm:$0xff]  }
  0x32   :  { %313 = vmatpush1.bf16.msra.mxu0 %v9084_v11  ;;  %8266 = vmatpush3.bf16.msra.mxu1 %v9091_v13  ;;  %v10581_v42 = vld [vmem:[#allocation5 + $0x68] ss:$12 sps:$4 sm:$0xff]   ;;  %v10586_v43 = vld [vmem:[#allocation5 + $0x50] ss:$12 sps:$4 sm:$0xff]   ;;  %v10592_v44 = vld [vmem:[#allocation5 + $0x38] ss:$12 sps:$4 sm:$0xff]  }
  0x33   :  { %8293 = vmatprep.subr.bf16.mxu0 %v9086_v12  ;;  %8267 = vmatprep.subr.bf16.mxu1 %v9092_v15  ;;  %v10600_v45 = vld [vmem:[#allocation5 + $0x20] ss:$12 sps:$4 sm:$0xff]   ;;  %v10606_v46 = vld [vmem:[#allocation5 + $0x8] ss:$12 sps:$4 sm:$0xff]   ;;  %v10632_v49 = vld [vmem:[#allocation5 + $0x90] ss:$12 sps:$4 sm:$0xff]  }
  0x34   :  { %v10623_v47 = vld [vmem:[#allocation5 + $0xa8] ss:$12 sps:$4 sm:$0xff]   ;;  %v10641_v51 = vld [vmem:[#allocation5 + $0x78] ss:$12 sps:$4 sm:$0xff]   ;;  %v10651_v53 = vld [vmem:[#allocation5 + $0x60] ss:$12 sps:$4 sm:$0xff]  }
  0x35   :  { %7454 = vmatmul.mubr.msk.bf16.vlgmr.msra.gmra.mxu0 %vm261_vm0, %v10396_v6  ;;  %v10635_v50 = vld [vmem:[#allocation5 + $0x7c] ss:$12 sps:$4 sm:$0xff]   ;;  %v10644_v52 = vld [vmem:[#allocation5 + $0x64] ss:$12 sps:$4 sm:$0xff]   ;;  %v10654_v54 = vld [vmem:[#allocation5 + $0x4c] ss:$12 sps:$4 sm:$0xff]  }
  0x36   :  { %8294 = vmatpush3.bf16.msra.mxu0 %v9086_v12  ;;  %340 = vmatprep.mubr.bf16.mxu0 %v13868_v0  ;;  %v10660_v55 = vld [vmem:[#allocation5 + $0x48] ss:$12 sps:$4 sm:$0xff]   ;;  %v10670_v57 = vld [vmem:[#allocation5 + $0x30] ss:$12 sps:$4 sm:$0xff]   ;;  %v10679_v59 = vld [vmem:[#allocation5 + $0x18] ss:$12 sps:$4 sm:$0xff]  }
  0x37   :  { %8295 = vmatprep.subr.bf16.mxu0 %v9094_v14  ;;  %8268 = vmatpush3.bf16.msra.mxu1 %v9092_v15  ;;  %14043 = vst [vmem:[#allocation12_spill] sm:$0xff] %v10660_v55  ;;  %v10663_v56 = vld [vmem:[#allocation5 + $0x34] ss:$12 sps:$4 sm:$0xff]   ;;  %14045 = vst [vmem:[#allocation14_spill] sm:$0xff] %v10670_v57  ;;  %v10675_v58 = vld [vmem:[#allocation5 + $0x1c] ss:$12 sps:$4 sm:$0xff]  }
  0x38   :  { %759 = vmatprep.subr.bf16.mxu1 %v9098_v16  ;;  %14044 = vst [vmem:[#allocation13_spill] sm:$0xff] %v10663_v56  ;;  %14046 = vst [vmem:[#allocation15_spill] sm:$0xff] %v10675_v58  ;;  %v10682_v60 = vld [vmem:[#allocation5 + $0x4] ss:$12 sps:$4 sm:$0xff]   ;;  %v10689_v61 = vld [vmem:[#allocation5] ss:$12 sps:$4 sm:$0xff]  }
  0x39   :  { %14047 = vst [vmem:[#allocation16_spill] sm:$0xff] %v10679_v59  ;;  %14048 = vst [vmem:[#allocation17_spill] sm:$0xff] %v10682_v60  ;;  %v10694_v62 = vld [vmem:[#allocation5 + $0x16c] ss:$12 sps:$4 sm:$0xff]   ;;  %v10712_v63 = vld [vmem:[#allocation5 + $0x168] ss:$12 sps:$4 sm:$0xff]  }
  0x3a   :  { %8296 = vmatpush3.bf16.msra.mxu0 %v9094_v14  ;;  %8270 = vmatmul.mubr.msk.bf16.vlgmr.msra.gmra.mxu1 %vm261_vm0, %v10439_v18  ;;  %14049 = vst [vmem:[#allocation18_spill] sm:$0xff] %v10689_v61  ;;  %14050 = vst [vmem:[#allocation19_spill] sm:$0xff] %v10694_v62  ;;  %v10714_v1 = vld [vmem:[#allocation5 + $0x154] ss:$12 sps:$4 sm:$0xff]   ;;  %v10718_v2 = vld [vmem:[#allocation5 + $0x150] ss:$12 sps:$4 sm:$0xff]  }
  0x3b   :  { %8297 = vmatprep.subr.bf16.mxu0 %v9104_v17  ;;  %760 = vmatpush1.bf16.msra.mxu1 %v9096_v19  ;;  %v10722_v3 = vld [vmem:[#allocation5 + $0x13c] ss:$12 sps:$4 sm:$0xff]   ;;  %v10729_v4 = vld [vmem:[#allocation5 + $0x138] ss:$12 sps:$4 sm:$0xff]   ;;  %v10737_v7 = vld [vmem:[#allocation5 + $0x120] ss:$12 sps:$4 sm:$0xff]  }
  0x3c   :  { %8273 = vmatprep.mubr.msk.bf16.mxu1 %vm261_vm0, %v10452_v21  ;;  %761 = vmatprep.subr.bf16.mxu1 %v9102_v20  ;;  %v10732_v5 = vld [vmem:[#allocation5 + $0x124] ss:$12 sps:$4 sm:$0xff]   ;;  %v10740_v8 = vld [vmem:[#allocation5 + $0x10c] ss:$12 sps:$4 sm:$0xff]   ;;  %v10750_v10 = vld [vmem:[#allocation5 + $0x108] ss:$12 sps:$4 sm:$0xff]  }
  0x3d   :  { %7455 = vmatmul.mubr.msk.bf16.gmra.mxu0 %vm261_vm0, %v10439_v18  ;;  %v10744_v9 = vld [vmem:[#allocation5 + $0x158] ss:$12 sps:$4 sm:$0xff]   ;;  %v10753_v11 = vld [vmem:[#allocation5 + $0xf4] ss:$12 sps:$4 sm:$0xff]   ;;  %v10760_v13 = vld [vmem:[#allocation5 + $0xf0] ss:$12 sps:$4 sm:$0xff]  }
  0x3e   :  { %350 = vmatprep.mubr.bf16.mxu0 %v13868_v0  ;;  %8298 = vmatpush3.bf16.msra.mxu0 %v9104_v17  ;;  %v10756_v12 = vld [vmem:[#allocation5 + $0x140] ss:$12 sps:$4 sm:$0xff]   ;;  %v10763_v14 = vld [vmem:[#allocation5 + $0xdc] ss:$12 sps:$4 sm:$0xff]   ;;  %v10770_v16 = vld [vmem:[#allocation5 + $0xd8] ss:$12 sps:$4 sm:$0xff]  }
  0x3f   :  { %762 = vmatpush1.bf16.msra.mxu1 %v9100_v22  ;;  %8299 = vmatprep.subr.bf16.mxu0 %v9116_v24  ;;  %v10766_v15 = vld [vmem:[#allocation5 + $0x128] ss:$12 sps:$4 sm:$0xff]   ;;  %v10773_v17 = vld [vmem:[#allocation5 + $0xc4] ss:$12 sps:$4 sm:$0xff]   ;;  %v10780_v19 = vld [vmem:[#allocation5 + $0xc0] ss:$12 sps:$4 sm:$0xff]  }
  0x40   :  { %763 = vmatprep.subr.bf16.mxu1 %v9108_v23  ;;  %v10784_v20 = vld [vmem:[#allocation5 + $0xf8] ss:$12 sps:$4 sm:$0xff]   ;;  %v10798_v22 = vld [vmem:[#allocation5 + $0xc8] ss:$12 sps:$4 sm:$0xff]   ;;  %v122_v23 = vlaneseq }
  0x42   :  { %8300 = vmatpush3.bf16.msra.mxu0 %v9116_v24  ;;  %8274 = vmatmul.mubr.msk.bf16.gmra.mxu1 %vm261_vm0, %v10471_v25  ;;  %v10815_v24 = vshrl.u32 %v122_v23, 7 }
  0x43   :  { %8277 = vmatprep.mubr.msk.bf16.mxu1 %vm261_vm0, %v10486_v29  ;;  %764 = vmatpush1.bf16.msra.mxu1 %v9106_v26 }
  0x44   :  { %765 = vmatprep.subr.bf16.mxu1 %v9115_v27  ;;  %1326 = vmatprep.subr.bf16.mxu0 %v10479_v28  ;;  %v10824_v27 = vsub.s32 2, %v10815_v24 }
  0x45   :  { %7456 = vmatmul.mubr.msk.bf16.gmra.mxu0 %vm261_vm0, %v10452_v21 }
  0x46   :  { %360 = vmatprep.mubr.bf16.mxu0 %v13868_v0  ;;  %14051 = vst [vmem:[#allocation20_spill] sm:$0xff] %v10824_v27 }
  0x47   :  { %766 = vmatpush1.bf16.msra.mxu1 %v9113_v30 }
  0x48   :  { %8325 = vmatprep.subr.bf16.mxu1 %v13870_v33 }
  0x4a   :  { %8278 = vmatmul.mubr.msk.bf16.gmra.mxu1 %vm261_vm0, %v10505_v32 }
  0x4b   :  { %8281 = vmatprep.mubr.msk.bf16.mxu1 %vm261_vm0, %v10500_v31 }
  0x4d   :  { %7457 = vmatmul.mubr.msk.bf16.gmra.mxu0 %vm261_vm0, %v10471_v25 }
  0x4e   :  { %370 = vmatprep.mubr.bf16.mxu0 %v13868_v0 }
  0x52   :  { %8282 = vmatmul.mubr.msk.bf16.gmra.mxu1 %vm261_vm0, %v10518_v34 }
  0x53   :  { %8285 = vmatprep.mubr.msk.bf16.mxu1 %vm261_vm0, %v10523_v35 }
  0x55   :  { %7458 = vmatmul.mubr.msk.bf16.gmra.mxu0 %vm261_vm0, %v10486_v29 }
  0x56   :  { %380 = vmatprep.mubr.bf16.mxu0 %v13868_v0 }
  0x5a   :  { %8286 = vmatmul.mubr.msk.bf16.gmra.mxu1 %vm261_vm0, %v10535_v36 }
  0x5b   :  { %8289 = vmatprep.mubr.msk.bf16.mxu1 %vm261_vm0, %v10540_v37 }
  0x5d   :  { %7459 = vmatmul.mubr.msk.bf16.gmra.mxu0 %vm261_vm0, %v10505_v32 }
  0x5e   :  { %390 = vmatprep.mubr.bf16.mxu0 %v13868_v0 }
  0x62   :  { %8290 = vmatmul.mubr.msk.bf16.gmra.mxu1 %vm261_vm0, %v10552_v38 }
  0x63   :  { %783 = vmatprep.mubr.bf16.mxu1 %v13868_v0 }
  0x65   :  { %7460 = vmatmul.mubr.msk.bf16.gmra.mxu0 %vm261_vm0, %v10500_v31 }
  0x66   :  { %400 = vmatprep.mubr.bf16.mxu0 %v13868_v0 }
  0x6a   :  { %7507 = vmatmul.mubr.msk.bf16.vlgmr.msra.gmra.mxu1 %vm261_vm0, %v10396_v6 }
  0x6b   :  { %8326 = vmatpush3.bf16.msra.mxu1 %v10560_v39  ;;  %793 = vmatprep.mubr.bf16.mxu1 %v13868_v0 }
  0x6c   :  { %8327 = vmatprep.subr.bf16.mxu1 %v13870_v33 }
  0x6d   :  { %7461 = vmatmul.mubr.msk.bf16.gmra.mxu0 %vm261_vm0, %v10518_v34 }
  0x6e   :  { %410 = vmatprep.mubr.bf16.mxu0 %v13868_v0 }
  0x6f   :  { %8328 = vmatpush3.bf16.msra.mxu1 %v10564_v40 }
  0x70   :  { %8329 = vmatprep.subr.bf16.mxu1 %v13870_v33 }
  0x72   :  { %7508 = vmatmul.mubr.msk.bf16.gmra.mxu1 %vm261_vm0, %v10439_v18 }
  0x73   :  { %803 = vmatprep.mubr.bf16.mxu1 %v13868_v0  ;;  %8330 = vmatpush3.bf16.msra.mxu1 %v10572_v41 }
  0x74   :  { %8331 = vmatprep.subr.bf16.mxu1 %v13870_v33 }
  0x75   :  { %7462 = vmatmul.mubr.msk.bf16.gmra.mxu0 %vm261_vm0, %v10523_v35 }
  0x76   :  { %420 = vmatprep.mubr.bf16.mxu0 %v13868_v0 }
  0x77   :  { %8332 = vmatpush3.bf16.msra.mxu1 %v10581_v42 }
  0x78   :  { %8333 = vmatprep.subr.bf16.mxu1 %v13870_v33 }
  0x7a   :  { %7509 = vmatmul.mubr.msk.bf16.gmra.mxu1 %vm261_vm0, %v10452_v21 }
  0x7b   :  { %813 = vmatprep.mubr.bf16.mxu1 %v13868_v0  ;;  %8334 = vmatpush3.bf16.msra.mxu1 %v10586_v43 }
  0x7c   :  { %8335 = vmatprep.subr.bf16.mxu1 %v13870_v33 }
  0x7d   :  { %7463 = vmatmul.mubr.msk.bf16.gmra.mxu0 %vm261_vm0, %v10535_v36 }
  0x7e   :  { %430 = vmatprep.mubr.bf16.mxu0 %v13868_v0 }
  0x7f   :  { %8336 = vmatpush3.bf16.msra.mxu1 %v10592_v44 }
  0x80   :  { %8337 = vmatprep.subr.bf16.mxu1 %v13870_v33 }
  0x82   :  { %7510 = vmatmul.mubr.msk.bf16.gmra.mxu1 %vm261_vm0, %v10471_v25 }
  0x83   :  { %823 = vmatprep.mubr.bf16.mxu1 %v13868_v0  ;;  %8338 = vmatpush3.bf16.msra.mxu1 %v10600_v45 }
  0x84   :  { %8339 = vmatprep.subr.bf16.mxu1 %v13870_v33 }
  0x85   :  { %7464 = vmatmul.mubr.msk.bf16.gmra.mxu0 %vm261_vm0, %v10540_v37 }
  0x86   :  { %440 = vmatprep.mubr.bf16.mxu0 %v13868_v0 }
  0x87   :  { %8340 = vmatpush3.bf16.msra.mxu1 %v10606_v46 }
  0x88   :  { %8345 = vmatprep.subr.bf16.mxu1 %v13870_v33 }
  0x8a   :  { %7511 = vmatmul.mubr.msk.bf16.gmra.mxu1 %vm261_vm0, %v10486_v29 }
  0x8b   :  { %833 = vmatprep.mubr.bf16.mxu1 %v13868_v0 }
  0x8d   :  { %7465 = vmatmul.mubr.msk.bf16.gmra.mxu0 %vm261_vm0, %v10552_v38 }
  0x8e   :  { %8301 = vmatprep.mubr.msk.bf16.mxu0 %vm261_vm0, %v10396_v6  ;;  %v10734_v6 = vld [vmem:[#allocation5 + $0x170] ss:$12 sps:$4 sm:$0xff]  }
  0x92   :  { %7512 = vmatmul.mubr.msk.bf16.gmra.mxu1 %vm261_vm0, %v10505_v32 }
  0x93   :  { %843 = vmatprep.mubr.bf16.mxu1 %v13868_v0 }
  0x95   :  { %8302 = vmatmul.mubr.msk.bf16.vlgmr.msra.gmra.mxu0 %vm261_vm0, %v10439_v18  ;;  %v10776_v18 = vld [vmem:[#allocation5 + $0x110] ss:$12 sps:$4 sm:$0xff]  }
  0x96   :  { %1327 = vmatpush1.bf16.msra.mxu0 %v10623_v47  ;;  %8305 = vmatprep.mubr.msk.bf16.mxu0 %vm261_vm0, %v10452_v21  ;;  %v10790_v21 = vld [vmem:[#allocation5 + $0xe0] ss:$12 sps:$4 sm:$0xff]  }
  0x97   :  { %1328 = vmatprep.subr.bf16.mxu0 %v10625_v48 }
  0x9a   :  { %1329 = vmatpush1.bf16.msra.mxu0 %v10632_v49  ;;  %7513 = vmatmul.mubr.msk.bf16.gmra.mxu1 %vm261_vm0, %v10500_v31 }
  0x9b   :  { %1330 = vmatprep.subr.bf16.mxu0 %v10635_v50  ;;  %853 = vmatprep.mubr.bf16.mxu1 %v13868_v0 }
  0x9d   :  { %8306 = vmatmul.mubr.msk.bf16.gmra.mxu0 %vm261_vm0, %v10471_v25 }
  0x9e   :  { %1331 = vmatpush1.bf16.msra.mxu0 %v10641_v51  ;;  %8309 = vmatprep.mubr.msk.bf16.mxu0 %vm261_vm0, %v10486_v29  ;;  %v10834_v29 = vld [vmem:[%s13859_s3] sm:$0x7] }
  0x9f   :  { %1332 = vmatprep.subr.bf16.mxu0 %v10644_v52 }
  0xa2   :  { %1333 = vmatpush1.bf16.msra.mxu0 %v10651_v53  ;;  %7514 = vmatmul.mubr.msk.bf16.gmra.mxu1 %vm261_vm0, %v10518_v34 }
  0xa3   :  { %1334 = vmatprep.subr.bf16.mxu0 %v10654_v54  ;;  %863 = vmatprep.mubr.bf16.mxu1 %v13868_v0 }
  0xa5   :  { %8310 = vmatmul.mubr.msk.bf16.gmra.mxu0 %vm261_vm0, %v10505_v32 }
  0xa6   :  { %8313 = vmatprep.mubr.msk.bf16.mxu0 %vm261_vm0, %v10500_v31  ;;  %1335 = vmatpush1.bf16.msra.mxu0 %v10660_v55  ;;  %v10841_v31 = vrot.slane %v10834_v29, %v10824_v27 }
  0xa7   :  { %1336 = vmatprep.subr.bf16.mxu0 %v10663_v56 }
  0xa8   :  { %14052 = vst [vmem:[#allocation21_spill] sm:$0xff] %v10841_v31 }
  0xaa   :  { %1337 = vmatpush1.bf16.msra.mxu0 %v10670_v57  ;;  %7515 = vmatmul.mubr.msk.bf16.gmra.mxu1 %vm261_vm0, %v10523_v35 }
  0xab   :  { %1338 = vmatprep.subr.bf16.mxu0 %v10675_v58  ;;  %873 = vmatprep.mubr.bf16.mxu1 %v13868_v0 }
  0xad   :  { %8314 = vmatmul.mubr.msk.bf16.gmra.mxu0 %vm261_vm0, %v10518_v34 }
  0xae   :  { %8317 = vmatprep.mubr.msk.bf16.mxu0 %vm261_vm0, %v10523_v35  ;;  %1339 = vmatpush1.bf16.msra.mxu0 %v10679_v59 }
  0xaf   :  { %1340 = vmatprep.subr.bf16.mxu0 %v10682_v60 }
  0xb2   :  { %1341 = vmatpush1.bf16.msra.mxu0 %v10689_v61  ;;  %7516 = vmatmul.mubr.msk.bf16.gmra.mxu1 %vm261_vm0, %v10535_v36 }
  0xb3   :  { %1538 = vmatprep.subr.bf16.mxu0 %v10694_v62  ;;  %883 = vmatprep.mubr.bf16.mxu1 %v13868_v0 }
  0xb5   :  { %8318 = vmatmul.mubr.msk.bf16.gmra.mxu0 %vm261_vm0, %v10535_v36 }
  0xb6   :  { %8321 = vmatprep.mubr.msk.bf16.mxu0 %vm261_vm0, %v10540_v37 }
  0xba   :  { %7517 = vmatmul.mubr.msk.bf16.gmra.mxu1 %vm261_vm0, %v10540_v37 }
  0xbb   :  { %893 = vmatprep.mubr.bf16.mxu1 %v13868_v0 }
  0xbd   :  { %8322 = vmatmul.mubr.msk.bf16.gmra.mxu0 %vm261_vm0, %v10552_v38 }
  0xbe   :  { %1358 = vmatprep.mubr.bf16.mxu0 %v13868_v0 }
  0xc2   :  { %7518 = vmatmul.mubr.msk.bf16.gmra.mxu1 %vm261_vm0, %v10552_v38 }
  0xc3   :  { %8341 = vmatprep.mubr.msk.bf16.mxu1 %vm10307_vm1, %v13870_v33 }
  0xc5   :  { %1359 = vmatmul.mubr.bf16.vlgmr.msra.gmra.mxu0 %v13868_v0 }
  0xc6   :  { %1539 = vmatpush1.bf16.msra.mxu0 %v10712_v63  ;;  %1570 = vmatprep.mubr.bf16.mxu0 %v13868_v0 }
  0xc7   :  { %1540 = vmatprep.subr.bf16.mxu0 %v10714_v1 }
  0xca   :  { %1541 = vmatpush1.bf16.msra.mxu0 %v10718_v2  ;;  %8342 = vmatmul.mubr.bf16.vlgmr.msra.gmra.mxu1 %v13868_v0 }
  0xcb   :  { %1542 = vmatprep.subr.bf16.mxu0 %v10722_v3  ;;  %8346 = vmatpush3.bf16.msra.mxu1 %v10734_v6 }
  0xcc   :  { %8361 = vmatprep.mubr.msk.bf16.mxu1 %vm10307_vm1, %v13870_v33  ;;  %8347 = vmatprep.subr.bf16.mxu1 %v13870_v33 }
  0xce   :  { %1543 = vmatpush1.bf16.msra.mxu0 %v10729_v4 }
  0xcf   :  { %1544 = vmatprep.subr.bf16.mxu0 %v10732_v5  ;;  %8348 = vmatpush3.bf16.msra.mxu1 %v10744_v9 }
  0xd0   :  { %8349 = vmatprep.subr.bf16.mxu1 %v13870_v33 }
  0xd2   :  { %1545 = vmatpush1.bf16.msra.mxu0 %v10737_v7 }
  0xd3   :  { %1546 = vmatprep.subr.bf16.mxu0 %v10740_v8  ;;  %8350 = vmatpush3.bf16.msra.mxu1 %v10756_v12 }
  0xd4   :  { %8351 = vmatprep.subr.bf16.mxu1 %v13870_v33 }
  0xd6   :  { %1547 = vmatpush1.bf16.msra.mxu0 %v10750_v10 }
  0xd7   :  { %1548 = vmatprep.subr.bf16.mxu0 %v10753_v11  ;;  %8352 = vmatpush3.bf16.msra.mxu1 %v10766_v15 }
  0xd8   :  { %8353 = vmatprep.subr.bf16.mxu1 %v13870_v33 }
  0xda   :  { %1549 = vmatpush1.bf16.msra.mxu0 %v10760_v13 }
  0xdb   :  { %1550 = vmatprep.subr.bf16.mxu0 %v10763_v14  ;;  %8354 = vmatpush3.bf16.msra.mxu1 %v10776_v18 }
  0xdc   :  { %8355 = vmatprep.subr.bf16.mxu1 %v13870_v33 }
  0xde   :  { %1551 = vmatpush1.bf16.msra.mxu0 %v10770_v16 }
  0xdf   :  { %1552 = vmatprep.subr.bf16.mxu0 %v10773_v17  ;;  %8356 = vmatpush3.bf16.msra.mxu1 %v10784_v20 }
  0xe0   :  { %8357 = vmatprep.subr.bf16.mxu1 %v13870_v33 }
  0xe2   :  { %1553 = vmatpush1.bf16.msra.mxu0 %v10780_v19 }
  0xe3   :  { %1730 = vmatprep.subr.bf16.mxu0 %v10479_v28  ;;  %8358 = vmatpush3.bf16.msra.mxu1 %v10790_v21 }
  0xe4   :  { %8359 = vmatprep.subr.bf16.mxu1 %v13870_v33 }
  0xe5   :  { %1571 = vmatmul.mubr.bf16.vlgmr.msra.gmra.mxu0 %v13868_v0 }
  0xe6   :  { %1731 = vmatpush1.bf16.msra.mxu0 %v10623_v47  ;;  %1762 = vmatprep.mubr.bf16.mxu0 %v13868_v0 }
  0xe7   :  { %1732 = vmatprep.subr.bf16.mxu0 %v10625_v48  ;;  %8360 = vmatpush3.bf16.msra.mxu1 %v10798_v22 }
  0xe8   :  { %8365 = vmatprep.subr.bf16.mxu1 %v13870_v33 }
  0xea   :  { %1733 = vmatpush1.bf16.msra.mxu0 %v10632_v49  ;;  %8362 = vmatmul.mubr.bf16.vlgmr.msra.gmra.mxu1 %v13868_v0 }
  0xeb   :  { %1734 = vmatprep.subr.bf16.mxu0 %v10635_v50  ;;  %8366 = vmatpush3.bf16.msra.mxu1 %v10560_v39 }
  0xec   :  { %8381 = vmatprep.mubr.msk.bf16.mxu1 %vm10307_vm1, %v13870_v33  ;;  %8367 = vmatprep.subr.bf16.mxu1 %v13870_v33 }
  0xee   :  { %1735 = vmatpush1.bf16.msra.mxu0 %v10641_v51 }
  0xef   :  { %1736 = vmatprep.subr.bf16.mxu0 %v10644_v52  ;;  %8368 = vmatpush3.bf16.msra.mxu1 %v10564_v40 }
  0xf0   :  { %8369 = vmatprep.subr.bf16.mxu1 %v13870_v33 }
  0xf2   :  { %1737 = vmatpush1.bf16.msra.mxu0 %v10651_v53 }
  0xf3   :  { %1738 = vmatprep.subr.bf16.mxu0 %v10654_v54  ;;  %8370 = vmatpush3.bf16.msra.mxu1 %v10572_v41 }
  0xf4   :  { %8371 = vmatprep.subr.bf16.mxu1 %v13870_v33 }
  0xf5   :  { %v10817_v25 = vpop.f32.mrf.mxu0 }
  0xf6   :  { %1739 = vmatpush1.bf16.msra.mxu0 %v10660_v55 }
  0xf7   :  { %v10821_v26 = vpop.f32.mrf.mxu0  ;;  %1740 = vmatprep.subr.bf16.mxu0 %v10663_v56  ;;  %8372 = vmatpush3.bf16.msra.mxu1 %v10581_v42 }
  0xf8   :  { %8373 = vmatprep.subr.bf16.mxu1 %v13870_v33 }
  0xf9   :  { %v10828_v28 = vpop.f32.mrf.mxu0 }
  0xfa   :  { %1741 = vmatpush1.bf16.msra.mxu0 %v10670_v57  ;;  %v8271_v34 = vpop.f32.mrf.mxu1 }
  0xfb   :  { %v10837_v30 = vpop.f32.mrf.mxu0  ;;  %1742 = vmatprep.subr.bf16.mxu0 %v10675_v58  ;;  %v10852_v36 = vadd.f32 %v8271_v34, %v10841_v31  ;;  %8374 = vmatpush3.bf16.msra.mxu1 %v10586_v43 }
  0xfc   :  { %v10855_v37 = vpop.f32.mrf.mxu1  ;;  %8375 = vmatprep.subr.bf16.mxu1 %v13870_v33 }
  0xfd   :  { %v10845_v32 = vpop.f32.mrf.mxu0  ;;  %14055 = vst [vmem:[#allocation24_spill] sm:$0xff] %v10852_v36 }
  0xfe   :  { %14053 = vst [vmem:[#allocation22_spill] sm:$0xff] %v10845_v32  ;;  %1743 = vmatpush1.bf16.msra.mxu0 %v10679_v59  ;;  %v8272_v39 = vpop.f32.mrf.mxu1 }
  0xff   :  { %v10849_v35 = vpop.f32.mrf.mxu0  ;;  %1744 = vmatprep.subr.bf16.mxu0 %v10682_v60  ;;  %v10865_v41 = vadd.f32 %v8272_v39, %v10841_v31  ;;  %8376 = vmatpush3.bf16.msra.mxu1 %v10592_v44 }
 0x100   :  { %14054 = vst [vmem:[#allocation23_spill] sm:$0xff] %v10849_v35  ;;  %v10868_v42 = vpop.f32.mrf.mxu1  ;;  %8377 = vmatprep.subr.bf16.mxu1 %v13870_v33 }
 0x101   :  { %v10858_v38 = vpop.f32.mrf.mxu0  ;;  %14058 = vst [vmem:[#allocation27_spill] sm:$0xff] %v10865_v41 }
 0x102   :  { %14056 = vst [vmem:[#allocation25_spill] sm:$0xff] %v10858_v38  ;;  %1745 = vmatpush1.bf16.msra.mxu0 %v10689_v61  ;;  %v8275_v43 = vpop.f32.mrf.mxu1 }
 0x103   :  { %v10862_v40 = vpop.f32.mrf.mxu0  ;;  %1815 = vmatprep.subr.bf16.mxu0 %v10694_v62  ;;  %v10877_v0 = vadd.f32 %v8275_v43, %v10841_v31  ;;  %8378 = vmatpush3.bf16.msra.mxu1 %v10600_v45 }
 0x104   :  { %14057 = vst [vmem:[#allocation26_spill] sm:$0xff] %v10862_v40  ;;  %v501_v36 = vpop.f32.mrf.mxu1  ;;  %8379 = vmatprep.subr.bf16.mxu1 %v13870_v33 }
 0x105   :  { %v10871_v23 = vpop.f32.mrf.mxu0  ;;  %14061 = vst [vmem:[#allocation30_spill] sm:$0xff] %v10877_v0  ;;  %v10883_v41 = vadd.f32 %v501_v36, %v10841_v31 }
 0x106   :  { %14059 = vst [vmem:[#allocation28_spill] sm:$0xff] %v10871_v23  ;;  %v8276_v44 = vpop.f32.mrf.mxu1 }
 0x107   :  { %v10874_v34 = vpop.f32.mrf.mxu0  ;;  %14063 = vst [vmem:[#allocation32_spill] sm:$0xff] %v10883_v41  ;;  %v10889_v40 = vadd.f32 %v8276_v44, %v10841_v31  ;;  %8380 = vmatpush3.bf16.msra.mxu1 %v10606_v46 }
 0x108   :  { %14060 = vst [vmem:[#allocation29_spill] sm:$0xff] %v10874_v34  ;;  %v10891_v34 = vpop.f32.mrf.mxu1  ;;  %8385 = vmatprep.subr.bf16.mxu1 %v13870_v33 }
 0x109   :  { %v10880_v39 = vpop.f32.mrf.mxu0  ;;  %14065 = vst [vmem:[#allocation34_spill] sm:$0xff] %v10889_v40  ;;  %14066 = vst [vmem:[#allocation35_spill] sm:$0xff] %v10891_v34 }
 0x10a   :  { %14062 = vst [vmem:[#allocation31_spill] sm:$0xff] %v10880_v39  ;;  %v8279_v45 = vpop.f32.mrf.mxu1 }
 0x10b   :  { %v10886_v23 = vpop.f32.mrf.mxu0  ;;  %v10900_v36 = vadd.f32 %v8279_v45, %v10841_v31 }
 0x10c   :  { %14064 = vst [vmem:[#allocation33_spill] sm:$0xff] %v10886_v23  ;;  %v517_v41 = vpop.f32.mrf.mxu1 }
 0x10d   :  { %v10894_v43 = vpop.f32.mrf.mxu0  ;;  %14069 = vst [vmem:[#allocation38_spill] sm:$0xff] %v10900_v36  ;;  %v10905_v44 = vadd.f32 %v517_v41, %v10841_v31 }
 0x10e   :  { %14067 = vst [vmem:[#allocation36_spill] sm:$0xff] %v10894_v43  ;;  %v8280_v40 = vpop.f32.mrf.mxu1 }
 0x10f   :  { %v10897_v0 = vpop.f32.mrf.mxu0  ;;  %14071 = vst [vmem:[#allocation40_spill] sm:$0xff] %v10905_v44  ;;  %v10910_v46 = vadd.f32 %v8280_v40, %v10841_v31 }
 0x110   :  { %14068 = vst [vmem:[#allocation37_spill] sm:$0xff] %v10897_v0  ;;  %v10912_v43 = vpop.f32.mrf.mxu1 }
 0x111   :  { %v10902_v39 = vpop.f32.mrf.mxu0  ;;  %14073 = vst [vmem:[#allocation42_spill] sm:$0xff] %v10910_v46  ;;  %14074 = vst [vmem:[#allocation43_spill] sm:$0xff] %v10912_v43 }
 0x112   :  { %14070 = vst [vmem:[#allocation39_spill] sm:$0xff] %v10902_v39  ;;  %v8283_v0 = vpop.f32.mrf.mxu1 }
 0x113   :  { %v10907_v34 = vpop.f32.mrf.mxu0  ;;  %v10919_v45 = vadd.f32 %v8283_v0, %v10841_v31 }
 0x114   :  { %14072 = vst [vmem:[#allocation41_spill] sm:$0xff] %v10907_v34  ;;  %v533_v36 = vpop.f32.mrf.mxu1 }
 0x115   :  { %v10914_v33 = vpop.f32.mrf.mxu0  ;;  %14077 = vst [vmem:[#allocation46_spill] sm:$0xff] %v10919_v45  ;;  %v10924_v41 = vadd.f32 %v533_v36, %v10841_v31 }
 0x116   :  { %14075 = vst [vmem:[#allocation44_spill] sm:$0xff] %v10914_v33  ;;  %v8284_v44 = vpop.f32.mrf.mxu1 }
 0x117   :  { %v10916_v23 = vpop.f32.mrf.mxu0  ;;  %14079 = vst [vmem:[#allocation48_spill] sm:$0xff] %v10924_v41  ;;  %v10929_v40 = vadd.f32 %v8284_v44, %v10841_v31 }
 0x118   :  { %14076 = vst [vmem:[#allocation45_spill] sm:$0xff] %v10916_v23  ;;  %v10931_v46 = vpop.f32.mrf.mxu1 }
 0x119   :  { %v10921_v39 = vpop.f32.mrf.mxu0  ;;  %14081 = vst [vmem:[#allocation50_spill] sm:$0xff] %v10929_v40  ;;  %14082 = vst [vmem:[#allocation51_spill] sm:$0xff] %v10931_v46 }
 0x11a   :  { %14078 = vst [vmem:[#allocation47_spill] sm:$0xff] %v10921_v39  ;;  %v8287_v23 = vpop.f32.mrf.mxu1 }
 0x11b   :  { %v10926_v34 = vpop.f32.mrf.mxu0  ;;  %v10938_v0 = vadd.f32 %v8287_v23, %v10841_v31 }
 0x11c   :  { %14080 = vst [vmem:[#allocation49_spill] sm:$0xff] %v10926_v34  ;;  %v549_v45 = vpop.f32.mrf.mxu1 }
 0x11d   :  { %v10933_v43 = vpop.f32.mrf.mxu0  ;;  %14085 = vst [vmem:[#allocation54_spill] sm:$0xff] %v10938_v0  ;;  %v10943_v36 = vadd.f32 %v549_v45, %v10841_v31 }
 0x11e   :  { %14083 = vst [vmem:[#allocation52_spill] sm:$0xff] %v10933_v43  ;;  %v8288_v41 = vpop.f32.mrf.mxu1 }
 0x11f   :  { %v10935_v33 = vpop.f32.mrf.mxu0  ;;  %14087 = vst [vmem:[#allocation56_spill] sm:$0xff] %v10943_v36  ;;  %v10948_v44 = vadd.f32 %v8288_v41, %v10841_v31 }
 0x120   :  { %14084 = vst [vmem:[#allocation53_spill] sm:$0xff] %v10935_v33  ;;  %v10950_v40 = vpop.f32.mrf.mxu1 }
 0x121   :  { %v10940_v39 = vpop.f32.mrf.mxu0  ;;  %14089 = vst [vmem:[#allocation58_spill] sm:$0xff] %v10948_v44  ;;  %14090 = vst [vmem:[#allocation59_spill] sm:$0xff] %v10950_v40 }
 0x122   :  { %14086 = vst [vmem:[#allocation55_spill] sm:$0xff] %v10940_v39  ;;  %v8291_v33 = vpop.f32.mrf.mxu1 }
 0x123   :  { %v10945_v34 = vpop.f32.mrf.mxu0  ;;  %v10957_v23 = vadd.f32 %v8291_v33, %v10841_v31 }
 0x124   :  { %14088 = vst [vmem:[#allocation57_spill] sm:$0xff] %v10945_v34  ;;  %v565_v0 = vpop.f32.mrf.mxu1 }
 0x125   :  { %v10952_v46 = vpop.f32.mrf.mxu0  ;;  %14093 = vst [vmem:[#allocation62_spill] sm:$0xff] %v10957_v23  ;;  %v10962_v45 = vadd.f32 %v565_v0, %v10841_v31 }
 0x126   :  { %14091 = vst [vmem:[#allocation60_spill] sm:$0xff] %v10952_v46  ;;  %v8292_v36 = vpop.f32.mrf.mxu1 }
 0x127   :  { %v10954_v43 = vpop.f32.mrf.mxu0  ;;  %14095 = vst [vmem:[#allocation64_spill] sm:$0xff] %v10962_v45  ;;  %v10967_v41 = vadd.f32 %v8292_v36, %v10841_v31 }
 0x128   :  { %14092 = vst [vmem:[#allocation61_spill] sm:$0xff] %v10954_v43  ;;  %v10969_v44 = vpop.f32.mrf.mxu1 }
 0x129   :  { %v10959_v39 = vpop.f32.mrf.mxu0  ;;  %14097 = vst [vmem:[#allocation66_spill] sm:$0xff] %v10967_v41  ;;  %14098 = vst [vmem:[#allocation67_spill] sm:$0xff] %v10969_v44 }
 0x12a   :  { %14094 = vst [vmem:[#allocation63_spill] sm:$0xff] %v10959_v39  ;;  %v10973_v43 = vpop.f32.mrf.mxu1 }
 0x12b   :  { %v10964_v34 = vpop.f32.mrf.mxu0  ;;  %14100 = vst [vmem:[#allocation69_spill] sm:$0xff] %v10973_v43 }
 0x12c   :  { %14096 = vst [vmem:[#allocation65_spill] sm:$0xff] %v10964_v34  ;;  %v10977_v23 = vpop.f32.mrf.mxu1 }
 0x12d   :  { %v10971_v40 = vpop.f32.mrf.mxu0  ;;  %14102 = vst [vmem:[#allocation71_spill] sm:$0xff] %v10977_v23 }
 0x12e   :  { %14099 = vst [vmem:[#allocation68_spill] sm:$0xff] %v10971_v40  ;;  %v10981_v0 = vpop.f32.mrf.mxu1 }
 0x12f   :  { %v10975_v33 = vpop.f32.mrf.mxu0  ;;  %14104 = vst [vmem:[#allocation73_spill] sm:$0xff] %v10981_v0 }
 0x130   :  { %14101 = vst [vmem:[#allocation70_spill] sm:$0xff] %v10975_v33  ;;  %v10985_v34 = vpop.f32.mrf.mxu1 }
 0x131   :  { %v10979_v39 = vpop.f32.mrf.mxu0  ;;  %14106 = vst [vmem:[#allocation75_spill] sm:$0xff] %v10985_v34 }
 0x132   :  { %14103 = vst [vmem:[#allocation72_spill] sm:$0xff] %v10979_v39  ;;  %v10989_v41 = vpop.f32.mrf.mxu1 }
 0x133   :  { %v10983_v45 = vpop.f32.mrf.mxu0  ;;  %14108 = vst [vmem:[#allocation77_spill] sm:$0xff] %v10989_v41 }
 0x134   :  { %14105 = vst [vmem:[#allocation74_spill] sm:$0xff] %v10983_v45  ;;  %v10993_v40 = vpop.f32.mrf.mxu1 }
 0x135   :  { %v10987_v36 = vpop.f32.mrf.mxu0  ;;  %14110 = vst [vmem:[#allocation79_spill] sm:$0xff] %v10993_v40 }
 0x136   :  { %14107 = vst [vmem:[#allocation76_spill] sm:$0xff] %v10987_v36  ;;  %v10997_v33 = vpop.f32.mrf.mxu1 }
 0x137   :  { %v10991_v44 = vpop.f32.mrf.mxu0  ;;  %14112 = vst [vmem:[#allocation81_spill] sm:$0xff] %v10997_v33 }
 0x138   :  { %14109 = vst [vmem:[#allocation78_spill] sm:$0xff] %v10991_v44  ;;  %v11001_v39 = vpop.f32.mrf.mxu1 }
 0x139   :  { %v10995_v43 = vpop.f32.mrf.mxu0  ;;  %14114 = vst [vmem:[#allocation83_spill] sm:$0xff] %v11001_v39 }
 0x13a   :  { %14111 = vst [vmem:[#allocation80_spill] sm:$0xff] %v10995_v43  ;;  %v11005_v45 = vpop.f32.mrf.mxu1 }
 0x13b   :  { %v10999_v23 = vpop.f32.mrf.mxu0  ;;  %14116 = vst [vmem:[#allocation85_spill] sm:$0xff] %v11005_v45 }
 0x13c   :  { %14113 = vst [vmem:[#allocation82_spill] sm:$0xff] %v10999_v23  ;;  %v11009_v36 = vpop.f32.mrf.mxu1 }
 0x13d   :  { %v11003_v0 = vpop.f32.mrf.mxu0  ;;  %14118 = vst [vmem:[#allocation87_spill] sm:$0xff] %v11009_v36 }
 0x13e   :  { %14115 = vst [vmem:[#allocation84_spill] sm:$0xff] %v11003_v0  ;;  %v11013_v44 = vpop.f32.mrf.mxu1 }
 0x13f   :  { %v11007_v34 = vpop.f32.mrf.mxu0  ;;  %14120 = vst [vmem:[#allocation89_spill] sm:$0xff] %v11013_v44 }
 0x140   :  { %14117 = vst [vmem:[#allocation86_spill] sm:$0xff] %v11007_v34  ;;  %v11017_v43 = vpop.f32.mrf.mxu1 }
 0x141   :  { %v11011_v41 = vpop.f32.mrf.mxu0  ;;  %14122 = vst [vmem:[#allocation91_spill] sm:$0xff] %v11017_v43 }
 0x142   :  { %14119 = vst [vmem:[#allocation88_spill] sm:$0xff] %v11011_v41  ;;  %v11021_v23 = vpop.f32.mrf.mxu1 }
 0x143   :  { %v11015_v40 = vpop.f32.mrf.mxu0  ;;  %14124 = vst [vmem:[#allocation93_spill] sm:$0xff] %v11021_v23 }
 0x144   :  { %14121 = vst [vmem:[#allocation90_spill] sm:$0xff] %v11015_v40  ;;  %v11025_v0 = vpop.f32.mrf.mxu1 }
 0x145   :  { %v11019_v33 = vpop.f32.mrf.mxu0  ;;  %14126 = vst [vmem:[#allocation95_spill] sm:$0xff] %v11025_v0 }
 0x146   :  { %14123 = vst [vmem:[#allocation92_spill] sm:$0xff] %v11019_v33  ;;  %v11029_v34 = vpop.f32.mrf.mxu1 }
 0x147   :  { %v11023_v39 = vpop.f32.mrf.mxu0  ;;  %14128 = vst [vmem:[#allocation97_spill] sm:$0xff] %v11029_v34 }
 0x148   :  { %14125 = vst [vmem:[#allocation94_spill] sm:$0xff] %v11023_v39  ;;  %v11033_v41 = vpop.f32.mrf.mxu1  ;;  %v11046_v39 = vld [vmem:[%s13859_s3 + $0x3] sm:$0x7] }
 0x149   :  { %v11027_v45 = vpop.f32.mrf.mxu0  ;;  %14130 = vst [vmem:[#allocation99_spill] sm:$0xff] %v11033_v41 }
 0x14a   :  { %14127 = vst [vmem:[#allocation96_spill] sm:$0xff] %v11027_v45  ;;  %v11037_v40 = vpop.f32.mrf.mxu1 }
 0x14b   :  { %v11031_v36 = vpop.f32.mrf.mxu0  ;;  %14132 = vst [vmem:[#allocation101_spill] sm:$0xff] %v11037_v40 }
 0x14c   :  { %14129 = vst [vmem:[#allocation98_spill] sm:$0xff] %v11031_v36  ;;  %v11041_v33 = vpop.f32.mrf.mxu1  ;;  %v11052_v36 = vrot.slane %v11046_v39, %v10824_v27 }
 0x14d   :  { %v11035_v44 = vpop.f32.mrf.mxu0  ;;  %14134 = vst [vmem:[#allocation103_spill] sm:$0xff] %v11041_v33 }
 0x14e   :  { %14131 = vst [vmem:[#allocation100_spill] sm:$0xff] %v11035_v44  ;;  %14136 = vst [vmem:[#allocation105_spill] sm:$0xff] %v11052_v36  ;;  %v11054_v41 = vpop.f32.mrf.mxu1 }
 0x14f   :  { %v11039_v43 = vpop.f32.mrf.mxu0  ;;  %14137 = vst [vmem:[#allocation106_spill] sm:$0xff] %v11054_v41 }
 0x150   :  { %14133 = vst [vmem:[#allocation102_spill] sm:$0xff] %v11039_v43  ;;  %v11058_v0 = vpop.f32.mrf.mxu1 }
 0x151   :  { %v11048_v45 = vpop.f32.mrf.mxu0  ;;  %14139 = vst [vmem:[#allocation108_spill] sm:$0xff] %v11058_v0 }
 0x152   :  { %14135 = vst [vmem:[#allocation104_spill] sm:$0xff] %v11048_v45  ;;  %v11063_v33 = vpop.f32.mrf.mxu1 }
 0x153   :  { %v11056_v44 = vpop.f32.mrf.mxu0  ;;  %14141 = vst [vmem:[#allocation110_spill] sm:$0xff] %v11063_v33 }
 0x154   :  { %14138 = vst [vmem:[#allocation107_spill] sm:$0xff] %v11056_v44  ;;  %v11068_v46 = vpop.f32.mrf.mxu1 }
 0x155   :  { %v8303_v43 = vpop.f32.mrf.mxu0  ;;  %14143 = vst [vmem:[#allocation112_spill] sm:$0xff] %v11068_v46 }
 0x156   :  { %v11061_v34 = vadd.f32 %v8303_v43, %v11052_v36  ;;  %v11075_v44 = vpop.f32.mrf.mxu1 }
 0x157   :  { %v938_v23 = vpop.f32.mrf.mxu0  ;;  %14146 = vst [vmem:[#allocation115_spill] sm:$0xff] %v11075_v44 }
 0x158   :  { %14140 = vst [vmem:[#allocation109_spill] sm:$0xff] %v11061_v34  ;;  %v11066_v40 = vadd.f32 %v938_v23, %v11052_v36  ;;  %v11077_v35 = vpop.f32.mrf.mxu1 }
 0x159   :  { %v8304_v45 = vpop.f32.mrf.mxu0  ;;  %14147 = vst [vmem:[#allocation116_spill] sm:$0xff] %v11077_v35 }
 0x15a   :  { %14142 = vst [vmem:[#allocation111_spill] sm:$0xff] %v11066_v40  ;;  %v11071_v27 = vadd.f32 %v8304_v45, %v11052_v36  ;;  %v11082_v33 = vpop.f32.mrf.mxu1 }
 0x15b   :  { %v11073_v41 = vpop.f32.mrf.mxu0  ;;  %14149 = vst [vmem:[#allocation118_spill] sm:$0xff] %v11082_v33 }
 0x15c   :  { %14144 = vst [vmem:[#allocation113_spill] sm:$0xff] %v11071_v27  ;;  %14145 = vst [vmem:[#allocation114_spill] sm:$0xff] %v11073_v41  ;;  %v11087_v46 = vpop.f32.mrf.mxu1 }
 0x15d   :  { %v8307_v0 = vpop.f32.mrf.mxu0  ;;  %14151 = vst [vmem:[#allocation120_spill] sm:$0xff] %v11087_v46 }
 0x15e   :  { %v11080_v43 = vadd.f32 %v8307_v0, %v11052_v36  ;;  %v11094_v27 = vpop.f32.mrf.mxu1 }
 0x15f   :  { %v954_v34 = vpop.f32.mrf.mxu0  ;;  %14154 = vst [vmem:[#allocation123_spill] sm:$0xff] %v11094_v27 }
 0x160   :  { %14148 = vst [vmem:[#allocation117_spill] sm:$0xff] %v11080_v43  ;;  %v11085_v23 = vadd.f32 %v954_v34, %v11052_v36  ;;  %v11096_v44 = vpop.f32.mrf.mxu1 }
 0x161   :  { %v8308_v40 = vpop.f32.mrf.mxu0  ;;  %14155 = vst [vmem:[#allocation124_spill] sm:$0xff] %v11096_v44 }
 0x162   :  { %14150 = vst [vmem:[#allocation119_spill] sm:$0xff] %v11085_v23  ;;  %v11090_v45 = vadd.f32 %v8308_v40, %v11052_v36  ;;  %v11101_v33 = vpop.f32.mrf.mxu1 }
 0x163   :  { %v11092_v41 = vpop.f32.mrf.mxu0  ;;  %14157 = vst [vmem:[#allocation126_spill] sm:$0xff] %v11101_v33 }
 0x164   :  { %14152 = vst [vmem:[#allocation121_spill] sm:$0xff] %v11090_v45  ;;  %14153 = vst [vmem:[#allocation122_spill] sm:$0xff] %v11092_v41  ;;  %v11106_v46 = vpop.f32.mrf.mxu1 }
 0x165   :  { %v8311_v35 = vpop.f32.mrf.mxu0  ;;  %14159 = vst [vmem:[#allocation128_spill] sm:$0xff] %v11106_v46 }
 0x166   :  { %v11099_v0 = vadd.f32 %v8311_v35, %v11052_v36  ;;  %v11113_v45 = vpop.f32.mrf.mxu1 }
 0x167   :  { %v970_v43 = vpop.f32.mrf.mxu0  ;;  %14162 = vst [vmem:[#allocation131_spill] sm:$0xff] %v11113_v45 }
 0x168   :  { %14156 = vst [vmem:[#allocation125_spill] sm:$0xff] %v11099_v0  ;;  %v11104_v34 = vadd.f32 %v970_v43, %v11052_v36  ;;  %v11115_v27 = vpop.f32.mrf.mxu1 }
 0x169   :  { %v8312_v23 = vpop.f32.mrf.mxu0  ;;  %14163 = vst [vmem:[#allocation132_spill] sm:$0xff] %v11115_v27 }
 0x16a   :  { %14158 = vst [vmem:[#allocation127_spill] sm:$0xff] %v11104_v34  ;;  %v11109_v40 = vadd.f32 %v8312_v23, %v11052_v36  ;;  %v11120_v33 = vpop.f32.mrf.mxu1 }
 0x16b   :  { %v11111_v41 = vpop.f32.mrf.mxu0  ;;  %14165 = vst [vmem:[#allocation134_spill] sm:$0xff] %v11120_v33 }
 0x16c   :  { %14160 = vst [vmem:[#allocation129_spill] sm:$0xff] %v11109_v40  ;;  %14161 = vst [vmem:[#allocation130_spill] sm:$0xff] %v11111_v41  ;;  %v11125_v46 = vpop.f32.mrf.mxu1 }
 0x16d   :  { %v8315_v44 = vpop.f32.mrf.mxu0  ;;  %14167 = vst [vmem:[#allocation136_spill] sm:$0xff] %v11125_v46 }
 0x16e   :  { %v11118_v35 = vadd.f32 %v8315_v44, %v11052_v36  ;;  %v11132_v40 = vpop.f32.mrf.mxu1 }
 0x16f   :  { %v986_v0 = vpop.f32.mrf.mxu0  ;;  %14170 = vst [vmem:[#allocation139_spill] sm:$0xff] %v11132_v40 }
 0x170   :  { %14164 = vst [vmem:[#allocation133_spill] sm:$0xff] %v11118_v35  ;;  %v11123_v43 = vadd.f32 %v986_v0, %v11052_v36  ;;  %v11134_v45 = vpop.f32.mrf.mxu1 }
 0x171   :  { %v8316_v34 = vpop.f32.mrf.mxu0  ;;  %14171 = vst [vmem:[#allocation140_spill] sm:$0xff] %v11134_v45  ;;  %v11154_v45 = vsub.s32 0, %v10815_v24 }
 0x172   :  { %14166 = vst [vmem:[#allocation135_spill] sm:$0xff] %v11123_v43  ;;  %v11128_v23 = vadd.f32 %v8316_v34, %v11052_v36  ;;  %v11139_v33 = vpop.f32.mrf.mxu1 }
 0x173   :  { %v11130_v41 = vpop.f32.mrf.mxu0  ;;  %14173 = vst [vmem:[#allocation142_spill] sm:$0xff] %v11139_v33  ;;  %14179 = vst [vmem:[#allocation148_spill] sm:$0xff] %v11154_v45 }
 0x174   :  { %14168 = vst [vmem:[#allocation137_spill] sm:$0xff] %v11128_v23  ;;  %14169 = vst [vmem:[#allocation138_spill] sm:$0xff] %v11130_v41  ;;  %v11144_v46 = vpop.f32.mrf.mxu1 }
 0x175   :  { %v8319_v27 = vpop.f32.mrf.mxu0  ;;  %14175 = vst [vmem:[#allocation144_spill] sm:$0xff] %v11144_v46  ;;  %v11174_v46 = vsub.s32 1, %v10815_v24 }
 0x176   :  { %v11137_v44 = vadd.f32 %v8319_v27, %v11052_v36  ;;  %v11151_v23 = vpop.f32.mrf.mxu1 }
 0x177   :  { %v1002_v35 = vpop.f32.mrf.mxu0  ;;  %14178 = vst [vmem:[#allocation147_spill] sm:$0xff] %v11151_v23  ;;  %14185 = vst [vmem:[#allocation154_spill] sm:$0xff] %v11174_v46 }
 0x178   :  { %14172 = vst [vmem:[#allocation141_spill] sm:$0xff] %v11137_v44  ;;  %v11142_v0 = vadd.f32 %v1002_v35, %v11052_v36  ;;  %v11158_v40 = vpop.f32.mrf.mxu1 }
 0x179   :  { %v8320_v43 = vpop.f32.mrf.mxu0  ;;  %14180 = vst [vmem:[#allocation149_spill] sm:$0xff] %v11158_v40 }
 0x17a   :  { %14174 = vst [vmem:[#allocation143_spill] sm:$0xff] %v11142_v0  ;;  %v11147_v34 = vadd.f32 %v8320_v43, %v11052_v36  ;;  %v11160_v35 = vpop.f32.mrf.mxu1  ;;  %v11164_v0 = vrot.slane %v10834_v29, %v11154_v45 }
 0x17b   :  { %v11149_v41 = vpop.f32.mrf.mxu0  ;;  %14181 = vst [vmem:[#allocation150_spill] sm:$0xff] %v11160_v35 }
 0x17c   :  { %14176 = vst [vmem:[#allocation145_spill] sm:$0xff] %v11147_v34  ;;  %14177 = vst [vmem:[#allocation146_spill] sm:$0xff] %v11149_v41  ;;  %v11171_v34 = vpop.f32.mrf.mxu1  ;;  %v333_v33 = vadd.f32 %v10817_v25, %v11164_v0  ;;  %v337_v24 = vadd.f32 %v10828_v28, %v11164_v0 }
 0x17d   :  { %v11156_v27 = vpop.f32.mrf.mxu0  ;;  %14182 = vst [vmem:[#allocation151_spill] sm:$0xff] %v11164_v0  ;;  %14184 = vst [vmem:[#allocation153_spill] sm:$0xff] %v11171_v34 }
 0x17e   :  { %v11178_v40 = vpop.f32.mrf.mxu1 }
 0x17f   :  { %v1018_v44 = vpop.f32.mrf.mxu0  ;;  %14187 = vst [vmem:[#allocation156_spill] sm:$0xff] %v11178_v40 }
 0x180   :  { %v11167_v43 = vadd.f32 %v1018_v44, %v11052_v36  ;;  %v11182_v38 = vpop.f32.mrf.mxu1  ;;  %v11186_v44 = vrot.slane %v10834_v29, %v11174_v46 }
 0x181   :  { %v11169_v41 = vpop.f32.mrf.mxu0  ;;  %14188 = vst [vmem:[#allocation157_spill] sm:$0xff] %v11182_v38 }
 0x182   :  { %14183 = vst [vmem:[#allocation152_spill] sm:$0xff] %v11167_v43  ;;  %14189 = vst [vmem:[#allocation158_spill] sm:$0xff] %v11186_v44  ;;  %v895_v34 = vpop.f32.mrf.mxu1  ;;  %v335_v40 = vadd.f32 %v10821_v26, %v11186_v44  ;;  %v339_v29 = vadd.f32 %v10837_v30, %v11186_v44 }
 0x183   :  { %v11176_v23 = vpop.f32.mrf.mxu0 }
 0x184   :  { %14186 = vst [vmem:[#allocation155_spill] sm:$0xff] %v11176_v23  ;;  %v897_v61 = vpop.f32.mrf.mxu1 }
 0x185   :  { %v1360_v35 = vpop.f32.mrf.mxu0 }
 0x186   :  { %v1622_v43 = vadd.f32 %v1360_v35, %v333_v33  ;;  %v899_v60 = vpop.f32.mrf.mxu1 }
 0x187   :  { %v1362_v32 = vpop.f32.mrf.mxu0 }
 0x188   :  { %v7582_v62 = vmul.f32 -1.442695, %v1622_v43  ;;  %v1636_v38 = vadd.f32 %v1362_v32, %v335_v40  ;;  %v901_v33 = vpop.f32.mrf.mxu1 }
 0x189   :  { %v1364_v23 = vpop.f32.mrf.mxu0 }
 0x18a   :  { %9285 = vpow2.f32 %v7582_v62  ;;  %v1623_v25 = vadd.f32 %v1364_v23, %v337_v24  ;;  %v1403_v57 = vpop.f32.mrf.mxu1  ;;  %v7584_v28 = vmul.f32 -1.442695, %v1636_v38 }
 0x18b   :  { %v1366_v58 = vpop.f32.mrf.mxu0 }
 0x18c   :  { %v7583_v59 = vmul.f32 -1.442695, %v1623_v25  ;;  %v1637_v35 = vadd.f32 %v1366_v58, %v339_v29  ;;  %v8343_v43 = vpop.f32.mrf.mxu1  ;;  %v11201_v58 = vrot.slane %v11046_v39, %v11154_v45  ;;  %v11527_v45 = vld [vmem:[#allocation5 + $0x4] ss:$12 sps:$4 sm:$0xff]  }
 0x18e   :  { %9287 = vpow2.f32 %v7583_v59  ;;  %v7585_v0 = vmul.f32 -1.442695, %v1637_v35  ;;  %v1406_v56 = vpop.f32.mrf.mxu1  ;;  %v11197_v59 = vld [vmem:[%s13860_s4] ss:$0 sm:$0xff]  ;;  %14190 = vst [vmem:[#allocation159_spill] sm:$0xff] %v11201_v58  ;;  %v486_v35 = vadd.f32 %v10855_v37, %v10841_v31  ;;  %v489_v37 = vadd.f32 %v10868_v42, %v10841_v31 }
 0x18f   :  { %9289 = vpow2.f32 %v7584_v28 }
 0x190   :  { %v8344_v55 = vpop.f32.mrf.mxu1  ;;  %9291 = vpow2.f32 %v7585_v0  ;;  %v1650_v0 = vadd.f32 %v11197_v59, %v1403_v57  ;;  %v1651_v57 = vadd.f32 %v11197_v59, %v1406_v56 }
 0x191   :  { %v896_v55 = vadd.f32 %v895_v34, %v11201_v58 }
 0x197   :  { %v9286_v26 = vpop.eup %9285 }
 0x198   :  { %v1630_v62 = vadd.f32 1.0, %v9286_v26  ;;  %v900_v26 = vadd.f32 %v899_v60, %v11201_v58 }
 0x19a   :  { %9293 = vrcp.f32 %v1630_v62 }
 0x19b   :  { %v9288_v32 = vpop.eup %9287 }
 0x19c   :  { %v1631_v40 = vadd.f32 1.0, %v9288_v32  ;;  %v9290_v23 = vpop.eup %9289 }
 0x19d   :  { %v9292_v30 = vpop.eup %9291  ;;  %v1644_v38 = vadd.f32 1.0, %v9290_v23 }
 0x19e   :  { %9295 = vrcp.f32 %v1631_v40  ;;  %v1645_v28 = vadd.f32 1.0, %v9292_v30  ;;  %v11210_v40 = vrot.slane %v11046_v39, %v11174_v46  ;;  %v11523_v46 = vld [vmem:[#allocation5 + $0x18] ss:$12 sps:$4 sm:$0xff]  }
 0x19f   :  { %9297 = vrcp.f32 %v1644_v38 }
 0x1a0   :  { %v898_v30 = vadd.f32 %v897_v61, %v11210_v40  ;;  %v902_v39 = vadd.f32 %v901_v33, %v11210_v40 }
 0x1a5   :  { %v1572_v24 = vpop.f32.mrf.mxu0 }
 0x1a6   :  { %v1666_v25 = vadd.f32 %v1572_v24, %v896_v55 }
 0x1a7   :  { %v9294_v29 = vpop.eup %9293  ;;  %v1574_v43 = vpop.f32.mrf.mxu0 }
 0x1a8   :  { %v1652_v62 = vmul.f32 %v9294_v29, %v1650_v0  ;;  %v7586_v32 = vmul.f32 -1.442695, %v1666_v25  ;;  %v1680_v29 = vadd.f32 %v1574_v43, %v898_v30 }
 0x1a9   :  { %v1576_v34 = vpop.f32.mrf.mxu0 }
 0x1aa   :  { %v1654_v23 = vadd.f32 %v1652_v62, %v486_v35  ;;  %9299 = vpow2.f32 %v7586_v32  ;;  %v1667_v55 = vadd.f32 %v1576_v34, %v900_v26  ;;  %v1615_v56 = vpop.f32.mrf.mxu1  ;;  %v7588_v62 = vmul.f32 -1.442695, %v1680_v29 }
 0x1ab   :  { %v9296_v24 = vpop.eup %9295  ;;  %9301 = vrcp.f32 %v1645_v28  ;;  %v1578_v0 = vpop.f32.mrf.mxu0 }
 0x1ac   :  { %9303 = vtanh.f32 %v1654_v23  ;;  %v1653_v60 = vmul.f32 %v9296_v24, %v1651_v57  ;;  %v7587_v38 = vmul.f32 -1.442695, %v1667_v55  ;;  %v1681_v35 = vadd.f32 %v1578_v0, %v902_v39  ;;  %v8363_v26 = vpop.f32.mrf.mxu1  ;;  %v9298_v42 = vpop.eup %9297 }
 0x1ad   :  { %v1658_v55 = vsub.f32 1.0, %v9298_v42  ;;  %v1662_v43 = vmul.f32 0.0, %v9298_v42 }
 0x1ae   :  { %v1655_v25 = vadd.f32 %v1653_v60, %v489_v37  ;;  %9305 = vpow2.f32 %v7587_v38  ;;  %v7589_v32 = vmul.f32 -1.442695, %v1681_v35  ;;  %v1618_v34 = vpop.f32.mrf.mxu1  ;;  %v11224_v35 = vld [vmem:[%s13860_s4 + $0x1] ss:$0 sm:$0xff] }
 0x1af   :  { %v1694_v42 = vadd.f32 %v11224_v35, %v1615_v56  ;;  %v1027_v56 = vadd.f32 %v11156_v27, %v11052_v36 }
 0x1b0   :  { %9307 = vtanh.f32 %v1655_v25  ;;  %v8364_v28 = vpop.f32.mrf.mxu1 }
 0x1b1   :  { %9309 = vpow2.f32 %v7588_v62 }
 0x1b2   :  { %9311 = vpow2.f32 %v7589_v32 }
 0x1b7   :  { %v9300_v61 = vpop.eup %9299 }
 0x1b8   :  { %v9302_v23 = vpop.eup %9301  ;;  %v1674_v57 = vadd.f32 1.0, %v9300_v61  ;;  %v14192_v61 = vmov 0.0  }
 0x1b9   :  { %v9304_v24 = vpop.eup %9303  ;;  %v1659_v60 = vsub.f32 1.0, %v9302_v23  ;;  %v1663_v25 = vmul.f32 0.0, %v9302_v23 }
 0x1ba   :  { %9313 = vrcp.f32 %v1674_v57  ;;  %v1660_v33 = vmul.f32 %v9304_v24, %v1658_v55  ;;  %v14193_v55 = vmov 0  }
 0x1bb   :  { %v9306_v37 = vpop.eup %9305 }
 0x1bc   :  { %v1675_v30 = vadd.f32 1.0, %v9306_v37  ;;  %v11217_v38 = vadd.f32 %v1662_v43, %v1660_v33  ;;  %v1030_v33 = vadd.f32 %v11169_v41, %v11052_v36  ;;  %v14206_v41 = vld [vmem:[#allocation18_spill] sm:$0xff]  ;;  %v14208_v43 = vld [vmem:[#allocation19_spill] sm:$0xff] }
 0x1bd   :  { %v9308_v0 = vpop.eup %9307  ;;  %v14209_v37 = vld [vmem:[#allocation151_spill] sm:$0xff] }
 0x1be   :  { %9315 = vrcp.f32 %v1675_v30  ;;  %v1661_v39 = vmul.f32 %v9308_v0, %v1659_v60  ;;  %v9310_v62 = vpop.eup %9309  ;;  %v14210_v30 = vld [vmem:[#allocation22_spill] sm:$0xff] }
 0x1bf   :  { %v9312_v32 = vpop.eup %9311  ;;  %v1688_v28 = vadd.f32 1.0, %v9310_v62  ;;  %v343_v60 = vadd.f32 %v14210_v30, %v14209_v37 }
 0x1c0   :  { %v11219_v29 = vadd.f32 %v1663_v25, %v1661_v39  ;;  %v1689_v57 = vadd.f32 1.0, %v9312_v32 }
 0x1c1   :  { %9317 = vrcp.f32 %v1688_v28 }
 0x1c2   :  { %v11228_v26 = vpack.c.bf16 %v11219_v29, %v11217_v38  ;;  %9319 = vrcp.f32 %v1689_v57 }
 0x1c4   :  { %14191 = vst [vmem:[#allocation160_spill] sm:$0xff] %v11228_v26  ;;  %1763 = vmatmul.mubr.bf16.vlgmr.msra.gmra.mxu0 %v11228_v26  ;;  %8382 = vmatmul.mubr.bf16.vlgmr.msra.gmra.mxu1 %v11228_v26 }
 0x1c5   :  { %1816 = vmatpush1.bf16.msra.mxu0 %v10712_v63  ;;  %8386 = vmatpush3.bf16.msra.mxu1 %v10734_v6 }
 0x1c6   :  { %1817 = vmatprep.subr.bf16.mxu0 %v10714_v1  ;;  %8387 = vmatprep.subr.bf16.mxu1 %v14192_v61  ;;  %v1695_v1 = vadd.f32 %v11224_v35, %v1618_v34  ;;  %v11331_v34 = vld [vmem:[#allocation5 + $0x8] ss:$12 sps:$4 sm:$0xff]  }
 0x1c7   :  { %v9314_v23 = vpop.eup %9313  ;;  %1847 = vmatprep.mubr.bf16.mxu0 %v14193_v55  ;;  %8401 = vmatprep.mubr.msk.bf16.mxu1 %vm10307_vm1, %v14192_v61 }
 0x1c8   :  { %v1696_v24 = vmul.f32 %v9314_v23, %v1694_v42  ;;  %v14211_v42 = vld [vmem:[#allocation25_spill] sm:$0xff] }
 0x1c9   :  { %1818 = vmatpush1.bf16.msra.mxu0 %v10718_v2  ;;  %8388 = vmatpush3.bf16.msra.mxu1 %v10744_v9  ;;  %v347_v28 = vadd.f32 %v14211_v42, %v14209_v37 }
 0x1ca   :  { %v1698_v63 = vadd.f32 %v1696_v24, %v1027_v56  ;;  %1819 = vmatprep.subr.bf16.mxu0 %v10722_v3  ;;  %8389 = vmatprep.subr.bf16.mxu1 %v14192_v61  ;;  %v14212_v24 = vld [vmem:[#allocation23_spill] sm:$0xff] }
 0x1cb   :  { %v9316_v6 = vpop.eup %9315 }
 0x1cc   :  { %9321 = vtanh.f32 %v1698_v63  ;;  %v1697_v27 = vmul.f32 %v9316_v6, %v1695_v1  ;;  %v345_v63 = vadd.f32 %v14212_v24, %v11186_v44 }
 0x1cd   :  { %1820 = vmatpush1.bf16.msra.mxu0 %v10729_v4  ;;  %8390 = vmatpush3.bf16.msra.mxu1 %v10756_v12 }
 0x1ce   :  { %v1699_v2 = vadd.f32 %v1697_v27, %v1030_v33  ;;  %1821 = vmatprep.subr.bf16.mxu0 %v10732_v5  ;;  %8391 = vmatprep.subr.bf16.mxu1 %v14192_v61  ;;  %v9318_v3 = vpop.eup %9317 }
 0x1cf   :  { %v9320_v4 = vpop.eup %9319  ;;  %v1706_v12 = vmul.f32 0.0, %v9318_v3 }
 0x1d0   :  { %9323 = vtanh.f32 %v1699_v2 }
 0x1d1   :  { %1822 = vmatpush1.bf16.msra.mxu0 %v10737_v7  ;;  %8392 = vmatpush3.bf16.msra.mxu1 %v10766_v15  ;;  %v1702_v7 = vsub.f32 1.0, %v9318_v3  ;;  %v14213_v3 = vld [vmem:[#allocation26_spill] sm:$0xff] }
 0x1d2   :  { %1823 = vmatprep.subr.bf16.mxu0 %v10740_v8  ;;  %8393 = vmatprep.subr.bf16.mxu1 %v14192_v61  ;;  %v1703_v8 = vsub.f32 1.0, %v9320_v4 }
 0x1d5   :  { %1824 = vmatpush1.bf16.msra.mxu0 %v10750_v10  ;;  %8394 = vmatpush3.bf16.msra.mxu1 %v10776_v18  ;;  %v11279_v18 = vld [vmem:[#allocation5 + $0xac] ss:$12 sps:$4 sm:$0xff]  }
 0x1d6   :  { %1825 = vmatprep.subr.bf16.mxu0 %v10753_v11  ;;  %8395 = vmatprep.subr.bf16.mxu1 %v14192_v61 }
 0x1d9   :  { %v9322_v5 = vpop.eup %9321  ;;  %1826 = vmatpush1.bf16.msra.mxu0 %v10760_v13  ;;  %8396 = vmatpush3.bf16.msra.mxu1 %v10784_v20  ;;  %v1707_v13 = vmul.f32 0.0, %v9320_v4  ;;  %v14202_v20 = vld [vmem:[#allocation15_spill] sm:$0xff]  ;;  %v349_v4 = vadd.f32 %v14213_v3, %v11186_v44 }
 0x1da   :  { %1827 = vmatprep.subr.bf16.mxu0 %v10763_v14  ;;  %8397 = vmatprep.subr.bf16.mxu1 %v14192_v61  ;;  %v1704_v9 = vmul.f32 %v9322_v5, %v1702_v7  ;;  %14207 = vst [vmem:[#allocation15_spill] sm:$0xff] %v11331_v34 }
 0x1dc   :  { %v11269_v15 = vadd.f32 %v1706_v12, %v1704_v9 }
 0x1dd   :  { %v9324_v10 = vpop.eup %9323  ;;  %1828 = vmatpush1.bf16.msra.mxu0 %v10770_v16  ;;  %8398 = vmatpush3.bf16.msra.mxu1 %v10790_v21  ;;  %v11325_v21 = vld [vmem:[#allocation5 + $0x20] ss:$12 sps:$4 sm:$0xff]  }
 0x1de   :  { %1829 = vmatprep.subr.bf16.mxu0 %v10773_v17  ;;  %8399 = vmatprep.subr.bf16.mxu1 %v14192_v61  ;;  %v1705_v11 = vmul.f32 %v9324_v10, %v1703_v8  ;;  %v11286_v17 = vld [vmem:[#allocation5 + $0xb0] ss:$12 sps:$4 sm:$0xff]  }
 0x1e0   :  { %v11271_v14 = vadd.f32 %v1707_v13, %v1705_v11 }
 0x1e1   :  { %1830 = vmatpush1.bf16.msra.mxu0 %v10780_v19  ;;  %8400 = vmatpush3.bf16.msra.mxu1 %v10798_v22  ;;  %v11295_v19 = vld [vmem:[#allocation5 + $0x98] ss:$12 sps:$4 sm:$0xff]   ;;  %v14205_v22 = vld [vmem:[#allocation17_spill] sm:$0xff] }
 0x1e2   :  { %v11277_v16 = vpack.c.bf16 %v11271_v14, %v11269_v15  ;;  %2008 = vmatprep.subr.bf16.mxu0 %v11279_v18  ;;  %8405 = vmatprep.subr.bf16.mxu1 %v14192_v61 }
 0x1e4   :  { %14194 = vst [vmem:[#allocation161_spill] sm:$0xff] %v11277_v16  ;;  %1848 = vmatmul.mubr.bf16.vlgmr.msra.gmra.mxu0 %v11277_v16  ;;  %8402 = vmatmul.mubr.bf16.vlgmr.msra.gmra.mxu1 %v11277_v16  ;;  %v11531_v16 = vld [vmem:[#allocation5] ss:$12 sps:$4 sm:$0xff]  }
 0x1e5   :  { %2009 = vmatpush1.bf16.msra.mxu0 %v10623_v47  ;;  %8406 = vmatpush3.bf16.msra.mxu1 %v11286_v17  ;;  %v11301_v47 = vld [vmem:[#allocation5 + $0x80] ss:$12 sps:$4 sm:$0xff]  }
 0x1e6   :  { %2010 = vmatprep.subr.bf16.mxu0 %v10625_v48  ;;  %8407 = vmatprep.subr.bf16.mxu1 %v14192_v61  ;;  %14195 = vst [vmem:[#allocation162_spill] sm:$0xff] %v11301_v47  ;;  %v11307_v48 = vld [vmem:[#allocation5 + $0x68] ss:$12 sps:$4 sm:$0xff]  }
 0x1e7   :  { %2040 = vmatprep.mubr.bf16.mxu0 %v14193_v55  ;;  %8421 = vmatprep.mubr.msk.bf16.mxu1 %vm10307_vm1, %v14192_v61  ;;  %14196 = vst [vmem:[#allocation163_spill] sm:$0xff] %v11307_v48 }
 0x1e9   :  { %2011 = vmatpush1.bf16.msra.mxu0 %v10632_v49  ;;  %8408 = vmatpush3.bf16.msra.mxu1 %v11295_v19  ;;  %v14197_v49 = vld [vmem:[#allocation12_spill] sm:$0xff] }
 0x1ea   :  { %2012 = vmatprep.subr.bf16.mxu0 %v10635_v50  ;;  %8409 = vmatprep.subr.bf16.mxu1 %v14192_v61  ;;  %v11313_v50 = vld [vmem:[#allocation5 + $0x50] ss:$12 sps:$4 sm:$0xff]  }
 0x1eb   :  { %14198 = vst [vmem:[#allocation12_spill] sm:$0xff] %v11313_v50 }
 0x1ed   :  { %2013 = vmatpush1.bf16.msra.mxu0 %v10641_v51  ;;  %8410 = vmatpush3.bf16.msra.mxu1 %v11301_v47  ;;  %v14199_v51 = vld [vmem:[#allocation13_spill] sm:$0xff] }
 0x1ee   :  { %2014 = vmatprep.subr.bf16.mxu0 %v10644_v52  ;;  %8411 = vmatprep.subr.bf16.mxu1 %v14192_v61  ;;  %v14200_v52 = vld [vmem:[#allocation14_spill] sm:$0xff] }
 0x1ef   :  { %14204 = vst [vmem:[#allocation14_spill] sm:$0xff] %v11325_v21 }
 0x1f1   :  { %2015 = vmatpush1.bf16.msra.mxu0 %v10651_v53  ;;  %8412 = vmatpush3.bf16.msra.mxu1 %v11307_v48  ;;  %v11319_v53 = vld [vmem:[#allocation5 + $0x38] ss:$12 sps:$4 sm:$0xff]  }
 0x1f2   :  { %2016 = vmatprep.subr.bf16.mxu0 %v10654_v54  ;;  %8413 = vmatprep.subr.bf16.mxu1 %v14192_v61  ;;  %14201 = vst [vmem:[#allocation13_spill] sm:$0xff] %v11319_v53  ;;  %v14203_v54 = vld [vmem:[#allocation16_spill] sm:$0xff] }
 0x1f5   :  { %2017 = vmatpush1.bf16.msra.mxu0 %v14197_v49  ;;  %8414 = vmatpush3.bf16.msra.mxu1 %v11313_v50 }
 0x1f6   :  { %2018 = vmatprep.subr.bf16.mxu0 %v14199_v51  ;;  %8415 = vmatprep.subr.bf16.mxu1 %v14192_v61  ;;  %v14214_v51 = vld [vmem:[#allocation150_spill] sm:$0xff] }
 0x1f9   :  { %2019 = vmatpush1.bf16.msra.mxu0 %v14200_v52  ;;  %8416 = vmatpush3.bf16.msra.mxu1 %v11319_v53  ;;  %v886_v52 = vadd.f32 %v14214_v51, %v11201_v58 }
 0x1fa   :  { %2020 = vmatprep.subr.bf16.mxu0 %v14202_v20  ;;  %8417 = vmatprep.subr.bf16.mxu1 %v14192_v61 }
 0x1fd   :  { %2021 = vmatpush1.bf16.msra.mxu0 %v14203_v54  ;;  %8418 = vmatpush3.bf16.msra.mxu1 %v11325_v21 }
 0x1fe   :  { %2022 = vmatprep.subr.bf16.mxu0 %v14205_v22  ;;  %8419 = vmatprep.subr.bf16.mxu1 %v14192_v61 }
 0x201   :  { %2023 = vmatpush1.bf16.msra.mxu0 %v14206_v41  ;;  %8420 = vmatpush3.bf16.msra.mxu1 %v11331_v34 }
 0x202   :  { %2093 = vmatprep.subr.bf16.mxu0 %v14208_v43  ;;  %8425 = vmatprep.subr.bf16.mxu1 %v14192_v61 }
 0x284   :  { %v1764_v0 = vpop.f32.mrf.mxu0  ;;  %v1807_v39 = vpop.f32.mrf.mxu1 }
 0x285   :  { %v1899_v25 = vadd.f32 %v1764_v0, %v343_v60  ;;  %v1927_v41 = vadd.f32 %v11197_v59, %v1807_v39 }
 0x286   :  { %v1766_v62 = vpop.f32.mrf.mxu0  ;;  %v8383_v32 = vpop.f32.mrf.mxu1 }
 0x287   :  { %v7590_v23 = vmul.f32 -1.442695, %v1899_v25  ;;  %v1913_v33 = vadd.f32 %v1766_v62, %v345_v63  ;;  %v14215_v62 = vld [vmem:[#allocation156_spill] sm:$0xff] }
 0x288   :  { %v1768_v57 = vpop.f32.mrf.mxu0  ;;  %v1810_v56 = vpop.f32.mrf.mxu1  ;;  %v890_v32 = vadd.f32 %v14215_v62, %v11201_v58 }
 0x289   :  { %9325 = vpow2.f32 %v7590_v23  ;;  %v1900_v1 = vadd.f32 %v1768_v57, %v347_v28  ;;  %v7592_v7 = vmul.f32 -1.442695, %v1913_v33  ;;  %v14216_v23 = vld [vmem:[#allocation153_spill] sm:$0xff]  ;;  %v1928_v39 = vadd.f32 %v11197_v59, %v1810_v56 }
 0x28a   :  { %v8384_v6 = vpop.f32.mrf.mxu1  ;;  %v1770_v2 = vpop.f32.mrf.mxu0  ;;  %v888_v57 = vadd.f32 %v14216_v23, %v11210_v40 }
 0x28b   :  { %v7591_v27 = vmul.f32 -1.442695, %v1900_v1  ;;  %v1914_v5 = vadd.f32 %v1770_v2, %v349_v4  ;;  %v14217_v1 = vld [vmem:[#allocation24_spill] sm:$0xff] }
 0x28c   :  { %14233 = vst [vmem:[#allocation24_spill] sm:$0xff] %v11523_v46 }
 0x28d   :  { %9327 = vpow2.f32 %v7591_v27  ;;  %v7593_v8 = vmul.f32 -1.442695, %v1914_v5 }
 0x28e   :  { %9329 = vpow2.f32 %v7592_v7 }
 0x28f   :  { %9331 = vpow2.f32 %v7593_v8  ;;  %v14218_v8 = vld [vmem:[#allocation157_spill] sm:$0xff] }
 0x290   :  { %14234 = vst [vmem:[#allocation157_spill] sm:$0xff] %v11527_v45 }
 0x296   :  { %v9326_v9 = vpop.eup %9325 }
 0x297   :  { %v1907_v10 = vadd.f32 1.0, %v9326_v9  ;;  %v892_v9 = vadd.f32 %v14218_v8, %v11210_v40 }
 0x299   :  { %9333 = vrcp.f32 %v1907_v10  ;;  %v14219_v10 = vld [vmem:[#allocation27_spill] sm:$0xff] }
 0x29a   :  { %v9328_v11 = vpop.eup %9327  ;;  %14235 = vst [vmem:[#allocation27_spill] sm:$0xff] %v11531_v16 }
 0x29b   :  { %v1908_v12 = vadd.f32 1.0, %v9328_v11  ;;  %v9330_v13 = vpop.eup %9329 }
 0x29c   :  { %v9332_v49 = vpop.eup %9331  ;;  %v1921_v20 = vadd.f32 1.0, %v9330_v13 }
 0x29d   :  { %9335 = vrcp.f32 %v1908_v12  ;;  %v1922_v60 = vadd.f32 1.0, %v9332_v49 }
 0x29e   :  { %9337 = vrcp.f32 %v1921_v20 }
 0x2a4   :  { %v1849_v54 = vpop.f32.mrf.mxu0  ;;  %v11346_v22 = vpop.f32.mrf.mxu1 }
 0x2a5   :  { %v1943_v43 = vadd.f32 %v1849_v54, %v886_v52 }
 0x2a6   :  { %v9334_v30 = vpop.eup %9333  ;;  %v1851_v0 = vpop.f32.mrf.mxu0 }
 0x2a7   :  { %v8403_v25 = vpop.f32.mrf.mxu1  ;;  %v1929_v42 = vmul.f32 %v9334_v30, %v1927_v41  ;;  %v7594_v28 = vmul.f32 -1.442695, %v1943_v43  ;;  %v1957_v4 = vadd.f32 %v1851_v0, %v888_v57 }
 0x2a8   :  { %v1853_v24 = vpop.f32.mrf.mxu0 }
 0x2a9   :  { %v11353_v63 = vpop.f32.mrf.mxu1  ;;  %v1931_v6 = vadd.f32 %v1929_v42, %v14217_v1  ;;  %9339 = vpow2.f32 %v7594_v28  ;;  %v1944_v33 = vadd.f32 %v1853_v24, %v890_v32  ;;  %v7596_v13 = vmul.f32 -1.442695, %v1957_v4  ;;  %v11387_v4 = vld [vmem:[#allocation5 + $0x150] ss:$12 sps:$4 sm:$0xff]  }
 0x2aa   :  { %v9336_v27 = vpop.eup %9335  ;;  %9341 = vrcp.f32 %v1922_v60  ;;  %v1855_v7 = vpop.f32.mrf.mxu0  ;;  %v1972_v8 = vadd.f32 %v11224_v35, %v11353_v63 }
 0x2ab   :  { %v8404_v2 = vpop.f32.mrf.mxu1  ;;  %9343 = vtanh.f32 %v1931_v6  ;;  %v1930_v3 = vmul.f32 %v9336_v27, %v1928_v39  ;;  %v7595_v5 = vmul.f32 -1.442695, %v1944_v33  ;;  %v1958_v12 = vadd.f32 %v1855_v7, %v892_v9  ;;  %v9338_v49 = vpop.eup %9337  ;;  %v11375_v39 = vld [vmem:[#allocation5 + $0x170] ss:$12 sps:$4 sm:$0xff]   ;;  %v11380_v33 = vld [vmem:[#allocation5 + $0x154] ss:$12 sps:$4 sm:$0xff]  }
 0x2ac   :  { %v1935_v54 = vsub.f32 1.0, %v9338_v49  ;;  %v1939_v30 = vmul.f32 %v9338_v49, %v11217_v38  ;;  %v11372_v38 = vld [vmem:[#allocation5 + $0x168] ss:$12 sps:$4 sm:$0xff]   ;;  %v11405_v49 = vld [vmem:[#allocation5 + $0x140] ss:$12 sps:$4 sm:$0xff]  }
 0x2ad   :  { %v1932_v11 = vadd.f32 %v1930_v3, %v14219_v10  ;;  %9345 = vpow2.f32 %v7595_v5  ;;  %v7597_v56 = vmul.f32 -1.442695, %v1958_v12  ;;  %v14221_v5 = vld [vmem:[#allocation152_spill] sm:$0xff]  ;;  %v11396_v9 = vld [vmem:[#allocation5 + $0x13c] ss:$12 sps:$4 sm:$0xff]  }
 0x2af   :  { %9347 = vtanh.f32 %v1932_v11  ;;  %v14222_v11 = vld [vmem:[#allocation155_spill] sm:$0xff] }
 0x2b0   :  { %9349 = vpow2.f32 %v7596_v13  ;;  %v1022_v12 = vadd.f32 %v14222_v11, %v11052_v36  ;;  %v11458_v11 = vld [vmem:[#allocation5 + $0xc0] ss:$12 sps:$4 sm:$0xff]  }
 0x2b1   :  { %9351 = vpow2.f32 %v7597_v56  ;;  %v11402_v56 = vld [vmem:[#allocation5 + $0x138] ss:$12 sps:$4 sm:$0xff]  }
 0x2b6   :  { %v9340_v51 = vpop.eup %9339 }
 0x2b7   :  { %v9342_v52 = vpop.eup %9341  ;;  %v1951_v20 = vadd.f32 1.0, %v9340_v51  ;;  %v11408_v51 = vld [vmem:[#allocation5 + $0x124] ss:$12 sps:$4 sm:$0xff]  }
 0x2b8   :  { %v9344_v41 = vpop.eup %9343  ;;  %v1936_v25 = vsub.f32 1.0, %v9342_v52  ;;  %v1940_v28 = vmul.f32 %v9342_v52, %v11219_v29  ;;  %v1971_v29 = vadd.f32 %v11224_v35, %v11346_v22  ;;  %v11390_v22 = vld [vmem:[#allocation5 + $0x158] ss:$12 sps:$4 sm:$0xff]   ;;  %v11412_v52 = vld [vmem:[#allocation5 + $0x120] ss:$12 sps:$4 sm:$0xff]  }
 0x2b9   :  { %9353 = vrcp.f32 %v1951_v20  ;;  %v1937_v43 = vmul.f32 %v9344_v41, %v1935_v54  ;;  %v11415_v20 = vld [vmem:[#allocation5 + $0x128] ss:$12 sps:$4 sm:$0xff]   ;;  %v11418_v54 = vld [vmem:[#allocation5 + $0x10c] ss:$12 sps:$4 sm:$0xff]  }
 0x2ba   :  { %v9346_v60 = vpop.eup %9345 }
 0x2bb   :  { %v1952_v0 = vadd.f32 1.0, %v9346_v60  ;;  %v11361_v62 = vadd.f32 %v1939_v30, %v1937_v43  ;;  %v11422_v43 = vld [vmem:[#allocation5 + $0x108] ss:$12 sps:$4 sm:$0xff]   ;;  %v11425_v30 = vld [vmem:[#allocation5 + $0x110] ss:$12 sps:$4 sm:$0xff]  }
 0x2bc   :  { %v9348_v32 = vpop.eup %9347  ;;  %v11428_v60 = vld [vmem:[#allocation5 + $0xf4] ss:$12 sps:$4 sm:$0xff]  }
 0x2bd   :  { %9355 = vrcp.f32 %v1952_v0  ;;  %v1938_v42 = vmul.f32 %v9348_v32, %v1936_v25  ;;  %v9350_v57 = vpop.eup %9349 }
 0x2be   :  { %v9352_v1 = vpop.eup %9351  ;;  %v1965_v6 = vadd.f32 1.0, %v9350_v57  ;;  %v11438_v57 = vld [vmem:[#allocation5 + $0xdc] ss:$12 sps:$4 sm:$0xff]  }
 0x2bf   :  { %v11364_v23 = vadd.f32 %v1940_v28, %v1938_v42  ;;  %v1966_v2 = vadd.f32 1.0, %v9352_v1  ;;  %v11432_v42 = vld [vmem:[#allocation5 + $0xf0] ss:$12 sps:$4 sm:$0xff]   ;;  %v11435_v28 = vld [vmem:[#allocation5 + $0xf8] ss:$12 sps:$4 sm:$0xff]  }
 0x2c0   :  { %9357 = vrcp.f32 %v1965_v6 }
 0x2c1   :  { %v11368_v24 = vpack.c.bf16 %v11364_v23, %v11361_v62  ;;  %9359 = vrcp.f32 %v1966_v2 }
 0x2c3   :  { %14220 = vst [vmem:[#allocation16_spill] sm:$0xff] %v11368_v24  ;;  %2041 = vmatmul.mubr.bf16.vlgmr.msra.gmra.mxu0 %v11368_v24  ;;  %8422 = vmatmul.mubr.bf16.vlgmr.msra.gmra.mxu1 %v11368_v24  ;;  %v14237_v24 = vld [vmem:[#allocation28_spill] sm:$0xff] }
 0x2c4   :  { %2094 = vmatpush1.bf16.msra.mxu0 %v11372_v38  ;;  %8426 = vmatpush3.bf16.msra.mxu1 %v11375_v39  ;;  %v353_v26 = vadd.f32 %v14237_v24, %v14209_v37 }
 0x2c5   :  { %2095 = vmatprep.subr.bf16.mxu0 %v11380_v33  ;;  %8427 = vmatprep.subr.bf16.mxu1 %v14192_v61 }
 0x2c6   :  { %v9354_v27 = vpop.eup %9353  ;;  %2125 = vmatprep.mubr.bf16.mxu0 %v14193_v55  ;;  %8441 = vmatprep.mubr.msk.bf16.mxu1 %vm10307_vm1, %v14192_v61 }
 0x2c7   :  { %v1973_v3 = vmul.f32 %v9354_v27, %v1971_v29 }
 0x2c8   :  { %2096 = vmatpush1.bf16.msra.mxu0 %v11387_v4  ;;  %8428 = vmatpush3.bf16.msra.mxu1 %v11390_v22 }
 0x2c9   :  { %v1975_v7 = vadd.f32 %v1973_v3, %v14221_v5  ;;  %2097 = vmatprep.subr.bf16.mxu0 %v11396_v9  ;;  %8429 = vmatprep.subr.bf16.mxu1 %v14192_v61  ;;  %v11445_v3 = vld [vmem:[#allocation5 + $0xd8] ss:$12 sps:$4 sm:$0xff]   ;;  %v11448_v5 = vld [vmem:[#allocation5 + $0xe0] ss:$12 sps:$4 sm:$0xff]  }
 0x2ca   :  { %v9356_v10 = vpop.eup %9355 }
 0x2cb   :  { %9361 = vtanh.f32 %v1975_v7  ;;  %v1974_v13 = vmul.f32 %v9356_v10, %v1972_v8  ;;  %v11451_v7 = vld [vmem:[#allocation5 + $0xc4] ss:$12 sps:$4 sm:$0xff]  }
 0x2cc   :  { %2098 = vmatpush1.bf16.msra.mxu0 %v11402_v56  ;;  %8430 = vmatpush3.bf16.msra.mxu1 %v11405_v49 }
 0x2cd   :  { %v1976_v63 = vadd.f32 %v1974_v13, %v1022_v12  ;;  %2099 = vmatprep.subr.bf16.mxu0 %v11408_v51  ;;  %8431 = vmatprep.subr.bf16.mxu1 %v14192_v61  ;;  %v9358_v41 = vpop.eup %9357  ;;  %v11461_v12 = vld [vmem:[#allocation5 + $0xc8] ss:$12 sps:$4 sm:$0xff]  }
 0x2ce   :  { %v9360_v0 = vpop.eup %9359  ;;  %v1979_v25 = vsub.f32 1.0, %v9358_v41  ;;  %v1983_v6 = vmul.f32 %v9358_v41, %v11269_v15  ;;  %v11483_v41 = vld [vmem:[#allocation5 + $0x90] ss:$12 sps:$4 sm:$0xff]  }
 0x2cf   :  { %9363 = vtanh.f32 %v1976_v63  ;;  %v1980_v29 = vsub.f32 1.0, %v9360_v0  ;;  %v1984_v15 = vmul.f32 %v9360_v0, %v11271_v14  ;;  %v11472_v14 = vld [vmem:[#allocation5 + $0xa8] ss:$12 sps:$4 sm:$0xff]  }
 0x2d0   :  { %2100 = vmatpush1.bf16.msra.mxu0 %v11412_v52  ;;  %8432 = vmatpush3.bf16.msra.mxu1 %v11415_v20  ;;  %v11476_v63 = vld [vmem:[#allocation5 + $0x94] ss:$12 sps:$4 sm:$0xff]   ;;  %v11487_v0 = vld [vmem:[#allocation5 + $0x7c] ss:$12 sps:$4 sm:$0xff]  }
 0x2d1   :  { %2101 = vmatprep.subr.bf16.mxu0 %v11418_v54  ;;  %8433 = vmatprep.subr.bf16.mxu1 %v14192_v61  ;;  %14224 = vst [vmem:[#allocation18_spill] sm:$0xff] %v11487_v0 }
 0x2d4   :  { %2102 = vmatpush1.bf16.msra.mxu0 %v11422_v43  ;;  %8434 = vmatpush3.bf16.msra.mxu1 %v11425_v30 }
 0x2d5   :  { %2103 = vmatprep.subr.bf16.mxu0 %v11428_v60  ;;  %8435 = vmatprep.subr.bf16.mxu1 %v14192_v61 }
 0x2d8   :  { %v9362_v32 = vpop.eup %9361  ;;  %2104 = vmatpush1.bf16.msra.mxu0 %v11432_v42  ;;  %8436 = vmatpush3.bf16.msra.mxu1 %v11435_v28 }
 0x2d9   :  { %2105 = vmatprep.subr.bf16.mxu0 %v11438_v57  ;;  %8437 = vmatprep.subr.bf16.mxu1 %v14192_v61  ;;  %v1981_v1 = vmul.f32 %v9362_v32, %v1979_v25  ;;  %v11491_v25 = vld [vmem:[#allocation5 + $0x78] ss:$12 sps:$4 sm:$0xff]  }
 0x2da   :  { %14225 = vst [vmem:[#allocation19_spill] sm:$0xff] %v11491_v25  ;;  %v11495_v32 = vld [vmem:[#allocation5 + $0x64] ss:$12 sps:$4 sm:$0xff]  }
 0x2db   :  { %v11443_v27 = vadd.f32 %v1983_v6, %v1981_v1  ;;  %14226 = vst [vmem:[#allocation22_spill] sm:$0xff] %v11495_v32  ;;  %v11499_v1 = vld [vmem:[#allocation5 + $0x60] ss:$12 sps:$4 sm:$0xff]  }
 0x2dc   :  { %v9364_v2 = vpop.eup %9363  ;;  %2106 = vmatpush1.bf16.msra.mxu0 %v11445_v3  ;;  %8438 = vmatpush3.bf16.msra.mxu1 %v11448_v5  ;;  %14227 = vst [vmem:[#allocation25_spill] sm:$0xff] %v11499_v1  ;;  %v11503_v6 = vld [vmem:[#allocation5 + $0x4c] ss:$12 sps:$4 sm:$0xff]  }
 0x2dd   :  { %2107 = vmatprep.subr.bf16.mxu0 %v11451_v7  ;;  %8439 = vmatprep.subr.bf16.mxu1 %v14192_v61  ;;  %v1982_v8 = vmul.f32 %v9364_v2, %v1980_v29  ;;  %14228 = vst [vmem:[#allocation23_spill] sm:$0xff] %v11503_v6  ;;  %v11507_v29 = vld [vmem:[#allocation5 + $0x48] ss:$12 sps:$4 sm:$0xff]  }
 0x2de   :  { %14229 = vst [vmem:[#allocation26_spill] sm:$0xff] %v11507_v29  ;;  %v11511_v2 = vld [vmem:[#allocation5 + $0x34] ss:$12 sps:$4 sm:$0xff]  }
 0x2df   :  { %v11456_v10 = vadd.f32 %v1984_v15, %v1982_v8  ;;  %14230 = vst [vmem:[#allocation150_spill] sm:$0xff] %v11511_v2  ;;  %v11515_v8 = vld [vmem:[#allocation5 + $0x30] ss:$12 sps:$4 sm:$0xff]  }
 0x2e0   :  { %2108 = vmatpush1.bf16.msra.mxu0 %v11458_v11  ;;  %8440 = vmatpush3.bf16.msra.mxu1 %v11461_v12  ;;  %14231 = vst [vmem:[#allocation156_spill] sm:$0xff] %v11515_v8  ;;  %v11519_v15 = vld [vmem:[#allocation5 + $0x1c] ss:$12 sps:$4 sm:$0xff]  }
 0x2e1   :  { %v11466_v13 = vpack.c.bf16 %v11456_v10, %v11443_v27  ;;  %2286 = vmatprep.subr.bf16.mxu0 %v11279_v18  ;;  %8445 = vmatprep.subr.bf16.mxu1 %v14192_v61  ;;  %14232 = vst [vmem:[#allocation153_spill] sm:$0xff] %v11519_v15 }
 0x2e3   :  { %14223 = vst [vmem:[#allocation17_spill] sm:$0xff] %v11466_v13  ;;  %2126 = vmatmul.mubr.bf16.vlgmr.msra.gmra.mxu0 %v11466_v13  ;;  %8442 = vmatmul.mubr.bf16.vlgmr.msra.gmra.mxu1 %v11466_v13  ;;  %v11535_v13 = vld [vmem:[#allocation5 + $0x16c] ss:$12 sps:$4 sm:$0xff]  }
 0x2e4   :  { %2287 = vmatpush1.bf16.msra.mxu0 %v11472_v14  ;;  %8446 = vmatpush3.bf16.msra.mxu1 %v11286_v17  ;;  %14236 = vst [vmem:[#allocation152_spill] sm:$0xff] %v11535_v13 }
 0x2e5   :  { %2288 = vmatprep.subr.bf16.mxu0 %v11476_v63  ;;  %8447 = vmatprep.subr.bf16.mxu1 %v14192_v61 }
 0x2e6   :  { %2318 = vmatprep.mubr.bf16.mxu0 %v14193_v55  ;;  %8461 = vmatprep.mubr.msk.bf16.mxu1 %vm10307_vm1, %v14192_v61 }
 0x2e8   :  { %2289 = vmatpush1.bf16.msra.mxu0 %v11483_v41  ;;  %8448 = vmatpush3.bf16.msra.mxu1 %v11295_v19 }
 0x2e9   :  { %2290 = vmatprep.subr.bf16.mxu0 %v11487_v0  ;;  %8449 = vmatprep.subr.bf16.mxu1 %v14192_v61 }
 0x2ec   :  { %2291 = vmatpush1.bf16.msra.mxu0 %v11491_v25  ;;  %8450 = vmatpush3.bf16.msra.mxu1 %v11301_v47 }
 0x2ed   :  { %2292 = vmatprep.subr.bf16.mxu0 %v11495_v32  ;;  %8451 = vmatprep.subr.bf16.mxu1 %v14192_v61  ;;  %v14240_v32 = vld [vmem:[#allocation33_spill] sm:$0xff] }
 0x2f0   :  { %2293 = vmatpush1.bf16.msra.mxu0 %v11499_v1  ;;  %8452 = vmatpush3.bf16.msra.mxu1 %v11307_v48 }
 0x2f1   :  { %2294 = vmatprep.subr.bf16.mxu0 %v11503_v6  ;;  %8453 = vmatprep.subr.bf16.mxu1 %v14192_v61 }
 0x2f4   :  { %2295 = vmatpush1.bf16.msra.mxu0 %v11507_v29  ;;  %8454 = vmatpush3.bf16.msra.mxu1 %v11313_v50  ;;  %v14239_v50 = vld [vmem:[#allocation29_spill] sm:$0xff] }
 0x2f5   :  { %2296 = vmatprep.subr.bf16.mxu0 %v11511_v2  ;;  %8455 = vmatprep.subr.bf16.mxu1 %v14192_v61  ;;  %v355_v29 = vadd.f32 %v14239_v50, %v11186_v44 }
 0x2f8   :  { %2297 = vmatpush1.bf16.msra.mxu0 %v11515_v8  ;;  %8456 = vmatpush3.bf16.msra.mxu1 %v11319_v53  ;;  %v14238_v53 = vld [vmem:[#allocation31_spill] sm:$0xff] }
 0x2f9   :  { %2298 = vmatprep.subr.bf16.mxu0 %v11519_v15  ;;  %8457 = vmatprep.subr.bf16.mxu1 %v14192_v61  ;;  %v357_v8 = vadd.f32 %v14238_v53, %v14209_v37 }
 0x2fc   :  { %2299 = vmatpush1.bf16.msra.mxu0 %v11523_v46  ;;  %8458 = vmatpush3.bf16.msra.mxu1 %v11325_v21 }
 0x2fd   :  { %2300 = vmatprep.subr.bf16.mxu0 %v11527_v45  ;;  %8459 = vmatprep.subr.bf16.mxu1 %v14192_v61 }
 0x300   :  { %2301 = vmatpush1.bf16.msra.mxu0 %v11531_v16  ;;  %8460 = vmatpush3.bf16.msra.mxu1 %v11331_v34 }
 0x301   :  { %2371 = vmatprep.subr.bf16.mxu0 %v11535_v13  ;;  %8465 = vmatprep.subr.bf16.mxu1 %v14192_v61 }
 0x383   :  { %v2042_v36 = vpop.f32.mrf.mxu0  ;;  %v2085_v21 = vpop.f32.mrf.mxu1 }
 0x384   :  { %v2177_v45 = vadd.f32 %v2042_v36, %v353_v26  ;;  %v359_v36 = vadd.f32 %v14240_v32, %v11186_v44  ;;  %v14244_v44 = vld [vmem:[#allocation32_spill] sm:$0xff] }
 0x385   :  { %v2044_v46 = vpop.f32.mrf.mxu0  ;;  %v8423_v15 = vpop.f32.mrf.mxu1 }
 0x386   :  { %v7598_v16 = vmul.f32 -1.442695, %v2177_v45  ;;  %v2191_v48 = vadd.f32 %v2044_v46, %v355_v29  ;;  %v14241_v46 = vld [vmem:[#allocation142_spill] sm:$0xff] }
 0x387   :  { %v2046_v2 = vpop.f32.mrf.mxu0  ;;  %v2088_v34 = vpop.f32.mrf.mxu1 }
 0x388   :  { %9365 = vpow2.f32 %v7598_v16  ;;  %v2178_v13 = vadd.f32 %v2046_v2, %v357_v8  ;;  %v7600_v15 = vmul.f32 -1.442695, %v2191_v48 }
 0x389   :  { %v8424_v6 = vpop.f32.mrf.mxu1  ;;  %v2048_v24 = vpop.f32.mrf.mxu0 }
 0x38a   :  { %v7599_v1 = vmul.f32 -1.442695, %v2178_v13  ;;  %v2192_v26 = vadd.f32 %v2048_v24, %v359_v36  ;;  %v876_v13 = vadd.f32 %v14241_v46, %v11201_v58 }
 0x38c   :  { %9367 = vpow2.f32 %v7599_v1  ;;  %v7601_v47 = vmul.f32 -1.442695, %v2192_v26  ;;  %v2205_v1 = vadd.f32 %v11197_v59, %v2085_v21  ;;  %v14242_v26 = vld [vmem:[#allocation147_spill] sm:$0xff]  ;;  %v2206_v21 = vadd.f32 %v11197_v59, %v2088_v34 }
 0x38d   :  { %9369 = vpow2.f32 %v7600_v15  ;;  %v880_v15 = vadd.f32 %v14242_v26, %v11201_v58 }
 0x38e   :  { %9371 = vpow2.f32 %v7601_v47 }
 0x395   :  { %v9366_v45 = vpop.eup %9365 }
 0x396   :  { %v2185_v53 = vadd.f32 1.0, %v9366_v45 }
 0x398   :  { %9373 = vrcp.f32 %v2185_v53  ;;  %v14243_v53 = vld [vmem:[#allocation144_spill] sm:$0xff] }
 0x399   :  { %v9368_v37 = vpop.eup %9367 }
 0x39a   :  { %v2186_v50 = vadd.f32 1.0, %v9368_v37  ;;  %v9370_v16 = vpop.eup %9369 }
 0x39b   :  { %v9372_v6 = vpop.eup %9371  ;;  %v2199_v29 = vadd.f32 1.0, %v9370_v16 }
 0x39c   :  { %9375 = vrcp.f32 %v2186_v50  ;;  %v2200_v24 = vadd.f32 1.0, %v9372_v6  ;;  %v878_v50 = vadd.f32 %v14243_v53, %v11210_v40  ;;  %v14246_v53 = vld [vmem:[#allocation149_spill] sm:$0xff] }
 0x39d   :  { %9377 = vrcp.f32 %v2199_v29  ;;  %v882_v58 = vadd.f32 %v14246_v53, %v11210_v40 }
 0x3a3   :  { %v2127_v2 = vpop.f32.mrf.mxu0  ;;  %v2170_v32 = vpop.f32.mrf.mxu1 }
 0x3a4   :  { %v2221_v48 = vadd.f32 %v2127_v2, %v876_v13  ;;  %v14245_v2 = vld [vmem:[#allocation35_spill] sm:$0xff] }
 0x3a5   :  { %v9374_v8 = vpop.eup %9373  ;;  %v2129_v36 = vpop.f32.mrf.mxu0 }
 0x3a6   :  { %v8443_v47 = vpop.f32.mrf.mxu1  ;;  %v2207_v37 = vmul.f32 %v9374_v8, %v2205_v1  ;;  %v7602_v45 = vmul.f32 -1.442695, %v2221_v48  ;;  %v2235_v1 = vadd.f32 %v2129_v36, %v878_v50 }
 0x3a7   :  { %v2131_v46 = vpop.f32.mrf.mxu0  ;;  %v505_v47 = vadd.f32 %v14245_v2, %v10841_v31 }
 0x3a8   :  { %v2173_v16 = vpop.f32.mrf.mxu1  ;;  %v2209_v25 = vadd.f32 %v2207_v37, %v14244_v44  ;;  %9379 = vpow2.f32 %v7602_v45  ;;  %v2222_v13 = vadd.f32 %v2131_v46, %v880_v15  ;;  %v7604_v59 = vmul.f32 -1.442695, %v2235_v1 }
 0x3a9   :  { %v9376_v6 = vpop.eup %9375  ;;  %9381 = vrcp.f32 %v2200_v24  ;;  %v2133_v8 = vpop.f32.mrf.mxu0 }
 0x3aa   :  { %v8444_v26 = vpop.f32.mrf.mxu1  ;;  %9383 = vtanh.f32 %v2209_v25  ;;  %v2208_v29 = vmul.f32 %v9376_v6, %v2206_v21  ;;  %v7603_v48 = vmul.f32 -1.442695, %v2222_v13  ;;  %v2236_v44 = vadd.f32 %v2133_v8, %v882_v58  ;;  %v9378_v15 = vpop.eup %9377 }
 0x3ab   :  { %v2213_v25 = vsub.f32 1.0, %v9378_v15  ;;  %v2217_v50 = vmul.f32 %v9378_v15, %v11361_v62  ;;  %v2249_v62 = vadd.f32 %v11224_v35, %v2170_v32  ;;  %v2250_v32 = vadd.f32 %v11224_v35, %v2173_v16 }
 0x3ac   :  { %v2210_v0 = vadd.f32 %v2208_v29, %v505_v47  ;;  %9385 = vpow2.f32 %v7603_v48  ;;  %v7605_v34 = vmul.f32 -1.442695, %v2236_v44 }
 0x3ae   :  { %9387 = vtanh.f32 %v2210_v0 }
 0x3af   :  { %9389 = vpow2.f32 %v7604_v59  ;;  %v14248_v59 = vld [vmem:[#allocation141_spill] sm:$0xff] }
 0x3b0   :  { %9391 = vpow2.f32 %v7605_v34 }
 0x3b5   :  { %v9380_v37 = vpop.eup %9379 }
 0x3b6   :  { %v9382_v24 = vpop.eup %9381  ;;  %v2229_v45 = vadd.f32 1.0, %v9380_v37 }
 0x3b7   :  { %v9384_v46 = vpop.eup %9383  ;;  %v2214_v6 = vsub.f32 1.0, %v9382_v24  ;;  %v2218_v47 = vmul.f32 %v9382_v24, %v11364_v23  ;;  %v14249_v24 = vld [vmem:[#allocation145_spill] sm:$0xff] }
 0x3b8   :  { %9393 = vrcp.f32 %v2229_v45  ;;  %v2215_v36 = vmul.f32 %v9384_v46, %v2213_v25 }
 0x3b9   :  { %v9386_v21 = vpop.eup %9385 }
 0x3ba   :  { %v2230_v13 = vadd.f32 1.0, %v9386_v21  ;;  %v11561_v2 = vadd.f32 %v2217_v50, %v2215_v36 }
 0x3bb   :  { %v9388_v58 = vpop.eup %9387 }
 0x3bc   :  { %9395 = vrcp.f32 %v2230_v13  ;;  %v2216_v0 = vmul.f32 %v9388_v58, %v2214_v6  ;;  %v9390_v29 = vpop.eup %9389 }
 0x3bd   :  { %v9392_v48 = vpop.eup %9391  ;;  %v2243_v8 = vadd.f32 1.0, %v9390_v29  ;;  %v14254_v29 = vld [vmem:[#allocation22_spill] sm:$0xff] }
 0x3be   :  { %v11564_v26 = vadd.f32 %v2218_v47, %v2216_v0  ;;  %v2244_v53 = vadd.f32 1.0, %v9392_v48  ;;  %v14255_v48 = vld [vmem:[#allocation25_spill] sm:$0xff] }
 0x3bf   :  { %9397 = vrcp.f32 %v2243_v8  ;;  %v14256_v8 = vld [vmem:[#allocation163_spill] sm:$0xff] }
 0x3c0   :  { %v11568_v1 = vpack.c.bf16 %v11564_v26, %v11561_v2  ;;  %9399 = vrcp.f32 %v2244_v53  ;;  %v14260_v53 = vld [vmem:[#allocation150_spill] sm:$0xff] }
 0x3c2   :  { %14247 = vst [vmem:[#allocation155_spill] sm:$0xff] %v11568_v1  ;;  %2319 = vmatmul.mubr.bf16.vlgmr.msra.gmra.mxu0 %v11568_v1  ;;  %8462 = vmatmul.mubr.bf16.vlgmr.msra.gmra.mxu1 %v11568_v1 }
 0x3c3   :  { %2372 = vmatpush1.bf16.msra.mxu0 %v11372_v38  ;;  %8466 = vmatpush3.bf16.msra.mxu1 %v11375_v39 }
 0x3c4   :  { %2373 = vmatprep.subr.bf16.mxu0 %v11380_v33  ;;  %8467 = vmatprep.subr.bf16.mxu1 %v14192_v61 }
 0x3c5   :  { %v9394_v23 = vpop.eup %9393  ;;  %2403 = vmatprep.mubr.bf16.mxu0 %v14193_v55  ;;  %8481 = vmatprep.mubr.msk.bf16.mxu1 %vm10307_vm1, %v14192_v61 }
 0x3c6   :  { %v2251_v44 = vmul.f32 %v9394_v23, %v2249_v62  ;;  %v14257_v62 = vld [vmem:[#allocation23_spill] sm:$0xff]  ;;  %v14259_v23 = vld [vmem:[#allocation12_spill] sm:$0xff] }
 0x3c7   :  { %2374 = vmatpush1.bf16.msra.mxu0 %v11387_v4  ;;  %8468 = vmatpush3.bf16.msra.mxu1 %v11390_v22 }
 0x3c8   :  { %v2253_v34 = vadd.f32 %v2251_v44, %v14248_v59  ;;  %2375 = vmatprep.subr.bf16.mxu0 %v11396_v9  ;;  %8469 = vmatprep.subr.bf16.mxu1 %v14192_v61  ;;  %v14261_v44 = vld [vmem:[#allocation156_spill] sm:$0xff]  ;;  %v14262_v59 = vld [vmem:[#allocation13_spill] sm:$0xff] }
 0x3c9   :  { %v9396_v15 = vpop.eup %9395 }
 0x3ca   :  { %9401 = vtanh.f32 %v2253_v34  ;;  %v2252_v37 = vmul.f32 %v9396_v15, %v2250_v32  ;;  %v14263_v34 = vld [vmem:[#allocation153_spill] sm:$0xff]  ;;  %v14264_v32 = vld [vmem:[#allocation24_spill] sm:$0xff]  ;;  %v14265_v15 = vld [vmem:[#allocation14_spill] sm:$0xff] }
 0x3cb   :  { %2376 = vmatpush1.bf16.msra.mxu0 %v11402_v56  ;;  %8470 = vmatpush3.bf16.msra.mxu1 %v11405_v49 }
 0x3cc   :  { %v2254_v45 = vadd.f32 %v2252_v37, %v14249_v24  ;;  %2377 = vmatprep.subr.bf16.mxu0 %v11408_v51  ;;  %8471 = vmatprep.subr.bf16.mxu1 %v14192_v61  ;;  %v9398_v35 = vpop.eup %9397  ;;  %v14266_v37 = vld [vmem:[#allocation157_spill] sm:$0xff]  ;;  %v14267_v24 = vld [vmem:[#allocation27_spill] sm:$0xff] }
 0x3cd   :  { %v9400_v16 = vpop.eup %9399  ;;  %v2257_v25 = vsub.f32 1.0, %v9398_v35  ;;  %v2261_v50 = vmul.f32 %v9398_v35, %v11443_v27  ;;  %v14269_v35 = vld [vmem:[#allocation152_spill] sm:$0xff] }
 0x3ce   :  { %9403 = vtanh.f32 %v2254_v45  ;;  %v2258_v21 = vsub.f32 1.0, %v9400_v16  ;;  %v2262_v0 = vmul.f32 %v9400_v16, %v11456_v10  ;;  %v14252_v10 = vld [vmem:[#allocation19_spill] sm:$0xff] }
 0x3cf   :  { %2378 = vmatpush1.bf16.msra.mxu0 %v11412_v52  ;;  %8472 = vmatpush3.bf16.msra.mxu1 %v11415_v20  ;;  %v14268_v45 = vld [vmem:[#allocation15_spill] sm:$0xff] }
 0x3d0   :  { %2379 = vmatprep.subr.bf16.mxu0 %v11418_v54  ;;  %8473 = vmatprep.subr.bf16.mxu1 %v14192_v61  ;;  %v14270_v16 = vld [vmem:[#allocation151_spill] sm:$0xff] }
 0x3d3   :  { %2380 = vmatpush1.bf16.msra.mxu0 %v11422_v43  ;;  %8474 = vmatpush3.bf16.msra.mxu1 %v11425_v30 }
 0x3d4   :  { %2381 = vmatprep.subr.bf16.mxu0 %v11428_v60  ;;  %8475 = vmatprep.subr.bf16.mxu1 %v14192_v61 }
 0x3d7   :  { %v9402_v46 = vpop.eup %9401  ;;  %2382 = vmatpush1.bf16.msra.mxu0 %v11432_v42  ;;  %8476 = vmatpush3.bf16.msra.mxu1 %v11435_v28 }
 0x3d8   :  { %2383 = vmatprep.subr.bf16.mxu0 %v11438_v57  ;;  %8477 = vmatprep.subr.bf16.mxu1 %v14192_v61  ;;  %v2259_v36 = vmul.f32 %v9402_v46, %v2257_v25  ;;  %v14271_v25 = vld [vmem:[#allocation36_spill] sm:$0xff] }
 0x3d9   :  { %v363_v46 = vadd.f32 %v14271_v25, %v14270_v16 }
 0x3da   :  { %v11604_v13 = vadd.f32 %v2261_v50, %v2259_v36 }
 0x3db   :  { %v9404_v6 = vpop.eup %9403  ;;  %2384 = vmatpush1.bf16.msra.mxu0 %v11445_v3  ;;  %8478 = vmatpush3.bf16.msra.mxu1 %v11448_v5 }
 0x3dc   :  { %2385 = vmatprep.subr.bf16.mxu0 %v11451_v7  ;;  %8479 = vmatprep.subr.bf16.mxu1 %v14192_v61  ;;  %v2260_v58 = vmul.f32 %v9404_v6, %v2258_v21 }
 0x3de   :  { %v11611_v47 = vadd.f32 %v2262_v0, %v2260_v58  ;;  %v14272_v0 = vld [vmem:[#allocation39_spill] sm:$0xff] }
 0x3df   :  { %2386 = vmatpush1.bf16.msra.mxu0 %v11458_v11  ;;  %8480 = vmatpush3.bf16.msra.mxu1 %v11461_v12 }
 0x3e0   :  { %v11617_v27 = vpack.c.bf16 %v11611_v47, %v11604_v13  ;;  %2564 = vmatprep.subr.bf16.mxu0 %v11279_v18  ;;  %8485 = vmatprep.subr.bf16.mxu1 %v14192_v61  ;;  %v14251_v18 = vld [vmem:[#allocation18_spill] sm:$0xff] }
 0x3e2   :  { %14250 = vst [vmem:[#allocation28_spill] sm:$0xff] %v11617_v27  ;;  %2404 = vmatmul.mubr.bf16.vlgmr.msra.gmra.mxu0 %v11617_v27  ;;  %8482 = vmatmul.mubr.bf16.vlgmr.msra.gmra.mxu1 %v11617_v27 }
 0x3e3   :  { %2565 = vmatpush1.bf16.msra.mxu0 %v11472_v14  ;;  %8486 = vmatpush3.bf16.msra.mxu1 %v11286_v17  ;;  %v14253_v17 = vld [vmem:[#allocation162_spill] sm:$0xff] }
 0x3e4   :  { %2566 = vmatprep.subr.bf16.mxu0 %v11476_v63  ;;  %8487 = vmatprep.subr.bf16.mxu1 %v14192_v61 }
 0x3e5   :  { %2596 = vmatprep.mubr.bf16.mxu0 %v14193_v55  ;;  %8501 = vmatprep.mubr.msk.bf16.mxu1 %vm10307_vm1, %v14192_v61 }
 0x3e7   :  { %2567 = vmatpush1.bf16.msra.mxu0 %v11483_v41  ;;  %8488 = vmatpush3.bf16.msra.mxu1 %v11295_v19  ;;  %v14258_v19 = vld [vmem:[#allocation26_spill] sm:$0xff] }
 0x3e8   :  { %2568 = vmatprep.subr.bf16.mxu0 %v14251_v18  ;;  %8489 = vmatprep.subr.bf16.mxu1 %v14192_v61 }
 0x3eb   :  { %2569 = vmatpush1.bf16.msra.mxu0 %v14252_v10  ;;  %8490 = vmatpush3.bf16.msra.mxu1 %v14253_v17  ;;  %v367_v17 = vadd.f32 %v14272_v0, %v14270_v16 }
 0x3ec   :  { %2570 = vmatprep.subr.bf16.mxu0 %v14254_v29  ;;  %8491 = vmatprep.subr.bf16.mxu1 %v14192_v61 }
 0x3ef   :  { %2571 = vmatpush1.bf16.msra.mxu0 %v14255_v48  ;;  %8492 = vmatpush3.bf16.msra.mxu1 %v14256_v8 }
 0x3f0   :  { %2572 = vmatprep.subr.bf16.mxu0 %v14257_v62  ;;  %8493 = vmatprep.subr.bf16.mxu1 %v14192_v61 }
 0x3f3   :  { %2573 = vmatpush1.bf16.msra.mxu0 %v14258_v19  ;;  %8494 = vmatpush3.bf16.msra.mxu1 %v14259_v23 }
 0x3f4   :  { %2574 = vmatprep.subr.bf16.mxu0 %v14260_v53  ;;  %8495 = vmatprep.subr.bf16.mxu1 %v14192_v61 }
 0x3f7   :  { %2575 = vmatpush1.bf16.msra.mxu0 %v14261_v44  ;;  %8496 = vmatpush3.bf16.msra.mxu1 %v14262_v59  ;;  %v14280_v44 = vld [vmem:[#allocation30_spill] sm:$0xff] }
 0x3f8   :  { %2576 = vmatprep.subr.bf16.mxu0 %v14263_v34  ;;  %8497 = vmatprep.subr.bf16.mxu1 %v14192_v61 }
 0x3fb   :  { %2577 = vmatpush1.bf16.msra.mxu0 %v14264_v32  ;;  %8498 = vmatpush3.bf16.msra.mxu1 %v14265_v15  ;;  %v14273_v15 = vld [vmem:[#allocation158_spill] sm:$0xff] }
 0x3fc   :  { %2578 = vmatprep.subr.bf16.mxu0 %v14266_v37  ;;  %8499 = vmatprep.subr.bf16.mxu1 %v14192_v61  ;;  %v14275_v37 = vld [vmem:[#allocation41_spill] sm:$0xff] }
 0x3ff   :  { %2579 = vmatpush1.bf16.msra.mxu0 %v14267_v24  ;;  %8500 = vmatpush3.bf16.msra.mxu1 %v14268_v45  ;;  %v14274_v45 = vld [vmem:[#allocation37_spill] sm:$0xff] }
 0x400   :  { %2649 = vmatprep.subr.bf16.mxu0 %v14269_v35  ;;  %8505 = vmatprep.subr.bf16.mxu1 %v14192_v61  ;;  %v365_v27 = vadd.f32 %v14274_v45, %v14273_v15 }
 0x482   :  { %v2320_v36 = vpop.f32.mrf.mxu0  ;;  %v2363_v50 = vpop.f32.mrf.mxu1 }
 0x483   :  { %v2455_v21 = vadd.f32 %v2320_v36, %v363_v46  ;;  %v369_v46 = vadd.f32 %v14275_v37, %v14273_v15 }
 0x484   :  { %v2322_v6 = vpop.f32.mrf.mxu0  ;;  %v8463_v58 = vpop.f32.mrf.mxu1 }
 0x485   :  { %v7606_v8 = vmul.f32 -1.442695, %v2455_v21  ;;  %v2469_v35 = vadd.f32 %v2322_v6, %v365_v27  ;;  %v14276_v27 = vld [vmem:[#allocation159_spill] sm:$0xff] }
 0x486   :  { %v2324_v23 = vpop.f32.mrf.mxu0  ;;  %v2366_v59 = vpop.f32.mrf.mxu1 }
 0x487   :  { %9405 = vpow2.f32 %v7606_v8  ;;  %v2456_v1 = vadd.f32 %v2324_v23, %v367_v17  ;;  %v7608_v58 = vmul.f32 -1.442695, %v2469_v35 }
 0x488   :  { %v8464_v31 = vpop.f32.mrf.mxu1  ;;  %v2326_v25 = vpop.f32.mrf.mxu0 }
 0x489   :  { %v7607_v24 = vmul.f32 -1.442695, %v2456_v1  ;;  %v2470_v36 = vadd.f32 %v2326_v25, %v369_v46  ;;  %v14277_v1 = vld [vmem:[#allocation134_spill] sm:$0xff] }
 0x48a   :  { %v866_v6 = vadd.f32 %v14277_v1, %v14276_v27 }
 0x48b   :  { %9407 = vpow2.f32 %v7607_v24  ;;  %v7609_v32 = vmul.f32 -1.442695, %v2470_v36  ;;  %v11673_v24 = vld [vmem:[%s13860_s4] ss:$0 sm:$0xff] }
 0x48c   :  { %9409 = vpow2.f32 %v7608_v58  ;;  %v14278_v58 = vld [vmem:[#allocation139_spill] sm:$0xff] }
 0x48d   :  { %9411 = vpow2.f32 %v7609_v32  ;;  %v2483_v32 = vadd.f32 %v11673_v24, %v2363_v50  ;;  %v2484_v50 = vadd.f32 %v11673_v24, %v2366_v59 }
 0x494   :  { %v9406_v21 = vpop.eup %9405 }
 0x495   :  { %v2463_v0 = vadd.f32 1.0, %v9406_v21  ;;  %v870_v21 = vadd.f32 %v14278_v58, %v14276_v27 }
 0x497   :  { %9413 = vrcp.f32 %v2463_v0 }
 0x498   :  { %v9408_v16 = vpop.eup %9407 }
 0x499   :  { %v2464_v45 = vadd.f32 1.0, %v9408_v16  ;;  %v9410_v17 = vpop.eup %9409 }
 0x49a   :  { %v9412_v31 = vpop.eup %9411  ;;  %v2477_v8 = vadd.f32 1.0, %v9410_v17  ;;  %v14279_v17 = vld [vmem:[#allocation136_spill] sm:$0xff] }
 0x49b   :  { %9415 = vrcp.f32 %v2464_v45  ;;  %v2478_v16 = vadd.f32 1.0, %v9412_v31  ;;  %v868_v1 = vadd.f32 %v14279_v17, %v11210_v40  ;;  %v14282_v17 = vld [vmem:[#allocation34_spill] sm:$0xff] }
 0x49c   :  { %9417 = vrcp.f32 %v2477_v8 }
 0x4a2   :  { %v2405_v23 = vpop.f32.mrf.mxu0  ;;  %v11668_v37 = vpop.f32.mrf.mxu1 }
 0x4a3   :  { %v2499_v35 = vadd.f32 %v2405_v23, %v866_v6 }
 0x4a4   :  { %v9414_v25 = vpop.eup %9413  ;;  %v2407_v46 = vpop.f32.mrf.mxu0 }
 0x4a5   :  { %v8483_v36 = vpop.f32.mrf.mxu1  ;;  %v2485_v0 = vmul.f32 %v9414_v25, %v2483_v32  ;;  %v7610_v45 = vmul.f32 -1.442695, %v2499_v35  ;;  %v2513_v58 = vadd.f32 %v2407_v46, %v868_v1  ;;  %v14281_v35 = vld [vmem:[#allocation140_spill] sm:$0xff] }
 0x4a6   :  { %v2409_v15 = vpop.f32.mrf.mxu0  ;;  %v872_v25 = vadd.f32 %v14281_v35, %v11210_v40 }
 0x4a7   :  { %v2451_v34 = vpop.f32.mrf.mxu1  ;;  %v2487_v53 = vadd.f32 %v2485_v0, %v14280_v44  ;;  %9419 = vpow2.f32 %v7610_v45  ;;  %v2500_v6 = vadd.f32 %v2409_v15, %v870_v21  ;;  %v7612_v44 = vmul.f32 -1.442695, %v2513_v58 }
 0x4a8   :  { %v9416_v31 = vpop.eup %9415  ;;  %9421 = vrcp.f32 %v2478_v16  ;;  %v2411_v8 = vpop.f32.mrf.mxu0 }
 0x4a9   :  { %v8484_v23 = vpop.f32.mrf.mxu1  ;;  %9423 = vtanh.f32 %v2487_v53  ;;  %v2486_v36 = vmul.f32 %v9416_v31, %v2484_v50  ;;  %v7611_v32 = vmul.f32 -1.442695, %v2500_v6  ;;  %v2514_v19 = vadd.f32 %v2411_v8, %v872_v25  ;;  %v9418_v15 = vpop.eup %9417 }
 0x4aa   :  { %v2491_v0 = vsub.f32 1.0, %v9418_v15  ;;  %v2495_v1 = vmul.f32 %v9418_v15, %v11561_v2  ;;  %v11702_v2 = vld [vmem:[%s13860_s4 + $0x1] ss:$0 sm:$0xff]  ;;  %v14285_v15 = vld [vmem:[#allocation105_spill] sm:$0xff] }
 0x4ab   :  { %v2488_v27 = vadd.f32 %v2486_v36, %v14282_v17  ;;  %9425 = vpow2.f32 %v7611_v32  ;;  %v7613_v59 = vmul.f32 -1.442695, %v2514_v19 }
 0x4ad   :  { %9427 = vtanh.f32 %v2488_v27 }
 0x4ae   :  { %9429 = vpow2.f32 %v7612_v44 }
 0x4af   :  { %9431 = vpow2.f32 %v7613_v59 }
 0x4b4   :  { %v9420_v21 = vpop.eup %9419 }
 0x4b5   :  { %v9422_v16 = vpop.eup %9421  ;;  %v2507_v53 = vadd.f32 1.0, %v9420_v21  ;;  %v14286_v21 = vld [vmem:[#allocation146_spill] sm:$0xff] }
 0x4b6   :  { %v9424_v46 = vpop.eup %9423  ;;  %v2492_v31 = vsub.f32 1.0, %v9422_v16  ;;  %v2496_v36 = vmul.f32 %v9422_v16, %v11564_v26  ;;  %v2527_v26 = vadd.f32 %v11702_v2, %v11668_v37  ;;  %v2528_v37 = vadd.f32 %v11702_v2, %v2451_v34  ;;  %v14301_v34 = vld [vmem:[#allocation152_spill] sm:$0xff] }
 0x4b7   :  { %9433 = vrcp.f32 %v2507_v53  ;;  %v2493_v45 = vmul.f32 %v9424_v46, %v2491_v0  ;;  %v1006_v16 = vadd.f32 %v14286_v21, %v14285_v15  ;;  %v14302_v0 = vld [vmem:[#allocation151_spill] sm:$0xff]  ;;  %v14303_v46 = vld [vmem:[#allocation44_spill] sm:$0xff]  ;;  %v14307_v21 = vld [vmem:[#allocation49_spill] sm:$0xff] }
 0x4b8   :  { %v9426_v50 = vpop.eup %9425 }
 0x4b9   :  { %v2508_v6 = vadd.f32 1.0, %v9426_v50  ;;  %v11686_v23 = vadd.f32 %v2495_v1, %v2493_v45  ;;  %v373_v45 = vadd.f32 %v14303_v46, %v14302_v0 }
 0x4ba   :  { %v9428_v27 = vpop.eup %9427 }
 0x4bb   :  { %9435 = vrcp.f32 %v2508_v6  ;;  %v2494_v19 = vmul.f32 %v9428_v27, %v2492_v31  ;;  %v9430_v32 = vpop.eup %9429 }
 0x4bc   :  { %v9432_v35 = vpop.eup %9431  ;;  %v2521_v25 = vadd.f32 1.0, %v9430_v32 }
 0x4bd   :  { %v11689_v58 = vadd.f32 %v2496_v36, %v2494_v19  ;;  %v2522_v44 = vadd.f32 1.0, %v9432_v35  ;;  %v14304_v19 = vld [vmem:[#allocation47_spill] sm:$0xff] }
 0x4be   :  { %9437 = vrcp.f32 %v2521_v25  ;;  %v377_v36 = vadd.f32 %v14304_v19, %v14302_v0 }
 0x4bf   :  { %v11693_v8 = vpack.c.bf16 %v11689_v58, %v11686_v23  ;;  %9439 = vrcp.f32 %v2522_v44 }
 0x4c1   :  { %14283 = vst [vmem:[#allocation31_spill] sm:$0xff] %v11693_v8  ;;  %2597 = vmatmul.mubr.bf16.vlgmr.msra.gmra.mxu0 %v11693_v8  ;;  %8502 = vmatmul.mubr.bf16.vlgmr.msra.gmra.mxu1 %v11693_v8 }
 0x4c2   :  { %2650 = vmatpush1.bf16.msra.mxu0 %v11372_v38  ;;  %8506 = vmatpush3.bf16.msra.mxu1 %v11375_v39  ;;  %v14284_v39 = vld [vmem:[#allocation143_spill] sm:$0xff] }
 0x4c3   :  { %2651 = vmatprep.subr.bf16.mxu0 %v11380_v33  ;;  %8507 = vmatprep.subr.bf16.mxu1 %v14192_v61 }
 0x4c4   :  { %v9434_v17 = vpop.eup %9433  ;;  %2681 = vmatprep.mubr.bf16.mxu0 %v14193_v55  ;;  %8521 = vmatprep.mubr.msk.bf16.mxu1 %vm10307_vm1, %v14192_v61 }
 0x4c5   :  { %v2529_v38 = vmul.f32 %v9434_v17, %v2527_v26  ;;  %v14305_v26 = vld [vmem:[#allocation158_spill] sm:$0xff]  ;;  %v14306_v17 = vld [vmem:[#allocation45_spill] sm:$0xff] }
 0x4c6   :  { %2652 = vmatpush1.bf16.msra.mxu0 %v11387_v4  ;;  %8508 = vmatpush3.bf16.msra.mxu1 %v11390_v22  ;;  %v375_v44 = vadd.f32 %v14306_v17, %v14305_v26 }
 0x4c7   :  { %v2531_v59 = vadd.f32 %v2529_v38, %v14284_v39  ;;  %2653 = vmatprep.subr.bf16.mxu0 %v11396_v9  ;;  %8509 = vmatprep.subr.bf16.mxu1 %v14192_v61 }
 0x4c8   :  { %v9436_v33 = vpop.eup %9435 }
 0x4c9   :  { %9441 = vtanh.f32 %v2531_v59  ;;  %v2530_v53 = vmul.f32 %v9436_v33, %v2528_v37 }
 0x4ca   :  { %2654 = vmatpush1.bf16.msra.mxu0 %v11402_v56  ;;  %8510 = vmatpush3.bf16.msra.mxu1 %v11405_v49 }
 0x4cb   :  { %v2532_v4 = vadd.f32 %v2530_v53, %v1006_v16  ;;  %2655 = vmatprep.subr.bf16.mxu0 %v11408_v51  ;;  %8511 = vmatprep.subr.bf16.mxu1 %v14192_v61  ;;  %v9438_v22 = vpop.eup %9437  ;;  %v379_v16 = vadd.f32 %v14307_v21, %v14305_v26 }
 0x4cc   :  { %v9440_v9 = vpop.eup %9439  ;;  %v2535_v56 = vsub.f32 1.0, %v9438_v22 }
 0x4cd   :  { %9443 = vtanh.f32 %v2532_v4 }
 0x4ce   :  { %2656 = vmatpush1.bf16.msra.mxu0 %v11412_v52  ;;  %8512 = vmatpush3.bf16.msra.mxu1 %v11415_v20  ;;  %v2539_v52 = vmul.f32 %v9438_v22, %v11604_v13  ;;  %v2536_v20 = vsub.f32 1.0, %v9440_v9  ;;  %v11791_v13 = vld [vmem:[#allocation5 + $0x38] ss:$12 sps:$4 sm:$0xff]  }
 0x4cf   :  { %2657 = vmatprep.subr.bf16.mxu0 %v11418_v54  ;;  %8513 = vmatprep.subr.bf16.mxu1 %v14192_v61  ;;  %14294 = vst [vmem:[#allocation144_spill] sm:$0xff] %v11791_v13 }
 0x4d2   :  { %2658 = vmatpush1.bf16.msra.mxu0 %v11422_v43  ;;  %8514 = vmatpush3.bf16.msra.mxu1 %v11425_v30 }
 0x4d3   :  { %2659 = vmatprep.subr.bf16.mxu0 %v11428_v60  ;;  %8515 = vmatprep.subr.bf16.mxu1 %v14192_v61  ;;  %v2540_v60 = vmul.f32 %v9440_v9, %v11611_v47  ;;  %v14295_v47 = vld [vmem:[#allocation153_spill] sm:$0xff] }
 0x4d6   :  { %v9442_v49 = vpop.eup %9441  ;;  %2660 = vmatpush1.bf16.msra.mxu0 %v11432_v42  ;;  %8516 = vmatpush3.bf16.msra.mxu1 %v11435_v28 }
 0x4d7   :  { %2661 = vmatprep.subr.bf16.mxu0 %v11438_v57  ;;  %8517 = vmatprep.subr.bf16.mxu1 %v14192_v61  ;;  %v2537_v51 = vmul.f32 %v9442_v49, %v2535_v56  ;;  %v11751_v57 = vld [vmem:[#allocation5 + $0xac] ss:$12 sps:$4 sm:$0xff]  }
 0x4d9   :  { %v11736_v54 = vadd.f32 %v2539_v52, %v2537_v51 }
 0x4da   :  { %v9444_v43 = vpop.eup %9443  ;;  %2662 = vmatpush1.bf16.msra.mxu0 %v11445_v3  ;;  %8518 = vmatpush3.bf16.msra.mxu1 %v11448_v5  ;;  %v11758_v3 = vld [vmem:[#allocation5 + $0xb0] ss:$12 sps:$4 sm:$0xff]   ;;  %v11767_v5 = vld [vmem:[#allocation5 + $0x98] ss:$12 sps:$4 sm:$0xff]  }
 0x4db   :  { %2663 = vmatprep.subr.bf16.mxu0 %v11451_v7  ;;  %8519 = vmatprep.subr.bf16.mxu1 %v14192_v61  ;;  %v2538_v30 = vmul.f32 %v9444_v43, %v2536_v20  ;;  %v11773_v7 = vld [vmem:[#allocation5 + $0x80] ss:$12 sps:$4 sm:$0xff]   ;;  %v14308_v43 = vld [vmem:[#allocation159_spill] sm:$0xff] }
 0x4dc   :  { %14288 = vst [vmem:[#allocation33_spill] sm:$0xff] %v11773_v7 }
 0x4dd   :  { %v11743_v42 = vadd.f32 %v2540_v60, %v2538_v30  ;;  %v14309_v30 = vld [vmem:[#allocation126_spill] sm:$0xff] }
 0x4de   :  { %2664 = vmatpush1.bf16.msra.mxu0 %v11458_v11  ;;  %8520 = vmatpush3.bf16.msra.mxu1 %v11461_v12  ;;  %v11779_v11 = vld [vmem:[#allocation5 + $0x68] ss:$12 sps:$4 sm:$0xff]   ;;  %v856_v60 = vadd.f32 %v14309_v30, %v14308_v43 }
 0x4df   :  { %v11749_v28 = vpack.c.bf16 %v11743_v42, %v11736_v54  ;;  %2842 = vmatprep.subr.bf16.mxu0 %v11751_v57  ;;  %8525 = vmatprep.subr.bf16.mxu1 %v14192_v61  ;;  %14289 = vst [vmem:[#allocation142_spill] sm:$0xff] %v11779_v11  ;;  %v14290_v12 = vld [vmem:[#allocation26_spill] sm:$0xff] }
 0x4e1   :  { %14287 = vst [vmem:[#allocation29_spill] sm:$0xff] %v11749_v28  ;;  %2682 = vmatmul.mubr.bf16.vlgmr.msra.gmra.mxu0 %v11749_v28  ;;  %8522 = vmatmul.mubr.bf16.vlgmr.msra.gmra.mxu1 %v11749_v28  ;;  %v12003_v28 = vld [vmem:[#allocation5] ss:$12 sps:$4 sm:$0xff]  }
 0x4e2   :  { %2843 = vmatpush1.bf16.msra.mxu0 %v11472_v14  ;;  %8526 = vmatpush3.bf16.msra.mxu1 %v11758_v3  ;;  %v11785_v14 = vld [vmem:[#allocation5 + $0x50] ss:$12 sps:$4 sm:$0xff]   ;;  %14331 = vst [vmem:[#allocation15_spill] sm:$0xff] %v12003_v28 }
 0x4e3   :  { %2844 = vmatprep.subr.bf16.mxu0 %v11476_v63  ;;  %8527 = vmatprep.subr.bf16.mxu1 %v14192_v61  ;;  %14291 = vst [vmem:[#allocation147_spill] sm:$0xff] %v11785_v14  ;;  %v14292_v63 = vld [vmem:[#allocation150_spill] sm:$0xff] }
 0x4e4   :  { %2874 = vmatprep.mubr.bf16.mxu0 %v14193_v55  ;;  %8541 = vmatprep.mubr.msk.bf16.mxu1 %vm10307_vm1, %v14192_v61 }
 0x4e6   :  { %2845 = vmatpush1.bf16.msra.mxu0 %v11483_v41  ;;  %8528 = vmatpush3.bf16.msra.mxu1 %v11767_v5  ;;  %v14293_v41 = vld [vmem:[#allocation156_spill] sm:$0xff] }
 0x4e7   :  { %2846 = vmatprep.subr.bf16.mxu0 %v14251_v18  ;;  %8529 = vmatprep.subr.bf16.mxu1 %v14192_v61  ;;  %v14296_v18 = vld [vmem:[#allocation24_spill] sm:$0xff] }
 0x4ea   :  { %2847 = vmatpush1.bf16.msra.mxu0 %v14252_v10  ;;  %8530 = vmatpush3.bf16.msra.mxu1 %v11773_v7  ;;  %v11797_v10 = vld [vmem:[#allocation5 + $0x20] ss:$12 sps:$4 sm:$0xff]  }
 0x4eb   :  { %2848 = vmatprep.subr.bf16.mxu0 %v14254_v29  ;;  %8531 = vmatprep.subr.bf16.mxu1 %v14192_v61  ;;  %14297 = vst [vmem:[#allocation32_spill] sm:$0xff] %v11797_v10  ;;  %v14298_v29 = vld [vmem:[#allocation157_spill] sm:$0xff] }
 0x4ee   :  { %2849 = vmatpush1.bf16.msra.mxu0 %v14255_v48  ;;  %8532 = vmatpush3.bf16.msra.mxu1 %v11779_v11  ;;  %v14299_v48 = vld [vmem:[#allocation27_spill] sm:$0xff] }
 0x4ef   :  { %2850 = vmatprep.subr.bf16.mxu0 %v14257_v62  ;;  %8533 = vmatprep.subr.bf16.mxu1 %v14192_v61  ;;  %v11803_v62 = vld [vmem:[#allocation5 + $0x8] ss:$12 sps:$4 sm:$0xff]  }
 0x4f0   :  { %14300 = vst [vmem:[#allocation35_spill] sm:$0xff] %v11803_v62 }
 0x4f2   :  { %2851 = vmatpush1.bf16.msra.mxu0 %v14290_v12  ;;  %8534 = vmatpush3.bf16.msra.mxu1 %v11785_v14 }
 0x4f3   :  { %2852 = vmatprep.subr.bf16.mxu0 %v14292_v63  ;;  %8535 = vmatprep.subr.bf16.mxu1 %v14192_v61 }
 0x4f6   :  { %2853 = vmatpush1.bf16.msra.mxu0 %v14293_v41  ;;  %8536 = vmatpush3.bf16.msra.mxu1 %v11791_v13 }
 0x4f7   :  { %2854 = vmatprep.subr.bf16.mxu0 %v14295_v47  ;;  %8537 = vmatprep.subr.bf16.mxu1 %v14192_v61 }
 0x4fa   :  { %2855 = vmatpush1.bf16.msra.mxu0 %v14296_v18  ;;  %8538 = vmatpush3.bf16.msra.mxu1 %v11797_v10 }
 0x4fb   :  { %2856 = vmatprep.subr.bf16.mxu0 %v14298_v29  ;;  %8539 = vmatprep.subr.bf16.mxu1 %v14192_v61 }
 0x4fe   :  { %2857 = vmatpush1.bf16.msra.mxu0 %v14299_v48  ;;  %8540 = vmatpush3.bf16.msra.mxu1 %v11803_v62 }
 0x4ff   :  { %2927 = vmatprep.subr.bf16.mxu0 %v14301_v34  ;;  %8545 = vmatprep.subr.bf16.mxu1 %v14192_v61 }
 0x581   :  { %v2598_v1 = vpop.f32.mrf.mxu0  ;;  %v2641_v50 = vpop.f32.mrf.mxu1 }
 0x582   :  { %v2733_v6 = vadd.f32 %v2598_v1, %v373_v45  ;;  %v2761_v47 = vadd.f32 %v11673_v24, %v2641_v50  ;;  %v14310_v45 = vld [vmem:[#allocation131_spill] sm:$0xff] }
 0x583   :  { %v2600_v31 = vpop.f32.mrf.mxu0  ;;  %v8503_v27 = vpop.f32.mrf.mxu1  ;;  %v860_v1 = vadd.f32 %v14310_v45, %v14308_v43 }
 0x584   :  { %v7614_v32 = vmul.f32 -1.442695, %v2733_v6  ;;  %v2747_v59 = vadd.f32 %v2600_v31, %v375_v44  ;;  %v14311_v27 = vld [vmem:[#allocation128_spill] sm:$0xff] }
 0x585   :  { %v2602_v35 = vpop.f32.mrf.mxu0  ;;  %v2644_v25 = vpop.f32.mrf.mxu1  ;;  %v858_v19 = vadd.f32 %v14311_v27, %v11210_v40 }
 0x586   :  { %9445 = vpow2.f32 %v7614_v32  ;;  %v2734_v38 = vadd.f32 %v2602_v35, %v377_v36  ;;  %v7616_v4 = vmul.f32 -1.442695, %v2747_v59  ;;  %v14312_v35 = vld [vmem:[#allocation40_spill] sm:$0xff]  ;;  %v2762_v50 = vadd.f32 %v11673_v24, %v2644_v25  ;;  %v14314_v59 = vld [vmem:[#allocation43_spill] sm:$0xff] }
 0x587   :  { %v8504_v39 = vpop.f32.mrf.mxu1  ;;  %v2604_v33 = vpop.f32.mrf.mxu0 }
 0x588   :  { %v7615_v37 = vmul.f32 -1.442695, %v2734_v38  ;;  %v2748_v53 = vadd.f32 %v2604_v33, %v379_v16  ;;  %v14313_v39 = vld [vmem:[#allocation21_spill] sm:$0xff] }
 0x58a   :  { %9447 = vpow2.f32 %v7615_v37  ;;  %v7617_v22 = vmul.f32 -1.442695, %v2748_v53  ;;  %v521_v37 = vadd.f32 %v14314_v59, %v14313_v39 }
 0x58b   :  { %9449 = vpow2.f32 %v7616_v4 }
 0x58c   :  { %9451 = vpow2.f32 %v7617_v22  ;;  %v14315_v22 = vld [vmem:[#allocation132_spill] sm:$0xff] }
 0x593   :  { %v9446_v9 = vpop.eup %9445 }
 0x594   :  { %v2741_v56 = vadd.f32 1.0, %v9446_v9  ;;  %v862_v9 = vadd.f32 %v14315_v22, %v11210_v40 }
 0x596   :  { %9453 = vrcp.f32 %v2741_v56 }
 0x597   :  { %v9448_v49 = vpop.eup %9447 }
 0x598   :  { %v2742_v51 = vadd.f32 1.0, %v9448_v49  ;;  %v9450_v52 = vpop.eup %9449 }
 0x599   :  { %v9452_v20 = vpop.eup %9451  ;;  %v2755_v12 = vadd.f32 1.0, %v9450_v52 }
 0x59a   :  { %9455 = vrcp.f32 %v2742_v51  ;;  %v2756_v48 = vadd.f32 1.0, %v9452_v20 }
 0x59b   :  { %9457 = vrcp.f32 %v2755_v12 }
 0x5a1   :  { %v2683_v63 = vpop.f32.mrf.mxu0  ;;  %v11818_v41 = vpop.f32.mrf.mxu1 }
 0x5a2   :  { %v2777_v18 = vadd.f32 %v2683_v63, %v856_v60 }
 0x5a3   :  { %v9454_v29 = vpop.eup %9453  ;;  %v2685_v34 = vpop.f32.mrf.mxu0 }
 0x5a4   :  { %v8523_v46 = vpop.f32.mrf.mxu1  ;;  %v2763_v6 = vmul.f32 %v9454_v29, %v2761_v47  ;;  %v7618_v31 = vmul.f32 -1.442695, %v2777_v18  ;;  %v2791_v16 = vadd.f32 %v2685_v34, %v858_v19 }
 0x5a5   :  { %v2687_v36 = vpop.f32.mrf.mxu0 }
 0x5a6   :  { %v11825_v32 = vpop.f32.mrf.mxu1  ;;  %v2765_v17 = vadd.f32 %v2763_v6, %v14312_v35  ;;  %9459 = vpow2.f32 %v7618_v31  ;;  %v2778_v44 = vadd.f32 %v2687_v36, %v860_v1  ;;  %v7620_v25 = vmul.f32 -1.442695, %v2791_v16 }
 0x5a7   :  { %v9456_v38 = vpop.eup %9455  ;;  %9461 = vrcp.f32 %v2756_v48  ;;  %v2689_v4 = vpop.f32.mrf.mxu0  ;;  %v2806_v16 = vadd.f32 %v11702_v2, %v11825_v32 }
 0x5a8   :  { %v8524_v33 = vpop.f32.mrf.mxu1  ;;  %9463 = vtanh.f32 %v2765_v17  ;;  %v2764_v21 = vmul.f32 %v9456_v38, %v2762_v50  ;;  %v7619_v53 = vmul.f32 -1.442695, %v2778_v44  ;;  %v2792_v49 = vadd.f32 %v2689_v4, %v862_v9  ;;  %v9458_v52 = vpop.eup %9457  ;;  %v11848_v17 = vld [vmem:[#allocation5 + $0x170] ss:$12 sps:$4 sm:$0xff]   ;;  %v11853_v50 = vld [vmem:[#allocation5 + $0x154] ss:$12 sps:$4 sm:$0xff]  }
 0x5a9   :  { %v2769_v12 = vsub.f32 1.0, %v9458_v52  ;;  %v2773_v18 = vmul.f32 %v9458_v52, %v11686_v23  ;;  %v11845_v23 = vld [vmem:[#allocation5 + $0x168] ss:$12 sps:$4 sm:$0xff]   ;;  %v11873_v9 = vld [vmem:[#allocation5 + $0x138] ss:$12 sps:$4 sm:$0xff]  }
 0x5aa   :  { %v2766_v56 = vadd.f32 %v2764_v21, %v521_v37  ;;  %9465 = vpow2.f32 %v7619_v53  ;;  %v7621_v51 = vmul.f32 -1.442695, %v2792_v49  ;;  %v11860_v37 = vld [vmem:[#allocation5 + $0x150] ss:$12 sps:$4 sm:$0xff]   ;;  %v14317_v33 = vld [vmem:[#allocation133_spill] sm:$0xff] }
 0x5ab   :  { %v11869_v53 = vld [vmem:[#allocation5 + $0x13c] ss:$12 sps:$4 sm:$0xff]  }
 0x5ac   :  { %9467 = vtanh.f32 %v2766_v56  ;;  %v11876_v56 = vld [vmem:[#allocation5 + $0x140] ss:$12 sps:$4 sm:$0xff]   ;;  %v11887_v52 = vld [vmem:[#allocation5 + $0x128] ss:$12 sps:$4 sm:$0xff]  }
 0x5ad   :  { %9469 = vpow2.f32 %v7620_v25  ;;  %v14318_v49 = vld [vmem:[#allocation137_spill] sm:$0xff]  ;;  %v11880_v25 = vld [vmem:[#allocation5 + $0x124] ss:$12 sps:$4 sm:$0xff]  }
 0x5ae   :  { %9471 = vpow2.f32 %v7621_v51  ;;  %v11884_v51 = vld [vmem:[#allocation5 + $0x120] ss:$12 sps:$4 sm:$0xff]  }
 0x5b3   :  { %v9460_v20 = vpop.eup %9459 }
 0x5b4   :  { %v9462_v30 = vpop.eup %9461  ;;  %v2785_v60 = vadd.f32 1.0, %v9460_v20  ;;  %v11890_v20 = vld [vmem:[#allocation5 + $0x10c] ss:$12 sps:$4 sm:$0xff]  }
 0x5b5   :  { %v9464_v63 = vpop.eup %9463  ;;  %v2770_v34 = vsub.f32 1.0, %v9462_v30  ;;  %v2774_v6 = vmul.f32 %v9462_v30, %v11689_v58  ;;  %v2805_v58 = vadd.f32 %v11702_v2, %v11818_v41  ;;  %v11863_v41 = vld [vmem:[#allocation5 + $0x158] ss:$12 sps:$4 sm:$0xff]  }
 0x5b6   :  { %9473 = vrcp.f32 %v2785_v60  ;;  %v2771_v47 = vmul.f32 %v9464_v63, %v2769_v12  ;;  %v11894_v60 = vld [vmem:[#allocation5 + $0x108] ss:$12 sps:$4 sm:$0xff]   ;;  %v11897_v12 = vld [vmem:[#allocation5 + $0x110] ss:$12 sps:$4 sm:$0xff]  }
 0x5b7   :  { %v9466_v29 = vpop.eup %9465  ;;  %v11900_v63 = vld [vmem:[#allocation5 + $0xf4] ss:$12 sps:$4 sm:$0xff]  }
 0x5b8   :  { %v2786_v48 = vadd.f32 1.0, %v9466_v29  ;;  %v11834_v46 = vadd.f32 %v2773_v18, %v2771_v47 }
 0x5b9   :  { %v9468_v45 = vpop.eup %9467 }
 0x5ba   :  { %9475 = vrcp.f32 %v2786_v48  ;;  %v2772_v1 = vmul.f32 %v9468_v45, %v2770_v34  ;;  %v9470_v27 = vpop.eup %9469  ;;  %v11904_v48 = vld [vmem:[#allocation5 + $0xf0] ss:$12 sps:$4 sm:$0xff]   ;;  %v11907_v34 = vld [vmem:[#allocation5 + $0xf8] ss:$12 sps:$4 sm:$0xff]  }
 0x5bb   :  { %v9472_v36 = vpop.eup %9471  ;;  %v2799_v35 = vadd.f32 1.0, %v9470_v27  ;;  %v11910_v45 = vld [vmem:[#allocation5 + $0xdc] ss:$12 sps:$4 sm:$0xff]  }
 0x5bc   :  { %v11837_v31 = vadd.f32 %v2774_v6, %v2772_v1  ;;  %v2800_v38 = vadd.f32 1.0, %v9472_v36 }
 0x5bd   :  { %9477 = vrcp.f32 %v2799_v35 }
 0x5be   :  { %v11841_v19 = vpack.c.bf16 %v11837_v31, %v11834_v46  ;;  %9479 = vrcp.f32 %v2800_v38  ;;  %v11923_v38 = vld [vmem:[#allocation5 + $0xc4] ss:$12 sps:$4 sm:$0xff]  }
 0x5c0   :  { %14316 = vst [vmem:[#allocation149_spill] sm:$0xff] %v11841_v19  ;;  %2875 = vmatmul.mubr.bf16.vlgmr.msra.gmra.mxu0 %v11841_v19  ;;  %8542 = vmatmul.mubr.bf16.vlgmr.msra.gmra.mxu1 %v11841_v19  ;;  %v14333_v19 = vld [vmem:[#allocation52_spill] sm:$0xff] }
 0x5c1   :  { %2928 = vmatpush1.bf16.msra.mxu0 %v11845_v23  ;;  %8546 = vmatpush3.bf16.msra.mxu1 %v11848_v17  ;;  %v383_v8 = vadd.f32 %v14333_v19, %v14302_v0 }
 0x5c2   :  { %2929 = vmatprep.subr.bf16.mxu0 %v11853_v50  ;;  %8547 = vmatprep.subr.bf16.mxu1 %v14192_v61 }
 0x5c3   :  { %v9474_v44 = vpop.eup %9473  ;;  %2959 = vmatprep.mubr.bf16.mxu0 %v14193_v55  ;;  %8561 = vmatprep.mubr.msk.bf16.mxu1 %vm10307_vm1, %v14192_v61 }
 0x5c4   :  { %v2807_v59 = vmul.f32 %v9474_v44, %v2805_v58  ;;  %v11917_v58 = vld [vmem:[#allocation5 + $0xd8] ss:$12 sps:$4 sm:$0xff]   ;;  %v11920_v44 = vld [vmem:[#allocation5 + $0xe0] ss:$12 sps:$4 sm:$0xff]  }
 0x5c5   :  { %2930 = vmatpush1.bf16.msra.mxu0 %v11860_v37  ;;  %8548 = vmatpush3.bf16.msra.mxu1 %v11863_v41 }
 0x5c6   :  { %v2809_v21 = vadd.f32 %v2807_v59, %v14317_v33  ;;  %2931 = vmatprep.subr.bf16.mxu0 %v11869_v53  ;;  %8549 = vmatprep.subr.bf16.mxu1 %v14192_v61 }
 0x5c7   :  { %v9476_v4 = vpop.eup %9475 }
 0x5c8   :  { %9481 = vtanh.f32 %v2809_v21  ;;  %v2808_v22 = vmul.f32 %v9476_v4, %v2806_v16  ;;  %v11930_v21 = vld [vmem:[#allocation5 + $0xc0] ss:$12 sps:$4 sm:$0xff]   ;;  %v11933_v16 = vld [vmem:[#allocation5 + $0xc8] ss:$12 sps:$4 sm:$0xff]  }
 0x5c9   :  { %2932 = vmatpush1.bf16.msra.mxu0 %v11873_v9  ;;  %8550 = vmatpush3.bf16.msra.mxu1 %v11876_v56 }
 0x5ca   :  { %v2810_v32 = vadd.f32 %v2808_v22, %v14318_v49  ;;  %2933 = vmatprep.subr.bf16.mxu0 %v11880_v25  ;;  %8551 = vmatprep.subr.bf16.mxu1 %v14192_v61  ;;  %v9478_v30 = vpop.eup %9477  ;;  %v11948_v22 = vld [vmem:[#allocation5 + $0x94] ss:$12 sps:$4 sm:$0xff]   ;;  %v11955_v49 = vld [vmem:[#allocation5 + $0x90] ss:$12 sps:$4 sm:$0xff]  }
 0x5cb   :  { %v9480_v47 = vpop.eup %9479  ;;  %v2813_v18 = vsub.f32 1.0, %v9478_v30  ;;  %v2817_v6 = vmul.f32 %v9478_v30, %v11736_v54  ;;  %v11963_v30 = vld [vmem:[#allocation5 + $0x78] ss:$12 sps:$4 sm:$0xff]  }
 0x5cc   :  { %9483 = vtanh.f32 %v2810_v32  ;;  %v2814_v27 = vsub.f32 1.0, %v9480_v47  ;;  %v2818_v54 = vmul.f32 %v9480_v47, %v11743_v42  ;;  %v11944_v42 = vld [vmem:[#allocation5 + $0xa8] ss:$12 sps:$4 sm:$0xff]   ;;  %14321 = vst [vmem:[#allocation18_spill] sm:$0xff] %v11963_v30  ;;  %v11967_v47 = vld [vmem:[#allocation5 + $0x64] ss:$12 sps:$4 sm:$0xff]  }
 0x5cd   :  { %2934 = vmatpush1.bf16.msra.mxu0 %v11884_v51  ;;  %8552 = vmatpush3.bf16.msra.mxu1 %v11887_v52  ;;  %v11959_v32 = vld [vmem:[#allocation5 + $0x7c] ss:$12 sps:$4 sm:$0xff]   ;;  %14322 = vst [vmem:[#allocation19_spill] sm:$0xff] %v11967_v47 }
 0x5ce   :  { %2935 = vmatprep.subr.bf16.mxu0 %v11890_v20  ;;  %8553 = vmatprep.subr.bf16.mxu1 %v14192_v61  ;;  %14320 = vst [vmem:[#allocation145_spill] sm:$0xff] %v11959_v32 }
 0x5d1   :  { %2936 = vmatpush1.bf16.msra.mxu0 %v11894_v60  ;;  %8554 = vmatpush3.bf16.msra.mxu1 %v11897_v12 }
 0x5d2   :  { %2937 = vmatprep.subr.bf16.mxu0 %v11900_v63  ;;  %8555 = vmatprep.subr.bf16.mxu1 %v14192_v61 }
 0x5d5   :  { %v9482_v29 = vpop.eup %9481  ;;  %2938 = vmatpush1.bf16.msra.mxu0 %v11904_v48  ;;  %8556 = vmatpush3.bf16.msra.mxu1 %v11907_v34 }
 0x5d6   :  { %2939 = vmatprep.subr.bf16.mxu0 %v11910_v45  ;;  %8557 = vmatprep.subr.bf16.mxu1 %v14192_v61  ;;  %v2815_v1 = vmul.f32 %v9482_v29, %v2813_v18  ;;  %v11971_v18 = vld [vmem:[#allocation5 + $0x60] ss:$12 sps:$4 sm:$0xff]  }
 0x5d7   :  { %14323 = vst [vmem:[#allocation162_spill] sm:$0xff] %v11971_v18  ;;  %v11975_v29 = vld [vmem:[#allocation5 + $0x4c] ss:$12 sps:$4 sm:$0xff]  }
 0x5d8   :  { %v11915_v36 = vadd.f32 %v2817_v6, %v2815_v1  ;;  %14324 = vst [vmem:[#allocation22_spill] sm:$0xff] %v11975_v29  ;;  %v11979_v1 = vld [vmem:[#allocation5 + $0x48] ss:$12 sps:$4 sm:$0xff]  }
 0x5d9   :  { %v9484_v35 = vpop.eup %9483  ;;  %2940 = vmatpush1.bf16.msra.mxu0 %v11917_v58  ;;  %8558 = vmatpush3.bf16.msra.mxu1 %v11920_v44  ;;  %14325 = vst [vmem:[#allocation25_spill] sm:$0xff] %v11979_v1  ;;  %v11983_v6 = vld [vmem:[#allocation5 + $0x34] ss:$12 sps:$4 sm:$0xff]  }
 0x5da   :  { %2941 = vmatprep.subr.bf16.mxu0 %v11923_v38  ;;  %8559 = vmatprep.subr.bf16.mxu1 %v14192_v61  ;;  %v2816_v59 = vmul.f32 %v9484_v35, %v2814_v27  ;;  %14326 = vst [vmem:[#allocation163_spill] sm:$0xff] %v11983_v6  ;;  %v11987_v27 = vld [vmem:[#allocation5 + $0x30] ss:$12 sps:$4 sm:$0xff]  }
 0x5db   :  { %14327 = vst [vmem:[#allocation23_spill] sm:$0xff] %v11987_v27  ;;  %v11991_v35 = vld [vmem:[#allocation5 + $0x1c] ss:$12 sps:$4 sm:$0xff]  }
 0x5dc   :  { %v11928_v33 = vadd.f32 %v2818_v54, %v2816_v59  ;;  %14328 = vst [vmem:[#allocation12_spill] sm:$0xff] %v11991_v35  ;;  %v11995_v59 = vld [vmem:[#allocation5 + $0x18] ss:$12 sps:$4 sm:$0xff]  }
 0x5dd   :  { %2942 = vmatpush1.bf16.msra.mxu0 %v11930_v21  ;;  %8560 = vmatpush3.bf16.msra.mxu1 %v11933_v16  ;;  %14329 = vst [vmem:[#allocation13_spill] sm:$0xff] %v11995_v59  ;;  %v11999_v54 = vld [vmem:[#allocation5 + $0x4] ss:$12 sps:$4 sm:$0xff]  }
 0x5de   :  { %v11938_v4 = vpack.c.bf16 %v11928_v33, %v11915_v36  ;;  %3120 = vmatprep.subr.bf16.mxu0 %v11751_v57  ;;  %8565 = vmatprep.subr.bf16.mxu1 %v14192_v61  ;;  %14330 = vst [vmem:[#allocation14_spill] sm:$0xff] %v11999_v54 }
 0x5e0   :  { %14319 = vst [vmem:[#allocation141_spill] sm:$0xff] %v11938_v4  ;;  %2960 = vmatmul.mubr.bf16.vlgmr.msra.gmra.mxu0 %v11938_v4  ;;  %8562 = vmatmul.mubr.bf16.vlgmr.msra.gmra.mxu1 %v11938_v4  ;;  %v12007_v4 = vld [vmem:[#allocation5 + $0x16c] ss:$12 sps:$4 sm:$0xff]  }
 0x5e1   :  { %3121 = vmatpush1.bf16.msra.mxu0 %v11944_v42  ;;  %8566 = vmatpush3.bf16.msra.mxu1 %v11758_v3  ;;  %14332 = vst [vmem:[#allocation36_spill] sm:$0xff] %v12007_v4 }
 0x5e2   :  { %3122 = vmatprep.subr.bf16.mxu0 %v11948_v22  ;;  %8567 = vmatprep.subr.bf16.mxu1 %v14192_v61 }
 0x5e3   :  { %3152 = vmatprep.mubr.bf16.mxu0 %v14193_v55  ;;  %8581 = vmatprep.mubr.msk.bf16.mxu1 %vm10307_vm1, %v14192_v61 }
 0x5e5   :  { %3123 = vmatpush1.bf16.msra.mxu0 %v11955_v49  ;;  %8568 = vmatpush3.bf16.msra.mxu1 %v11767_v5 }
 0x5e6   :  { %3124 = vmatprep.subr.bf16.mxu0 %v11959_v32  ;;  %8569 = vmatprep.subr.bf16.mxu1 %v14192_v61 }
 0x5e9   :  { %3125 = vmatpush1.bf16.msra.mxu0 %v11963_v30  ;;  %8570 = vmatpush3.bf16.msra.mxu1 %v11773_v7 }
 0x5ea   :  { %3126 = vmatprep.subr.bf16.mxu0 %v11967_v47  ;;  %8571 = vmatprep.subr.bf16.mxu1 %v14192_v61  ;;  %v14336_v47 = vld [vmem:[#allocation57_spill] sm:$0xff] }
 0x5ed   :  { %3127 = vmatpush1.bf16.msra.mxu0 %v11971_v18  ;;  %8572 = vmatpush3.bf16.msra.mxu1 %v11779_v11 }
 0x5ee   :  { %3128 = vmatprep.subr.bf16.mxu0 %v11975_v29  ;;  %8573 = vmatprep.subr.bf16.mxu1 %v14192_v61 }
 0x5f1   :  { %3129 = vmatpush1.bf16.msra.mxu0 %v11979_v1  ;;  %8574 = vmatpush3.bf16.msra.mxu1 %v11785_v14  ;;  %v14335_v14 = vld [vmem:[#allocation53_spill] sm:$0xff] }
 0x5f2   :  { %3130 = vmatprep.subr.bf16.mxu0 %v11983_v6  ;;  %8575 = vmatprep.subr.bf16.mxu1 %v14192_v61  ;;  %v385_v1 = vadd.f32 %v14335_v14, %v14305_v26 }
 0x5f5   :  { %3131 = vmatpush1.bf16.msra.mxu0 %v11987_v27  ;;  %8576 = vmatpush3.bf16.msra.mxu1 %v11791_v13  ;;  %v14334_v13 = vld [vmem:[#allocation55_spill] sm:$0xff] }
 0x5f6   :  { %3132 = vmatprep.subr.bf16.mxu0 %v11991_v35  ;;  %8577 = vmatprep.subr.bf16.mxu1 %v14192_v61  ;;  %v387_v27 = vadd.f32 %v14334_v13, %v14302_v0 }
 0x5f9   :  { %3133 = vmatpush1.bf16.msra.mxu0 %v11995_v59  ;;  %8578 = vmatpush3.bf16.msra.mxu1 %v11797_v10 }
 0x5fa   :  { %3134 = vmatprep.subr.bf16.mxu0 %v11999_v54  ;;  %8579 = vmatprep.subr.bf16.mxu1 %v14192_v61 }
 0x5fd   :  { %3135 = vmatpush1.bf16.msra.mxu0 %v12003_v28  ;;  %8580 = vmatpush3.bf16.msra.mxu1 %v11803_v62 }
 0x5fe   :  { %3205 = vmatprep.subr.bf16.mxu0 %v12007_v4  ;;  %8585 = vmatprep.subr.bf16.mxu1 %v14192_v61 }
 0x680   :  { %v2876_v39 = vpop.f32.mrf.mxu0  ;;  %v2919_v10 = vpop.f32.mrf.mxu1 }
 0x681   :  { %v3011_v54 = vadd.f32 %v2876_v39, %v383_v8  ;;  %v389_v8 = vadd.f32 %v14336_v47, %v14305_v26  ;;  %v14340_v26 = vld [vmem:[#allocation38_spill] sm:$0xff] }
 0x682   :  { %v2878_v59 = vpop.f32.mrf.mxu0  ;;  %v8543_v35 = vpop.f32.mrf.mxu1 }
 0x683   :  { %v7622_v28 = vmul.f32 -1.442695, %v3011_v54  ;;  %v3025_v11 = vadd.f32 %v2878_v59, %v385_v1 }
 0x684   :  { %v2880_v6 = vpop.f32.mrf.mxu0  ;;  %v2922_v62 = vpop.f32.mrf.mxu1 }
 0x685   :  { %9485 = vpow2.f32 %v7622_v28  ;;  %v3012_v4 = vadd.f32 %v2880_v6, %v387_v27  ;;  %v7624_v35 = vmul.f32 -1.442695, %v3025_v11 }
 0x686   :  { %v8544_v29 = vpop.f32.mrf.mxu1  ;;  %v2882_v19 = vpop.f32.mrf.mxu0 }
 0x687   :  { %v7623_v18 = vmul.f32 -1.442695, %v3012_v4  ;;  %v3026_v39 = vadd.f32 %v2882_v19, %v389_v8  ;;  %v14337_v4 = vld [vmem:[#allocation118_spill] sm:$0xff] }
 0x688   :  { %v846_v1 = vadd.f32 %v14337_v4, %v14308_v43 }
 0x689   :  { %9487 = vpow2.f32 %v7623_v18  ;;  %v7625_v7 = vmul.f32 -1.442695, %v3026_v39  ;;  %v3039_v18 = vadd.f32 %v11673_v24, %v2919_v10  ;;  %v14338_v39 = vld [vmem:[#allocation123_spill] sm:$0xff]  ;;  %v3040_v10 = vadd.f32 %v11673_v24, %v2922_v62 }
 0x68a   :  { %9489 = vpow2.f32 %v7624_v35  ;;  %v850_v35 = vadd.f32 %v14338_v39, %v14308_v43 }
 0x68b   :  { %9491 = vpow2.f32 %v7625_v7 }
 0x692   :  { %v9486_v13 = vpop.eup %9485 }
 0x693   :  { %v3019_v54 = vadd.f32 1.0, %v9486_v13 }
 0x695   :  { %9493 = vrcp.f32 %v3019_v54  ;;  %v14339_v54 = vld [vmem:[#allocation120_spill] sm:$0xff] }
 0x696   :  { %v9488_v0 = vpop.eup %9487 }
 0x697   :  { %v3020_v14 = vadd.f32 1.0, %v9488_v0  ;;  %v9490_v28 = vpop.eup %9489 }
 0x698   :  { %v9492_v29 = vpop.eup %9491  ;;  %v3033_v6 = vadd.f32 1.0, %v9490_v28 }
 0x699   :  { %9495 = vrcp.f32 %v3020_v14  ;;  %v3034_v19 = vadd.f32 1.0, %v9492_v29  ;;  %v848_v14 = vadd.f32 %v14339_v54, %v11210_v40  ;;  %v14342_v54 = vld [vmem:[#allocation42_spill] sm:$0xff] }
 0x69a   :  { %9497 = vrcp.f32 %v3033_v6 }
 0x6a0   :  { %v2961_v27 = vpop.f32.mrf.mxu0  ;;  %v3004_v47 = vpop.f32.mrf.mxu1 }
 0x6a1   :  { %v3055_v11 = vadd.f32 %v2961_v27, %v846_v1 }
 0x6a2   :  { %v9494_v59 = vpop.eup %9493  ;;  %v2963_v8 = vpop.f32.mrf.mxu0 }
 0x6a3   :  { %v8563_v7 = vpop.f32.mrf.mxu1  ;;  %v3041_v0 = vmul.f32 %v9494_v59, %v3039_v18  ;;  %v7626_v13 = vmul.f32 -1.442695, %v3055_v11  ;;  %v3069_v39 = vadd.f32 %v2963_v8, %v848_v14  ;;  %v14341_v11 = vld [vmem:[#allocation124_spill] sm:$0xff] }
 0x6a4   :  { %v2965_v4 = vpop.f32.mrf.mxu0  ;;  %v852_v59 = vadd.f32 %v14341_v11, %v11210_v40 }
 0x6a5   :  { %v3007_v28 = vpop.f32.mrf.mxu1  ;;  %v3043_v30 = vadd.f32 %v3041_v0, %v14340_v26  ;;  %9499 = vpow2.f32 %v7626_v13  ;;  %v3056_v1 = vadd.f32 %v2965_v4, %v850_v35  ;;  %v7628_v26 = vmul.f32 -1.442695, %v3069_v39 }
 0x6a6   :  { %v9496_v29 = vpop.eup %9495  ;;  %9501 = vrcp.f32 %v3034_v19  ;;  %v2967_v6 = vpop.f32.mrf.mxu0 }
 0x6a7   :  { %v8564_v27 = vpop.f32.mrf.mxu1  ;;  %9503 = vtanh.f32 %v3043_v30  ;;  %v3042_v7 = vmul.f32 %v9496_v29, %v3040_v10  ;;  %v7627_v18 = vmul.f32 -1.442695, %v3056_v1  ;;  %v3070_v32 = vadd.f32 %v2967_v6, %v852_v59  ;;  %v9498_v62 = vpop.eup %9497 }
 0x6a8   :  { %v3047_v0 = vsub.f32 1.0, %v9498_v62  ;;  %v3051_v14 = vmul.f32 %v9498_v62, %v11834_v46  ;;  %v3083_v46 = vadd.f32 %v11702_v2, %v3004_v47  ;;  %v3084_v47 = vadd.f32 %v11702_v2, %v3007_v28 }
 0x6a9   :  { %v3044_v43 = vadd.f32 %v3042_v7, %v14342_v54  ;;  %9505 = vpow2.f32 %v7627_v18  ;;  %v7629_v24 = vmul.f32 -1.442695, %v3070_v32 }
 0x6ab   :  { %9507 = vtanh.f32 %v3044_v43 }
 0x6ac   :  { %9509 = vpow2.f32 %v7628_v26  ;;  %v14344_v26 = vld [vmem:[#allocation135_spill] sm:$0xff] }
 0x6ad   :  { %9511 = vpow2.f32 %v7629_v24 }
 0x6b2   :  { %v9500_v35 = vpop.eup %9499 }
 0x6b3   :  { %v9502_v19 = vpop.eup %9501  ;;  %v3063_v30 = vadd.f32 1.0, %v9500_v35  ;;  %v14345_v35 = vld [vmem:[#allocation138_spill] sm:$0xff] }
 0x6b4   :  { %v9504_v8 = vpop.eup %9503  ;;  %v3048_v1 = vsub.f32 1.0, %v9502_v19  ;;  %v3052_v27 = vmul.f32 %v9502_v19, %v11837_v31  ;;  %v990_v19 = vadd.f32 %v14345_v35, %v14285_v15  ;;  %v14361_v35 = vld [vmem:[#allocation32_spill] sm:$0xff] }
 0x6b5   :  { %9513 = vrcp.f32 %v3063_v30  ;;  %v3049_v13 = vmul.f32 %v9504_v8, %v3047_v0 }
 0x6b6   :  { %v9506_v4 = vpop.eup %9505 }
 0x6b7   :  { %v3064_v10 = vadd.f32 1.0, %v9506_v4  ;;  %v12032_v29 = vadd.f32 %v3051_v14, %v3049_v13 }
 0x6b8   :  { %v9508_v43 = vpop.eup %9507 }
 0x6b9   :  { %9515 = vrcp.f32 %v3064_v10  ;;  %v3050_v32 = vmul.f32 %v9508_v43, %v3048_v1  ;;  %v9510_v39 = vpop.eup %9509 }
 0x6ba   :  { %v9512_v6 = vpop.eup %9511  ;;  %v3077_v11 = vadd.f32 1.0, %v9510_v39 }
 0x6bb   :  { %v12035_v7 = vadd.f32 %v3052_v27, %v3050_v32  ;;  %v3078_v59 = vadd.f32 1.0, %v9512_v6  ;;  %v14350_v6 = vld [vmem:[#allocation19_spill] sm:$0xff] }
 0x6bc   :  { %9517 = vrcp.f32 %v3077_v11  ;;  %v14351_v11 = vld [vmem:[#allocation162_spill] sm:$0xff] }
 0x6bd   :  { %v12039_v18 = vpack.c.bf16 %v12035_v7, %v12032_v29  ;;  %9519 = vrcp.f32 %v3078_v59  ;;  %v14355_v59 = vld [vmem:[#allocation147_spill] sm:$0xff] }
 0x6bf   :  { %14343 = vst [vmem:[#allocation39_spill] sm:$0xff] %v12039_v18  ;;  %3153 = vmatmul.mubr.bf16.vlgmr.msra.gmra.mxu0 %v12039_v18  ;;  %8582 = vmatmul.mubr.bf16.vlgmr.msra.gmra.mxu1 %v12039_v18 }
 0x6c0   :  { %3206 = vmatpush1.bf16.msra.mxu0 %v11845_v23  ;;  %8586 = vmatpush3.bf16.msra.mxu1 %v11848_v17 }
 0x6c1   :  { %3207 = vmatprep.subr.bf16.mxu0 %v11853_v50  ;;  %8587 = vmatprep.subr.bf16.mxu1 %v14192_v61 }
 0x6c2   :  { %v9514_v31 = vpop.eup %9513  ;;  %3237 = vmatprep.mubr.bf16.mxu0 %v14193_v55  ;;  %8601 = vmatprep.mubr.msk.bf16.mxu1 %vm10307_vm1, %v14192_v61 }
 0x6c3   :  { %v3085_v54 = vmul.f32 %v9514_v31, %v3083_v46  ;;  %v14352_v46 = vld [vmem:[#allocation142_spill] sm:$0xff] }
 0x6c4   :  { %3208 = vmatpush1.bf16.msra.mxu0 %v11860_v37  ;;  %8588 = vmatpush3.bf16.msra.mxu1 %v11863_v41  ;;  %v14353_v31 = vld [vmem:[#allocation22_spill] sm:$0xff] }
 0x6c5   :  { %v3087_v24 = vadd.f32 %v3085_v54, %v14344_v26  ;;  %3209 = vmatprep.subr.bf16.mxu0 %v11869_v53  ;;  %8589 = vmatprep.subr.bf16.mxu1 %v14192_v61  ;;  %v14356_v54 = vld [vmem:[#allocation163_spill] sm:$0xff] }
 0x6c6   :  { %v9516_v62 = vpop.eup %9515  ;;  %v14357_v26 = vld [vmem:[#allocation23_spill] sm:$0xff] }
 0x6c7   :  { %9521 = vtanh.f32 %v3087_v24  ;;  %v3086_v30 = vmul.f32 %v9516_v62, %v3084_v47  ;;  %v14358_v24 = vld [vmem:[#allocation144_spill] sm:$0xff]  ;;  %v14360_v62 = vld [vmem:[#allocation13_spill] sm:$0xff] }
 0x6c8   :  { %3210 = vmatpush1.bf16.msra.mxu0 %v11873_v9  ;;  %8590 = vmatpush3.bf16.msra.mxu1 %v11876_v56  ;;  %v14359_v47 = vld [vmem:[#allocation12_spill] sm:$0xff] }
 0x6c9   :  { %v3088_v0 = vadd.f32 %v3086_v30, %v990_v19  ;;  %3211 = vmatprep.subr.bf16.mxu0 %v11880_v25  ;;  %8591 = vmatprep.subr.bf16.mxu1 %v14192_v61  ;;  %v9518_v2 = vpop.eup %9517  ;;  %v14362_v19 = vld [vmem:[#allocation14_spill] sm:$0xff]  ;;  %v14363_v30 = vld [vmem:[#allocation15_spill] sm:$0xff] }
 0x6ca   :  { %v9520_v28 = vpop.eup %9519  ;;  %v3091_v8 = vsub.f32 1.0, %v9518_v2  ;;  %v3095_v4 = vmul.f32 %v9518_v2, %v11915_v36  ;;  %v14365_v2 = vld [vmem:[#allocation36_spill] sm:$0xff] }
 0x6cb   :  { %9523 = vtanh.f32 %v3088_v0  ;;  %v3092_v10 = vsub.f32 1.0, %v9520_v28  ;;  %v3096_v27 = vmul.f32 %v9520_v28, %v11928_v33  ;;  %v14348_v33 = vld [vmem:[#allocation18_spill] sm:$0xff]  ;;  %v14364_v0 = vld [vmem:[#allocation35_spill] sm:$0xff] }
 0x6cc   :  { %3212 = vmatpush1.bf16.msra.mxu0 %v11884_v51  ;;  %8592 = vmatpush3.bf16.msra.mxu1 %v11887_v52  ;;  %v14366_v28 = vld [vmem:[#allocation151_spill] sm:$0xff] }
 0x6cd   :  { %3213 = vmatprep.subr.bf16.mxu0 %v11890_v20  ;;  %8593 = vmatprep.subr.bf16.mxu1 %v14192_v61 }
 0x6d0   :  { %3214 = vmatpush1.bf16.msra.mxu0 %v11894_v60  ;;  %8594 = vmatpush3.bf16.msra.mxu1 %v11897_v12 }
 0x6d1   :  { %3215 = vmatprep.subr.bf16.mxu0 %v11900_v63  ;;  %8595 = vmatprep.subr.bf16.mxu1 %v14192_v61 }
 0x6d4   :  { %v9522_v13 = vpop.eup %9521  ;;  %3216 = vmatpush1.bf16.msra.mxu0 %v11904_v48  ;;  %8596 = vmatpush3.bf16.msra.mxu1 %v11907_v34 }
 0x6d5   :  { %3217 = vmatprep.subr.bf16.mxu0 %v11910_v45  ;;  %8597 = vmatprep.subr.bf16.mxu1 %v14192_v61  ;;  %v3093_v14 = vmul.f32 %v9522_v13, %v3091_v8  ;;  %v14367_v8 = vld [vmem:[#allocation60_spill] sm:$0xff] }
 0x6d6   :  { %v393_v13 = vadd.f32 %v14367_v8, %v14366_v28 }
 0x6d7   :  { %v12076_v1 = vadd.f32 %v3095_v4, %v3093_v14 }
 0x6d8   :  { %v9524_v43 = vpop.eup %9523  ;;  %3218 = vmatpush1.bf16.msra.mxu0 %v11917_v58  ;;  %8598 = vmatpush3.bf16.msra.mxu1 %v11920_v44 }
 0x6d9   :  { %3219 = vmatprep.subr.bf16.mxu0 %v11923_v38  ;;  %8599 = vmatprep.subr.bf16.mxu1 %v14192_v61  ;;  %v3094_v32 = vmul.f32 %v9524_v43, %v3092_v10 }
 0x6db   :  { %v12083_v39 = vadd.f32 %v3096_v27, %v3094_v32  ;;  %v14368_v27 = vld [vmem:[#allocation63_spill] sm:$0xff] }
 0x6dc   :  { %3220 = vmatpush1.bf16.msra.mxu0 %v11930_v21  ;;  %8600 = vmatpush3.bf16.msra.mxu1 %v11933_v16 }
 0x6dd   :  { %v12089_v36 = vpack.c.bf16 %v12083_v39, %v12076_v1  ;;  %3396 = vmatprep.subr.bf16.mxu0 %v11751_v57  ;;  %8605 = vmatprep.subr.bf16.mxu1 %v14192_v61  ;;  %v14347_v57 = vld [vmem:[#allocation145_spill] sm:$0xff] }
 0x6df   :  { %14346 = vst [vmem:[#allocation37_spill] sm:$0xff] %v12089_v36  ;;  %3238 = vmatmul.mubr.bf16.vlgmr.msra.gmra.mxu0 %v12089_v36  ;;  %8602 = vmatmul.mubr.bf16.vlgmr.msra.gmra.mxu1 %v12089_v36 }
 0x6e0   :  { %3397 = vmatpush1.bf16.msra.mxu0 %v11944_v42  ;;  %8606 = vmatpush3.bf16.msra.mxu1 %v11758_v3  ;;  %v14349_v3 = vld [vmem:[#allocation33_spill] sm:$0xff] }
 0x6e1   :  { %3398 = vmatprep.subr.bf16.mxu0 %v11948_v22  ;;  %8607 = vmatprep.subr.bf16.mxu1 %v14192_v61 }
 0x6e2   :  { %3428 = vmatprep.mubr.bf16.mxu0 %v14193_v55  ;;  %8621 = vmatprep.mubr.msk.bf16.mxu1 %vm10307_vm1, %v14192_v61 }
 0x6e4   :  { %3399 = vmatpush1.bf16.msra.mxu0 %v11955_v49  ;;  %8608 = vmatpush3.bf16.msra.mxu1 %v11767_v5  ;;  %v14354_v5 = vld [vmem:[#allocation25_spill] sm:$0xff] }
 0x6e5   :  { %3400 = vmatprep.subr.bf16.mxu0 %v14347_v57  ;;  %8609 = vmatprep.subr.bf16.mxu1 %v14192_v61 }
 0x6e8   :  { %3401 = vmatpush1.bf16.msra.mxu0 %v14348_v33  ;;  %8610 = vmatpush3.bf16.msra.mxu1 %v14349_v3  ;;  %v397_v3 = vadd.f32 %v14368_v27, %v14366_v28 }
 0x6e9   :  { %3402 = vmatprep.subr.bf16.mxu0 %v14350_v6  ;;  %8611 = vmatprep.subr.bf16.mxu1 %v14192_v61 }
 0x6ec   :  { %3403 = vmatpush1.bf16.msra.mxu0 %v14351_v11  ;;  %8612 = vmatpush3.bf16.msra.mxu1 %v14352_v46 }
 0x6ed   :  { %3404 = vmatprep.subr.bf16.mxu0 %v14353_v31  ;;  %8613 = vmatprep.subr.bf16.mxu1 %v14192_v61 }
 0x6f0   :  { %3405 = vmatpush1.bf16.msra.mxu0 %v14354_v5  ;;  %8614 = vmatpush3.bf16.msra.mxu1 %v14355_v59 }
 0x6f1   :  { %3406 = vmatprep.subr.bf16.mxu0 %v14356_v54  ;;  %8615 = vmatprep.subr.bf16.mxu1 %v14192_v61 }
 0x6f4   :  { %3407 = vmatpush1.bf16.msra.mxu0 %v14357_v26  ;;  %8616 = vmatpush3.bf16.msra.mxu1 %v14358_v24  ;;  %v14376_v26 = vld [vmem:[#allocation48_spill] sm:$0xff] }
 0x6f5   :  { %3408 = vmatprep.subr.bf16.mxu0 %v14359_v47  ;;  %8617 = vmatprep.subr.bf16.mxu1 %v14192_v61 }
 0x6f8   :  { %3409 = vmatpush1.bf16.msra.mxu0 %v14360_v62  ;;  %8618 = vmatpush3.bf16.msra.mxu1 %v14361_v35  ;;  %v14369_v35 = vld [vmem:[#allocation158_spill] sm:$0xff] }
 0x6f9   :  { %3410 = vmatprep.subr.bf16.mxu0 %v14362_v19  ;;  %8619 = vmatprep.subr.bf16.mxu1 %v14192_v61  ;;  %v14371_v19 = vld [vmem:[#allocation65_spill] sm:$0xff] }
 0x6fc   :  { %3411 = vmatpush1.bf16.msra.mxu0 %v14363_v30  ;;  %8620 = vmatpush3.bf16.msra.mxu1 %v14364_v0  ;;  %v14370_v0 = vld [vmem:[#allocation61_spill] sm:$0xff] }
 0x6fd   :  { %3481 = vmatprep.subr.bf16.mxu0 %v14365_v2  ;;  %8625 = vmatprep.subr.bf16.mxu1 %v14192_v61  ;;  %v395_v36 = vadd.f32 %v14370_v0, %v14369_v35 }
 0x77f   :  { %v3154_v14 = vpop.f32.mrf.mxu0  ;;  %v3197_v4 = vpop.f32.mrf.mxu1 }
 0x780   :  { %v3289_v10 = vadd.f32 %v3154_v14, %v393_v13  ;;  %v399_v13 = vadd.f32 %v14371_v19, %v14369_v35 }
 0x781   :  { %v3156_v43 = vpop.f32.mrf.mxu0  ;;  %v8583_v32 = vpop.f32.mrf.mxu1 }
 0x782   :  { %v7630_v46 = vmul.f32 -1.442695, %v3289_v10  ;;  %v3303_v2 = vadd.f32 %v3156_v43, %v395_v36  ;;  %v14372_v36 = vld [vmem:[#allocation159_spill] sm:$0xff] }
 0x783   :  { %v3158_v59 = vpop.f32.mrf.mxu0  ;;  %v3200_v24 = vpop.f32.mrf.mxu1 }
 0x784   :  { %9525 = vpow2.f32 %v7630_v46  ;;  %v3290_v18 = vadd.f32 %v3158_v59, %v397_v3  ;;  %v7632_v32 = vmul.f32 -1.442695, %v3303_v2 }
 0x785   :  { %v8584_v15 = vpop.f32.mrf.mxu1  ;;  %v3160_v8 = vpop.f32.mrf.mxu0 }
 0x786   :  { %v7631_v30 = vmul.f32 -1.442695, %v3290_v18  ;;  %v3304_v14 = vadd.f32 %v3160_v8, %v399_v13  ;;  %v14373_v18 = vld [vmem:[#allocation110_spill] sm:$0xff] }
 0x787   :  { %v836_v43 = vadd.f32 %v14373_v18, %v14372_v36 }
 0x788   :  { %9527 = vpow2.f32 %v7631_v30  ;;  %v7633_v62 = vmul.f32 -1.442695, %v3304_v14  ;;  %v12145_v30 = vld [vmem:[%s13860_s4] ss:$0 sm:$0xff] }
 0x789   :  { %9529 = vpow2.f32 %v7632_v32  ;;  %v14374_v32 = vld [vmem:[#allocation115_spill] sm:$0xff] }
 0x78a   :  { %9531 = vpow2.f32 %v7633_v62  ;;  %v3317_v62 = vadd.f32 %v12145_v30, %v3197_v4  ;;  %v3318_v4 = vadd.f32 %v12145_v30, %v3200_v24 }
 0x791   :  { %v9526_v10 = vpop.eup %9525 }
 0x792   :  { %v3297_v27 = vadd.f32 1.0, %v9526_v10  ;;  %v840_v10 = vadd.f32 %v14374_v32, %v14372_v36 }
 0x794   :  { %9533 = vrcp.f32 %v3297_v27 }
 0x795   :  { %v9528_v28 = vpop.eup %9527 }
 0x796   :  { %v3298_v0 = vadd.f32 1.0, %v9528_v28  ;;  %v9530_v3 = vpop.eup %9529 }
 0x797   :  { %v9532_v15 = vpop.eup %9531  ;;  %v3311_v46 = vadd.f32 1.0, %v9530_v3  ;;  %v14375_v3 = vld [vmem:[#allocation112_spill] sm:$0xff] }
 0x798   :  { %9535 = vrcp.f32 %v3298_v0  ;;  %v3312_v28 = vadd.f32 1.0, %v9532_v15  ;;  %v838_v18 = vadd.f32 %v14375_v3, %v11210_v40  ;;  %v14379_v3 = vld [vmem:[#allocation116_spill] sm:$0xff] }
 0x799   :  { %9537 = vrcp.f32 %v3311_v46  ;;  %v842_v36 = vadd.f32 %v14379_v3, %v11210_v40 }
 0x79f   :  { %v3239_v59 = vpop.f32.mrf.mxu0  ;;  %v12140_v19 = vpop.f32.mrf.mxu1 }
 0x7a0   :  { %v3333_v2 = vadd.f32 %v3239_v59, %v836_v43  ;;  %v14377_v59 = vld [vmem:[#allocation21_spill] sm:$0xff] }
 0x7a1   :  { %v9534_v8 = vpop.eup %9533  ;;  %v3241_v13 = vpop.f32.mrf.mxu0 }
 0x7a2   :  { %v8603_v14 = vpop.f32.mrf.mxu1  ;;  %v3319_v27 = vmul.f32 %v9534_v8, %v3317_v62  ;;  %v7634_v0 = vmul.f32 -1.442695, %v3333_v2  ;;  %v3347_v62 = vadd.f32 %v3241_v13, %v838_v18 }
 0x7a3   :  { %v3243_v35 = vpop.f32.mrf.mxu0  ;;  %v14378_v14 = vld [vmem:[#allocation51_spill] sm:$0xff] }
 0x7a4   :  { %v3285_v47 = vpop.f32.mrf.mxu1  ;;  %v3321_v54 = vadd.f32 %v3319_v27, %v14376_v26  ;;  %9539 = vpow2.f32 %v7634_v0  ;;  %v3334_v43 = vadd.f32 %v3243_v35, %v840_v10  ;;  %v537_v5 = vadd.f32 %v14378_v14, %v14377_v59 }
 0x7a5   :  { %v9536_v15 = vpop.eup %9535  ;;  %9541 = vrcp.f32 %v3312_v28  ;;  %v3245_v8 = vpop.f32.mrf.mxu0  ;;  %v7636_v24 = vmul.f32 -1.442695, %v3347_v62 }
 0x7a6   :  { %v8604_v32 = vpop.f32.mrf.mxu1  ;;  %9543 = vtanh.f32 %v3321_v54  ;;  %v3320_v46 = vmul.f32 %v9536_v15, %v3318_v4  ;;  %v7635_v2 = vmul.f32 -1.442695, %v3334_v43  ;;  %v3348_v26 = vadd.f32 %v3245_v8, %v842_v36  ;;  %v9538_v10 = vpop.eup %9537 }
 0x7a7   :  { %v3325_v54 = vsub.f32 1.0, %v9538_v10  ;;  %v3329_v18 = vmul.f32 %v9538_v10, %v12032_v29  ;;  %v12175_v29 = vld [vmem:[%s13860_s4 + $0x1] ss:$0 sm:$0xff] }
 0x7a8   :  { %v3322_v31 = vadd.f32 %v3320_v46, %v537_v5  ;;  %9545 = vpow2.f32 %v7635_v2  ;;  %v7637_v35 = vmul.f32 -1.442695, %v3348_v26 }
 0x7aa   :  { %9547 = vtanh.f32 %v3322_v31 }
 0x7ab   :  { %9549 = vpow2.f32 %v7636_v24 }
 0x7ac   :  { %9551 = vpow2.f32 %v7637_v35 }
 0x7b1   :  { %v9540_v27 = vpop.eup %9539 }
 0x7b2   :  { %v9542_v28 = vpop.eup %9541  ;;  %v3341_v0 = vadd.f32 1.0, %v9540_v27  ;;  %v14382_v27 = vld [vmem:[#allocation129_spill] sm:$0xff] }
 0x7b3   :  { %v9544_v4 = vpop.eup %9543  ;;  %v3326_v5 = vsub.f32 1.0, %v9542_v28  ;;  %v3330_v32 = vmul.f32 %v9542_v28, %v12035_v7  ;;  %v3361_v7 = vadd.f32 %v12175_v29, %v12140_v19  ;;  %v3362_v19 = vadd.f32 %v12175_v29, %v3285_v47  ;;  %v14396_v47 = vld [vmem:[#allocation15_spill] sm:$0xff]  ;;  %v12275_v28 = vld [vmem:[#allocation5 + $0x8] ss:$12 sps:$4 sm:$0xff]  }
 0x7b4   :  { %9553 = vrcp.f32 %v3341_v0  ;;  %v3327_v13 = vmul.f32 %v9544_v4, %v3325_v54  ;;  %14397 = vst [vmem:[#allocation143_spill] sm:$0xff] %v12275_v28  ;;  %v14398_v0 = vld [vmem:[#allocation36_spill] sm:$0xff]  ;;  %v14399_v54 = vld [vmem:[#allocation151_spill] sm:$0xff] }
 0x7b5   :  { %v9546_v43 = vpop.eup %9545  ;;  %v14400_v4 = vld [vmem:[#allocation68_spill] sm:$0xff] }
 0x7b6   :  { %v3342_v15 = vadd.f32 1.0, %v9546_v43  ;;  %v12159_v14 = vadd.f32 %v3329_v18, %v3327_v13  ;;  %v403_v13 = vadd.f32 %v14400_v4, %v14399_v54 }
 0x7b7   :  { %v9548_v31 = vpop.eup %9547 }
 0x7b8   :  { %9555 = vrcp.f32 %v3342_v15  ;;  %v3328_v36 = vmul.f32 %v9548_v31, %v3326_v5  ;;  %v9550_v62 = vpop.eup %9549 }
 0x7b9   :  { %v9552_v8 = vpop.eup %9551  ;;  %v3355_v3 = vadd.f32 1.0, %v9550_v62 }
 0x7ba   :  { %v12162_v46 = vadd.f32 %v3330_v32, %v3328_v36  ;;  %v3356_v24 = vadd.f32 1.0, %v9552_v8  ;;  %v14401_v36 = vld [vmem:[#allocation72_spill] sm:$0xff] }
 0x7bb   :  { %9557 = vrcp.f32 %v3355_v3  ;;  %v407_v32 = vadd.f32 %v14401_v36, %v14399_v54 }
 0x7bc   :  { %v12166_v2 = vpack.c.bf16 %v12162_v46, %v12159_v14  ;;  %9559 = vrcp.f32 %v3356_v24 }
 0x7be   :  { %14380 = vst [vmem:[#allocation41_spill] sm:$0xff] %v12166_v2  ;;  %3429 = vmatmul.mubr.bf16.vlgmr.msra.gmra.mxu0 %v12166_v2  ;;  %8622 = vmatmul.mubr.bf16.vlgmr.msra.gmra.mxu1 %v12166_v2  ;;  %v12479_v2 = vld [vmem:[#allocation5 + $0x16c] ss:$12 sps:$4 sm:$0xff]  }
 0x7bf   :  { %3482 = vmatpush1.bf16.msra.mxu0 %v11845_v23  ;;  %8626 = vmatpush3.bf16.msra.mxu1 %v11848_v17  ;;  %v14381_v17 = vld [vmem:[#allocation125_spill] sm:$0xff]  ;;  %14429 = vst [vmem:[#allocation131_spill] sm:$0xff] %v12479_v2 }
 0x7c0   :  { %3483 = vmatprep.subr.bf16.mxu0 %v11853_v50  ;;  %8627 = vmatprep.subr.bf16.mxu1 %v14192_v61 }
 0x7c1   :  { %v9554_v26 = vpop.eup %9553  ;;  %3513 = vmatprep.mubr.bf16.mxu0 %v14193_v55  ;;  %8641 = vmatprep.mubr.msk.bf16.mxu1 %vm10307_vm1, %v14192_v61 }
 0x7c2   :  { %v3363_v23 = vmul.f32 %v9554_v26, %v3361_v7  ;;  %v14402_v7 = vld [vmem:[#allocation158_spill] sm:$0xff] }
 0x7c3   :  { %3484 = vmatpush1.bf16.msra.mxu0 %v11860_v37  ;;  %8628 = vmatpush3.bf16.msra.mxu1 %v11863_v41  ;;  %v14403_v26 = vld [vmem:[#allocation70_spill] sm:$0xff] }
 0x7c4   :  { %v3365_v35 = vadd.f32 %v3363_v23, %v14381_v17  ;;  %3485 = vmatprep.subr.bf16.mxu0 %v11869_v53  ;;  %8629 = vmatprep.subr.bf16.mxu1 %v14192_v61  ;;  %v405_v24 = vadd.f32 %v14403_v26, %v14402_v7 }
 0x7c5   :  { %v9556_v50 = vpop.eup %9555 }
 0x7c6   :  { %9561 = vtanh.f32 %v3365_v35  ;;  %v3364_v10 = vmul.f32 %v9556_v50, %v3362_v19 }
 0x7c7   :  { %3486 = vmatpush1.bf16.msra.mxu0 %v11873_v9  ;;  %8630 = vmatpush3.bf16.msra.mxu1 %v11876_v56 }
 0x7c8   :  { %v3366_v37 = vadd.f32 %v3364_v10, %v14382_v27  ;;  %3487 = vmatprep.subr.bf16.mxu0 %v11880_v25  ;;  %8631 = vmatprep.subr.bf16.mxu1 %v14192_v61  ;;  %v9558_v41 = vpop.eup %9557  ;;  %v14404_v10 = vld [vmem:[#allocation74_spill] sm:$0xff] }
 0x7c9   :  { %v9560_v53 = vpop.eup %9559  ;;  %v3369_v9 = vsub.f32 1.0, %v9558_v41  ;;  %v409_v27 = vadd.f32 %v14404_v10, %v14402_v7 }
 0x7ca   :  { %9563 = vtanh.f32 %v3366_v37 }
 0x7cb   :  { %3488 = vmatpush1.bf16.msra.mxu0 %v11884_v51  ;;  %8632 = vmatpush3.bf16.msra.mxu1 %v11887_v52  ;;  %v3373_v51 = vmul.f32 %v9558_v41, %v12076_v1  ;;  %v3370_v52 = vsub.f32 1.0, %v9560_v53  ;;  %v14390_v1 = vld [vmem:[#allocation23_spill] sm:$0xff] }
 0x7cc   :  { %3489 = vmatprep.subr.bf16.mxu0 %v11890_v20  ;;  %8633 = vmatprep.subr.bf16.mxu1 %v14192_v61 }
 0x7cf   :  { %3490 = vmatpush1.bf16.msra.mxu0 %v11894_v60  ;;  %8634 = vmatpush3.bf16.msra.mxu1 %v11897_v12 }
 0x7d0   :  { %3491 = vmatprep.subr.bf16.mxu0 %v11900_v63  ;;  %8635 = vmatprep.subr.bf16.mxu1 %v14192_v61  ;;  %v3374_v63 = vmul.f32 %v9560_v53, %v12083_v39  ;;  %v12263_v39 = vld [vmem:[#allocation5 + $0x38] ss:$12 sps:$4 sm:$0xff]  }
 0x7d1   :  { %14391 = vst [vmem:[#allocation140_spill] sm:$0xff] %v12263_v39 }
 0x7d3   :  { %v9562_v56 = vpop.eup %9561  ;;  %3492 = vmatpush1.bf16.msra.mxu0 %v11904_v48  ;;  %8636 = vmatpush3.bf16.msra.mxu1 %v11907_v34 }
 0x7d4   :  { %3493 = vmatprep.subr.bf16.mxu0 %v11910_v45  ;;  %8637 = vmatprep.subr.bf16.mxu1 %v14192_v61  ;;  %v3371_v25 = vmul.f32 %v9562_v56, %v3369_v9  ;;  %v12223_v45 = vld [vmem:[#allocation5 + $0xac] ss:$12 sps:$4 sm:$0xff]  }
 0x7d6   :  { %v12208_v20 = vadd.f32 %v3373_v51, %v3371_v25 }
 0x7d7   :  { %v9564_v60 = vpop.eup %9563  ;;  %3494 = vmatpush1.bf16.msra.mxu0 %v11917_v58  ;;  %8638 = vmatpush3.bf16.msra.mxu1 %v11920_v44  ;;  %v12230_v58 = vld [vmem:[#allocation5 + $0xb0] ss:$12 sps:$4 sm:$0xff]   ;;  %v12239_v44 = vld [vmem:[#allocation5 + $0x98] ss:$12 sps:$4 sm:$0xff]  }
 0x7d8   :  { %3495 = vmatprep.subr.bf16.mxu0 %v11923_v38  ;;  %8639 = vmatprep.subr.bf16.mxu1 %v14192_v61  ;;  %v3372_v12 = vmul.f32 %v9564_v60, %v3370_v52  ;;  %v12245_v38 = vld [vmem:[#allocation5 + $0x80] ss:$12 sps:$4 sm:$0xff]  }
 0x7d9   :  { %14384 = vst [vmem:[#allocation139_spill] sm:$0xff] %v12245_v38 }
 0x7da   :  { %v12215_v48 = vadd.f32 %v3374_v63, %v3372_v12  ;;  %v14405_v12 = vld [vmem:[#allocation159_spill] sm:$0xff]  ;;  %v14406_v63 = vld [vmem:[#allocation101_spill] sm:$0xff] }
 0x7db   :  { %3496 = vmatpush1.bf16.msra.mxu0 %v11930_v21  ;;  %8640 = vmatpush3.bf16.msra.mxu1 %v11933_v16  ;;  %v12251_v21 = vld [vmem:[#allocation5 + $0x68] ss:$12 sps:$4 sm:$0xff]  }
 0x7dc   :  { %v12221_v34 = vpack.c.bf16 %v12215_v48, %v12208_v20  ;;  %3672 = vmatprep.subr.bf16.mxu0 %v12223_v45  ;;  %8645 = vmatprep.subr.bf16.mxu1 %v14192_v61  ;;  %14385 = vst [vmem:[#allocation136_spill] sm:$0xff] %v12251_v21  ;;  %v14386_v16 = vld [vmem:[#allocation22_spill] sm:$0xff] }
 0x7de   :  { %14383 = vst [vmem:[#allocation134_spill] sm:$0xff] %v12221_v34  ;;  %3514 = vmatmul.mubr.bf16.vlgmr.msra.gmra.mxu0 %v12221_v34  ;;  %8642 = vmatmul.mubr.bf16.vlgmr.msra.gmra.mxu1 %v12221_v34  ;;  %v14430_v34 = vld [vmem:[#allocation76_spill] sm:$0xff] }
 0x7df   :  { %3673 = vmatpush1.bf16.msra.mxu0 %v11944_v42  ;;  %8646 = vmatpush3.bf16.msra.mxu1 %v12230_v58  ;;  %v14387_v42 = vld [vmem:[#allocation25_spill] sm:$0xff] }
 0x7e0   :  { %3674 = vmatprep.subr.bf16.mxu0 %v11948_v22  ;;  %8647 = vmatprep.subr.bf16.mxu1 %v14192_v61  ;;  %v12257_v22 = vld [vmem:[#allocation5 + $0x50] ss:$12 sps:$4 sm:$0xff]  }
 0x7e1   :  { %3704 = vmatprep.mubr.bf16.mxu0 %v14193_v55  ;;  %8661 = vmatprep.mubr.msk.bf16.mxu1 %vm10307_vm1, %v14192_v61  ;;  %14388 = vst [vmem:[#allocation30_spill] sm:$0xff] %v12257_v22 }
 0x7e3   :  { %3675 = vmatpush1.bf16.msra.mxu0 %v11955_v49  ;;  %8648 = vmatpush3.bf16.msra.mxu1 %v12239_v44  ;;  %v14389_v49 = vld [vmem:[#allocation163_spill] sm:$0xff] }
 0x7e4   :  { %3676 = vmatprep.subr.bf16.mxu0 %v14347_v57  ;;  %8649 = vmatprep.subr.bf16.mxu1 %v14192_v61  ;;  %v14392_v57 = vld [vmem:[#allocation12_spill] sm:$0xff] }
 0x7e7   :  { %3677 = vmatpush1.bf16.msra.mxu0 %v14348_v33  ;;  %8650 = vmatpush3.bf16.msra.mxu1 %v12245_v38  ;;  %v14393_v33 = vld [vmem:[#allocation13_spill] sm:$0xff] }
 0x7e8   :  { %3678 = vmatprep.subr.bf16.mxu0 %v14350_v6  ;;  %8651 = vmatprep.subr.bf16.mxu1 %v14192_v61  ;;  %v12269_v6 = vld [vmem:[#allocation5 + $0x20] ss:$12 sps:$4 sm:$0xff]  }
 0x7e9   :  { %14394 = vst [vmem:[#allocation34_spill] sm:$0xff] %v12269_v6 }
 0x7eb   :  { %3679 = vmatpush1.bf16.msra.mxu0 %v14351_v11  ;;  %8652 = vmatpush3.bf16.msra.mxu1 %v12251_v21  ;;  %v14395_v11 = vld [vmem:[#allocation14_spill] sm:$0xff] }
 0x7ec   :  { %3680 = vmatprep.subr.bf16.mxu0 %v14386_v16  ;;  %8653 = vmatprep.subr.bf16.mxu1 %v14192_v61  ;;  %v826_v16 = vadd.f32 %v14406_v63, %v14405_v12 }
 0x7ef   :  { %3681 = vmatpush1.bf16.msra.mxu0 %v14387_v42  ;;  %8654 = vmatpush3.bf16.msra.mxu1 %v12257_v22 }
 0x7f0   :  { %3682 = vmatprep.subr.bf16.mxu0 %v14389_v49  ;;  %8655 = vmatprep.subr.bf16.mxu1 %v14192_v61 }
 0x7f3   :  { %3683 = vmatpush1.bf16.msra.mxu0 %v14390_v1  ;;  %8656 = vmatpush3.bf16.msra.mxu1 %v12263_v39 }
 0x7f4   :  { %3684 = vmatprep.subr.bf16.mxu0 %v14392_v57  ;;  %8657 = vmatprep.subr.bf16.mxu1 %v14192_v61 }
 0x7f7   :  { %3685 = vmatpush1.bf16.msra.mxu0 %v14393_v33  ;;  %8658 = vmatpush3.bf16.msra.mxu1 %v12269_v6 }
 0x7f8   :  { %3686 = vmatprep.subr.bf16.mxu0 %v14395_v11  ;;  %8659 = vmatprep.subr.bf16.mxu1 %v14192_v61 }
 0x7fb   :  { %3687 = vmatpush1.bf16.msra.mxu0 %v14396_v47  ;;  %8660 = vmatpush3.bf16.msra.mxu1 %v12275_v28 }
 0x7fc   :  { %3757 = vmatprep.subr.bf16.mxu0 %v14398_v0  ;;  %8665 = vmatprep.subr.bf16.mxu1 %v14192_v61 }
 0x87e   :  { %v3430_v18 = vpop.f32.mrf.mxu0  ;;  %v3473_v43 = vpop.f32.mrf.mxu1 }
 0x87f   :  { %v3565_v15 = vadd.f32 %v3430_v18, %v403_v13  ;;  %v3593_v57 = vadd.f32 %v12145_v30, %v3473_v43  ;;  %v14407_v13 = vld [vmem:[#allocation106_spill] sm:$0xff] }
 0x880   :  { %v3432_v5 = vpop.f32.mrf.mxu0  ;;  %v8623_v31 = vpop.f32.mrf.mxu1  ;;  %v830_v18 = vadd.f32 %v14407_v13, %v14405_v12 }
 0x881   :  { %v7638_v62 = vmul.f32 -1.442695, %v3565_v15  ;;  %v3579_v35 = vadd.f32 %v3432_v5, %v405_v24  ;;  %v14408_v31 = vld [vmem:[#allocation103_spill] sm:$0xff] }
 0x882   :  { %v3434_v8 = vpop.f32.mrf.mxu0  ;;  %v3476_v3 = vpop.f32.mrf.mxu1  ;;  %v828_v36 = vadd.f32 %v14408_v31, %v11210_v40 }
 0x883   :  { %9565 = vpow2.f32 %v7638_v62  ;;  %v3566_v23 = vadd.f32 %v3434_v8, %v407_v32  ;;  %v7640_v41 = vmul.f32 -1.442695, %v3579_v35  ;;  %v14409_v8 = vld [vmem:[#allocation46_spill] sm:$0xff]  ;;  %v3594_v43 = vadd.f32 %v12145_v30, %v3476_v3 }
 0x884   :  { %v8624_v17 = vpop.f32.mrf.mxu1  ;;  %v3436_v50 = vpop.f32.mrf.mxu0 }
 0x885   :  { %v7639_v19 = vmul.f32 -1.442695, %v3566_v23  ;;  %v3580_v37 = vadd.f32 %v3436_v50, %v409_v27  ;;  %v14410_v27 = vld [vmem:[#allocation108_spill] sm:$0xff] }
 0x887   :  { %9567 = vpow2.f32 %v7639_v19  ;;  %v7641_v53 = vmul.f32 -1.442695, %v3580_v37  ;;  %v832_v37 = vadd.f32 %v14410_v27, %v11210_v40  ;;  %v14414_v27 = vld [vmem:[#allocation105_spill] sm:$0xff] }
 0x888   :  { %9569 = vpow2.f32 %v7640_v41  ;;  %v14411_v41 = vld [vmem:[#allocation50_spill] sm:$0xff] }
 0x889   :  { %9571 = vpow2.f32 %v7641_v53 }
 0x890   :  { %v9566_v9 = vpop.eup %9565 }
 0x891   :  { %v3573_v56 = vadd.f32 1.0, %v9566_v9 }
 0x893   :  { %9573 = vrcp.f32 %v3573_v56 }
 0x894   :  { %v9568_v25 = vpop.eup %9567 }
 0x895   :  { %v3574_v51 = vadd.f32 1.0, %v9568_v25  ;;  %v9570_v52 = vpop.eup %9569 }
 0x896   :  { %v9572_v60 = vpop.eup %9571  ;;  %v3587_v42 = vadd.f32 1.0, %v9570_v52 }
 0x897   :  { %9575 = vrcp.f32 %v3574_v51  ;;  %v3588_v47 = vadd.f32 1.0, %v9572_v60 }
 0x898   :  { %9577 = vrcp.f32 %v3587_v42 }
 0x89e   :  { %v3515_v49 = vpop.f32.mrf.mxu0  ;;  %v12290_v1 = vpop.f32.mrf.mxu1 }
 0x89f   :  { %v3609_v33 = vadd.f32 %v3515_v49, %v826_v16 }
 0x8a0   :  { %v9574_v11 = vpop.eup %9573  ;;  %v3517_v0 = vpop.f32.mrf.mxu0 }
 0x8a1   :  { %v8643_v4 = vpop.f32.mrf.mxu1  ;;  %v3595_v15 = vmul.f32 %v9574_v11, %v3593_v57  ;;  %v7642_v5 = vmul.f32 -1.442695, %v3609_v33  ;;  %v3623_v19 = vadd.f32 %v3517_v0, %v828_v36 }
 0x8a2   :  { %v3519_v32 = vpop.f32.mrf.mxu0 }
 0x8a3   :  { %v12297_v62 = vpop.f32.mrf.mxu1  ;;  %v3597_v26 = vadd.f32 %v3595_v15, %v14409_v8  ;;  %9579 = vpow2.f32 %v7642_v5  ;;  %v3610_v24 = vadd.f32 %v3519_v32, %v830_v18  ;;  %v7644_v56 = vmul.f32 -1.442695, %v3623_v19  ;;  %v12319_v32 = vld [vmem:[#allocation5 + $0x170] ss:$12 sps:$4 sm:$0xff]   ;;  %v12324_v8 = vld [vmem:[#allocation5 + $0x154] ss:$12 sps:$4 sm:$0xff]  }
 0x8a4   :  { %v9576_v23 = vpop.eup %9575  ;;  %9581 = vrcp.f32 %v3588_v47  ;;  %v3521_v10 = vpop.f32.mrf.mxu0  ;;  %v3638_v19 = vadd.f32 %v12175_v29, %v12297_v62 }
 0x8a5   :  { %v8644_v17 = vpop.f32.mrf.mxu1  ;;  %9583 = vtanh.f32 %v3597_v26  ;;  %v3596_v35 = vmul.f32 %v9576_v23, %v3594_v43  ;;  %v7643_v50 = vmul.f32 -1.442695, %v3610_v24  ;;  %v3624_v9 = vadd.f32 %v3521_v10, %v832_v37  ;;  %v9578_v25 = vpop.eup %9577  ;;  %v12331_v23 = vld [vmem:[#allocation5 + $0x150] ss:$12 sps:$4 sm:$0xff]  }
 0x8a6   :  { %v3601_v63 = vsub.f32 1.0, %v9578_v25  ;;  %v3605_v49 = vmul.f32 %v9578_v25, %v12159_v14  ;;  %v12316_v14 = vld [vmem:[#allocation5 + $0x168] ss:$12 sps:$4 sm:$0xff]   ;;  %v14413_v17 = vld [vmem:[#allocation127_spill] sm:$0xff]  ;;  %v12356_v25 = vld [vmem:[#allocation5 + $0x120] ss:$12 sps:$4 sm:$0xff]  }
 0x8a7   :  { %v3598_v53 = vadd.f32 %v3596_v35, %v14411_v41  ;;  %9585 = vpow2.f32 %v7643_v50  ;;  %v7645_v3 = vmul.f32 -1.442695, %v3624_v9  ;;  %v12340_v50 = vld [vmem:[#allocation5 + $0x13c] ss:$12 sps:$4 sm:$0xff]   ;;  %v14415_v37 = vld [vmem:[#allocation130_spill] sm:$0xff] }
 0x8a8   :  { %v974_v41 = vadd.f32 %v14415_v37, %v14414_v27  ;;  %v12346_v9 = vld [vmem:[#allocation5 + $0x138] ss:$12 sps:$4 sm:$0xff]  }
 0x8a9   :  { %9587 = vtanh.f32 %v3598_v53 }
 0x8aa   :  { %9589 = vpow2.f32 %v7644_v56  ;;  %v12349_v56 = vld [vmem:[#allocation5 + $0x140] ss:$12 sps:$4 sm:$0xff]  }
 0x8ab   :  { %9591 = vpow2.f32 %v7645_v3  ;;  %v12352_v3 = vld [vmem:[#allocation5 + $0x124] ss:$12 sps:$4 sm:$0xff]  }
 0x8b0   :  { %v9580_v51 = vpop.eup %9579 }
 0x8b1   :  { %v9582_v52 = vpop.eup %9581  ;;  %v3617_v60 = vadd.f32 1.0, %v9580_v51  ;;  %v12359_v51 = vld [vmem:[#allocation5 + $0x128] ss:$12 sps:$4 sm:$0xff]  }
 0x8b2   :  { %v9584_v16 = vpop.eup %9583  ;;  %v3602_v11 = vsub.f32 1.0, %v9582_v52  ;;  %v3606_v13 = vmul.f32 %v9582_v52, %v12162_v46  ;;  %v3637_v46 = vadd.f32 %v12175_v29, %v12290_v1  ;;  %v12334_v1 = vld [vmem:[#allocation5 + $0x158] ss:$12 sps:$4 sm:$0xff]  }
 0x8b3   :  { %9593 = vrcp.f32 %v3617_v60  ;;  %v3603_v42 = vmul.f32 %v9584_v16, %v3601_v63  ;;  %v12362_v52 = vld [vmem:[#allocation5 + $0x10c] ss:$12 sps:$4 sm:$0xff]   ;;  %v12366_v63 = vld [vmem:[#allocation5 + $0x108] ss:$12 sps:$4 sm:$0xff]   ;;  %v12369_v16 = vld [vmem:[#allocation5 + $0x110] ss:$12 sps:$4 sm:$0xff]  }
 0x8b4   :  { %v9586_v57 = vpop.eup %9585 }
 0x8b5   :  { %v3618_v33 = vadd.f32 1.0, %v9586_v57  ;;  %v12305_v47 = vadd.f32 %v3605_v49, %v3603_v42  ;;  %v12372_v42 = vld [vmem:[#allocation5 + $0xf4] ss:$12 sps:$4 sm:$0xff]  }
 0x8b6   :  { %v9588_v0 = vpop.eup %9587 }
 0x8b7   :  { %9595 = vrcp.f32 %v3618_v33  ;;  %v3604_v4 = vmul.f32 %v9588_v0, %v3602_v11  ;;  %v9590_v15 = vpop.eup %9589  ;;  %v12376_v11 = vld [vmem:[#allocation5 + $0xf0] ss:$12 sps:$4 sm:$0xff]   ;;  %v12379_v0 = vld [vmem:[#allocation5 + $0xf8] ss:$12 sps:$4 sm:$0xff]  }
 0x8b8   :  { %v9592_v31 = vpop.eup %9591  ;;  %v3631_v36 = vadd.f32 1.0, %v9590_v15 }
 0x8b9   :  { %v12308_v18 = vadd.f32 %v3606_v13, %v3604_v4  ;;  %v3632_v43 = vadd.f32 1.0, %v9592_v31  ;;  %v12382_v4 = vld [vmem:[#allocation5 + $0xdc] ss:$12 sps:$4 sm:$0xff]  }
 0x8ba   :  { %9597 = vrcp.f32 %v3631_v36 }
 0x8bb   :  { %v12312_v5 = vpack.c.bf16 %v12308_v18, %v12305_v47  ;;  %9599 = vrcp.f32 %v3632_v43  ;;  %v12392_v43 = vld [vmem:[#allocation5 + $0xe0] ss:$12 sps:$4 sm:$0xff]  }
 0x8bd   :  { %14412 = vst [vmem:[#allocation146_spill] sm:$0xff] %v12312_v5  ;;  %3705 = vmatmul.mubr.bf16.vlgmr.msra.gmra.mxu0 %v12312_v5  ;;  %8662 = vmatmul.mubr.bf16.vlgmr.msra.gmra.mxu1 %v12312_v5  ;;  %v12475_v5 = vld [vmem:[#allocation5] ss:$12 sps:$4 sm:$0xff]  }
 0x8be   :  { %3758 = vmatpush1.bf16.msra.mxu0 %v12316_v14  ;;  %8666 = vmatpush3.bf16.msra.mxu1 %v12319_v32  ;;  %14428 = vst [vmem:[#allocation126_spill] sm:$0xff] %v12475_v5 }
 0x8bf   :  { %3759 = vmatprep.subr.bf16.mxu0 %v12324_v8  ;;  %8667 = vmatprep.subr.bf16.mxu1 %v14192_v61 }
 0x8c0   :  { %v9594_v26 = vpop.eup %9593  ;;  %3789 = vmatprep.mubr.bf16.mxu0 %v14193_v55  ;;  %8681 = vmatprep.mubr.msk.bf16.mxu1 %vm10307_vm1, %v14192_v61 }
 0x8c1   :  { %v3639_v24 = vmul.f32 %v9594_v26, %v3637_v46  ;;  %v12389_v26 = vld [vmem:[#allocation5 + $0xd8] ss:$12 sps:$4 sm:$0xff]  }
 0x8c2   :  { %3760 = vmatpush1.bf16.msra.mxu0 %v12331_v23  ;;  %8668 = vmatpush3.bf16.msra.mxu1 %v12334_v1 }
 0x8c3   :  { %v3641_v35 = vadd.f32 %v3639_v24, %v14413_v17  ;;  %3761 = vmatprep.subr.bf16.mxu0 %v12340_v50  ;;  %8669 = vmatprep.subr.bf16.mxu1 %v14192_v61  ;;  %v12395_v24 = vld [vmem:[#allocation5 + $0xc4] ss:$12 sps:$4 sm:$0xff]  }
 0x8c4   :  { %v9596_v10 = vpop.eup %9595 }
 0x8c5   :  { %9601 = vtanh.f32 %v3641_v35  ;;  %v3640_v53 = vmul.f32 %v9596_v10, %v3638_v19  ;;  %v12402_v19 = vld [vmem:[#allocation5 + $0xc0] ss:$12 sps:$4 sm:$0xff]   ;;  %v12405_v10 = vld [vmem:[#allocation5 + $0xc8] ss:$12 sps:$4 sm:$0xff]  }
 0x8c6   :  { %3762 = vmatpush1.bf16.msra.mxu0 %v12346_v9  ;;  %8670 = vmatpush3.bf16.msra.mxu1 %v12349_v56 }
 0x8c7   :  { %v3642_v62 = vadd.f32 %v3640_v53, %v974_v41  ;;  %3763 = vmatprep.subr.bf16.mxu0 %v12352_v3  ;;  %8671 = vmatprep.subr.bf16.mxu1 %v14192_v61  ;;  %v9598_v60 = vpop.eup %9597  ;;  %v12420_v41 = vld [vmem:[#allocation5 + $0x94] ss:$12 sps:$4 sm:$0xff]   ;;  %v12427_v53 = vld [vmem:[#allocation5 + $0x90] ss:$12 sps:$4 sm:$0xff]  }
 0x8c8   :  { %v9600_v49 = vpop.eup %9599  ;;  %v3645_v57 = vsub.f32 1.0, %v9598_v60  ;;  %v3649_v15 = vmul.f32 %v9598_v60, %v12208_v20  ;;  %v12435_v60 = vld [vmem:[#allocation5 + $0x78] ss:$12 sps:$4 sm:$0xff]  }
 0x8c9   :  { %9603 = vtanh.f32 %v3642_v62  ;;  %v3646_v31 = vsub.f32 1.0, %v9600_v49  ;;  %v3650_v20 = vmul.f32 %v9600_v49, %v12215_v48  ;;  %v12416_v48 = vld [vmem:[#allocation5 + $0xa8] ss:$12 sps:$4 sm:$0xff]   ;;  %14418 = vst [vmem:[#allocation156_spill] sm:$0xff] %v12435_v60  ;;  %v12439_v49 = vld [vmem:[#allocation5 + $0x64] ss:$12 sps:$4 sm:$0xff]  }
 0x8ca   :  { %3764 = vmatpush1.bf16.msra.mxu0 %v12356_v25  ;;  %8672 = vmatpush3.bf16.msra.mxu1 %v12359_v51  ;;  %v12431_v62 = vld [vmem:[#allocation5 + $0x7c] ss:$12 sps:$4 sm:$0xff]   ;;  %14419 = vst [vmem:[#allocation153_spill] sm:$0xff] %v12439_v49 }
 0x8cb   :  { %3765 = vmatprep.subr.bf16.mxu0 %v12362_v52  ;;  %8673 = vmatprep.subr.bf16.mxu1 %v14192_v61  ;;  %14417 = vst [vmem:[#allocation150_spill] sm:$0xff] %v12431_v62 }
 0x8ce   :  { %3766 = vmatpush1.bf16.msra.mxu0 %v12366_v63  ;;  %8674 = vmatpush3.bf16.msra.mxu1 %v12369_v16 }
 0x8cf   :  { %3767 = vmatprep.subr.bf16.mxu0 %v12372_v42  ;;  %8675 = vmatprep.subr.bf16.mxu1 %v14192_v61 }
 0x8d2   :  { %v9602_v33 = vpop.eup %9601  ;;  %3768 = vmatpush1.bf16.msra.mxu0 %v12376_v11  ;;  %8676 = vmatpush3.bf16.msra.mxu1 %v12379_v0 }
 0x8d3   :  { %3769 = vmatprep.subr.bf16.mxu0 %v12382_v4  ;;  %8677 = vmatprep.subr.bf16.mxu1 %v14192_v61  ;;  %v3647_v13 = vmul.f32 %v9602_v33, %v3645_v57  ;;  %v12443_v57 = vld [vmem:[#allocation5 + $0x60] ss:$12 sps:$4 sm:$0xff]  }
 0x8d4   :  { %14420 = vst [vmem:[#allocation24_spill] sm:$0xff] %v12443_v57  ;;  %v12447_v33 = vld [vmem:[#allocation5 + $0x4c] ss:$12 sps:$4 sm:$0xff]  }
 0x8d5   :  { %v12387_v36 = vadd.f32 %v3649_v15, %v3647_v13  ;;  %14421 = vst [vmem:[#allocation157_spill] sm:$0xff] %v12447_v33  ;;  %v12451_v13 = vld [vmem:[#allocation5 + $0x48] ss:$12 sps:$4 sm:$0xff]  }
 0x8d6   :  { %v9604_v46 = vpop.eup %9603  ;;  %3770 = vmatpush1.bf16.msra.mxu0 %v12389_v26  ;;  %8678 = vmatpush3.bf16.msra.mxu1 %v12392_v43  ;;  %14422 = vst [vmem:[#allocation27_spill] sm:$0xff] %v12451_v13  ;;  %v12455_v15 = vld [vmem:[#allocation5 + $0x34] ss:$12 sps:$4 sm:$0xff]  }
 0x8d7   :  { %3771 = vmatprep.subr.bf16.mxu0 %v12395_v24  ;;  %8679 = vmatprep.subr.bf16.mxu1 %v14192_v61  ;;  %v3648_v17 = vmul.f32 %v9604_v46, %v3646_v31  ;;  %14423 = vst [vmem:[#allocation152_spill] sm:$0xff] %v12455_v15  ;;  %v12459_v31 = vld [vmem:[#allocation5 + $0x30] ss:$12 sps:$4 sm:$0xff]  }
 0x8d8   :  { %14424 = vst [vmem:[#allocation44_spill] sm:$0xff] %v12459_v31  ;;  %v12463_v46 = vld [vmem:[#allocation5 + $0x1c] ss:$12 sps:$4 sm:$0xff]  }
 0x8d9   :  { %v12400_v35 = vadd.f32 %v3650_v20, %v3648_v17  ;;  %14425 = vst [vmem:[#allocation47_spill] sm:$0xff] %v12463_v46  ;;  %v12467_v17 = vld [vmem:[#allocation5 + $0x18] ss:$12 sps:$4 sm:$0xff]  }
 0x8da   :  { %3772 = vmatpush1.bf16.msra.mxu0 %v12402_v19  ;;  %8680 = vmatpush3.bf16.msra.mxu1 %v12405_v10  ;;  %14426 = vst [vmem:[#allocation45_spill] sm:$0xff] %v12467_v17  ;;  %v12471_v20 = vld [vmem:[#allocation5 + $0x4] ss:$12 sps:$4 sm:$0xff]  }
 0x8db   :  { %v12410_v37 = vpack.c.bf16 %v12400_v35, %v12387_v36  ;;  %3948 = vmatprep.subr.bf16.mxu0 %v12223_v45  ;;  %8685 = vmatprep.subr.bf16.mxu1 %v14192_v61  ;;  %14427 = vst [vmem:[#allocation49_spill] sm:$0xff] %v12471_v20 }
 0x8dd   :  { %14416 = vst [vmem:[#allocation26_spill] sm:$0xff] %v12410_v37  ;;  %3790 = vmatmul.mubr.bf16.vlgmr.msra.gmra.mxu0 %v12410_v37  ;;  %8682 = vmatmul.mubr.bf16.vlgmr.msra.gmra.mxu1 %v12410_v37  ;;  %v413_v37 = vadd.f32 %v14430_v34, %v14399_v54 }
 0x8de   :  { %3949 = vmatpush1.bf16.msra.mxu0 %v12416_v48  ;;  %8686 = vmatpush3.bf16.msra.mxu1 %v12230_v58 }
 0x8df   :  { %3950 = vmatprep.subr.bf16.mxu0 %v12420_v41  ;;  %8687 = vmatprep.subr.bf16.mxu1 %v14192_v61 }
 0x8e0   :  { %3980 = vmatprep.mubr.bf16.mxu0 %v14193_v55  ;;  %8701 = vmatprep.mubr.msk.bf16.mxu1 %vm10307_vm1, %v14192_v61 }
 0x8e2   :  { %3951 = vmatpush1.bf16.msra.mxu0 %v12427_v53  ;;  %8688 = vmatpush3.bf16.msra.mxu1 %v12239_v44 }
 0x8e3   :  { %3952 = vmatprep.subr.bf16.mxu0 %v12431_v62  ;;  %8689 = vmatprep.subr.bf16.mxu1 %v14192_v61 }
 0x8e6   :  { %3953 = vmatpush1.bf16.msra.mxu0 %v12435_v60  ;;  %8690 = vmatpush3.bf16.msra.mxu1 %v12245_v38 }
 0x8e7   :  { %3954 = vmatprep.subr.bf16.mxu0 %v12439_v49  ;;  %8691 = vmatprep.subr.bf16.mxu1 %v14192_v61  ;;  %v14433_v49 = vld [vmem:[#allocation82_spill] sm:$0xff] }
 0x8ea   :  { %3955 = vmatpush1.bf16.msra.mxu0 %v12443_v57  ;;  %8692 = vmatpush3.bf16.msra.mxu1 %v12251_v21 }
 0x8eb   :  { %3956 = vmatprep.subr.bf16.mxu0 %v12447_v33  ;;  %8693 = vmatprep.subr.bf16.mxu1 %v14192_v61 }
 0x8ee   :  { %3957 = vmatpush1.bf16.msra.mxu0 %v12451_v13  ;;  %8694 = vmatpush3.bf16.msra.mxu1 %v12257_v22  ;;  %v14432_v22 = vld [vmem:[#allocation78_spill] sm:$0xff] }
 0x8ef   :  { %3958 = vmatprep.subr.bf16.mxu0 %v12455_v15  ;;  %8695 = vmatprep.subr.bf16.mxu1 %v14192_v61  ;;  %v415_v13 = vadd.f32 %v14432_v22, %v14402_v7 }
 0x8f2   :  { %3959 = vmatpush1.bf16.msra.mxu0 %v12459_v31  ;;  %8696 = vmatpush3.bf16.msra.mxu1 %v12263_v39  ;;  %v14431_v39 = vld [vmem:[#allocation80_spill] sm:$0xff] }
 0x8f3   :  { %3960 = vmatprep.subr.bf16.mxu0 %v12463_v46  ;;  %8697 = vmatprep.subr.bf16.mxu1 %v14192_v61  ;;  %v417_v31 = vadd.f32 %v14431_v39, %v14399_v54 }
 0x8f6   :  { %3961 = vmatpush1.bf16.msra.mxu0 %v12467_v17  ;;  %8698 = vmatpush3.bf16.msra.mxu1 %v12269_v6 }
 0x8f7   :  { %3962 = vmatprep.subr.bf16.mxu0 %v12471_v20  ;;  %8699 = vmatprep.subr.bf16.mxu1 %v14192_v61 }
 0x8fa   :  { %3963 = vmatpush1.bf16.msra.mxu0 %v12475_v5  ;;  %8700 = vmatpush3.bf16.msra.mxu1 %v12275_v28 }
 0x8fb   :  { %4033 = vmatprep.subr.bf16.mxu0 %v12479_v2  ;;  %8705 = vmatprep.subr.bf16.mxu1 %v14192_v61 }
 0x97d   :  { %v3706_v27 = vpop.f32.mrf.mxu0  ;;  %v3749_v6 = vpop.f32.mrf.mxu1 }
 0x97e   :  { %v3841_v20 = vadd.f32 %v3706_v27, %v413_v37  ;;  %v419_v27 = vadd.f32 %v14433_v49, %v14402_v7  ;;  %v14437_v7 = vld [vmem:[#allocation56_spill] sm:$0xff] }
 0x97f   :  { %v3708_v17 = vpop.f32.mrf.mxu0  ;;  %v8663_v46 = vpop.f32.mrf.mxu1 }
 0x980   :  { %v7646_v5 = vmul.f32 -1.442695, %v3841_v20  ;;  %v3855_v21 = vadd.f32 %v3708_v17, %v415_v13 }
 0x981   :  { %v3710_v15 = vpop.f32.mrf.mxu0  ;;  %v3752_v28 = vpop.f32.mrf.mxu1 }
 0x982   :  { %9605 = vpow2.f32 %v7646_v5  ;;  %v3842_v2 = vadd.f32 %v3710_v15, %v417_v31  ;;  %v7648_v46 = vmul.f32 -1.442695, %v3855_v21 }
 0x983   :  { %v8664_v33 = vpop.f32.mrf.mxu1  ;;  %v3712_v34 = vpop.f32.mrf.mxu0 }
 0x984   :  { %v7647_v57 = vmul.f32 -1.442695, %v3842_v2  ;;  %v3856_v37 = vadd.f32 %v3712_v34, %v419_v27  ;;  %v14434_v2 = vld [vmem:[#allocation93_spill] sm:$0xff] }
 0x985   :  { %v816_v13 = vadd.f32 %v14434_v2, %v14405_v12 }
 0x986   :  { %9607 = vpow2.f32 %v7647_v57  ;;  %v7649_v38 = vmul.f32 -1.442695, %v3856_v37  ;;  %v3869_v57 = vadd.f32 %v12145_v30, %v3749_v6  ;;  %v14435_v37 = vld [vmem:[#allocation97_spill] sm:$0xff]  ;;  %v3870_v6 = vadd.f32 %v12145_v30, %v3752_v28 }
 0x987   :  { %9609 = vpow2.f32 %v7648_v46  ;;  %v820_v46 = vadd.f32 %v14435_v37, %v14405_v12 }
 0x988   :  { %9611 = vpow2.f32 %v7649_v38 }
 0x98f   :  { %v9606_v39 = vpop.eup %9605 }
 0x990   :  { %v3849_v20 = vadd.f32 1.0, %v9606_v39 }
 0x992   :  { %9613 = vrcp.f32 %v3849_v20  ;;  %v14436_v20 = vld [vmem:[#allocation95_spill] sm:$0xff] }
 0x993   :  { %v9608_v54 = vpop.eup %9607 }
 0x994   :  { %v3850_v22 = vadd.f32 1.0, %v9608_v54  ;;  %v9610_v5 = vpop.eup %9609 }
 0x995   :  { %v9612_v33 = vpop.eup %9611  ;;  %v3863_v15 = vadd.f32 1.0, %v9610_v5 }
 0x996   :  { %9615 = vrcp.f32 %v3850_v22  ;;  %v3864_v34 = vadd.f32 1.0, %v9612_v33  ;;  %v818_v22 = vadd.f32 %v14436_v20, %v11210_v40  ;;  %v14439_v20 = vld [vmem:[#allocation99_spill] sm:$0xff] }
 0x997   :  { %9617 = vrcp.f32 %v3863_v15  ;;  %v822_v12 = vadd.f32 %v14439_v20, %v11210_v40 }
 0x99d   :  { %v3791_v31 = vpop.f32.mrf.mxu0  ;;  %v3834_v49 = vpop.f32.mrf.mxu1 }
 0x99e   :  { %v3885_v21 = vadd.f32 %v3791_v31, %v816_v13  ;;  %v14438_v31 = vld [vmem:[#allocation59_spill] sm:$0xff] }
 0x99f   :  { %v9614_v17 = vpop.eup %9613  ;;  %v3793_v27 = vpop.f32.mrf.mxu0 }
 0x9a0   :  { %v8683_v38 = vpop.f32.mrf.mxu1  ;;  %v3871_v54 = vmul.f32 %v9614_v17, %v3869_v57  ;;  %v7650_v39 = vmul.f32 -1.442695, %v3885_v21  ;;  %v3899_v57 = vadd.f32 %v3793_v27, %v818_v22 }
 0x9a1   :  { %v3795_v2 = vpop.f32.mrf.mxu0  ;;  %v553_v38 = vadd.f32 %v14438_v31, %v14377_v59 }
 0x9a2   :  { %v3837_v5 = vpop.f32.mrf.mxu1  ;;  %v3873_v60 = vadd.f32 %v3871_v54, %v14437_v7  ;;  %9619 = vpow2.f32 %v7650_v39  ;;  %v3886_v13 = vadd.f32 %v3795_v2, %v820_v46  ;;  %v7652_v30 = vmul.f32 -1.442695, %v3899_v57 }
 0x9a3   :  { %v9616_v33 = vpop.eup %9615  ;;  %9621 = vrcp.f32 %v3864_v34  ;;  %v3797_v17 = vpop.f32.mrf.mxu0 }
 0x9a4   :  { %v8684_v37 = vpop.f32.mrf.mxu1  ;;  %9623 = vtanh.f32 %v3873_v60  ;;  %v3872_v15 = vmul.f32 %v9616_v33, %v3870_v6  ;;  %v7651_v21 = vmul.f32 -1.442695, %v3886_v13  ;;  %v3900_v7 = vadd.f32 %v3797_v17, %v822_v12  ;;  %v9618_v46 = vpop.eup %9617 }
 0x9a5   :  { %v3877_v60 = vsub.f32 1.0, %v9618_v46  ;;  %v3881_v22 = vmul.f32 %v9618_v46, %v12305_v47  ;;  %v3913_v47 = vadd.f32 %v12175_v29, %v3834_v49  ;;  %v3914_v49 = vadd.f32 %v12175_v29, %v3837_v5 }
 0x9a6   :  { %v3874_v62 = vadd.f32 %v3872_v15, %v553_v38  ;;  %9625 = vpow2.f32 %v7651_v21  ;;  %v7653_v28 = vmul.f32 -1.442695, %v3900_v7 }
 0x9a8   :  { %9627 = vtanh.f32 %v3874_v62 }
 0x9a9   :  { %9629 = vpow2.f32 %v7652_v30  ;;  %v14441_v30 = vld [vmem:[#allocation117_spill] sm:$0xff] }
 0x9aa   :  { %9631 = vpow2.f32 %v7653_v28 }
 0x9af   :  { %v9620_v54 = vpop.eup %9619 }
 0x9b0   :  { %v9622_v34 = vpop.eup %9621  ;;  %v3893_v39 = vadd.f32 1.0, %v9620_v54 }
 0x9b1   :  { %v9624_v2 = vpop.eup %9623  ;;  %v3878_v33 = vsub.f32 1.0, %v9622_v34  ;;  %v3882_v38 = vmul.f32 %v9622_v34, %v12308_v18  ;;  %v14442_v34 = vld [vmem:[#allocation121_spill] sm:$0xff] }
 0x9b2   :  { %9633 = vrcp.f32 %v3893_v39  ;;  %v3879_v27 = vmul.f32 %v9624_v2, %v3877_v60 }
 0x9b3   :  { %v9626_v6 = vpop.eup %9625 }
 0x9b4   :  { %v3894_v13 = vadd.f32 1.0, %v9626_v6  ;;  %v12505_v31 = vadd.f32 %v3881_v22, %v3879_v27 }
 0x9b5   :  { %v9628_v12 = vpop.eup %9627 }
 0x9b6   :  { %9635 = vrcp.f32 %v3894_v13  ;;  %v3880_v62 = vmul.f32 %v9628_v12, %v3878_v33  ;;  %v9630_v15 = vpop.eup %9629 }
 0x9b7   :  { %v9632_v21 = vpop.eup %9631  ;;  %v3907_v17 = vadd.f32 1.0, %v9630_v15  ;;  %v14447_v15 = vld [vmem:[#allocation153_spill] sm:$0xff] }
 0x9b8   :  { %v12508_v37 = vadd.f32 %v3882_v38, %v3880_v62  ;;  %v3908_v20 = vadd.f32 1.0, %v9632_v21  ;;  %v14448_v21 = vld [vmem:[#allocation24_spill] sm:$0xff] }
 0x9b9   :  { %9637 = vrcp.f32 %v3907_v17  ;;  %v14449_v17 = vld [vmem:[#allocation136_spill] sm:$0xff] }
 0x9ba   :  { %v12512_v57 = vpack.c.bf16 %v12508_v37, %v12505_v31  ;;  %9639 = vrcp.f32 %v3908_v20  ;;  %v14453_v20 = vld [vmem:[#allocation152_spill] sm:$0xff] }
 0x9bc   :  { %14440 = vst [vmem:[#allocation128_spill] sm:$0xff] %v12512_v57  ;;  %3981 = vmatmul.mubr.bf16.vlgmr.msra.gmra.mxu0 %v12512_v57  ;;  %8702 = vmatmul.mubr.bf16.vlgmr.msra.gmra.mxu1 %v12512_v57 }
 0x9bd   :  { %4034 = vmatpush1.bf16.msra.mxu0 %v12316_v14  ;;  %8706 = vmatpush3.bf16.msra.mxu1 %v12319_v32 }
 0x9be   :  { %4035 = vmatprep.subr.bf16.mxu0 %v12324_v8  ;;  %8707 = vmatprep.subr.bf16.mxu1 %v14192_v61 }
 0x9bf   :  { %v9634_v18 = vpop.eup %9633  ;;  %4065 = vmatprep.mubr.bf16.mxu0 %v14193_v55  ;;  %8721 = vmatprep.mubr.msk.bf16.mxu1 %vm10307_vm1, %v14192_v61 }
 0x9c0   :  { %v3915_v7 = vmul.f32 %v9634_v18, %v3913_v47  ;;  %v14450_v47 = vld [vmem:[#allocation157_spill] sm:$0xff]  ;;  %v14452_v18 = vld [vmem:[#allocation30_spill] sm:$0xff] }
 0x9c1   :  { %4036 = vmatpush1.bf16.msra.mxu0 %v12331_v23  ;;  %8708 = vmatpush3.bf16.msra.mxu1 %v12334_v1 }
 0x9c2   :  { %v3917_v28 = vadd.f32 %v3915_v7, %v14441_v30  ;;  %4037 = vmatprep.subr.bf16.mxu0 %v12340_v50  ;;  %8709 = vmatprep.subr.bf16.mxu1 %v14192_v61  ;;  %v14454_v7 = vld [vmem:[#allocation44_spill] sm:$0xff] }
 0x9c3   :  { %v9636_v46 = vpop.eup %9635  ;;  %v14455_v30 = vld [vmem:[#allocation140_spill] sm:$0xff] }
 0x9c4   :  { %9641 = vtanh.f32 %v3917_v28  ;;  %v3916_v54 = vmul.f32 %v9636_v46, %v3914_v49  ;;  %v14456_v28 = vld [vmem:[#allocation47_spill] sm:$0xff]  ;;  %v14457_v49 = vld [vmem:[#allocation45_spill] sm:$0xff]  ;;  %v14458_v46 = vld [vmem:[#allocation34_spill] sm:$0xff] }
 0x9c5   :  { %4038 = vmatpush1.bf16.msra.mxu0 %v12346_v9  ;;  %8710 = vmatpush3.bf16.msra.mxu1 %v12349_v56 }
 0x9c6   :  { %v3918_v39 = vadd.f32 %v3916_v54, %v14442_v34  ;;  %4039 = vmatprep.subr.bf16.mxu0 %v12352_v3  ;;  %8711 = vmatprep.subr.bf16.mxu1 %v14192_v61  ;;  %v9638_v29 = vpop.eup %9637  ;;  %v14459_v54 = vld [vmem:[#allocation49_spill] sm:$0xff]  ;;  %v14460_v34 = vld [vmem:[#allocation126_spill] sm:$0xff] }
 0x9c7   :  { %v9640_v5 = vpop.eup %9639  ;;  %v3921_v60 = vsub.f32 1.0, %v9638_v29  ;;  %v3925_v22 = vmul.f32 %v9638_v29, %v12387_v36  ;;  %v14462_v29 = vld [vmem:[#allocation131_spill] sm:$0xff] }
 0x9c8   :  { %9643 = vtanh.f32 %v3918_v39  ;;  %v3922_v6 = vsub.f32 1.0, %v9640_v5  ;;  %v3926_v62 = vmul.f32 %v9640_v5, %v12400_v35  ;;  %v14445_v35 = vld [vmem:[#allocation156_spill] sm:$0xff]  ;;  %v14461_v39 = vld [vmem:[#allocation143_spill] sm:$0xff] }
 0x9c9   :  { %4040 = vmatpush1.bf16.msra.mxu0 %v12356_v25  ;;  %8712 = vmatpush3.bf16.msra.mxu1 %v12359_v51  ;;  %v14463_v5 = vld [vmem:[#allocation151_spill] sm:$0xff] }
 0x9ca   :  { %4041 = vmatprep.subr.bf16.mxu0 %v12362_v52  ;;  %8713 = vmatprep.subr.bf16.mxu1 %v14192_v61 }
 0x9cd   :  { %4042 = vmatpush1.bf16.msra.mxu0 %v12366_v63  ;;  %8714 = vmatpush3.bf16.msra.mxu1 %v12369_v16 }
 0x9ce   :  { %4043 = vmatprep.subr.bf16.mxu0 %v12372_v42  ;;  %8715 = vmatprep.subr.bf16.mxu1 %v14192_v61 }
 0x9d1   :  { %v9642_v2 = vpop.eup %9641  ;;  %4044 = vmatpush1.bf16.msra.mxu0 %v12376_v11  ;;  %8716 = vmatpush3.bf16.msra.mxu1 %v12379_v0 }
 0x9d2   :  { %4045 = vmatprep.subr.bf16.mxu0 %v12382_v4  ;;  %8717 = vmatprep.subr.bf16.mxu1 %v14192_v61  ;;  %v3923_v27 = vmul.f32 %v9642_v2, %v3921_v60  ;;  %v14464_v60 = vld [vmem:[#allocation84_spill] sm:$0xff] }
 0x9d3   :  { %v423_v2 = vadd.f32 %v14464_v60, %v14463_v5 }
 0x9d4   :  { %v12548_v13 = vadd.f32 %v3925_v22, %v3923_v27 }
 0x9d5   :  { %v9644_v33 = vpop.eup %9643  ;;  %4046 = vmatpush1.bf16.msra.mxu0 %v12389_v26  ;;  %8718 = vmatpush3.bf16.msra.mxu1 %v12392_v43 }
 0x9d6   :  { %4047 = vmatprep.subr.bf16.mxu0 %v12395_v24  ;;  %8719 = vmatprep.subr.bf16.mxu1 %v14192_v61  ;;  %v3924_v12 = vmul.f32 %v9644_v33, %v3922_v6 }
 0x9d8   :  { %v12555_v38 = vadd.f32 %v3926_v62, %v3924_v12  ;;  %v14465_v62 = vld [vmem:[#allocation88_spill] sm:$0xff] }
 0x9d9   :  { %4048 = vmatpush1.bf16.msra.mxu0 %v12402_v19  ;;  %8720 = vmatpush3.bf16.msra.mxu1 %v12405_v10 }
 0x9da   :  { %v12561_v36 = vpack.c.bf16 %v12555_v38, %v12548_v13  ;;  %4224 = vmatprep.subr.bf16.mxu0 %v12223_v45  ;;  %8725 = vmatprep.subr.bf16.mxu1 %v14192_v61  ;;  %v14444_v45 = vld [vmem:[#allocation150_spill] sm:$0xff] }
 0x9dc   :  { %14443 = vst [vmem:[#allocation40_spill] sm:$0xff] %v12561_v36  ;;  %4066 = vmatmul.mubr.bf16.vlgmr.msra.gmra.mxu0 %v12561_v36  ;;  %8722 = vmatmul.mubr.bf16.vlgmr.msra.gmra.mxu1 %v12561_v36 }
 0x9dd   :  { %4225 = vmatpush1.bf16.msra.mxu0 %v12416_v48  ;;  %8726 = vmatpush3.bf16.msra.mxu1 %v12230_v58  ;;  %v14446_v58 = vld [vmem:[#allocation139_spill] sm:$0xff] }
 0x9de   :  { %4226 = vmatprep.subr.bf16.mxu0 %v12420_v41  ;;  %8727 = vmatprep.subr.bf16.mxu1 %v14192_v61 }
 0x9df   :  { %4256 = vmatprep.mubr.bf16.mxu0 %v14193_v55  ;;  %8741 = vmatprep.mubr.msk.bf16.mxu1 %vm10307_vm1, %v14192_v61 }
 0x9e1   :  { %4227 = vmatpush1.bf16.msra.mxu0 %v12427_v53  ;;  %8728 = vmatpush3.bf16.msra.mxu1 %v12239_v44  ;;  %v14451_v44 = vld [vmem:[#allocation27_spill] sm:$0xff] }
 0x9e2   :  { %4228 = vmatprep.subr.bf16.mxu0 %v14444_v45  ;;  %8729 = vmatprep.subr.bf16.mxu1 %v14192_v61 }
 0x9e5   :  { %4229 = vmatpush1.bf16.msra.mxu0 %v14445_v35  ;;  %8730 = vmatpush3.bf16.msra.mxu1 %v14446_v58  ;;  %v427_v58 = vadd.f32 %v14465_v62, %v14463_v5 }
 0x9e6   :  { %4230 = vmatprep.subr.bf16.mxu0 %v14447_v15  ;;  %8731 = vmatprep.subr.bf16.mxu1 %v14192_v61 }
 0x9e9   :  { %4231 = vmatpush1.bf16.msra.mxu0 %v14448_v21  ;;  %8732 = vmatpush3.bf16.msra.mxu1 %v14449_v17 }
 0x9ea   :  { %4232 = vmatprep.subr.bf16.mxu0 %v14450_v47  ;;  %8733 = vmatprep.subr.bf16.mxu1 %v14192_v61 }
 0x9ed   :  { %4233 = vmatpush1.bf16.msra.mxu0 %v14451_v44  ;;  %8734 = vmatpush3.bf16.msra.mxu1 %v14452_v18 }
 0x9ee   :  { %4234 = vmatprep.subr.bf16.mxu0 %v14453_v20  ;;  %8735 = vmatprep.subr.bf16.mxu1 %v14192_v61 }
 0x9f1   :  { %4235 = vmatpush1.bf16.msra.mxu0 %v14454_v7  ;;  %8736 = vmatpush3.bf16.msra.mxu1 %v14455_v30  ;;  %v14473_v7 = vld [vmem:[#allocation54_spill] sm:$0xff] }
 0x9f2   :  { %4236 = vmatprep.subr.bf16.mxu0 %v14456_v28  ;;  %8737 = vmatprep.subr.bf16.mxu1 %v14192_v61 }
 0x9f5   :  { %4237 = vmatpush1.bf16.msra.mxu0 %v14457_v49  ;;  %8738 = vmatpush3.bf16.msra.mxu1 %v14458_v46  ;;  %v14466_v46 = vld [vmem:[#allocation158_spill] sm:$0xff] }
 0x9f6   :  { %4238 = vmatprep.subr.bf16.mxu0 %v14459_v54  ;;  %8739 = vmatprep.subr.bf16.mxu1 %v14192_v61  ;;  %v14468_v54 = vld [vmem:[#allocation90_spill] sm:$0xff] }
 0x9f9   :  { %4239 = vmatpush1.bf16.msra.mxu0 %v14460_v34  ;;  %8740 = vmatpush3.bf16.msra.mxu1 %v14461_v39  ;;  %v14467_v39 = vld [vmem:[#allocation86_spill] sm:$0xff] }
 0x9fa   :  { %4309 = vmatprep.subr.bf16.mxu0 %v14462_v29  ;;  %8745 = vmatprep.subr.bf16.mxu1 %v14192_v61  ;;  %v425_v57 = vadd.f32 %v14467_v39, %v14466_v46 }
 0xa7c   :  { %v3982_v27 = vpop.f32.mrf.mxu0  ;;  %v4025_v22 = vpop.f32.mrf.mxu1 }
 0xa7d   :  { %v4117_v6 = vadd.f32 %v3982_v27, %v423_v2  ;;  %v429_v2 = vadd.f32 %v14468_v54, %v14466_v46 }
 0xa7e   :  { %v3984_v33 = vpop.f32.mrf.mxu0  ;;  %v8703_v12 = vpop.f32.mrf.mxu1 }
 0xa7f   :  { %v7654_v17 = vmul.f32 -1.442695, %v4117_v6  ;;  %v4131_v29 = vadd.f32 %v3984_v33, %v425_v57  ;;  %v14469_v57 = vld [vmem:[#allocation159_spill] sm:$0xff] }
 0xa80   :  { %v3986_v18 = vpop.f32.mrf.mxu0  ;;  %v4028_v30 = vpop.f32.mrf.mxu1 }
 0xa81   :  { %9645 = vpow2.f32 %v7654_v17  ;;  %v4118_v36 = vadd.f32 %v3986_v18, %v427_v58  ;;  %v7656_v12 = vmul.f32 -1.442695, %v4131_v29 }
 0xa82   :  { %v8704_v59 = vpop.f32.mrf.mxu1  ;;  %v3988_v60 = vpop.f32.mrf.mxu0 }
 0xa83   :  { %v7655_v34 = vmul.f32 -1.442695, %v4118_v36  ;;  %v4132_v27 = vadd.f32 %v3988_v60, %v429_v2  ;;  %v14470_v36 = vld [vmem:[#allocation85_spill] sm:$0xff] }
 0xa84   :  { %v806_v33 = vadd.f32 %v14470_v36, %v14469_v57 }
 0xa85   :  { %9647 = vpow2.f32 %v7655_v34  ;;  %v7657_v49 = vmul.f32 -1.442695, %v4132_v27  ;;  %v12617_v34 = vld [vmem:[%s13860_s4] ss:$0 sm:$0xff] }
 0xa86   :  { %9649 = vpow2.f32 %v7656_v12  ;;  %v14471_v12 = vld [vmem:[#allocation89_spill] sm:$0xff] }
 0xa87   :  { %9651 = vpow2.f32 %v7657_v49  ;;  %v4145_v49 = vadd.f32 %v12617_v34, %v4025_v22  ;;  %v4146_v22 = vadd.f32 %v12617_v34, %v4028_v30 }
 0xa8e   :  { %v9646_v6 = vpop.eup %9645 }
 0xa8f   :  { %v4125_v62 = vadd.f32 1.0, %v9646_v6  ;;  %v810_v6 = vadd.f32 %v14471_v12, %v14469_v57 }
 0xa91   :  { %9653 = vrcp.f32 %v4125_v62 }
 0xa92   :  { %v9648_v5 = vpop.eup %9647 }
 0xa93   :  { %v4126_v39 = vadd.f32 1.0, %v9648_v5  ;;  %v9650_v58 = vpop.eup %9649 }
 0xa94   :  { %v9652_v59 = vpop.eup %9651  ;;  %v4139_v17 = vadd.f32 1.0, %v9650_v58  ;;  %v14472_v58 = vld [vmem:[#allocation87_spill] sm:$0xff] }
 0xa95   :  { %9655 = vrcp.f32 %v4126_v39  ;;  %v4140_v5 = vadd.f32 1.0, %v9652_v59  ;;  %v808_v36 = vadd.f32 %v14472_v58, %v11210_v40  ;;  %v14475_v58 = vld [vmem:[#allocation58_spill] sm:$0xff] }
 0xa96   :  { %9657 = vrcp.f32 %v4139_v17 }
 0xa9c   :  { %v4067_v18 = vpop.f32.mrf.mxu0  ;;  %v12612_v54 = vpop.f32.mrf.mxu1 }
 0xa9d   :  { %v4161_v29 = vadd.f32 %v4067_v18, %v806_v33 }
 0xa9e   :  { %v9654_v60 = vpop.eup %9653  ;;  %v4069_v2 = vpop.f32.mrf.mxu0 }
 0xa9f   :  { %v8723_v27 = vpop.f32.mrf.mxu1  ;;  %v4147_v62 = vmul.f32 %v9654_v60, %v4145_v49  ;;  %v7658_v39 = vmul.f32 -1.442695, %v4161_v29  ;;  %v4175_v12 = vadd.f32 %v4069_v2, %v808_v36  ;;  %v14474_v29 = vld [vmem:[#allocation91_spill] sm:$0xff] }
 0xaa0   :  { %v4071_v46 = vpop.f32.mrf.mxu0  ;;  %v812_v60 = vadd.f32 %v14474_v29, %v11210_v40 }
 0xaa1   :  { %v4113_v28 = vpop.f32.mrf.mxu1  ;;  %v4149_v20 = vadd.f32 %v4147_v62, %v14473_v7  ;;  %9659 = vpow2.f32 %v7658_v39  ;;  %v4162_v33 = vadd.f32 %v4071_v46, %v810_v6  ;;  %v7660_v7 = vmul.f32 -1.442695, %v4175_v12 }
 0xaa2   :  { %v9656_v59 = vpop.eup %9655  ;;  %9661 = vrcp.f32 %v4140_v5  ;;  %v4073_v17 = vpop.f32.mrf.mxu0 }
 0xaa3   :  { %v8724_v18 = vpop.f32.mrf.mxu1  ;;  %9663 = vtanh.f32 %v4149_v20  ;;  %v4148_v27 = vmul.f32 %v9656_v59, %v4146_v22  ;;  %v7659_v49 = vmul.f32 -1.442695, %v4162_v33  ;;  %v4176_v44 = vadd.f32 %v4073_v17, %v812_v60  ;;  %v9658_v46 = vpop.eup %9657 }
 0xaa4   :  { %v4153_v62 = vsub.f32 1.0, %v9658_v46  ;;  %v4157_v36 = vmul.f32 %v9658_v46, %v12505_v31  ;;  %v12646_v31 = vld [vmem:[%s13860_s4 + $0x1] ss:$0 sm:$0xff]  ;;  %v14477_v46 = vld [vmem:[#allocation105_spill] sm:$0xff] }
 0xaa5   :  { %v4150_v57 = vadd.f32 %v4148_v27, %v14475_v58  ;;  %9665 = vpow2.f32 %v7659_v49  ;;  %v7661_v30 = vmul.f32 -1.442695, %v4176_v44 }
 0xaa7   :  { %9667 = vtanh.f32 %v4150_v57 }
 0xaa8   :  { %9669 = vpow2.f32 %v7660_v7 }
 0xaa9   :  { %9671 = vpow2.f32 %v7661_v30 }
 0xaae   :  { %v9660_v6 = vpop.eup %9659 }
 0xaaf   :  { %v9662_v5 = vpop.eup %9661  ;;  %v4169_v20 = vadd.f32 1.0, %v9660_v6  ;;  %v14478_v6 = vld [vmem:[#allocation122_spill] sm:$0xff] }
 0xab0   :  { %v9664_v2 = vpop.eup %9663  ;;  %v4154_v59 = vsub.f32 1.0, %v9662_v5  ;;  %v4158_v27 = vmul.f32 %v9662_v5, %v12508_v37  ;;  %v4189_v37 = vadd.f32 %v12646_v31, %v12612_v54  ;;  %v4190_v54 = vadd.f32 %v12646_v31, %v4113_v28  ;;  %v14486_v28 = vld [vmem:[#allocation131_spill] sm:$0xff] }
 0xab1   :  { %9673 = vrcp.f32 %v4169_v20  ;;  %v4155_v39 = vmul.f32 %v9664_v2, %v4153_v62  ;;  %v958_v5 = vadd.f32 %v14478_v6, %v14477_v46  ;;  %v14487_v62 = vld [vmem:[#allocation151_spill] sm:$0xff]  ;;  %v14488_v2 = vld [vmem:[#allocation92_spill] sm:$0xff]  ;;  %v14492_v6 = vld [vmem:[#allocation98_spill] sm:$0xff] }
 0xab2   :  { %v9666_v22 = vpop.eup %9665 }
 0xab3   :  { %v4170_v33 = vadd.f32 1.0, %v9666_v22  ;;  %v12630_v18 = vadd.f32 %v4157_v36, %v4155_v39  ;;  %v433_v39 = vadd.f32 %v14488_v2, %v14487_v62  ;;  %v14497_v2 = vld [vmem:[#allocation64_spill] sm:$0xff] }
 0xab4   :  { %v9668_v57 = vpop.eup %9667 }
 0xab5   :  { %9675 = vrcp.f32 %v4170_v33  ;;  %v4156_v44 = vmul.f32 %v9668_v57, %v4154_v59  ;;  %v9670_v49 = vpop.eup %9669 }
 0xab6   :  { %v9672_v29 = vpop.eup %9671  ;;  %v4183_v60 = vadd.f32 1.0, %v9670_v49 }
 0xab7   :  { %v12633_v12 = vadd.f32 %v4158_v27, %v4156_v44  ;;  %v4184_v7 = vadd.f32 1.0, %v9672_v29  ;;  %v14489_v44 = vld [vmem:[#allocation96_spill] sm:$0xff] }
 0xab8   :  { %9677 = vrcp.f32 %v4183_v60  ;;  %v437_v27 = vadd.f32 %v14489_v44, %v14487_v62 }
 0xab9   :  { %v12637_v17 = vpack.c.bf16 %v12633_v12, %v12630_v18  ;;  %9679 = vrcp.f32 %v4184_v7 }
 0xabb   :  { %4257 = vmatmul.mubr.bf16.vlgmr.msra.gmra.mxu0 %v12637_v17  ;;  %8742 = vmatmul.mubr.bf16.vlgmr.msra.gmra.mxu1 %v12637_v17 }
 0xabc   :  { %4310 = vmatpush1.bf16.msra.mxu0 %v12316_v14  ;;  %8746 = vmatpush3.bf16.msra.mxu1 %v12319_v32  ;;  %v14476_v32 = vld [vmem:[#allocation119_spill] sm:$0xff] }
 0xabd   :  { %4311 = vmatprep.subr.bf16.mxu0 %v12324_v8  ;;  %8747 = vmatprep.subr.bf16.mxu1 %v14192_v61 }
 0xabe   :  { %v9674_v58 = vpop.eup %9673  ;;  %4341 = vmatprep.mubr.bf16.mxu0 %v14193_v55  ;;  %8761 = vmatprep.mubr.msk.bf16.mxu1 %vm10307_vm1, %v14192_v61 }
 0xabf   :  { %v4191_v14 = vmul.f32 %v9674_v58, %v4189_v37  ;;  %v14490_v37 = vld [vmem:[#allocation158_spill] sm:$0xff] }
 0xac0   :  { %4312 = vmatpush1.bf16.msra.mxu0 %v12331_v23  ;;  %8748 = vmatpush3.bf16.msra.mxu1 %v12334_v1  ;;  %v14491_v58 = vld [vmem:[#allocation94_spill] sm:$0xff] }
 0xac1   :  { %v4193_v30 = vadd.f32 %v4191_v14, %v14476_v32  ;;  %4313 = vmatprep.subr.bf16.mxu0 %v12340_v50  ;;  %8749 = vmatprep.subr.bf16.mxu1 %v14192_v61  ;;  %v435_v7 = vadd.f32 %v14491_v58, %v14490_v37 }
 0xac2   :  { %v9676_v8 = vpop.eup %9675 }
 0xac3   :  { %9681 = vtanh.f32 %v4193_v30  ;;  %v4192_v20 = vmul.f32 %v9676_v8, %v4190_v54 }
 0xac4   :  { %4314 = vmatpush1.bf16.msra.mxu0 %v12346_v9  ;;  %8750 = vmatpush3.bf16.msra.mxu1 %v12349_v56 }
 0xac5   :  { %v4194_v23 = vadd.f32 %v4192_v20, %v958_v5  ;;  %4315 = vmatprep.subr.bf16.mxu0 %v12352_v3  ;;  %8751 = vmatprep.subr.bf16.mxu1 %v14192_v61  ;;  %v9678_v1 = vpop.eup %9677  ;;  %v439_v5 = vadd.f32 %v14492_v6, %v14490_v37 }
 0xac6   :  { %v9680_v50 = vpop.eup %9679  ;;  %v4197_v9 = vsub.f32 1.0, %v9678_v1 }
 0xac7   :  { %9683 = vtanh.f32 %v4194_v23 }
 0xac8   :  { %4316 = vmatpush1.bf16.msra.mxu0 %v12356_v25  ;;  %8752 = vmatpush3.bf16.msra.mxu1 %v12359_v51  ;;  %v4201_v25 = vmul.f32 %v9678_v1, %v12548_v13  ;;  %v4198_v51 = vsub.f32 1.0, %v9680_v50  ;;  %v10161_v13 = vld [vmem:[#allocation5 + $0x38] ss:$12 sps:$4 sm:$0xff]  }
 0xac9   :  { %4317 = vmatprep.subr.bf16.mxu0 %v12362_v52  ;;  %8753 = vmatprep.subr.bf16.mxu1 %v14192_v61 }
 0xacc   :  { %4318 = vmatpush1.bf16.msra.mxu0 %v12366_v63  ;;  %8754 = vmatpush3.bf16.msra.mxu1 %v12369_v16 }
 0xacd   :  { %4319 = vmatprep.subr.bf16.mxu0 %v12372_v42  ;;  %8755 = vmatprep.subr.bf16.mxu1 %v14192_v61  ;;  %v4202_v42 = vmul.f32 %v9680_v50, %v12555_v38  ;;  %v14482_v38 = vld [vmem:[#allocation47_spill] sm:$0xff] }
 0xad0   :  { %v9682_v56 = vpop.eup %9681  ;;  %4320 = vmatpush1.bf16.msra.mxu0 %v12376_v11  ;;  %8756 = vmatpush3.bf16.msra.mxu1 %v12379_v0 }
 0xad1   :  { %4321 = vmatprep.subr.bf16.mxu0 %v12382_v4  ;;  %8757 = vmatprep.subr.bf16.mxu1 %v14192_v61  ;;  %v4199_v3 = vmul.f32 %v9682_v56, %v4197_v9  ;;  %v10155_v4 = vld [vmem:[#allocation5 + $0xac] ss:$12 sps:$4 sm:$0xff]  }
 0xad3   :  { %v12680_v52 = vadd.f32 %v4201_v25, %v4199_v3 }
 0xad4   :  { %v9684_v63 = vpop.eup %9683  ;;  %4322 = vmatpush1.bf16.msra.mxu0 %v12389_v26  ;;  %8758 = vmatpush3.bf16.msra.mxu1 %v12392_v43  ;;  %v10156_v26 = vld [vmem:[#allocation5 + $0xb0] ss:$12 sps:$4 sm:$0xff]   ;;  %v10157_v43 = vld [vmem:[#allocation5 + $0x98] ss:$12 sps:$4 sm:$0xff]  }
 0xad5   :  { %4323 = vmatprep.subr.bf16.mxu0 %v12395_v24  ;;  %8759 = vmatprep.subr.bf16.mxu1 %v14192_v61  ;;  %v4200_v16 = vmul.f32 %v9684_v63, %v4198_v51  ;;  %v10158_v24 = vld [vmem:[#allocation5 + $0x80] ss:$12 sps:$4 sm:$0xff]   ;;  %v14493_v63 = vld [vmem:[#allocation159_spill] sm:$0xff] }
 0xad7   :  { %v12687_v11 = vadd.f32 %v4202_v42, %v4200_v16  ;;  %v14494_v16 = vld [vmem:[#allocation77_spill] sm:$0xff] }
 0xad8   :  { %4324 = vmatpush1.bf16.msra.mxu0 %v12402_v19  ;;  %8760 = vmatpush3.bf16.msra.mxu1 %v12405_v10  ;;  %v10159_v19 = vld [vmem:[#allocation5 + $0x68] ss:$12 sps:$4 sm:$0xff]   ;;  %v14479_v10 = vld [vmem:[#allocation27_spill] sm:$0xff]  ;;  %v796_v42 = vadd.f32 %v14494_v16, %v14493_v63 }
 0xad9   :  { %v12693_v0 = vpack.c.bf16 %v12687_v11, %v12680_v52  ;;  %4499 = vmatprep.subr.bf16.mxu0 %v10155_v4  ;;  %8765 = vmatprep.subr.bf16.mxu1 %v14192_v61 }
 0xadb   :  { %4342 = vmatmul.mubr.bf16.vlgmr.msra.gmra.mxu0 %v12693_v0  ;;  %8762 = vmatmul.mubr.bf16.vlgmr.msra.gmra.mxu1 %v12693_v0 }
 0xadc   :  { %4500 = vmatpush1.bf16.msra.mxu0 %v12416_v48  ;;  %8766 = vmatpush3.bf16.msra.mxu1 %v10156_v26  ;;  %v10160_v48 = vld [vmem:[#allocation5 + $0x50] ss:$12 sps:$4 sm:$0xff]  }
 0xadd   :  { %4501 = vmatprep.subr.bf16.mxu0 %v12420_v41  ;;  %8767 = vmatprep.subr.bf16.mxu1 %v14192_v61  ;;  %v14480_v41 = vld [vmem:[#allocation152_spill] sm:$0xff] }
 0xade   :  { %4531 = vmatprep.mubr.bf16.mxu0 %v14193_v55  ;;  %8781 = vmatprep.mubr.msk.bf16.mxu1 %vm10307_vm1, %v14192_v61 }
 0xae0   :  { %4502 = vmatpush1.bf16.msra.mxu0 %v12427_v53  ;;  %8768 = vmatpush3.bf16.msra.mxu1 %v10157_v43  ;;  %v14481_v53 = vld [vmem:[#allocation44_spill] sm:$0xff] }
 0xae1   :  { %4503 = vmatprep.subr.bf16.mxu0 %v14444_v45  ;;  %8769 = vmatprep.subr.bf16.mxu1 %v14192_v61  ;;  %v14483_v45 = vld [vmem:[#allocation45_spill] sm:$0xff] }
 0xae4   :  { %4504 = vmatpush1.bf16.msra.mxu0 %v14445_v35  ;;  %8770 = vmatpush3.bf16.msra.mxu1 %v10158_v24  ;;  %v10162_v35 = vld [vmem:[#allocation5 + $0x20] ss:$12 sps:$4 sm:$0xff]  }
 0xae5   :  { %4505 = vmatprep.subr.bf16.mxu0 %v14447_v15  ;;  %8771 = vmatprep.subr.bf16.mxu1 %v14192_v61  ;;  %v14484_v15 = vld [vmem:[#allocation49_spill] sm:$0xff] }
 0xae8   :  { %4506 = vmatpush1.bf16.msra.mxu0 %v14448_v21  ;;  %8772 = vmatpush3.bf16.msra.mxu1 %v10159_v19  ;;  %v14485_v21 = vld [vmem:[#allocation126_spill] sm:$0xff] }
 0xae9   :  { %4507 = vmatprep.subr.bf16.mxu0 %v14450_v47  ;;  %8773 = vmatprep.subr.bf16.mxu1 %v14192_v61  ;;  %v10163_v47 = vld [vmem:[#allocation5 + $0x8] ss:$12 sps:$4 sm:$0xff]  }
 0xaec   :  { %4508 = vmatpush1.bf16.msra.mxu0 %v14479_v10  ;;  %8774 = vmatpush3.bf16.msra.mxu1 %v10160_v48 }
 0xaed   :  { %4509 = vmatprep.subr.bf16.mxu0 %v14480_v41  ;;  %8775 = vmatprep.subr.bf16.mxu1 %v14192_v61 }
 0xaf0   :  { %4510 = vmatpush1.bf16.msra.mxu0 %v14481_v53  ;;  %8776 = vmatpush3.bf16.msra.mxu1 %v10161_v13  ;;  %v14495_v13 = vld [vmem:[#allocation81_spill] sm:$0xff] }
 0xaf1   :  { %4511 = vmatprep.subr.bf16.mxu0 %v14482_v38  ;;  %8777 = vmatprep.subr.bf16.mxu1 %v14192_v61  ;;  %v800_v38 = vadd.f32 %v14495_v13, %v14493_v63  ;;  %v10166_v13 = vld [vmem:[#allocation5 + $0x154] ss:$12 sps:$4 sm:$0xff]  }
 0xaf4   :  { %4512 = vmatpush1.bf16.msra.mxu0 %v14483_v45  ;;  %8778 = vmatpush3.bf16.msra.mxu1 %v10162_v35 }
 0xaf5   :  { %4513 = vmatprep.subr.bf16.mxu0 %v14484_v15  ;;  %8779 = vmatprep.subr.bf16.mxu1 %v14192_v61  ;;  %v14496_v15 = vld [vmem:[#allocation79_spill] sm:$0xff] }
 0xaf8   :  { %4514 = vmatpush1.bf16.msra.mxu0 %v14485_v21  ;;  %8780 = vmatpush3.bf16.msra.mxu1 %v10163_v47  ;;  %v798_v21 = vadd.f32 %v14496_v15, %v11210_v40  ;;  %v10167_v15 = vld [vmem:[#allocation5 + $0x150] ss:$12 sps:$4 sm:$0xff]  }
 0xaf9   :  { %4584 = vmatprep.subr.bf16.mxu0 %v14486_v28  ;;  %8785 = vmatprep.subr.bf16.mxu1 %v14192_v61 }
 0xb7b   :  { %v4258_v36 = vpop.f32.mrf.mxu0  ;;  %v4301_v22 = vpop.f32.mrf.mxu1 }
 0xb7c   :  { %v4393_v33 = vadd.f32 %v4258_v36, %v433_v39  ;;  %v4421_v24 = vadd.f32 %v12617_v34, %v4301_v22 }
 0xb7d   :  { %v4260_v59 = vpop.f32.mrf.mxu0  ;;  %v8743_v57 = vpop.f32.mrf.mxu1 }
 0xb7e   :  { %v7662_v49 = vmul.f32 -1.442695, %v4393_v33  ;;  %v4407_v30 = vadd.f32 %v4260_v59, %v435_v7  ;;  %v14498_v59 = vld [vmem:[#allocation21_spill] sm:$0xff]  ;;  %v14499_v57 = vld [vmem:[#allocation67_spill] sm:$0xff] }
 0xb7f   :  { %v4262_v29 = vpop.f32.mrf.mxu0  ;;  %v4304_v60 = vpop.f32.mrf.mxu1  ;;  %v569_v44 = vadd.f32 %v14499_v57, %v14498_v59  ;;  %v10171_v59 = vld [vmem:[#allocation5 + $0x140] ss:$12 sps:$4 sm:$0xff]  }
 0xb80   :  { %9685 = vpow2.f32 %v7662_v49  ;;  %v4394_v14 = vadd.f32 %v4262_v29, %v437_v27  ;;  %v7664_v23 = vmul.f32 -1.442695, %v4407_v30  ;;  %v4422_v36 = vadd.f32 %v12617_v34, %v4304_v60  ;;  %v14502_v57 = vld [vmem:[#allocation113_spill] sm:$0xff] }
 0xb81   :  { %v8744_v32 = vpop.f32.mrf.mxu1  ;;  %v4264_v8 = vpop.f32.mrf.mxu0 }
 0xb82   :  { %v7663_v54 = vmul.f32 -1.442695, %v4394_v14  ;;  %v4408_v20 = vadd.f32 %v4264_v8, %v439_v5  ;;  %v14500_v14 = vld [vmem:[#allocation83_spill] sm:$0xff] }
 0xb83   :  { %v802_v32 = vadd.f32 %v14500_v14, %v11210_v40  ;;  %v10177_v14 = vld [vmem:[#allocation5 + $0x110] ss:$12 sps:$4 sm:$0xff]  }
 0xb84   :  { %9687 = vpow2.f32 %v7663_v54  ;;  %v7665_v1 = vmul.f32 -1.442695, %v4408_v20 }
 0xb85   :  { %9689 = vpow2.f32 %v7664_v23 }
 0xb86   :  { %9691 = vpow2.f32 %v7665_v1 }
 0xb8d   :  { %v9686_v50 = vpop.eup %9685 }
 0xb8e   :  { %v4401_v9 = vadd.f32 1.0, %v9686_v50 }
 0xb90   :  { %9693 = vrcp.f32 %v4401_v9 }
 0xb91   :  { %v9688_v56 = vpop.eup %9687 }
 0xb92   :  { %v4402_v3 = vadd.f32 1.0, %v9688_v56  ;;  %v9690_v25 = vpop.eup %9689 }
 0xb93   :  { %v9692_v51 = vpop.eup %9691  ;;  %v4415_v4 = vadd.f32 1.0, %v9690_v25 }
 0xb94   :  { %9695 = vrcp.f32 %v4402_v3  ;;  %v4416_v48 = vadd.f32 1.0, %v9692_v51 }
 0xb95   :  { %9697 = vrcp.f32 %v4415_v4 }
 0xb9b   :  { %v4343_v26 = vpop.f32.mrf.mxu0  ;;  %v12735_v43 = vpop.f32.mrf.mxu1 }
 0xb9c   :  { %v4437_v19 = vadd.f32 %v4343_v26, %v796_v42 }
 0xb9d   :  { %v9694_v10 = vpop.eup %9693  ;;  %v4345_v41 = vpop.f32.mrf.mxu0 }
 0xb9e   :  { %v8763_v53 = vpop.f32.mrf.mxu1  ;;  %v4423_v45 = vmul.f32 %v9694_v10, %v4421_v24  ;;  %v7666_v35 = vmul.f32 -1.442695, %v4437_v19  ;;  %v4451_v29 = vadd.f32 %v4345_v41, %v798_v21  ;;  %v10168_v21 = vld [vmem:[#allocation5 + $0x158] ss:$12 sps:$4 sm:$0xff]  }
 0xb9f   :  { %v4347_v47 = vpop.f32.mrf.mxu0  ;;  %v10165_v53 = vld [vmem:[#allocation5 + $0x170] ss:$12 sps:$4 sm:$0xff]  }
 0xba0   :  { %v12742_v28 = vpop.f32.mrf.mxu1  ;;  %v4425_v39 = vadd.f32 %v4423_v45, %v14497_v2  ;;  %9699 = vpow2.f32 %v7666_v35  ;;  %v4438_v22 = vadd.f32 %v4347_v47, %v800_v38  ;;  %v7668_v60 = vmul.f32 -1.442695, %v4451_v29  ;;  %v14501_v47 = vld [vmem:[#allocation109_spill] sm:$0xff] }
 0xba1   :  { %v9696_v33 = vpop.eup %9695  ;;  %9701 = vrcp.f32 %v4416_v48  ;;  %v4349_v7 = vpop.f32.mrf.mxu0  ;;  %v10175_v29 = vld [vmem:[#allocation5 + $0x10c] ss:$12 sps:$4 sm:$0xff]  }
 0xba2   :  { %v8764_v27 = vpop.f32.mrf.mxu1  ;;  %9703 = vtanh.f32 %v4425_v39  ;;  %v4424_v49 = vmul.f32 %v9696_v33, %v4422_v36  ;;  %v7667_v58 = vmul.f32 -1.442695, %v4438_v22  ;;  %v4452_v54 = vadd.f32 %v4349_v7, %v802_v32  ;;  %v9698_v6 = vpop.eup %9697  ;;  %v10169_v39 = vld [vmem:[#allocation5 + $0x13c] ss:$12 sps:$4 sm:$0xff]   ;;  %v10170_v33 = vld [vmem:[#allocation5 + $0x138] ss:$12 sps:$4 sm:$0xff]  }
 0xba3   :  { %v4429_v1 = vsub.f32 1.0, %v9698_v6  ;;  %v4433_v56 = vmul.f32 %v9698_v6, %v12630_v18  ;;  %v10164_v18 = vld [vmem:[#allocation5 + $0x168] ss:$12 sps:$4 sm:$0xff]   ;;  %v10172_v27 = vld [vmem:[#allocation5 + $0x124] ss:$12 sps:$4 sm:$0xff]  }
 0xba4   :  { %v4426_v30 = vadd.f32 %v4424_v49, %v569_v44  ;;  %9705 = vpow2.f32 %v7667_v58  ;;  %v7669_v8 = vmul.f32 -1.442695, %v4452_v54  ;;  %v10174_v49 = vld [vmem:[#allocation5 + $0x128] ss:$12 sps:$4 sm:$0xff]   ;;  %v10180_v6 = vld [vmem:[#allocation5 + $0xf8] ss:$12 sps:$4 sm:$0xff]  }
 0xba5   :  { %v10176_v7 = vld [vmem:[#allocation5 + $0x108] ss:$12 sps:$4 sm:$0xff]  }
 0xba6   :  { %9707 = vtanh.f32 %v4426_v30  ;;  %v10178_v32 = vld [vmem:[#allocation5 + $0xf4] ss:$12 sps:$4 sm:$0xff]  }
 0xba7   :  { %9709 = vpow2.f32 %v7668_v60 }
 0xba8   :  { %9711 = vpow2.f32 %v7669_v8  ;;  %v10179_v8 = vld [vmem:[#allocation5 + $0xf0] ss:$12 sps:$4 sm:$0xff]  }
 0xbad   :  { %v9700_v5 = vpop.eup %9699 }
 0xbae   :  { %v9702_v20 = vpop.eup %9701  ;;  %v4445_v23 = vadd.f32 1.0, %v9700_v5  ;;  %v10181_v5 = vld [vmem:[#allocation5 + $0xdc] ss:$12 sps:$4 sm:$0xff]  }
 0xbaf   :  { %v9704_v50 = vpop.eup %9703  ;;  %v4430_v51 = vsub.f32 1.0, %v9702_v20  ;;  %v4434_v26 = vmul.f32 %v9702_v20, %v12633_v12  ;;  %v4465_v12 = vadd.f32 %v12646_v31, %v12735_v43  ;;  %v4466_v43 = vadd.f32 %v12646_v31, %v12742_v28  ;;  %v10173_v28 = vld [vmem:[#allocation5 + $0x120] ss:$12 sps:$4 sm:$0xff]  }
 0xbb0   :  { %9713 = vrcp.f32 %v4445_v23  ;;  %v4431_v9 = vmul.f32 %v9704_v50, %v4429_v1 }
 0xbb1   :  { %v9706_v3 = vpop.eup %9705 }
 0xbb2   :  { %v4446_v25 = vadd.f32 1.0, %v9706_v3  ;;  %v12751_v16 = vadd.f32 %v4433_v56, %v4431_v9  ;;  %v10182_v56 = vld [vmem:[#allocation5 + $0xd8] ss:$12 sps:$4 sm:$0xff]   ;;  %v10183_v3 = vld [vmem:[#allocation5 + $0xe0] ss:$12 sps:$4 sm:$0xff]  }
 0xbb3   :  { %v9708_v42 = vpop.eup %9707 }
 0xbb4   :  { %9715 = vrcp.f32 %v4446_v25  ;;  %v4432_v4 = vmul.f32 %v9708_v42, %v4430_v51  ;;  %v9710_v19 = vpop.eup %9709  ;;  %v10184_v25 = vld [vmem:[#allocation5 + $0xc4] ss:$12 sps:$4 sm:$0xff]  }
 0xbb5   :  { %v9712_v48 = vpop.eup %9711  ;;  %v4459_v41 = vadd.f32 1.0, %v9710_v19 }
 0xbb6   :  { %v12754_v24 = vadd.f32 %v4434_v26, %v4432_v4  ;;  %v4460_v45 = vadd.f32 1.0, %v9712_v48  ;;  %v10185_v26 = vld [vmem:[#allocation5 + $0xc0] ss:$12 sps:$4 sm:$0xff]  }
 0xbb7   :  { %9717 = vrcp.f32 %v4459_v41  ;;  %v9183_v48 = vld [vmem:[#allocation7 + $0xac] ss:$12 sps:$4 sm:$0xff]   ;;  %v9181_v41 = vld [vmem:[#allocation7 + $0xa8] ss:$12 sps:$4 sm:$0xff]  }
 0xbb8   :  { %v12758_v10 = vpack.c.bf16 %v12754_v24, %v12751_v16  ;;  %9719 = vrcp.f32 %v4460_v45  ;;  %v9195_v45 = vld [vmem:[#allocation7 + $0x4c] ss:$12 sps:$4 sm:$0xff]  }
 0xbba   :  { %4532 = vmatmul.mubr.bf16.vlgmr.msra.gmra.mxu0 %v12758_v10  ;;  %8782 = vmatmul.mubr.bf16.vlgmr.msra.gmra.mxu1 %v12758_v10 }
 0xbbb   :  { %4585 = vmatpush1.bf16.msra.mxu0 %v10164_v18  ;;  %8786 = vmatpush3.bf16.msra.mxu1 %v10165_v53  ;;  %v9186_v18 = vld [vmem:[#allocation7 + $0x94] ss:$12 sps:$4 sm:$0xff]   ;;  %v9189_v53 = vld [vmem:[#allocation7 + $0x7c] ss:$12 sps:$4 sm:$0xff]  }
 0xbbc   :  { %4586 = vmatprep.subr.bf16.mxu0 %v10166_v13  ;;  %8787 = vmatprep.subr.bf16.mxu1 %v14192_v61  ;;  %v9192_v13 = vld [vmem:[#allocation7 + $0x64] ss:$12 sps:$4 sm:$0xff]  }
 0xbbd   :  { %v9714_v38 = vpop.eup %9713  ;;  %4616 = vmatprep.mubr.bf16.mxu0 %v14193_v55  ;;  %8801 = vmatprep.mubr.msk.bf16.mxu1 %vm10307_vm1, %v14192_v61 }
 0xbbe   :  { %v4467_v35 = vmul.f32 %v9714_v38, %v4465_v12  ;;  %v9187_v12 = vld [vmem:[#allocation7 + $0x78] ss:$12 sps:$4 sm:$0xff]   ;;  %v9190_v38 = vld [vmem:[#allocation7 + $0x60] ss:$12 sps:$4 sm:$0xff]  }
 0xbbf   :  { %4587 = vmatpush1.bf16.msra.mxu0 %v10167_v15  ;;  %8788 = vmatpush3.bf16.msra.mxu1 %v10168_v21  ;;  %v9198_v15 = vld [vmem:[#allocation7 + $0x34] ss:$12 sps:$4 sm:$0xff]   ;;  %v9196_v21 = vld [vmem:[#allocation7 + $0x30] ss:$12 sps:$4 sm:$0xff]  }
 0xbc0   :  { %v4469_v2 = vadd.f32 %v4467_v35, %v14501_v47  ;;  %4588 = vmatprep.subr.bf16.mxu0 %v10169_v39  ;;  %8789 = vmatprep.subr.bf16.mxu1 %v14192_v61  ;;  %v9193_v35 = vld [vmem:[#allocation7 + $0x48] ss:$12 sps:$4 sm:$0xff]   ;;  %v9202_v39 = vld [vmem:[#allocation7] ss:$12 sps:$4 sm:$0xff]  }
 0xbc1   :  { %v9716_v36 = vpop.eup %9715  ;;  %v9201_v47 = vld [vmem:[#allocation7 + $0x1c] ss:$12 sps:$4 sm:$0xff]  }
 0xbc2   :  { %9721 = vtanh.f32 %v4469_v2  ;;  %v4468_v22 = vmul.f32 %v9716_v36, %v4466_v43  ;;  %v9199_v2 = vld [vmem:[#allocation7 + $0x18] ss:$12 sps:$4 sm:$0xff]  }
 0xbc3   :  { %4589 = vmatpush1.bf16.msra.mxu0 %v10170_v33  ;;  %8790 = vmatpush3.bf16.msra.mxu1 %v10171_v59  ;;  %v9204_v43 = vld [vmem:[#allocation7 + $0x4] ss:$12 sps:$4 sm:$0xff]   ;;  %v9207_v36 = vld [vmem:[#allocation7 + $0x16c] ss:$12 sps:$4 sm:$0xff]   ;;  %v9205_v33 = vld [vmem:[#allocation7 + $0x168] ss:$12 sps:$4 sm:$0xff]  }
 0xbc4   :  { %v4470_v44 = vadd.f32 %v4468_v22, %v14502_v57  ;;  %4590 = vmatprep.subr.bf16.mxu0 %v10172_v27  ;;  %8791 = vmatprep.subr.bf16.mxu1 %v14192_v61  ;;  %v9718_v58 = vpop.eup %9717  ;;  %v9208_v22 = vld [vmem:[#allocation7 + $0x170] ss:$12 sps:$4 sm:$0xff]   ;;  %v9212_v57 = vld [vmem:[#allocation7 + $0x154] ss:$12 sps:$4 sm:$0xff]  }
 0xbc5   :  { %v9720_v30 = vpop.eup %9719  ;;  %v4473_v54 = vsub.f32 1.0, %v9718_v58  ;;  %v4477_v23 = vmul.f32 %v9718_v58, %v12680_v52  ;;  %v10186_v52 = vld [vmem:[#allocation5 + $0xc8] ss:$12 sps:$4 sm:$0xff]   ;;  %v9209_v59 = vld [vmem:[#allocation7 + $0xb0] ss:$12 sps:$4 sm:$0xff]  }
 0xbc6   :  { %9723 = vtanh.f32 %v4470_v44  ;;  %v4474_v1 = vsub.f32 1.0, %v9720_v30  ;;  %v4478_v42 = vmul.f32 %v9720_v30, %v12687_v11  ;;  %v9184_v11 = vld [vmem:[#allocation7 + $0x90] ss:$12 sps:$4 sm:$0xff]   ;;  %v9213_v44 = vld [vmem:[#allocation7 + $0x158] ss:$12 sps:$4 sm:$0xff]  }
 0xbc7   :  { %4591 = vmatpush1.bf16.msra.mxu0 %v10173_v28  ;;  %8792 = vmatpush3.bf16.msra.mxu1 %v10174_v49  ;;  %v9210_v27 = vld [vmem:[#allocation7 + $0x150] ss:$12 sps:$4 sm:$0xff]   ;;  %v9214_v28 = vld [vmem:[#allocation7 + $0x98] ss:$12 sps:$4 sm:$0xff]   ;;  %v9223_v30 = vld [vmem:[#allocation7 + $0x128] ss:$12 sps:$4 sm:$0xff]  }
 0xbc8   :  { %4592 = vmatprep.subr.bf16.mxu0 %v10175_v29  ;;  %8793 = vmatprep.subr.bf16.mxu1 %v14192_v61  ;;  %v9217_v49 = vld [vmem:[#allocation7 + $0x13c] ss:$12 sps:$4 sm:$0xff]   ;;  %v9218_v29 = vld [vmem:[#allocation7 + $0x140] ss:$12 sps:$4 sm:$0xff]   ;;  %v9215_v58 = vld [vmem:[#allocation7 + $0x138] ss:$12 sps:$4 sm:$0xff]  }
 0xbcb   :  { %4593 = vmatpush1.bf16.msra.mxu0 %v10176_v7  ;;  %8794 = vmatpush3.bf16.msra.mxu1 %v10177_v14  ;;  %v9219_v7 = vld [vmem:[#allocation7 + $0x80] ss:$12 sps:$4 sm:$0xff]  }
 0xbcc   :  { %4594 = vmatprep.subr.bf16.mxu0 %v10178_v32  ;;  %8795 = vmatprep.subr.bf16.mxu1 %v14192_v61  ;;  %v9220_v14 = vld [vmem:[#allocation7 + $0x120] ss:$12 sps:$4 sm:$0xff]   ;;  %v9222_v32 = vld [vmem:[#allocation7 + $0x124] ss:$12 sps:$4 sm:$0xff]  }
 0xbcf   :  { %v9722_v60 = vpop.eup %9721  ;;  %4595 = vmatpush1.bf16.msra.mxu0 %v10179_v8  ;;  %8796 = vmatpush3.bf16.msra.mxu1 %v10180_v6  ;;  %v9228_v8 = vld [vmem:[#allocation7 + $0x110] ss:$12 sps:$4 sm:$0xff]   ;;  %v9225_v6 = vld [vmem:[#allocation7 + $0x108] ss:$12 sps:$4 sm:$0xff]  }
 0xbd0   :  { %4596 = vmatprep.subr.bf16.mxu0 %v10181_v5  ;;  %8797 = vmatprep.subr.bf16.mxu1 %v14192_v61  ;;  %v4475_v20 = vmul.f32 %v9722_v60, %v4473_v54  ;;  %v9224_v54 = vld [vmem:[#allocation7 + $0x68] ss:$12 sps:$4 sm:$0xff]   ;;  %v9227_v60 = vld [vmem:[#allocation7 + $0x10c] ss:$12 sps:$4 sm:$0xff]   ;;  %v9229_v5 = vld [vmem:[#allocation7 + $0x50] ss:$12 sps:$4 sm:$0xff]  }
 0xbd2   :  { %v12778_v50 = vadd.f32 %v4477_v23, %v4475_v20  ;;  %v9232_v20 = vld [vmem:[#allocation7 + $0xf4] ss:$12 sps:$4 sm:$0xff]   ;;  %v9233_v23 = vld [vmem:[#allocation7 + $0xf8] ss:$12 sps:$4 sm:$0xff]  }
 0xbd3   :  { %v9724_v9 = vpop.eup %9723  ;;  %4597 = vmatpush1.bf16.msra.mxu0 %v10182_v56  ;;  %8798 = vmatpush3.bf16.msra.mxu1 %v10183_v3  ;;  %v9237_v56 = vld [vmem:[#allocation7 + $0xdc] ss:$12 sps:$4 sm:$0xff]   ;;  %v9238_v3 = vld [vmem:[#allocation7 + $0xe0] ss:$12 sps:$4 sm:$0xff]  }
 0xbd4   :  { %4598 = vmatprep.subr.bf16.mxu0 %v10184_v25  ;;  %8799 = vmatprep.subr.bf16.mxu1 %v14192_v61  ;;  %v4476_v51 = vmul.f32 %v9724_v9, %v4474_v1  ;;  %v9230_v1 = vld [vmem:[#allocation7 + $0xf0] ss:$12 sps:$4 sm:$0xff]   ;;  %v9234_v9 = vld [vmem:[#allocation7 + $0x38] ss:$12 sps:$4 sm:$0xff]  }
 0xbd5   :  { %v9235_v25 = vld [vmem:[#allocation7 + $0xd8] ss:$12 sps:$4 sm:$0xff]  }
 0xbd6   :  { %v12782_v4 = vadd.f32 %v4478_v42, %v4476_v51  ;;  %v9239_v51 = vld [vmem:[#allocation7 + $0x20] ss:$12 sps:$4 sm:$0xff]   ;;  %v9242_v42 = vld [vmem:[#allocation7 + $0xc4] ss:$12 sps:$4 sm:$0xff]  }
 0xbd7   :  { %4599 = vmatpush1.bf16.msra.mxu0 %v10185_v26  ;;  %8800 = vmatpush3.bf16.msra.mxu1 %v10186_v52  ;;  %v9243_v26 = vld [vmem:[#allocation7 + $0xc8] ss:$12 sps:$4 sm:$0xff]   ;;  %v9240_v52 = vld [vmem:[#allocation7 + $0xc0] ss:$12 sps:$4 sm:$0xff]  }
 0xbd8   :  { %v12786_v19 = vpack.c.bf16 %v12782_v4, %v12778_v50  ;;  %5169 = vmatprep.subr.bf16.mxu0 %v9183_v48  ;;  %8056 = vmatprep.subr.bf16.mxu1 %v9208_v22  ;;  %v9244_v48 = vld [vmem:[#allocation7 + $0x8] ss:$12 sps:$4 sm:$0xff]  }
 0xbda   :  { %4617 = vmatmul.mubr.bf16.vlgmr.msra.gmra.mxu0 %v12786_v19  ;;  %8802 = vmatmul.mubr.bf16.vlgmr.msra.gmra.mxu1 %v12786_v19 }
 0xbdb   :  { %5170 = vmatpush1.bf16.msra.mxu0 %v9181_v41  ;;  %8057 = vmatpush3.bf16.msra.mxu1 %v9209_v59  ;;  %v12791_v41 = vld [vmem:[#allocation9 + $0xac] ss:$12 sps:$4 sm:$0xff]  }
 0xbdc   :  { %5171 = vmatprep.subr.bf16.mxu0 %v9186_v18  ;;  %8058 = vmatprep.subr.bf16.mxu1 %v9213_v44  ;;  %v14503_v18 = vld [vmem:[#allocation100_spill] sm:$0xff]  ;;  %v14506_v44 = vld [vmem:[#allocation107_spill] sm:$0xff] }
 0xbdf   :  { %5172 = vmatpush1.bf16.msra.mxu0 %v9184_v11  ;;  %8059 = vmatpush3.bf16.msra.mxu1 %v9214_v28  ;;  %v443_v11 = vadd.f32 %v14503_v18, %v14487_v62 }
 0xbe0   :  { %5173 = vmatprep.subr.bf16.mxu0 %v9189_v53  ;;  %8060 = vmatprep.subr.bf16.mxu1 %v9218_v29 }
 0xbe3   :  { %5174 = vmatpush1.bf16.msra.mxu0 %v9187_v12  ;;  %8061 = vmatpush3.bf16.msra.mxu1 %v9219_v7 }
 0xbe4   :  { %5175 = vmatprep.subr.bf16.mxu0 %v9192_v13  ;;  %8062 = vmatprep.subr.bf16.mxu1 %v9223_v30  ;;  %v14504_v13 = vld [vmem:[#allocation102_spill] sm:$0xff] }
 0xbe7   :  { %5176 = vmatpush1.bf16.msra.mxu0 %v9190_v38  ;;  %8063 = vmatpush3.bf16.msra.mxu1 %v9224_v54  ;;  %v445_v38 = vadd.f32 %v14504_v13, %v14490_v37  ;;  %v14507_v54 = vld [vmem:[#allocation69_spill] sm:$0xff] }
 0xbe8   :  { %5177 = vmatprep.subr.bf16.mxu0 %v9195_v45  ;;  %8064 = vmatprep.subr.bf16.mxu1 %v9228_v8 }
 0xbeb   :  { %5178 = vmatpush1.bf16.msra.mxu0 %v9193_v35  ;;  %8065 = vmatpush3.bf16.msra.mxu1 %v9229_v5 }
 0xbec   :  { %5179 = vmatprep.subr.bf16.mxu0 %v9198_v15  ;;  %8066 = vmatprep.subr.bf16.mxu1 %v9233_v23 }
 0xbef   :  { %5180 = vmatpush1.bf16.msra.mxu0 %v9196_v21  ;;  %8067 = vmatpush3.bf16.msra.mxu1 %v9234_v9  ;;  %v14505_v21 = vld [vmem:[#allocation104_spill] sm:$0xff] }
 0xbf0   :  { %5181 = vmatprep.subr.bf16.mxu0 %v9201_v47  ;;  %8068 = vmatprep.subr.bf16.mxu1 %v9238_v3  ;;  %v447_v47 = vadd.f32 %v14505_v21, %v14487_v62  ;;  %v14508_v3 = vld [vmem:[#allocation73_spill] sm:$0xff] }
 0xbf3   :  { %5182 = vmatpush1.bf16.msra.mxu0 %v9199_v2  ;;  %8069 = vmatpush3.bf16.msra.mxu1 %v9239_v51 }
 0xbf4   :  { %5183 = vmatprep.subr.bf16.mxu0 %v9204_v43  ;;  %8070 = vmatprep.subr.bf16.mxu1 %v9243_v26  ;;  %v14509_v26 = vld [vmem:[#allocation71_spill] sm:$0xff] }
 0xbf7   :  { %5184 = vmatpush1.bf16.msra.mxu0 %v9202_v39  ;;  %8071 = vmatpush3.bf16.msra.mxu1 %v9244_v48 }
 0xbf8   :  { %5185 = vmatprep.subr.bf16.mxu0 %v9207_v36  ;;  %5696 = vmatprep.subr.bf16.mxu1 %v12791_v41 }
 0xbfb   :  { %5186 = vmatpush2.bf16.msra.mxu0 %v9205_v33 }
 0xbfc   :  { %5187 = vmatprep.subr.bf16.mxu0 %v9212_v57 }
 0xbff   :  { %5188 = vmatpush2.bf16.msra.mxu0 %v9210_v27  ;;  %v449_v27 = vadd.f32 %v14506_v44, %v14490_v37 }
 0xc00   :  { %5189 = vmatprep.subr.bf16.mxu0 %v9217_v49 }
 0xc03   :  { %5190 = vmatpush2.bf16.msra.mxu0 %v9215_v58 }
 0xc04   :  { %5191 = vmatprep.subr.bf16.mxu0 %v9222_v32 }
 0xc07   :  { %5192 = vmatpush2.bf16.msra.mxu0 %v9220_v14 }
 0xc08   :  { %5193 = vmatprep.subr.bf16.mxu0 %v9227_v60  ;;  %v786_v60 = vadd.f32 %v14507_v54, %v14493_v63 }
 0xc0b   :  { %5194 = vmatpush2.bf16.msra.mxu0 %v9225_v6 }
 0xc0c   :  { %5195 = vmatprep.subr.bf16.mxu0 %v9232_v20 }
 0xc0f   :  { %5196 = vmatpush2.bf16.msra.mxu0 %v9230_v1 }
 0xc10   :  { %5197 = vmatprep.subr.bf16.mxu0 %v9237_v56 }
 0xc13   :  { %5198 = vmatpush2.bf16.msra.mxu0 %v9235_v25  ;;  %v790_v25 = vadd.f32 %v14508_v3, %v14493_v63 }
 0xc14   :  { %5199 = vmatprep.subr.bf16.mxu0 %v9242_v42 }
 0xc17   :  { %5200 = vmatpush2.bf16.msra.mxu0 %v9240_v52  ;;  %v788_v52 = vadd.f32 %v14509_v26, %v11210_v40 }
 0xc18   :  { %8805 = vmatprep.subr.bf16.mxu0 %v14192_v61 }
 0xc7a   :  { %v4533_v53 = vpop.f32.mrf.mxu0  ;;  %v4576_v12 = vpop.f32.mrf.mxu1 }
 0xc7b   :  { %v4668_v45 = vadd.f32 %v4533_v53, %v443_v11  ;;  %v4696_v5 = vadd.f32 %v12617_v34, %v4576_v12  ;;  %v14510_v11 = vld [vmem:[#allocation62_spill] sm:$0xff] }
 0xc7c   :  { %v4535_v35 = vpop.f32.mrf.mxu0  ;;  %v8783_v15 = vpop.f32.mrf.mxu1 }
 0xc7d   :  { %v7670_v2 = vmul.f32 -1.442695, %v4668_v45  ;;  %v4682_v43 = vadd.f32 %v4535_v35, %v445_v38 }
 0xc7e   :  { %v4537_v39 = vpop.f32.mrf.mxu0  ;;  %v4579_v36 = vpop.f32.mrf.mxu1 }
 0xc7f   :  { %9725 = vpow2.f32 %v7670_v2  ;;  %v4669_v22 = vadd.f32 %v4537_v39, %v447_v47  ;;  %v7672_v49 = vmul.f32 -1.442695, %v4682_v43  ;;  %v4697_v12 = vadd.f32 %v12617_v34, %v4579_v36  ;;  %v14511_v47 = vld [vmem:[#allocation75_spill] sm:$0xff]  ;;  %v14512_v43 = vld [vmem:[#allocation66_spill] sm:$0xff] }
 0xc80   :  { %v8784_v33 = vpop.f32.mrf.mxu1  ;;  %v4539_v57 = vpop.f32.mrf.mxu0  ;;  %v792_v2 = vadd.f32 %v14511_v47, %v11210_v40  ;;  %v14515_v47 = vld [vmem:[#allocation160_spill] sm:$0xff] }
 0xc81   :  { %v7671_v59 = vmul.f32 -1.442695, %v4669_v22  ;;  %v4683_v28 = vadd.f32 %v4539_v57, %v449_v27 }
 0xc83   :  { %9727 = vpow2.f32 %v7671_v59  ;;  %v7673_v29 = vmul.f32 -1.442695, %v4683_v28 }
 0xc84   :  { %9729 = vpow2.f32 %v7672_v49 }
 0xc85   :  { %9731 = vpow2.f32 %v7673_v29 }
 0xc8c   :  { %v9726_v58 = vpop.eup %9725 }
 0xc8d   :  { %v4676_v62 = vadd.f32 1.0, %v9726_v58 }
 0xc8f   :  { %9733 = vrcp.f32 %v4676_v62 }
 0xc90   :  { %v9728_v7 = vpop.eup %9727 }
 0xc91   :  { %v4677_v14 = vadd.f32 1.0, %v9728_v7  ;;  %v9730_v32 = vpop.eup %9729 }
 0xc92   :  { %v9732_v30 = vpop.eup %9731  ;;  %v4690_v8 = vadd.f32 1.0, %v9730_v32 }
 0xc93   :  { %9735 = vrcp.f32 %v4677_v14  ;;  %v4691_v1 = vadd.f32 1.0, %v9732_v30 }
 0xc94   :  { %9737 = vrcp.f32 %v4690_v8 }
 0xc9a   :  { %v4618_v6 = vpop.f32.mrf.mxu0  ;;  %v4661_v37 = vpop.f32.mrf.mxu1 }
 0xc9b   :  { %v4712_v20 = vadd.f32 %v4618_v6, %v786_v60 }
 0xc9c   :  { %v9734_v23 = vpop.eup %9733  ;;  %v4620_v9 = vpop.f32.mrf.mxu0 }
 0xc9d   :  { %v8803_v56 = vpop.f32.mrf.mxu1  ;;  %v4698_v51 = vmul.f32 %v9734_v23, %v4696_v5  ;;  %v7674_v42 = vmul.f32 -1.442695, %v4712_v20  ;;  %v4726_v63 = vadd.f32 %v4620_v9, %v788_v52  ;;  %v4740_v20 = vadd.f32 %v12646_v31, %v4661_v37  ;;  %v14513_v9 = vld [vmem:[#allocation111_spill] sm:$0xff] }
 0xc9e   :  { %v4622_v48 = vpop.f32.mrf.mxu0 }
 0xc9f   :  { %v4664_v18 = vpop.f32.mrf.mxu1  ;;  %v4700_v53 = vadd.f32 %v4698_v51, %v14510_v11  ;;  %9739 = vpow2.f32 %v7674_v42  ;;  %v4713_v13 = vadd.f32 %v4622_v48, %v790_v25  ;;  %v7676_v33 = vmul.f32 -1.442695, %v4726_v63 }
 0xca0   :  { %v9736_v38 = vpop.eup %9735  ;;  %9741 = vrcp.f32 %v4691_v1  ;;  %v4624_v21 = vpop.f32.mrf.mxu0  ;;  %v4741_v3 = vadd.f32 %v12646_v31, %v4664_v18 }
 0xca1   :  { %v8804_v45 = vpop.f32.mrf.mxu1  ;;  %9743 = vtanh.f32 %v4700_v53  ;;  %v4699_v35 = vmul.f32 %v9736_v38, %v4697_v12  ;;  %v7675_v15 = vmul.f32 -1.442695, %v4713_v13  ;;  %v4727_v22 = vadd.f32 %v4624_v21, %v792_v2  ;;  %v9738_v36 = vpop.eup %9737  ;;  %v12829_v21 = vld [vmem:[#allocation9 + $0x94] ss:$12 sps:$4 sm:$0xff]   ;;  %v12842_v2 = vld [vmem:[#allocation9 + $0x7c] ss:$12 sps:$4 sm:$0xff]  }
 0xca2   :  { %v4704_v27 = vsub.f32 1.0, %v9738_v36  ;;  %v4708_v29 = vmul.f32 %v9738_v36, %v12751_v16  ;;  %v12866_v36 = vld [vmem:[#allocation9 + $0x4c] ss:$12 sps:$4 sm:$0xff]  }
 0xca3   :  { %v4701_v39 = vadd.f32 %v4699_v35, %v14512_v43  ;;  %9745 = vpow2.f32 %v7675_v15  ;;  %v7677_v34 = vmul.f32 -1.442695, %v4727_v22  ;;  %v12827_v15 = vld [vmem:[#allocation9 + $0xb0] ss:$12 sps:$4 sm:$0xff]   ;;  %v12846_v43 = vld [vmem:[#allocation9 + $0x78] ss:$12 sps:$4 sm:$0xff]  }
 0xca4   :  { %v14516_v22 = vld [vmem:[#allocation16_spill] sm:$0xff] }
 0xca5   :  { %9747 = vtanh.f32 %v4701_v39  ;;  %v12852_v39 = vld [vmem:[#allocation9 + $0x64] ss:$12 sps:$4 sm:$0xff]  }
 0xca6   :  { %9749 = vpow2.f32 %v7676_v33  ;;  %v12860_v33 = vld [vmem:[#allocation9 + $0x60] ss:$12 sps:$4 sm:$0xff]  }
 0xca7   :  { %9751 = vpow2.f32 %v7677_v34  ;;  %v12863_v34 = vld [vmem:[#allocation9 + $0x68] ss:$12 sps:$4 sm:$0xff]  }
 0xcac   :  { %v9740_v59 = vpop.eup %9739 }
 0xcad   :  { %v9742_v57 = vpop.eup %9741  ;;  %v4720_v44 = vadd.f32 1.0, %v9740_v59  ;;  %v12870_v59 = vld [vmem:[#allocation9 + $0x48] ss:$12 sps:$4 sm:$0xff]  }
 0xcae   :  { %v9744_v28 = vpop.eup %9743  ;;  %v4705_v62 = vsub.f32 1.0, %v9742_v57  ;;  %v4709_v30 = vmul.f32 %v9742_v57, %v12754_v24  ;;  %v14514_v24 = vld [vmem:[#allocation114_spill] sm:$0xff] }
 0xcaf   :  { %9753 = vrcp.f32 %v4720_v44  ;;  %v4706_v49 = vmul.f32 %v9744_v28, %v4704_v27  ;;  %v942_v51 = vadd.f32 %v14514_v24, %v14477_v46  ;;  %v12825_v46 = vld [vmem:[#allocation9 + $0xa8] ss:$12 sps:$4 sm:$0xff]   ;;  %v14517_v44 = vld [vmem:[#allocation155_spill] sm:$0xff]  ;;  %v14518_v27 = vld [vmem:[#allocation40_spill] sm:$0xff] }
 0xcb0   :  { %v9746_v40 = vpop.eup %9745  ;;  %v12876_v57 = vld [vmem:[#allocation9 + $0x34] ss:$12 sps:$4 sm:$0xff]   ;;  %v12884_v28 = vld [vmem:[#allocation9 + $0x30] ss:$12 sps:$4 sm:$0xff]  }
 0xcb1   :  { %v4721_v58 = vadd.f32 1.0, %v9746_v40  ;;  %v4710_v7 = vadd.f32 %v4708_v29, %v4706_v49  ;;  %v12887_v49 = vld [vmem:[#allocation9 + $0x38] ss:$12 sps:$4 sm:$0xff]   ;;  %v12890_v29 = vld [vmem:[#allocation9 + $0x1c] ss:$12 sps:$4 sm:$0xff]  }
 0xcb2   :  { %v9748_v14 = vpop.eup %9747  ;;  %v12894_v40 = vld [vmem:[#allocation9 + $0x18] ss:$12 sps:$4 sm:$0xff]  }
 0xcb3   :  { %9755 = vrcp.f32 %v4721_v58  ;;  %v4707_v32 = vmul.f32 %v9748_v14, %v4705_v62  ;;  %v9750_v60 = vpop.eup %9749  ;;  %v12897_v58 = vld [vmem:[#allocation9 + $0x20] ss:$12 sps:$4 sm:$0xff]   ;;  %v12900_v62 = vld [vmem:[#allocation9 + $0x4] ss:$12 sps:$4 sm:$0xff]  }
 0xcb4   :  { %v9752_v6 = vpop.eup %9751  ;;  %v4734_v5 = vadd.f32 1.0, %v9750_v60  ;;  %v14520_v14 = vld [vmem:[#allocation26_spill] sm:$0xff] }
 0xcb5   :  { %v4711_v54 = vadd.f32 %v4709_v30, %v4707_v32  ;;  %v4735_v1 = vadd.f32 1.0, %v9752_v6  ;;  %v12908_v32 = vld [vmem:[#allocation9] ss:$12 sps:$4 sm:$0xff]   ;;  %v12911_v30 = vld [vmem:[#allocation9 + $0x8] ss:$12 sps:$4 sm:$0xff]   ;;  %v14523_v6 = vld [vmem:[#allocation39_spill] sm:$0xff] }
 0xcb6   :  { %9757 = vrcp.f32 %v4734_v5  ;;  %v14522_v60 = vld [vmem:[#allocation134_spill] sm:$0xff]  ;;  %v14524_v5 = vld [vmem:[#allocation37_spill] sm:$0xff] }
 0xcb7   :  { %v12816_v8 = vpack.c.bf16 %v4711_v54, %v4710_v7  ;;  %9759 = vrcp.f32 %v4735_v1  ;;  %v14519_v7 = vld [vmem:[#allocation31_spill] sm:$0xff]  ;;  %v14521_v54 = vld [vmem:[#allocation149_spill] sm:$0xff]  ;;  %v14527_v1 = vld [vmem:[#allocation146_spill] sm:$0xff] }
 0xcbc   :  { %v9754_v23 = vpop.eup %9753 }
 0xcbd   :  { %v4742_v16 = vmul.f32 %v9754_v23, %v4740_v20  ;;  %v14525_v20 = vld [vmem:[#allocation41_spill] sm:$0xff] }
 0xcbe   :  { %v14526_v23 = vld [vmem:[#allocation141_spill] sm:$0xff] }
 0xcbf   :  { %v4744_v56 = vadd.f32 %v4742_v16, %v14513_v9  ;;  %v14528_v16 = vld [vmem:[#allocation29_spill] sm:$0xff]  ;;  %v14529_v9 = vld [vmem:[#allocation128_spill] sm:$0xff] }
 0xcc0   :  { %v9756_v25 = vpop.eup %9755 }
 0xcc1   :  { %9761 = vtanh.f32 %v4744_v56  ;;  %v4743_v42 = vmul.f32 %v9756_v25, %v4741_v3  ;;  %v14530_v56 = vld [vmem:[#allocation28_spill] sm:$0xff]  ;;  %v14531_v3 = vld [vmem:[#allocation17_spill] sm:$0xff] }
 0xcc2   :  { %v14532_v25 = vld [vmem:[#allocation161_spill] sm:$0xff] }
 0xcc3   :  { %v4745_v26 = vadd.f32 %v4743_v42, %v942_v51  ;;  %v9758_v52 = vpop.eup %9757 }
 0xcc4   :  { %v9760_v48 = vpop.eup %9759  ;;  %v4748_v37 = vsub.f32 1.0, %v9758_v52  ;;  %v4752_v12 = vmul.f32 %v9758_v52, %v12778_v50  ;;  %v12836_v50 = vld [vmem:[#allocation9 + $0x90] ss:$12 sps:$4 sm:$0xff]  }
 0xcc5   :  { %9763 = vtanh.f32 %v4745_v26  ;;  %v4749_v13 = vsub.f32 1.0, %v9760_v48  ;;  %v4753_v18 = vmul.f32 %v9760_v48, %v12782_v4  ;;  %v12839_v4 = vld [vmem:[#allocation9 + $0x98] ss:$12 sps:$4 sm:$0xff]  }
 0xcce   :  { %v9762_v11 = vpop.eup %9761 }
 0xccf   :  { %v4750_v53 = vmul.f32 %v9762_v11, %v4748_v37 }
 0xcd1   :  { %v4754_v38 = vadd.f32 %v4752_v12, %v4750_v53 }
 0xcd2   :  { %v9764_v45 = vpop.eup %9763 }
 0xcd3   :  { %v4751_v31 = vmul.f32 %v9764_v45, %v4749_v13 }
 0xcd5   :  { %v4755_v35 = vadd.f32 %v4753_v18, %v4751_v31 }
 0xcd7   :  { %v4809_v63 = vpack.c.bf16 %v4755_v35, %v4754_v38 }
 0xcd9   :  { %5201 = vmatprep.mubr.bf16.mxu0 %v4809_v63  ;;  %5354 = vmatprep.mubr.bf16.mxu1 %v4809_v63 }
 0xcda   :  { %5202 = vmatmul.mubr.bf16.vlgmr.msra.gmra.mxu0 %v14515_v47  ;;  %5355 = vmatmul.mubr.bf16.vlgmr.msra.gmra.mxu1 %v14515_v47 }
 0xcdb   :  { %5211 = vmatprep.mubr.bf16.mxu0 %v12786_v19  ;;  %5362 = vmatprep.mubr.bf16.mxu1 %v12786_v19  ;;  %v12849_v19 = vld [vmem:[#allocation9 + $0x80] ss:$12 sps:$4 sm:$0xff]  }
 0xcdc   :  { %5697 = vmatpush1.bf16.msra.mxu1 %v12825_v46  ;;  %8806 = vmatpush3.bf16.msra.mxu0 %v12827_v15 }
 0xcdd   :  { %5698 = vmatprep.subr.bf16.mxu1 %v12829_v21  ;;  %8807 = vmatprep.subr.bf16.mxu0 %v14192_v61 }
 0xce0   :  { %5699 = vmatpush1.bf16.msra.mxu1 %v12836_v50  ;;  %8808 = vmatpush3.bf16.msra.mxu0 %v12839_v4 }
 0xce1   :  { %5700 = vmatprep.subr.bf16.mxu1 %v12842_v2  ;;  %8809 = vmatprep.subr.bf16.mxu0 %v14192_v61 }
 0xce2   :  { %5212 = vmatmul.mubr.bf16.gmra.mxu0 %v14516_v22  ;;  %5363 = vmatmul.mubr.bf16.gmra.mxu1 %v14516_v22 }
 0xce3   :  { %5221 = vmatprep.mubr.bf16.mxu0 %v12693_v0  ;;  %5370 = vmatprep.mubr.bf16.mxu1 %v12693_v0  ;;  %v12873_v0 = vld [vmem:[#allocation9 + $0x50] ss:$12 sps:$4 sm:$0xff]  }
 0xce4   :  { %5701 = vmatpush1.bf16.msra.mxu1 %v12846_v43  ;;  %8810 = vmatpush3.bf16.msra.mxu0 %v12849_v19 }
 0xce5   :  { %5702 = vmatprep.subr.bf16.mxu1 %v12852_v39  ;;  %8811 = vmatprep.subr.bf16.mxu0 %v14192_v61 }
 0xce8   :  { %5703 = vmatpush1.bf16.msra.mxu1 %v12860_v33  ;;  %8812 = vmatpush3.bf16.msra.mxu0 %v12863_v34 }
 0xce9   :  { %5704 = vmatprep.subr.bf16.mxu1 %v12866_v36  ;;  %8813 = vmatprep.subr.bf16.mxu0 %v14192_v61 }
 0xcea   :  { %5222 = vmatmul.mubr.bf16.gmra.mxu0 %v14517_v44  ;;  %5371 = vmatmul.mubr.bf16.gmra.mxu1 %v14517_v44 }
 0xceb   :  { %5231 = vmatprep.mubr.bf16.mxu0 %v14518_v27  ;;  %5378 = vmatprep.mubr.bf16.mxu1 %v14518_v27 }
 0xcec   :  { %5705 = vmatpush1.bf16.msra.mxu1 %v12870_v59  ;;  %8814 = vmatpush3.bf16.msra.mxu0 %v12873_v0 }
 0xced   :  { %5706 = vmatprep.subr.bf16.mxu1 %v12876_v57  ;;  %8815 = vmatprep.subr.bf16.mxu0 %v14192_v61 }
 0xcf0   :  { %5707 = vmatpush1.bf16.msra.mxu1 %v12884_v28  ;;  %8816 = vmatpush3.bf16.msra.mxu0 %v12887_v49 }
 0xcf1   :  { %5708 = vmatprep.subr.bf16.mxu1 %v12890_v29  ;;  %8817 = vmatprep.subr.bf16.mxu0 %v14192_v61 }
 0xcf2   :  { %5232 = vmatmul.mubr.bf16.gmra.mxu0 %v14519_v7  ;;  %5379 = vmatmul.mubr.bf16.gmra.mxu1 %v14519_v7 }
 0xcf3   :  { %5241 = vmatprep.mubr.bf16.mxu0 %v14520_v14  ;;  %5386 = vmatprep.mubr.bf16.mxu1 %v14520_v14 }
 0xcf4   :  { %5709 = vmatpush1.bf16.msra.mxu1 %v12894_v40  ;;  %8818 = vmatpush3.bf16.msra.mxu0 %v12897_v58 }
 0xcf5   :  { %5710 = vmatprep.subr.bf16.mxu1 %v12900_v62  ;;  %8819 = vmatprep.subr.bf16.mxu0 %v14192_v61 }
 0xcf8   :  { %5711 = vmatpush1.bf16.msra.mxu1 %v12908_v32  ;;  %8820 = vmatpush3.bf16.msra.mxu0 %v12911_v30 }
 0xcf9   :  { %5831 = vmatprep.subr.bf16.mxu1 %v12791_v41  ;;  %8825 = vmatprep.subr.bf16.mxu0 %v14192_v61 }
 0xcfa   :  { %5242 = vmatmul.mubr.bf16.gmra.mxu0 %v14521_v54  ;;  %5387 = vmatmul.mubr.bf16.gmra.mxu1 %v14521_v54 }
 0xcfb   :  { %5251 = vmatprep.mubr.bf16.mxu0 %v14522_v60  ;;  %5394 = vmatprep.mubr.bf16.mxu1 %v14522_v60 }
 0xd02   :  { %5252 = vmatmul.mubr.bf16.gmra.mxu0 %v14523_v6  ;;  %5395 = vmatmul.mubr.bf16.gmra.mxu1 %v14523_v6 }
 0xd03   :  { %5261 = vmatprep.mubr.bf16.mxu0 %v14524_v5  ;;  %5402 = vmatprep.mubr.bf16.mxu1 %v14524_v5 }
 0xd0a   :  { %5262 = vmatmul.mubr.bf16.gmra.mxu0 %v14525_v20  ;;  %5403 = vmatmul.mubr.bf16.gmra.mxu1 %v14525_v20 }
 0xd0b   :  { %5271 = vmatprep.mubr.bf16.mxu0 %v14526_v23  ;;  %5410 = vmatprep.mubr.bf16.mxu1 %v14526_v23 }
 0xd12   :  { %5272 = vmatmul.mubr.bf16.gmra.mxu0 %v14527_v1  ;;  %5411 = vmatmul.mubr.bf16.gmra.mxu1 %v14527_v1 }
 0xd13   :  { %5281 = vmatprep.mubr.bf16.mxu0 %v14528_v16  ;;  %5418 = vmatprep.mubr.bf16.mxu1 %v14528_v16 }
 0xd1a   :  { %5282 = vmatmul.mubr.bf16.gmra.mxu0 %v14529_v9  ;;  %5419 = vmatmul.mubr.bf16.gmra.mxu1 %v14529_v9 }
 0xd1b   :  { %5291 = vmatprep.mubr.bf16.mxu0 %v14530_v56  ;;  %5426 = vmatprep.mubr.bf16.mxu1 %v14530_v56 }
 0xd22   :  { %5292 = vmatmul.mubr.bf16.gmra.mxu0 %v12637_v17  ;;  %5427 = vmatmul.mubr.bf16.gmra.mxu1 %v12637_v17 }
 0xd23   :  { %5301 = vmatprep.mubr.bf16.mxu0 %v14531_v3  ;;  %5434 = vmatprep.mubr.bf16.mxu1 %v14531_v3 }
 0xd2a   :  { %5302 = vmatmul.mubr.bf16.gmra.mxu0 %v12758_v10  ;;  %5435 = vmatmul.mubr.bf16.gmra.mxu1 %v12758_v10 }
 0xd2b   :  { %5311 = vmatprep.mubr.bf16.mxu0 %v14532_v25  ;;  %5442 = vmatprep.mubr.bf16.mxu1 %v14532_v25 }
 0xd32   :  { %5312 = vmatmul.mubr.bf16.gmra.mxu0 %v12816_v8  ;;  %5443 = vmatmul.mubr.bf16.gmra.mxu1 %v12816_v8 }
 0xd33   :  { %5728 = vmatprep.mubr.bf16.mxu1 %v14193_v55  ;;  %8821 = vmatprep.mubr.msk.bf16.mxu0 %vm10307_vm1, %v14192_v61 }
 0xd3a   :  { %5729 = vmatmul.mubr.bf16.vlgmr.msra.gmra.mxu1 %v14193_v55  ;;  %8822 = vmatmul.mubr.bf16.vlgmr.msra.gmra.mxu0 %v14193_v55 }
 0xd3b   :  { %5832 = vmatpush1.bf16.msra.mxu1 %v12825_v46  ;;  %8826 = vmatpush3.bf16.msra.mxu0 %v12827_v15 }
 0xd3c   :  { %5833 = vmatprep.subr.bf16.mxu1 %v12829_v21  ;;  %8827 = vmatprep.subr.bf16.mxu0 %v14192_v61 }
 0xd3d   :  { %5863 = vmatprep.mubr.bf16.mxu1 %v14193_v55  ;;  %8841 = vmatprep.mubr.msk.bf16.mxu0 %vm10307_vm1, %v14192_v61 }
 0xd3f   :  { %5834 = vmatpush1.bf16.msra.mxu1 %v12836_v50  ;;  %8828 = vmatpush3.bf16.msra.mxu0 %v12839_v4 }
 0xd40   :  { %5835 = vmatprep.subr.bf16.mxu1 %v12842_v2  ;;  %8829 = vmatprep.subr.bf16.mxu0 %v14192_v61 }
 0xd43   :  { %5836 = vmatpush1.bf16.msra.mxu1 %v12846_v43  ;;  %8830 = vmatpush3.bf16.msra.mxu0 %v12849_v19 }
 0xd44   :  { %5837 = vmatprep.subr.bf16.mxu1 %v12852_v39  ;;  %8831 = vmatprep.subr.bf16.mxu0 %v14192_v61 }
 0xd47   :  { %5838 = vmatpush1.bf16.msra.mxu1 %v12860_v33  ;;  %8832 = vmatpush3.bf16.msra.mxu0 %v12863_v34 }
 0xd48   :  { %5839 = vmatprep.subr.bf16.mxu1 %v12866_v36  ;;  %8833 = vmatprep.subr.bf16.mxu0 %v14192_v61 }
 0xd4b   :  { %5840 = vmatpush1.bf16.msra.mxu1 %v12870_v59  ;;  %8834 = vmatpush3.bf16.msra.mxu0 %v12873_v0 }
 0xd4c   :  { %5841 = vmatprep.subr.bf16.mxu1 %v12876_v57  ;;  %8835 = vmatprep.subr.bf16.mxu0 %v14192_v61 }
 0xd4f   :  { %5842 = vmatpush1.bf16.msra.mxu1 %v12884_v28  ;;  %8836 = vmatpush3.bf16.msra.mxu0 %v12887_v49 }
 0xd50   :  { %5843 = vmatprep.subr.bf16.mxu1 %v12890_v29  ;;  %8837 = vmatprep.subr.bf16.mxu0 %v14192_v61 }
 0xd53   :  { %5844 = vmatpush1.bf16.msra.mxu1 %v12894_v40  ;;  %8838 = vmatpush3.bf16.msra.mxu0 %v12897_v58 }
 0xd54   :  { %5845 = vmatprep.subr.bf16.mxu1 %v12900_v62  ;;  %8839 = vmatprep.subr.bf16.mxu0 %v14192_v61 }
 0xd57   :  { %5846 = vmatpush1.bf16.msra.mxu1 %v12908_v32  ;;  %8840 = vmatpush3.bf16.msra.mxu0 %v12911_v30 }
 0xd58   :  { %5966 = vmatprep.subr.bf16.mxu1 %v12791_v41  ;;  %8845 = vmatprep.subr.bf16.mxu0 %v14192_v61 }
 0xd9a   :  { %v12989_v17 = vpop.f32.mrf.mxu0  ;;  %v8072_v10 = vpop.f32.mrf.mxu1 }
 0xd9c   :  { %v12991_v8 = vpop.f32.mrf.mxu0  ;;  %v8073_v24 = vpop.f32.mrf.mxu1 }
 0xd9d   :  { %v12993_v51 = vadd.f32 %v8073_v24, %v8072_v10 }
 0xd9e   :  { %v12995_v42 = vpop.f32.mrf.mxu0  ;;  %v8075_v26 = vpop.f32.mrf.mxu1 }
 0xda0   :  { %v12997_v52 = vpop.f32.mrf.mxu0  ;;  %v8076_v48 = vpop.f32.mrf.mxu1 }
 0xda1   :  { %v12999_v37 = vadd.f32 %v8076_v48, %v8075_v26 }
 0xda2   :  { %v13001_v11 = vpop.f32.mrf.mxu0  ;;  %v8078_v53 = vpop.f32.mrf.mxu1 }
 0xda4   :  { %v13003_v12 = vpop.f32.mrf.mxu0  ;;  %v8079_v13 = vpop.f32.mrf.mxu1 }
 0xda5   :  { %v13005_v38 = vadd.f32 %v8079_v13, %v8078_v53 }
 0xda6   :  { %v13007_v45 = vpop.f32.mrf.mxu0  ;;  %v8081_v31 = vpop.f32.mrf.mxu1 }
 0xda8   :  { %v13009_v18 = vpop.f32.mrf.mxu0  ;;  %v8082_v35 = vpop.f32.mrf.mxu1 }
 0xda9   :  { %v13011_v63 = vadd.f32 %v8082_v35, %v8081_v31 }
 0xdaa   :  { %v13013_v47 = vpop.f32.mrf.mxu0  ;;  %v8084_v22 = vpop.f32.mrf.mxu1 }
 0xdac   :  { %v13015_v44 = vpop.f32.mrf.mxu0  ;;  %v8085_v27 = vpop.f32.mrf.mxu1 }
 0xdad   :  { %v13017_v7 = vadd.f32 %v8085_v27, %v8084_v22 }
 0xdae   :  { %v13019_v14 = vpop.f32.mrf.mxu0  ;;  %v8087_v54 = vpop.f32.mrf.mxu1 }
 0xdb0   :  { %v13021_v60 = vpop.f32.mrf.mxu0  ;;  %v8088_v6 = vpop.f32.mrf.mxu1 }
 0xdb1   :  { %v13023_v5 = vadd.f32 %v8088_v6, %v8087_v54 }
 0xdb2   :  { %v13025_v20 = vpop.f32.mrf.mxu0  ;;  %v8090_v23 = vpop.f32.mrf.mxu1 }
 0xdb3   :  { %14533 = vst [vmem:[#allocation43_spill] sm:$0xff] %v13025_v20 }
 0xdb4   :  { %v13027_v1 = vpop.f32.mrf.mxu0  ;;  %v8091_v16 = vpop.f32.mrf.mxu1 }
 0xdb5   :  { %14534 = vst [vmem:[#allocation132_spill] sm:$0xff] %v13027_v1  ;;  %v13029_v9 = vadd.f32 %v8091_v16, %v8090_v23 }
 0xdb6   :  { %v13031_v56 = vpop.f32.mrf.mxu0  ;;  %v8093_v3 = vpop.f32.mrf.mxu1 }
 0xdb7   :  { %14535 = vst [vmem:[#allocation133_spill] sm:$0xff] %v13029_v9  ;;  %14536 = vst [vmem:[#allocation137_spill] sm:$0xff] %v13031_v56 }
 0xdb8   :  { %v13033_v25 = vpop.f32.mrf.mxu0  ;;  %v8094_v10 = vpop.f32.mrf.mxu1 }
 0xdb9   :  { %14537 = vst [vmem:[#allocation52_spill] sm:$0xff] %v13033_v25  ;;  %v13035_v24 = vadd.f32 %v8094_v10, %v8093_v3 }
 0xdba   :  { %v13037_v26 = vpop.f32.mrf.mxu0  ;;  %v8096_v48 = vpop.f32.mrf.mxu1 }
 0xdbb   :  { %14538 = vst [vmem:[#allocation55_spill] sm:$0xff] %v13035_v24  ;;  %14539 = vst [vmem:[#allocation53_spill] sm:$0xff] %v13037_v26 }
 0xdbc   :  { %v13039_v53 = vpop.f32.mrf.mxu0  ;;  %v8097_v13 = vpop.f32.mrf.mxu1 }
 0xdbd   :  { %14540 = vst [vmem:[#allocation57_spill] sm:$0xff] %v13039_v53  ;;  %v13041_v31 = vadd.f32 %v8097_v13, %v8096_v48 }
 0xdbe   :  { %v13043_v35 = vpop.f32.mrf.mxu0  ;;  %v8099_v22 = vpop.f32.mrf.mxu1 }
 0xdbf   :  { %14541 = vst [vmem:[#allocation118_spill] sm:$0xff] %v13041_v31  ;;  %14542 = vst [vmem:[#allocation123_spill] sm:$0xff] %v13043_v35 }
 0xdc0   :  { %v13045_v27 = vpop.f32.mrf.mxu0  ;;  %v8100_v54 = vpop.f32.mrf.mxu1 }
 0xdc1   :  { %14543 = vst [vmem:[#allocation120_spill] sm:$0xff] %v13045_v27  ;;  %v13047_v6 = vadd.f32 %v8100_v54, %v8099_v22 }
 0xdc2   :  { %v13049_v23 = vpop.f32.mrf.mxu0  ;;  %v8102_v16 = vpop.f32.mrf.mxu1 }
 0xdc3   :  { %14544 = vst [vmem:[#allocation38_spill] sm:$0xff] %v13047_v6  ;;  %14545 = vst [vmem:[#allocation124_spill] sm:$0xff] %v13049_v23 }
 0xdc4   :  { %v13051_v3 = vpop.f32.mrf.mxu0  ;;  %v8103_v10 = vpop.f32.mrf.mxu1 }
 0xdc5   :  { %14546 = vst [vmem:[#allocation42_spill] sm:$0xff] %v13051_v3  ;;  %v13053_v26 = vadd.f32 %v8103_v10, %v8102_v16 }
 0xdc6   :  { %v13055_v53 = vpop.f32.mrf.mxu0  ;;  %v8105_v48 = vpop.f32.mrf.mxu1 }
 0xdc7   :  { %14547 = vst [vmem:[#allocation135_spill] sm:$0xff] %v13053_v26  ;;  %14548 = vst [vmem:[#allocation138_spill] sm:$0xff] %v13055_v53 }
 0xdc8   :  { %v13057_v13 = vpop.f32.mrf.mxu0  ;;  %v8106_v31 = vpop.f32.mrf.mxu1 }
 0xdc9   :  { %14549 = vst [vmem:[#allocation145_spill] sm:$0xff] %v13057_v13  ;;  %v13059_v35 = vadd.f32 %v8106_v31, %v8105_v48 }
 0xdca   :  { %v13061_v27 = vpop.f32.mrf.mxu0  ;;  %v8108_v22 = vpop.f32.mrf.mxu1 }
 0xdcb   :  { %14550 = vst [vmem:[#allocation18_spill] sm:$0xff] %v13059_v35  ;;  %14551 = vst [vmem:[#allocation33_spill] sm:$0xff] %v13061_v27 }
 0xdcc   :  { %v13063_v54 = vpop.f32.mrf.mxu0  ;;  %v8109_v23 = vpop.f32.mrf.mxu1 }
 0xdcd   :  { %14552 = vst [vmem:[#allocation19_spill] sm:$0xff] %v13063_v54  ;;  %v13065_v6 = vadd.f32 %v8109_v23, %v8108_v22 }
 0xdce   :  { %v13067_v3 = vpop.f32.mrf.mxu0  ;;  %v8111_v16 = vpop.f32.mrf.mxu1 }
 0xdcf   :  { %14553 = vst [vmem:[#allocation162_spill] sm:$0xff] %v13065_v6  ;;  %14554 = vst [vmem:[#allocation142_spill] sm:$0xff] %v13067_v3 }
 0xdd0   :  { %v13069_v10 = vpop.f32.mrf.mxu0  ;;  %v8112_v26 = vpop.f32.mrf.mxu1 }
 0xdd1   :  { %14555 = vst [vmem:[#allocation147_spill] sm:$0xff] %v13069_v10  ;;  %v13071_v53 = vadd.f32 %v8112_v26, %v8111_v16 }
 0xdd2   :  { %v13073_v13 = vpop.f32.mrf.mxu0  ;;  %v8114_v31 = vpop.f32.mrf.mxu1 }
 0xdd3   :  { %14556 = vst [vmem:[#allocation144_spill] sm:$0xff] %v13071_v53  ;;  %14557 = vst [vmem:[#allocation32_spill] sm:$0xff] %v13073_v13 }
 0xdd4   :  { %v13075_v48 = vpop.f32.mrf.mxu0  ;;  %v8115_v27 = vpop.f32.mrf.mxu1 }
 0xdd5   :  { %14558 = vst [vmem:[#allocation35_spill] sm:$0xff] %v13075_v48  ;;  %v13077_v35 = vadd.f32 %v8115_v27, %v8114_v31 }
 0xdd6   :  { %v13079_v54 = vpop.f32.mrf.mxu0  ;;  %v8117_v23 = vpop.f32.mrf.mxu1 }
 0xdd7   :  { %14559 = vst [vmem:[#allocation60_spill] sm:$0xff] %v13077_v35  ;;  %14560 = vst [vmem:[#allocation63_spill] sm:$0xff] %v13079_v54 }
 0xdd8   :  { %v13081_v22 = vpop.f32.mrf.mxu0  ;;  %v8118_v6 = vpop.f32.mrf.mxu1 }
 0xdd9   :  { %14561 = vst [vmem:[#allocation61_spill] sm:$0xff] %v13081_v22  ;;  %v13083_v3 = vadd.f32 %v8118_v6, %v8117_v23 }
 0xdda   :  { %v13085_v10 = vpop.f32.mrf.mxu0  ;;  %v8120_v26 = vpop.f32.mrf.mxu1 }
 0xddb   :  { %14562 = vst [vmem:[#allocation65_spill] sm:$0xff] %v13083_v3  ;;  %14563 = vst [vmem:[#allocation110_spill] sm:$0xff] %v13085_v10 }
 0xddc   :  { %v13087_v16 = vpop.f32.mrf.mxu0  ;;  %v8121_v13 = vpop.f32.mrf.mxu1 }
 0xddd   :  { %14564 = vst [vmem:[#allocation115_spill] sm:$0xff] %v13087_v16  ;;  %v13089_v53 = vadd.f32 %v8121_v13, %v8120_v26 }
 0xdde   :  { %v13091_v48 = vpop.f32.mrf.mxu0  ;;  %v8123_v27 = vpop.f32.mrf.mxu1 }
 0xddf   :  { %14565 = vst [vmem:[#allocation112_spill] sm:$0xff] %v13089_v53  ;;  %14566 = vst [vmem:[#allocation48_spill] sm:$0xff] %v13091_v48 }
 0xde0   :  { %v13093_v31 = vpop.f32.mrf.mxu0  ;;  %v8124_v35 = vpop.f32.mrf.mxu1 }
 0xde1   :  { %14567 = vst [vmem:[#allocation51_spill] sm:$0xff] %v13093_v31  ;;  %v13095_v54 = vadd.f32 %v8124_v35, %v8123_v27 }
 0xde2   :  { %v13097_v22 = vpop.f32.mrf.mxu0  ;;  %v8126_v6 = vpop.f32.mrf.mxu1 }
 0xde3   :  { %14568 = vst [vmem:[#allocation116_spill] sm:$0xff] %v13095_v54  ;;  %14569 = vst [vmem:[#allocation125_spill] sm:$0xff] %v13097_v22 }
 0xde4   :  { %v13099_v23 = vpop.f32.mrf.mxu0  ;;  %v8127_v10 = vpop.f32.mrf.mxu1 }
 0xde5   :  { %14570 = vst [vmem:[#allocation129_spill] sm:$0xff] %v13099_v23  ;;  %v13101_v3 = vadd.f32 %v8127_v10, %v8126_v6 }
 0xde6   :  { %v13103_v16 = vpop.f32.mrf.mxu0  ;;  %v8129_v13 = vpop.f32.mrf.mxu1 }
 0xde7   :  { %14571 = vst [vmem:[#allocation22_spill] sm:$0xff] %v13101_v3  ;;  %14572 = vst [vmem:[#allocation25_spill] sm:$0xff] %v13103_v16 }
 0xde8   :  { %v13105_v26 = vpop.f32.mrf.mxu0  ;;  %v8130_v53 = vpop.f32.mrf.mxu1 }
 0xde9   :  { %14573 = vst [vmem:[#allocation163_spill] sm:$0xff] %v13105_v26  ;;  %v13107_v48 = vadd.f32 %v8130_v53, %v8129_v13  ;;  %v4896_v53 = vld [vmem:[%s13863_s7] sm:$0x7] }
 0xdea   :  { %v13109_v31 = vpop.f32.mrf.mxu0  ;;  %v8132_v35 = vpop.f32.mrf.mxu1 }
 0xdeb   :  { %14574 = vst [vmem:[#allocation23_spill] sm:$0xff] %v13107_v48  ;;  %14575 = vst [vmem:[#allocation12_spill] sm:$0xff] %v13109_v31 }
 0xdec   :  { %v13111_v27 = vpop.f32.mrf.mxu0  ;;  %v8133_v22 = vpop.f32.mrf.mxu1 }
 0xded   :  { %14576 = vst [vmem:[#allocation13_spill] sm:$0xff] %v13111_v27  ;;  %v13113_v54 = vadd.f32 %v8133_v22, %v8132_v35  ;;  %v14583_v22 = vld [vmem:[#allocation148_spill] sm:$0xff] }
 0xdee   :  { %v13115_v23 = vpop.f32.mrf.mxu0  ;;  %v8135_v10 = vpop.f32.mrf.mxu1  ;;  %v13129_v35 = vrot.slane %v4896_v53, %v14583_v22 }
 0xdef   :  { %14577 = vst [vmem:[#allocation14_spill] sm:$0xff] %v13113_v54  ;;  %14578 = vst [vmem:[#allocation15_spill] sm:$0xff] %v13115_v23 }
 0xdf0   :  { %v13117_v6 = vpop.f32.mrf.mxu0  ;;  %v8136_v3 = vpop.f32.mrf.mxu1 }
 0xdf1   :  { %14579 = vst [vmem:[#allocation36_spill] sm:$0xff] %v13117_v6  ;;  %v13119_v16 = vadd.f32 %v8136_v3, %v8135_v10 }
 0xdf2   :  { %v13124_v13 = vpop.f32.mrf.mxu0  ;;  %v8138_v31 = vpop.f32.mrf.mxu1 }
 0xdf3   :  { %14580 = vst [vmem:[#allocation68_spill] sm:$0xff] %v13119_v16  ;;  %14581 = vst [vmem:[#allocation72_spill] sm:$0xff] %v13124_v13  ;;  %v5204_v16 = vadd.f32 %v12989_v17, %v13129_v35 }
 0xdf4   :  { %v13126_v48 = vpop.f32.mrf.mxu0  ;;  %v8139_v27 = vpop.f32.mrf.mxu1 }
 0xdf5   :  { %14582 = vst [vmem:[#allocation70_spill] sm:$0xff] %v13126_v48  ;;  %v13131_v54 = vadd.f32 %v8139_v27, %v8138_v31  ;;  %v14588_v48 = vld [vmem:[#allocation154_spill] sm:$0xff]  ;;  %v5208_v27 = vadd.f32 %v12995_v42, %v13129_v35 }
 0xdf6   :  { %v13133_v23 = vpop.f32.mrf.mxu0  ;;  %v8141_v6 = vpop.f32.mrf.mxu1  ;;  %v13142_v9 = vrot.slane %v4896_v53, %v14588_v48 }
 0xdf7   :  { %14584 = vst [vmem:[#allocation74_spill] sm:$0xff] %v13131_v54  ;;  %14585 = vst [vmem:[#allocation101_spill] sm:$0xff] %v13133_v23 }
 0xdf8   :  { %v13135_v3 = vpop.f32.mrf.mxu0  ;;  %v8142_v10 = vpop.f32.mrf.mxu1  ;;  %v5206_v1 = vadd.f32 %v12991_v8, %v13142_v9  ;;  %v5210_v48 = vadd.f32 %v12997_v52, %v13142_v9  ;;  %v14589_v52 = vld [vmem:[#allocation20_spill] sm:$0xff] }
 0xdf9   :  { %14586 = vst [vmem:[#allocation106_spill] sm:$0xff] %v13135_v3  ;;  %v13139_v26 = vadd.f32 %v8142_v10, %v8141_v6 }
 0xdfa   :  { %v5730_v13 = vpop.f32.mrf.mxu1  ;;  %v5773_v24 = vpop.f32.mrf.mxu0 }
 0xdfb   :  { %14587 = vst [vmem:[#allocation103_spill] sm:$0xff] %v13139_v26  ;;  %v5780_v22 = vadd.f32 %v5730_v13, %v5204_v16 }
 0xdfc   :  { %v5732_v25 = vpop.f32.mrf.mxu1  ;;  %v8823_v31 = vpop.f32.mrf.mxu0 }
 0xdfd   :  { %v7751_v54 = vmul.f32 -1.442695, %v5780_v22  ;;  %v5794_v10 = vadd.f32 %v5732_v25, %v5206_v1  ;;  %v13153_v1 = vld [vmem:[%s13864_s8] ss:$0 sm:$0xff] }
 0xdfe   :  { %v5734_v23 = vpop.f32.mrf.mxu1  ;;  %v5776_v3 = vpop.f32.mrf.mxu0 }
 0xdff   :  { %9765 = vpow2.f32 %v7751_v54  ;;  %v5781_v17 = vadd.f32 %v5734_v23, %v5208_v27  ;;  %v7753_v13 = vmul.f32 -1.442695, %v5794_v10  ;;  %v13156_v23 = vrot.slane %v4896_v53, %v14589_v52 }
 0xe00   :  { %v8824_v6 = vpop.f32.mrf.mxu0  ;;  %v5736_v56 = vpop.f32.mrf.mxu1 }
 0xe01   :  { %v7752_v26 = vmul.f32 -1.442695, %v5781_v17  ;;  %v5795_v16 = vadd.f32 %v5736_v56, %v5210_v48  ;;  %v5357_v6 = vadd.f32 %v12993_v51, %v13156_v23  ;;  %v5809_v48 = vadd.f32 %v13153_v1, %v5776_v3 }
 0xe03   :  { %9767 = vpow2.f32 %v7752_v26  ;;  %v7754_v31 = vmul.f32 -1.442695, %v5795_v16  ;;  %v5808_v26 = vadd.f32 %v13153_v1, %v5773_v24 }
 0xe04   :  { %9769 = vpow2.f32 %v7753_v13  ;;  %v5360_v13 = vadd.f32 %v12999_v37, %v13156_v23 }
 0xe05   :  { %9771 = vpow2.f32 %v7754_v31 }
 0xe0c   :  { %v9766_v42 = vpop.eup %9765 }
 0xe0d   :  { %v5788_v22 = vadd.f32 1.0, %v9766_v42 }
 0xe0f   :  { %9773 = vrcp.f32 %v5788_v22 }
 0xe10   :  { %v9768_v20 = vpop.eup %9767 }
 0xe11   :  { %v5789_v8 = vadd.f32 1.0, %v9768_v20  ;;  %v9770_v54 = vpop.eup %9769 }
 0xe12   :  { %v9772_v25 = vpop.eup %9771  ;;  %v5802_v56 = vadd.f32 1.0, %v9770_v54 }
 0xe13   :  { %9775 = vrcp.f32 %v5789_v8  ;;  %v5803_v17 = vadd.f32 1.0, %v9772_v25 }
 0xe14   :  { %9777 = vrcp.f32 %v5802_v56 }
 0xe15   :  { %9779 = vrcp.f32 %v5803_v17  ;;  %v5214_v17 = vadd.f32 %v13001_v11, %v13129_v35 }
 0xe1c   :  { %v9774_v27 = vpop.eup %9773 }
 0xe1d   :  { %v5810_v20 = vmul.f32 %v9774_v27, %v5808_v26 }
 0xe1f   :  { %v5812_v10 = vadd.f32 %v5810_v20, %v5357_v6 }
 0xe20   :  { %v9776_v16 = vpop.eup %9775 }
 0xe21   :  { %9781 = vtanh.f32 %v5812_v10  ;;  %v5811_v53 = vmul.f32 %v9776_v16, %v5809_v48  ;;  %v9778_v24 = vpop.eup %9777 }
 0xe22   :  { %v9780_v42 = vpop.eup %9779  ;;  %v5816_v22 = vsub.f32 1.0, %v9778_v24  ;;  %v5820_v51 = vmul.f32 0.0, %v9778_v24 }
 0xe23   :  { %v5813_v31 = vadd.f32 %v5811_v53, %v5360_v13  ;;  %v5817_v25 = vsub.f32 1.0, %v9780_v42  ;;  %v5821_v26 = vmul.f32 0.0, %v9780_v42  ;;  %v5218_v13 = vadd.f32 %v13007_v45, %v13129_v35 }
 0xe24   :  { %v5216_v42 = vadd.f32 %v13003_v12, %v13142_v9 }
 0xe25   :  { %9783 = vtanh.f32 %v5813_v31 }
 0xe2e   :  { %v9782_v8 = vpop.eup %9781 }
 0xe2f   :  { %v5818_v54 = vmul.f32 %v9782_v8, %v5816_v22 }
 0xe31   :  { %v13164_v52 = vadd.f32 %v5820_v51, %v5818_v54  ;;  %v5220_v51 = vadd.f32 %v13009_v18, %v13142_v9  ;;  %v5365_v18 = vadd.f32 %v13005_v38, %v13156_v23 }
 0xe32   :  { %v9784_v56 = vpop.eup %9783 }
 0xe33   :  { %v5819_v3 = vmul.f32 %v9784_v56, %v5817_v25 }
 0xe35   :  { %v13166_v27 = vadd.f32 %v5821_v26, %v5819_v3 }
 0xe37   :  { %v5830_v37 = vpack.c.bf16 %v13166_v27, %v13164_v52 }
 0xe39   :  { %5864 = vmatmul.mubr.bf16.vlgmr.msra.gmra.mxu1 %v5830_v37  ;;  %8842 = vmatmul.mubr.bf16.vlgmr.msra.gmra.mxu0 %v5830_v37 }
 0xe3a   :  { %5967 = vmatpush1.bf16.msra.mxu1 %v12825_v46  ;;  %8846 = vmatpush3.bf16.msra.mxu0 %v12827_v15 }
 0xe3b   :  { %5968 = vmatprep.subr.bf16.mxu1 %v12829_v21  ;;  %8847 = vmatprep.subr.bf16.mxu0 %v14192_v61 }
 0xe3c   :  { %5998 = vmatprep.mubr.bf16.mxu1 %v14193_v55  ;;  %8861 = vmatprep.mubr.msk.bf16.mxu0 %vm10307_vm1, %v14192_v61 }
 0xe3e   :  { %5969 = vmatpush1.bf16.msra.mxu1 %v12836_v50  ;;  %8848 = vmatpush3.bf16.msra.mxu0 %v12839_v4 }
 0xe3f   :  { %5970 = vmatprep.subr.bf16.mxu1 %v12842_v2  ;;  %8849 = vmatprep.subr.bf16.mxu0 %v14192_v61 }
 0xe42   :  { %5971 = vmatpush1.bf16.msra.mxu1 %v12846_v43  ;;  %8850 = vmatpush3.bf16.msra.mxu0 %v12849_v19 }
 0xe43   :  { %5972 = vmatprep.subr.bf16.mxu1 %v12852_v39  ;;  %8851 = vmatprep.subr.bf16.mxu0 %v14192_v61 }
 0xe46   :  { %5973 = vmatpush1.bf16.msra.mxu1 %v12860_v33  ;;  %8852 = vmatpush3.bf16.msra.mxu0 %v12863_v34 }
 0xe47   :  { %5974 = vmatprep.subr.bf16.mxu1 %v12866_v36  ;;  %8853 = vmatprep.subr.bf16.mxu0 %v14192_v61 }
 0xe4a   :  { %5975 = vmatpush1.bf16.msra.mxu1 %v12870_v59  ;;  %8854 = vmatpush3.bf16.msra.mxu0 %v12873_v0 }
 0xe4b   :  { %5976 = vmatprep.subr.bf16.mxu1 %v12876_v57  ;;  %8855 = vmatprep.subr.bf16.mxu0 %v14192_v61 }
 0xe4e   :  { %5977 = vmatpush1.bf16.msra.mxu1 %v12884_v28  ;;  %8856 = vmatpush3.bf16.msra.mxu0 %v12887_v49 }
 0xe4f   :  { %5978 = vmatprep.subr.bf16.mxu1 %v12890_v29  ;;  %8857 = vmatprep.subr.bf16.mxu0 %v14192_v61 }
 0xe52   :  { %5979 = vmatpush1.bf16.msra.mxu1 %v12894_v40  ;;  %8858 = vmatpush3.bf16.msra.mxu0 %v12897_v58 }
 0xe53   :  { %5980 = vmatprep.subr.bf16.mxu1 %v12900_v62  ;;  %8859 = vmatprep.subr.bf16.mxu0 %v14192_v61 }
 0xe56   :  { %5981 = vmatpush1.bf16.msra.mxu1 %v12908_v32  ;;  %8860 = vmatpush3.bf16.msra.mxu0 %v12911_v30 }
 0xe57   :  { %6101 = vmatprep.subr.bf16.mxu1 %v12791_v41  ;;  %8865 = vmatprep.subr.bf16.mxu0 %v14192_v61 }
 0xef9   :  { %v5865_v6 = vpop.f32.mrf.mxu1  ;;  %v5908_v20 = vpop.f32.mrf.mxu0 }
 0xefa   :  { %v5915_v10 = vadd.f32 %v5865_v6, %v5214_v17 }
 0xefb   :  { %v5867_v48 = vpop.f32.mrf.mxu1  ;;  %v8843_v16 = vpop.f32.mrf.mxu0 }
 0xefc   :  { %v7755_v53 = vmul.f32 -1.442695, %v5915_v10  ;;  %v5929_v8 = vadd.f32 %v5867_v48, %v5216_v42  ;;  %v5943_v48 = vadd.f32 %v13153_v1, %v5908_v20 }
 0xefd   :  { %v5869_v31 = vpop.f32.mrf.mxu1  ;;  %v5911_v24 = vpop.f32.mrf.mxu0 }
 0xefe   :  { %9785 = vpow2.f32 %v7755_v53  ;;  %v5916_v41 = vadd.f32 %v5869_v31, %v5218_v13  ;;  %v7757_v56 = vmul.f32 -1.442695, %v5929_v8  ;;  %v5944_v42 = vadd.f32 %v13153_v1, %v5911_v24 }
 0xeff   :  { %v8844_v22 = vpop.f32.mrf.mxu0  ;;  %v5871_v11 = vpop.f32.mrf.mxu1 }
 0xf00   :  { %v7756_v54 = vmul.f32 -1.442695, %v5916_v41  ;;  %v5930_v25 = vadd.f32 %v5871_v11, %v5220_v51  ;;  %v5368_v22 = vadd.f32 %v13011_v63, %v13156_v23 }
 0xf02   :  { %9787 = vpow2.f32 %v7756_v54  ;;  %v7758_v3 = vmul.f32 -1.442695, %v5930_v25 }
 0xf03   :  { %9789 = vpow2.f32 %v7757_v56 }
 0xf04   :  { %9791 = vpow2.f32 %v7758_v3 }
 0xf0b   :  { %v9786_v45 = vpop.eup %9785 }
 0xf0c   :  { %v5923_v26 = vadd.f32 1.0, %v9786_v45 }
 0xf0e   :  { %9793 = vrcp.f32 %v5923_v26 }
 0xf0f   :  { %v9788_v37 = vpop.eup %9787 }
 0xf10   :  { %v5924_v12 = vadd.f32 1.0, %v9788_v37  ;;  %v9790_v17 = vpop.eup %9789 }
 0xf11   :  { %v9792_v6 = vpop.eup %9791  ;;  %v5937_v10 = vadd.f32 1.0, %v9790_v17  ;;  %v5226_v17 = vadd.f32 %v13015_v44, %v13142_v9 }
 0xf12   :  { %9795 = vrcp.f32 %v5924_v12  ;;  %v5938_v13 = vadd.f32 1.0, %v9792_v6 }
 0xf13   :  { %9797 = vrcp.f32 %v5937_v10 }
 0xf14   :  { %9799 = vrcp.f32 %v5938_v13  ;;  %v5230_v13 = vadd.f32 %v13021_v60, %v13142_v9  ;;  %v5373_v60 = vadd.f32 %v13017_v7, %v13156_v23 }
 0xf1b   :  { %v9794_v16 = vpop.eup %9793 }
 0xf1c   :  { %v5945_v53 = vmul.f32 %v9794_v16, %v5943_v48 }
 0xf1e   :  { %v5947_v31 = vadd.f32 %v5945_v53, %v5365_v18 }
 0xf1f   :  { %v9796_v41 = vpop.eup %9795 }
 0xf20   :  { %9801 = vtanh.f32 %v5947_v31  ;;  %v5946_v8 = vmul.f32 %v9796_v41, %v5944_v42  ;;  %v9798_v20 = vpop.eup %9797 }
 0xf21   :  { %v9800_v11 = vpop.eup %9799  ;;  %v5951_v51 = vsub.f32 1.0, %v9798_v20  ;;  %v5955_v38 = vmul.f32 %v9798_v20, %v13164_v52 }
 0xf22   :  { %v5948_v54 = vadd.f32 %v5946_v8, %v5368_v22  ;;  %v5952_v3 = vsub.f32 1.0, %v9800_v11  ;;  %v5956_v37 = vmul.f32 %v9800_v11, %v13166_v27 }
 0xf24   :  { %9803 = vtanh.f32 %v5948_v54 }
 0xf2d   :  { %v9802_v25 = vpop.eup %9801 }
 0xf2e   :  { %v5953_v56 = vmul.f32 %v9802_v25, %v5951_v51 }
 0xf30   :  { %v13220_v45 = vadd.f32 %v5955_v38, %v5953_v56 }
 0xf31   :  { %v9804_v24 = vpop.eup %9803 }
 0xf32   :  { %v5954_v26 = vmul.f32 %v9804_v24, %v5952_v3  ;;  %v5376_v24 = vadd.f32 %v13023_v5, %v13156_v23 }
 0xf34   :  { %v13223_v12 = vadd.f32 %v5956_v37, %v5954_v26 }
 0xf36   :  { %v5965_v63 = vpack.c.bf16 %v13223_v12, %v13220_v45 }
 0xf38   :  { %5999 = vmatmul.mubr.bf16.vlgmr.msra.gmra.mxu1 %v5965_v63  ;;  %8862 = vmatmul.mubr.bf16.vlgmr.msra.gmra.mxu0 %v5965_v63 }
 0xf39   :  { %6102 = vmatpush1.bf16.msra.mxu1 %v12825_v46  ;;  %8866 = vmatpush3.bf16.msra.mxu0 %v12827_v15  ;;  %v13260_v46 = vld [vmem:[#allocation9 + $0xac] ss:$12 sps:$4 sm:$0xff]   ;;  %v5224_v15 = vadd.f32 %v13013_v47, %v13129_v35 }
 0xf3a   :  { %6103 = vmatprep.subr.bf16.mxu1 %v12829_v21  ;;  %8867 = vmatprep.subr.bf16.mxu0 %v14192_v61 }
 0xf3b   :  { %6133 = vmatprep.mubr.bf16.mxu1 %v14193_v55  ;;  %8881 = vmatprep.mubr.msk.bf16.mxu0 %vm10307_vm1, %v14192_v61 }
 0xf3d   :  { %6104 = vmatpush1.bf16.msra.mxu1 %v12836_v50  ;;  %8868 = vmatpush3.bf16.msra.mxu0 %v12839_v4 }
 0xf3e   :  { %6105 = vmatprep.subr.bf16.mxu1 %v12842_v2  ;;  %8869 = vmatprep.subr.bf16.mxu0 %v14192_v61 }
 0xf41   :  { %6106 = vmatpush1.bf16.msra.mxu1 %v12846_v43  ;;  %8870 = vmatpush3.bf16.msra.mxu0 %v12849_v19  ;;  %v5228_v19 = vadd.f32 %v13019_v14, %v13129_v35 }
 0xf42   :  { %6107 = vmatprep.subr.bf16.mxu1 %v12852_v39  ;;  %8871 = vmatprep.subr.bf16.mxu0 %v14192_v61 }
 0xf45   :  { %6108 = vmatpush1.bf16.msra.mxu1 %v12860_v33  ;;  %8872 = vmatpush3.bf16.msra.mxu0 %v12863_v34 }
 0xf46   :  { %6109 = vmatprep.subr.bf16.mxu1 %v12866_v36  ;;  %8873 = vmatprep.subr.bf16.mxu0 %v14192_v61 }
 0xf49   :  { %6110 = vmatpush1.bf16.msra.mxu1 %v12870_v59  ;;  %8874 = vmatpush3.bf16.msra.mxu0 %v12873_v0 }
 0xf4a   :  { %6111 = vmatprep.subr.bf16.mxu1 %v12876_v57  ;;  %8875 = vmatprep.subr.bf16.mxu0 %v14192_v61 }
 0xf4d   :  { %6112 = vmatpush1.bf16.msra.mxu1 %v12884_v28  ;;  %8876 = vmatpush3.bf16.msra.mxu0 %v12887_v49 }
 0xf4e   :  { %6113 = vmatprep.subr.bf16.mxu1 %v12890_v29  ;;  %8877 = vmatprep.subr.bf16.mxu0 %v14192_v61 }
 0xf51   :  { %6114 = vmatpush1.bf16.msra.mxu1 %v12894_v40  ;;  %8878 = vmatpush3.bf16.msra.mxu0 %v12897_v58 }
 0xf52   :  { %6115 = vmatprep.subr.bf16.mxu1 %v12900_v62  ;;  %8879 = vmatprep.subr.bf16.mxu0 %v14192_v61 }
 0xf55   :  { %6116 = vmatpush1.bf16.msra.mxu1 %v12908_v32  ;;  %8880 = vmatpush3.bf16.msra.mxu0 %v12911_v30 }
 0xf56   :  { %6236 = vmatprep.subr.bf16.mxu1 %v13260_v46  ;;  %8885 = vmatprep.subr.bf16.mxu0 %v14192_v61 }
 0xff8   :  { %v6000_v21 = vpop.f32.mrf.mxu1  ;;  %v6043_v50 = vpop.f32.mrf.mxu0 }
 0xff9   :  { %v6050_v4 = vadd.f32 %v6000_v21, %v5224_v15  ;;  %v6078_v20 = vadd.f32 %v13153_v1, %v6043_v50 }
 0xffa   :  { %v6002_v2 = vpop.f32.mrf.mxu1  ;;  %v8863_v43 = vpop.f32.mrf.mxu0 }
 0xffb   :  { %v7759_v39 = vmul.f32 -1.442695, %v6050_v4  ;;  %v6064_v48 = vadd.f32 %v6002_v2, %v5226_v17  ;;  %v13286_v17 = vld [vmem:[#allocation9 + $0xa8] ss:$12 sps:$4 sm:$0xff]  }
 0xffc   :  { %v6004_v52 = vpop.f32.mrf.mxu1  ;;  %v6046_v27 = vpop.f32.mrf.mxu0 }
 0xffd   :  { %9805 = vpow2.f32 %v7759_v39  ;;  %v6051_v6 = vadd.f32 %v6004_v52, %v5228_v19  ;;  %v7761_v53 = vmul.f32 -1.442695, %v6064_v48  ;;  %v6079_v38 = vadd.f32 %v13153_v1, %v6046_v27  ;;  %v13305_v48 = vld [vmem:[#allocation9 + $0x7c] ss:$12 sps:$4 sm:$0xff]  }
 0xffe   :  { %v8864_v10 = vpop.f32.mrf.mxu0  ;;  %v6006_v47 = vpop.f32.mrf.mxu1 }
 0xfff   :  { %v7760_v16 = vmul.f32 -1.442695, %v6051_v6  ;;  %v6065_v18 = vadd.f32 %v6006_v47, %v5230_v13  ;;  %v13289_v6 = vld [vmem:[#allocation9 + $0xb0] ss:$12 sps:$4 sm:$0xff]   ;;  %v13302_v10 = vld [vmem:[#allocation9 + $0x98] ss:$12 sps:$4 sm:$0xff]  }
0x1000   :  { %v13312_v47 = vld [vmem:[#allocation9 + $0x80] ss:$12 sps:$4 sm:$0xff]   ;;  %v13315_v13 = vld [vmem:[#allocation9 + $0x64] ss:$12 sps:$4 sm:$0xff]  }
0x1001   :  { %9807 = vpow2.f32 %v7760_v16  ;;  %v7762_v31 = vmul.f32 -1.442695, %v6065_v18  ;;  %v13309_v16 = vld [vmem:[#allocation9 + $0x78] ss:$12 sps:$4 sm:$0xff]  }
0x1002   :  { %9809 = vpow2.f32 %v7761_v53 }
0x1003   :  { %9811 = vpow2.f32 %v7762_v31 }
0x100a   :  { %v9806_v14 = vpop.eup %9805 }
0x100b   :  { %v6058_v42 = vadd.f32 1.0, %v9806_v14 }
0x100d   :  { %9813 = vrcp.f32 %v6058_v42 }
0x100e   :  { %v9808_v41 = vpop.eup %9807 }
0x100f   :  { %v6059_v44 = vadd.f32 1.0, %v9808_v41  ;;  %v9810_v22 = vpop.eup %9809  ;;  %v14593_v41 = vld [vmem:[#allocation52_spill] sm:$0xff] }
0x1010   :  { %v9812_v8 = vpop.eup %9811  ;;  %v6072_v54 = vadd.f32 1.0, %v9810_v22 }
0x1011   :  { %9815 = vrcp.f32 %v6059_v44  ;;  %v6073_v51 = vadd.f32 1.0, %v9812_v8  ;;  %v5240_v44 = vadd.f32 %v14593_v41, %v13142_v9  ;;  %v13409_v41 = vld [vmem:[#allocation9 + $0x20] ss:$12 sps:$4 sm:$0xff]  }
0x1012   :  { %9817 = vrcp.f32 %v6072_v54 }
0x1013   :  { %9819 = vrcp.f32 %v6073_v51 }
0x101a   :  { %v9814_v11 = vpop.eup %9813 }
0x101b   :  { %v6080_v25 = vmul.f32 %v9814_v11, %v6078_v20 }
0x101d   :  { %v6082_v56 = vadd.f32 %v6080_v25, %v5373_v60 }
0x101e   :  { %v9816_v3 = vpop.eup %9815 }
0x101f   :  { %9821 = vtanh.f32 %v6082_v56  ;;  %v6081_v26 = vmul.f32 %v9816_v3, %v6079_v38  ;;  %v9818_v63 = vpop.eup %9817 }
0x1020   :  { %v9820_v15 = vpop.eup %9819  ;;  %v6086_v21 = vsub.f32 1.0, %v9818_v63  ;;  %v6090_v7 = vmul.f32 %v9818_v63, %v13220_v45  ;;  %v13292_v45 = vld [vmem:[#allocation9 + $0x94] ss:$12 sps:$4 sm:$0xff]  }
0x1021   :  { %v6083_v37 = vadd.f32 %v6081_v26, %v5376_v24  ;;  %v6087_v2 = vsub.f32 1.0, %v9820_v15  ;;  %v6091_v52 = vmul.f32 %v9820_v15, %v13223_v12  ;;  %v13299_v12 = vld [vmem:[#allocation9 + $0x90] ss:$12 sps:$4 sm:$0xff]  }
0x1023   :  { %9823 = vtanh.f32 %v6083_v37  ;;  %v14594_v37 = vld [vmem:[#allocation133_spill] sm:$0xff] }
0x1024   :  { %v5381_v63 = vadd.f32 %v14594_v37, %v13156_v23 }
0x102c   :  { %v9822_v50 = vpop.eup %9821 }
0x102d   :  { %v6088_v4 = vmul.f32 %v9822_v50, %v6086_v21 }
0x102f   :  { %v13279_v43 = vadd.f32 %v6090_v7, %v6088_v4  ;;  %v14595_v7 = vld [vmem:[#allocation55_spill] sm:$0xff] }
0x1030   :  { %v9824_v19 = vpop.eup %9823 }
0x1031   :  { %v6089_v39 = vmul.f32 %v9824_v19, %v6087_v2  ;;  %v5384_v2 = vadd.f32 %v14595_v7, %v13156_v23 }
0x1033   :  { %v13282_v27 = vadd.f32 %v6091_v52, %v6089_v39 }
0x1035   :  { %v6100_v5 = vpack.c.bf16 %v13282_v27, %v13279_v43 }
0x1037   :  { %6134 = vmatmul.mubr.bf16.vlgmr.msra.gmra.mxu1 %v6100_v5  ;;  %8882 = vmatmul.mubr.bf16.vlgmr.msra.gmra.mxu0 %v6100_v5 }
0x1038   :  { %6237 = vmatpush1.bf16.msra.mxu1 %v13286_v17  ;;  %8886 = vmatpush3.bf16.msra.mxu0 %v13289_v6 }
0x1039   :  { %6238 = vmatprep.subr.bf16.mxu1 %v13292_v45  ;;  %8887 = vmatprep.subr.bf16.mxu0 %v14192_v61 }
0x103a   :  { %6268 = vmatprep.mubr.bf16.mxu1 %v14193_v55  ;;  %8901 = vmatprep.mubr.msk.bf16.mxu0 %vm10307_vm1, %v14192_v61 }
0x103c   :  { %6239 = vmatpush1.bf16.msra.mxu1 %v13299_v12  ;;  %8888 = vmatpush3.bf16.msra.mxu0 %v13302_v10 }
0x103d   :  { %6240 = vmatprep.subr.bf16.mxu1 %v13305_v48  ;;  %8889 = vmatprep.subr.bf16.mxu0 %v14192_v61 }
0x1040   :  { %6241 = vmatpush1.bf16.msra.mxu1 %v13309_v16  ;;  %8890 = vmatpush3.bf16.msra.mxu0 %v13312_v47 }
0x1041   :  { %6242 = vmatprep.subr.bf16.mxu1 %v13315_v13  ;;  %8891 = vmatprep.subr.bf16.mxu0 %v14192_v61 }
0x1044   :  { %6243 = vmatpush1.bf16.msra.mxu1 %v12860_v33  ;;  %8892 = vmatpush3.bf16.msra.mxu0 %v12863_v34  ;;  %v14590_v33 = vld [vmem:[#allocation43_spill] sm:$0xff] }
0x1045   :  { %6244 = vmatprep.subr.bf16.mxu1 %v12866_v36  ;;  %8893 = vmatprep.subr.bf16.mxu0 %v14192_v61  ;;  %v5234_v34 = vadd.f32 %v14590_v33, %v13129_v35 }
0x1048   :  { %6245 = vmatpush1.bf16.msra.mxu1 %v12870_v59  ;;  %8894 = vmatpush3.bf16.msra.mxu0 %v12873_v0 }
0x1049   :  { %6246 = vmatprep.subr.bf16.mxu1 %v12876_v57  ;;  %8895 = vmatprep.subr.bf16.mxu0 %v14192_v61 }
0x104c   :  { %6247 = vmatpush1.bf16.msra.mxu1 %v12884_v28  ;;  %8896 = vmatpush3.bf16.msra.mxu0 %v12887_v49  ;;  %v14591_v49 = vld [vmem:[#allocation137_spill] sm:$0xff] }
0x104d   :  { %6248 = vmatprep.subr.bf16.mxu1 %v12890_v29  ;;  %8897 = vmatprep.subr.bf16.mxu0 %v14192_v61  ;;  %v5238_v29 = vadd.f32 %v14591_v49, %v13129_v35 }
0x1050   :  { %6249 = vmatpush1.bf16.msra.mxu1 %v12894_v40  ;;  %8898 = vmatpush3.bf16.msra.mxu0 %v12897_v58 }
0x1051   :  { %6250 = vmatprep.subr.bf16.mxu1 %v12900_v62  ;;  %8899 = vmatprep.subr.bf16.mxu0 %v14192_v61 }
0x1054   :  { %6251 = vmatpush1.bf16.msra.mxu1 %v12908_v32  ;;  %8900 = vmatpush3.bf16.msra.mxu0 %v12911_v30  ;;  %v14592_v32 = vld [vmem:[#allocation132_spill] sm:$0xff] }
0x1055   :  { %6371 = vmatprep.subr.bf16.mxu1 %v13260_v46  ;;  %8905 = vmatprep.subr.bf16.mxu0 %v14192_v61  ;;  %v5236_v30 = vadd.f32 %v14592_v32, %v13142_v9  ;;  %v13386_v32 = vld [vmem:[#allocation9 + $0x48] ss:$12 sps:$4 sm:$0xff]  }
0x10f7   :  { %v6135_v36 = vpop.f32.mrf.mxu1  ;;  %v6178_v59 = vpop.f32.mrf.mxu0 }
0x10f8   :  { %v6185_v0 = vadd.f32 %v6135_v36, %v5234_v34  ;;  %v6213_v3 = vadd.f32 %v13153_v1, %v6178_v59 }
0x10f9   :  { %v6137_v57 = vpop.f32.mrf.mxu1  ;;  %v8883_v28 = vpop.f32.mrf.mxu0 }
0x10fa   :  { %v7763_v40 = vmul.f32 -1.442695, %v6185_v0  ;;  %v6199_v31 = vadd.f32 %v6137_v57, %v5236_v30  ;;  %v13389_v30 = vld [vmem:[#allocation9 + $0x50] ss:$12 sps:$4 sm:$0xff]  }
0x10fb   :  { %v6139_v58 = vpop.f32.mrf.mxu1  ;;  %v6181_v62 = vpop.f32.mrf.mxu0 }
0x10fc   :  { %9825 = vpow2.f32 %v7763_v40  ;;  %v6186_v18 = vadd.f32 %v6139_v58, %v5238_v29  ;;  %v7765_v8 = vmul.f32 -1.442695, %v6199_v31  ;;  %v6214_v50 = vadd.f32 %v13153_v1, %v6181_v62  ;;  %v13382_v62 = vld [vmem:[#allocation9 + $0x4c] ss:$12 sps:$4 sm:$0xff]  }
0x10fd   :  { %v8884_v53 = vpop.f32.mrf.mxu0  ;;  %v6141_v42 = vpop.f32.mrf.mxu1  ;;  %v13399_v31 = vld [vmem:[#allocation9 + $0x38] ss:$12 sps:$4 sm:$0xff]  }
0x10fe   :  { %v7764_v14 = vmul.f32 -1.442695, %v6186_v18  ;;  %v6200_v22 = vadd.f32 %v6141_v42, %v5240_v44  ;;  %v13392_v18 = vld [vmem:[#allocation9 + $0x34] ss:$12 sps:$4 sm:$0xff]   ;;  %v13396_v53 = vld [vmem:[#allocation9 + $0x30] ss:$12 sps:$4 sm:$0xff]  }
0x10ff   :  { %v13406_v42 = vld [vmem:[#allocation9 + $0x18] ss:$12 sps:$4 sm:$0xff]  }
0x1100   :  { %9827 = vpow2.f32 %v7764_v14  ;;  %v7766_v54 = vmul.f32 -1.442695, %v6200_v22  ;;  %v13402_v14 = vld [vmem:[#allocation9 + $0x1c] ss:$12 sps:$4 sm:$0xff]   ;;  %v13412_v44 = vld [vmem:[#allocation9 + $0x4] ss:$12 sps:$4 sm:$0xff]  }
0x1101   :  { %9829 = vpow2.f32 %v7765_v8  ;;  %v13416_v22 = vld [vmem:[#allocation9] ss:$12 sps:$4 sm:$0xff]   ;;  %v13419_v8 = vld [vmem:[#allocation9 + $0x8] ss:$12 sps:$4 sm:$0xff]  }
0x1102   :  { %9831 = vpow2.f32 %v7766_v54  ;;  %v14596_v54 = vld [vmem:[#allocation53_spill] sm:$0xff] }
0x1109   :  { %v9826_v20 = vpop.eup %9825 }
0x110a   :  { %v6193_v11 = vadd.f32 1.0, %v9826_v20  ;;  %v5244_v20 = vadd.f32 %v14596_v54, %v13129_v35 }
0x110c   :  { %9833 = vrcp.f32 %v6193_v11 }
0x110d   :  { %v9828_v51 = vpop.eup %9827 }
0x110e   :  { %v6194_v60 = vadd.f32 1.0, %v9828_v51  ;;  %v9830_v25 = vpop.eup %9829 }
0x110f   :  { %v9832_v56 = vpop.eup %9831  ;;  %v6207_v38 = vadd.f32 1.0, %v9830_v25 }
0x1110   :  { %9835 = vrcp.f32 %v6194_v60  ;;  %v6208_v26 = vadd.f32 1.0, %v9832_v56 }
0x1111   :  { %9837 = vrcp.f32 %v6207_v38  ;;  %v14597_v38 = vld [vmem:[#allocation123_spill] sm:$0xff] }
0x1112   :  { %9839 = vrcp.f32 %v6208_v26 }
0x1119   :  { %v9834_v24 = vpop.eup %9833 }
0x111a   :  { %v6215_v15 = vmul.f32 %v9834_v24, %v6213_v3  ;;  %v5248_v3 = vadd.f32 %v14597_v38, %v13129_v35 }
0x111c   :  { %v6217_v21 = vadd.f32 %v6215_v15, %v5381_v63  ;;  %v14598_v63 = vld [vmem:[#allocation57_spill] sm:$0xff] }
0x111d   :  { %v9836_v4 = vpop.eup %9835  ;;  %v5246_v15 = vadd.f32 %v14598_v63, %v13142_v9 }
0x111e   :  { %9841 = vtanh.f32 %v6217_v21  ;;  %v6216_v19 = vmul.f32 %v9836_v4, %v6214_v50  ;;  %v9838_v52 = vpop.eup %9837 }
0x111f   :  { %v9840_v5 = vpop.eup %9839  ;;  %v6221_v33 = vsub.f32 1.0, %v9838_v52  ;;  %v6225_v59 = vmul.f32 %v9838_v52, %v13279_v43  ;;  %v13376_v43 = vld [vmem:[#allocation9 + $0x60] ss:$12 sps:$4 sm:$0xff]  }
0x1120   :  { %v6218_v39 = vadd.f32 %v6216_v19, %v5384_v2  ;;  %v6222_v0 = vsub.f32 1.0, %v9840_v5  ;;  %v6226_v29 = vmul.f32 %v9840_v5, %v13282_v27  ;;  %v13379_v27 = vld [vmem:[#allocation9 + $0x68] ss:$12 sps:$4 sm:$0xff]   ;;  %v14599_v19 = vld [vmem:[#allocation120_spill] sm:$0xff] }
0x1122   :  { %9843 = vtanh.f32 %v6218_v39  ;;  %v5250_v39 = vadd.f32 %v14599_v19, %v13142_v9 }
0x112b   :  { %v9842_v34 = vpop.eup %9841 }
0x112c   :  { %v6223_v36 = vmul.f32 %v9842_v34, %v6221_v33 }
0x112e   :  { %v13354_v57 = vadd.f32 %v6225_v59, %v6223_v36 }
0x112f   :  { %v9844_v28 = vpop.eup %9843 }
0x1130   :  { %v6224_v49 = vmul.f32 %v9844_v28, %v6222_v0 }
0x1132   :  { %v13357_v40 = vadd.f32 %v6226_v29, %v6224_v49 }
0x1134   :  { %v6235_v58 = vpack.c.bf16 %v13357_v40, %v13354_v57 }
0x1136   :  { %6269 = vmatmul.mubr.bf16.vlgmr.msra.gmra.mxu1 %v6235_v58  ;;  %8902 = vmatmul.mubr.bf16.vlgmr.msra.gmra.mxu0 %v6235_v58 }
0x1137   :  { %6372 = vmatpush1.bf16.msra.mxu1 %v13286_v17  ;;  %8906 = vmatpush3.bf16.msra.mxu0 %v13289_v6 }
0x1138   :  { %6373 = vmatprep.subr.bf16.mxu1 %v13292_v45  ;;  %8907 = vmatprep.subr.bf16.mxu0 %v14192_v61 }
0x1139   :  { %6403 = vmatprep.mubr.bf16.mxu1 %v14193_v55  ;;  %8921 = vmatprep.mubr.msk.bf16.mxu0 %vm10307_vm1, %v14192_v61 }
0x113b   :  { %6374 = vmatpush1.bf16.msra.mxu1 %v13299_v12  ;;  %8908 = vmatpush3.bf16.msra.mxu0 %v13302_v10 }
0x113c   :  { %6375 = vmatprep.subr.bf16.mxu1 %v13305_v48  ;;  %8909 = vmatprep.subr.bf16.mxu0 %v14192_v61 }
0x113f   :  { %6376 = vmatpush1.bf16.msra.mxu1 %v13309_v16  ;;  %8910 = vmatpush3.bf16.msra.mxu0 %v13312_v47 }
0x1140   :  { %6377 = vmatprep.subr.bf16.mxu1 %v13315_v13  ;;  %8911 = vmatprep.subr.bf16.mxu0 %v14192_v61 }
0x1143   :  { %6378 = vmatpush1.bf16.msra.mxu1 %v13376_v43  ;;  %8912 = vmatpush3.bf16.msra.mxu0 %v13379_v27 }
0x1144   :  { %6379 = vmatprep.subr.bf16.mxu1 %v13382_v62  ;;  %8913 = vmatprep.subr.bf16.mxu0 %v14192_v61 }
0x1147   :  { %6380 = vmatpush1.bf16.msra.mxu1 %v13386_v32  ;;  %8914 = vmatpush3.bf16.msra.mxu0 %v13389_v30 }
0x1148   :  { %6381 = vmatprep.subr.bf16.mxu1 %v13392_v18  ;;  %8915 = vmatprep.subr.bf16.mxu0 %v14192_v61 }
0x114b   :  { %6382 = vmatpush1.bf16.msra.mxu1 %v13396_v53  ;;  %8916 = vmatpush3.bf16.msra.mxu0 %v13399_v31 }
0x114c   :  { %6383 = vmatprep.subr.bf16.mxu1 %v13402_v14  ;;  %8917 = vmatprep.subr.bf16.mxu0 %v14192_v61 }
0x114f   :  { %6384 = vmatpush1.bf16.msra.mxu1 %v13406_v42  ;;  %8918 = vmatpush3.bf16.msra.mxu0 %v13409_v41 }
0x1150   :  { %6385 = vmatprep.subr.bf16.mxu1 %v13412_v44  ;;  %8919 = vmatprep.subr.bf16.mxu0 %v14192_v61 }
0x1153   :  { %6386 = vmatpush1.bf16.msra.mxu1 %v13416_v22  ;;  %8920 = vmatpush3.bf16.msra.mxu0 %v13419_v8 }
0x1154   :  { %6506 = vmatprep.subr.bf16.mxu1 %v13260_v46  ;;  %8925 = vmatprep.subr.bf16.mxu0 %v14192_v61 }
0x11f6   :  { %v6270_v11 = vpop.f32.mrf.mxu1  ;;  %v6313_v51 = vpop.f32.mrf.mxu0 }
0x11f7   :  { %v6320_v60 = vadd.f32 %v6270_v11, %v5244_v20  ;;  %v6348_v58 = vadd.f32 %v13153_v1, %v6313_v51  ;;  %v14600_v11 = vld [vmem:[#allocation118_spill] sm:$0xff] }
0x11f8   :  { %v6272_v25 = vpop.f32.mrf.mxu1  ;;  %v8903_v56 = vpop.f32.mrf.mxu0 }
0x11f9   :  { %v7767_v24 = vmul.f32 -1.442695, %v6320_v60  ;;  %v6334_v4 = vadd.f32 %v6272_v25, %v5246_v15  ;;  %v5389_v60 = vadd.f32 %v14600_v11, %v13156_v23 }
0x11fa   :  { %v6274_v26 = vpop.f32.mrf.mxu1  ;;  %v6316_v37 = vpop.f32.mrf.mxu0 }
0x11fb   :  { %9845 = vpow2.f32 %v7767_v24  ;;  %v6321_v21 = vadd.f32 %v6274_v26, %v5248_v3  ;;  %v7769_v5 = vmul.f32 -1.442695, %v6334_v4  ;;  %v6349_v38 = vadd.f32 %v13153_v1, %v6316_v37  ;;  %v14601_v24 = vld [vmem:[#allocation38_spill] sm:$0xff] }
0x11fc   :  { %v8904_v50 = vpop.f32.mrf.mxu0  ;;  %v6276_v2 = vpop.f32.mrf.mxu1  ;;  %v5392_v26 = vadd.f32 %v14601_v24, %v13156_v23 }
0x11fd   :  { %v7768_v7 = vmul.f32 -1.442695, %v6321_v21  ;;  %v6335_v52 = vadd.f32 %v6276_v2, %v5250_v39 }
0x11ff   :  { %9847 = vpow2.f32 %v7768_v7  ;;  %v7770_v33 = vmul.f32 -1.442695, %v6335_v52 }
0x1200   :  { %9849 = vpow2.f32 %v7769_v5 }
0x1201   :  { %9851 = vpow2.f32 %v7770_v33 }
0x1208   :  { %v9846_v34 = vpop.eup %9845 }
0x1209   :  { %v6328_v36 = vadd.f32 1.0, %v9846_v34 }
0x120b   :  { %9853 = vrcp.f32 %v6328_v36 }
0x120c   :  { %v9848_v59 = vpop.eup %9847 }
0x120d   :  { %v6329_v0 = vadd.f32 1.0, %v9848_v59  ;;  %v9850_v28 = vpop.eup %9849 }
0x120e   :  { %v9852_v49 = vpop.eup %9851  ;;  %v6342_v29 = vadd.f32 1.0, %v9850_v28 }
0x120f   :  { %9855 = vrcp.f32 %v6329_v0  ;;  %v6343_v20 = vadd.f32 1.0, %v9852_v49 }
0x1210   :  { %9857 = vrcp.f32 %v6342_v29  ;;  %v14603_v29 = vld [vmem:[#allocation138_spill] sm:$0xff] }
0x1211   :  { %9859 = vrcp.f32 %v6343_v20 }
0x1218   :  { %v9854_v54 = vpop.eup %9853 }
0x1219   :  { %v6350_v25 = vmul.f32 %v9854_v54, %v6348_v58  ;;  %v5258_v58 = vadd.f32 %v14603_v29, %v13129_v35 }
0x121b   :  { %v6352_v56 = vadd.f32 %v6350_v25, %v5389_v60  ;;  %v14604_v60 = vld [vmem:[#allocation42_spill] sm:$0xff] }
0x121c   :  { %v9856_v3 = vpop.eup %9855  ;;  %v5256_v25 = vadd.f32 %v14604_v60, %v13142_v9 }
0x121d   :  { %9861 = vtanh.f32 %v6352_v56  ;;  %v6351_v63 = vmul.f32 %v9856_v3, %v6349_v38  ;;  %v9858_v51 = vpop.eup %9857 }
0x121e   :  { %v9860_v21 = vpop.eup %9859  ;;  %v6356_v50 = vsub.f32 1.0, %v9858_v51  ;;  %v6360_v2 = vmul.f32 %v9858_v51, %v13354_v57  ;;  %v14602_v57 = vld [vmem:[#allocation124_spill] sm:$0xff] }
0x121f   :  { %v6353_v15 = vadd.f32 %v6351_v63, %v5392_v26  ;;  %v6357_v19 = vsub.f32 1.0, %v9860_v21  ;;  %v6361_v5 = vmul.f32 %v9860_v21, %v13357_v40  ;;  %v5254_v40 = vadd.f32 %v14602_v57, %v13129_v35  ;;  %v14605_v63 = vld [vmem:[#allocation145_spill] sm:$0xff] }
0x1221   :  { %9863 = vtanh.f32 %v6353_v15  ;;  %v5260_v15 = vadd.f32 %v14605_v63, %v13142_v9 }
0x122a   :  { %v9862_v4 = vpop.eup %9861 }
0x122b   :  { %v6358_v7 = vmul.f32 %v9862_v4, %v6356_v50 }
0x122d   :  { %v13439_v39 = vadd.f32 %v6360_v2, %v6358_v7 }
0x122e   :  { %v9864_v37 = vpop.eup %9863 }
0x122f   :  { %v6359_v52 = vmul.f32 %v9864_v37, %v6357_v19 }
0x1231   :  { %v13442_v33 = vadd.f32 %v6361_v5, %v6359_v52 }
0x1233   :  { %v6370_v34 = vpack.c.bf16 %v13442_v33, %v13439_v39 }
0x1235   :  { %6404 = vmatmul.mubr.bf16.vlgmr.msra.gmra.mxu1 %v6370_v34  ;;  %8922 = vmatmul.mubr.bf16.vlgmr.msra.gmra.mxu0 %v6370_v34 }
0x1236   :  { %6507 = vmatpush1.bf16.msra.mxu1 %v13286_v17  ;;  %8926 = vmatpush3.bf16.msra.mxu0 %v13289_v6 }
0x1237   :  { %6508 = vmatprep.subr.bf16.mxu1 %v13292_v45  ;;  %8927 = vmatprep.subr.bf16.mxu0 %v14192_v61 }
0x1238   :  { %6538 = vmatprep.mubr.bf16.mxu1 %v14193_v55  ;;  %8941 = vmatprep.mubr.msk.bf16.mxu0 %vm10307_vm1, %v14192_v61 }
0x123a   :  { %6509 = vmatpush1.bf16.msra.mxu1 %v13299_v12  ;;  %8928 = vmatpush3.bf16.msra.mxu0 %v13302_v10 }
0x123b   :  { %6510 = vmatprep.subr.bf16.mxu1 %v13305_v48  ;;  %8929 = vmatprep.subr.bf16.mxu0 %v14192_v61 }
0x123e   :  { %6511 = vmatpush1.bf16.msra.mxu1 %v13309_v16  ;;  %8930 = vmatpush3.bf16.msra.mxu0 %v13312_v47 }
0x123f   :  { %6512 = vmatprep.subr.bf16.mxu1 %v13315_v13  ;;  %8931 = vmatprep.subr.bf16.mxu0 %v14192_v61 }
0x1242   :  { %6513 = vmatpush1.bf16.msra.mxu1 %v13376_v43  ;;  %8932 = vmatpush3.bf16.msra.mxu0 %v13379_v27 }
0x1243   :  { %6514 = vmatprep.subr.bf16.mxu1 %v13382_v62  ;;  %8933 = vmatprep.subr.bf16.mxu0 %v14192_v61 }
0x1246   :  { %6515 = vmatpush1.bf16.msra.mxu1 %v13386_v32  ;;  %8934 = vmatpush3.bf16.msra.mxu0 %v13389_v30 }
0x1247   :  { %6516 = vmatprep.subr.bf16.mxu1 %v13392_v18  ;;  %8935 = vmatprep.subr.bf16.mxu0 %v14192_v61 }
0x124a   :  { %6517 = vmatpush1.bf16.msra.mxu1 %v13396_v53  ;;  %8936 = vmatpush3.bf16.msra.mxu0 %v13399_v31 }
0x124b   :  { %6518 = vmatprep.subr.bf16.mxu1 %v13402_v14  ;;  %8937 = vmatprep.subr.bf16.mxu0 %v14192_v61 }
0x124e   :  { %6519 = vmatpush1.bf16.msra.mxu1 %v13406_v42  ;;  %8938 = vmatpush3.bf16.msra.mxu0 %v13409_v41 }
0x124f   :  { %6520 = vmatprep.subr.bf16.mxu1 %v13412_v44  ;;  %8939 = vmatprep.subr.bf16.mxu0 %v14192_v61 }
0x1252   :  { %6521 = vmatpush1.bf16.msra.mxu1 %v13416_v22  ;;  %8940 = vmatpush3.bf16.msra.mxu0 %v13419_v8 }
0x1253   :  { %6641 = vmatprep.subr.bf16.mxu1 %v13260_v46  ;;  %8945 = vmatprep.subr.bf16.mxu0 %v14192_v61 }
0x12f5   :  { %v6405_v36 = vpop.f32.mrf.mxu1  ;;  %v6448_v59 = vpop.f32.mrf.mxu0 }
0x12f6   :  { %v6455_v0 = vadd.f32 %v6405_v36, %v5254_v40  ;;  %v6483_v34 = vadd.f32 %v13153_v1, %v6448_v59  ;;  %v14606_v36 = vld [vmem:[#allocation135_spill] sm:$0xff] }
0x12f7   :  { %v6407_v28 = vpop.f32.mrf.mxu1  ;;  %v8923_v49 = vpop.f32.mrf.mxu0 }
0x12f8   :  { %v7771_v54 = vmul.f32 -1.442695, %v6455_v0  ;;  %v6469_v3 = vadd.f32 %v6407_v28, %v5256_v25  ;;  %v5397_v0 = vadd.f32 %v14606_v36, %v13156_v23  ;;  %v14610_v36 = vld [vmem:[#allocation19_spill] sm:$0xff] }
0x12f9   :  { %v6409_v20 = vpop.f32.mrf.mxu1  ;;  %v6451_v11 = vpop.f32.mrf.mxu0 }
0x12fa   :  { %9865 = vpow2.f32 %v7771_v54  ;;  %v6456_v56 = vadd.f32 %v6409_v20, %v5258_v58  ;;  %v7773_v21 = vmul.f32 -1.442695, %v6469_v3  ;;  %v6484_v29 = vadd.f32 %v13153_v1, %v6451_v11  ;;  %v14607_v54 = vld [vmem:[#allocation18_spill] sm:$0xff] }
0x12fb   :  { %v8924_v38 = vpop.f32.mrf.mxu0  ;;  %v6411_v26 = vpop.f32.mrf.mxu1  ;;  %v5400_v20 = vadd.f32 %v14607_v54, %v13156_v23 }
0x12fc   :  { %v7772_v24 = vmul.f32 -1.442695, %v6456_v56  ;;  %v6470_v51 = vadd.f32 %v6411_v26, %v5260_v15 }
0x12fe   :  { %9867 = vpow2.f32 %v7772_v24  ;;  %v7774_v50 = vmul.f32 -1.442695, %v6470_v51 }
0x12ff   :  { %9869 = vpow2.f32 %v7773_v21 }
0x1300   :  { %9871 = vpow2.f32 %v7774_v50 }
0x1307   :  { %v9866_v4 = vpop.eup %9865 }
0x1308   :  { %v6463_v7 = vadd.f32 1.0, %v9866_v4 }
0x130a   :  { %9873 = vrcp.f32 %v6463_v7 }
0x130b   :  { %v9868_v2 = vpop.eup %9867 }
0x130c   :  { %v6464_v19 = vadd.f32 1.0, %v9868_v2  ;;  %v9870_v37 = vpop.eup %9869 }
0x130d   :  { %v9872_v52 = vpop.eup %9871  ;;  %v6477_v5 = vadd.f32 1.0, %v9870_v37 }
0x130e   :  { %9875 = vrcp.f32 %v6464_v19  ;;  %v6478_v40 = vadd.f32 1.0, %v9872_v52  ;;  %v14609_v52 = vld [vmem:[#allocation142_spill] sm:$0xff] }
0x130f   :  { %9877 = vrcp.f32 %v6477_v5  ;;  %v5268_v5 = vadd.f32 %v14609_v52, %v13129_v35 }
0x1310   :  { %9879 = vrcp.f32 %v6478_v40 }
0x1317   :  { %v9874_v57 = vpop.eup %9873 }
0x1318   :  { %v6485_v28 = vmul.f32 %v9874_v57, %v6483_v34 }
0x131a   :  { %v6487_v49 = vadd.f32 %v6485_v28, %v5397_v0  ;;  %v5266_v0 = vadd.f32 %v14610_v36, %v13142_v9 }
0x131b   :  { %v9876_v58 = vpop.eup %9875 }
0x131c   :  { %9881 = vtanh.f32 %v6487_v49  ;;  %v6486_v60 = vmul.f32 %v9876_v58, %v6484_v29  ;;  %v9878_v59 = vpop.eup %9877 }
0x131d   :  { %v9880_v56 = vpop.eup %9879  ;;  %v6491_v38 = vsub.f32 1.0, %v9878_v59  ;;  %v6495_v26 = vmul.f32 %v9878_v59, %v13439_v39  ;;  %v14608_v39 = vld [vmem:[#allocation33_spill] sm:$0xff] }
0x131e   :  { %v6488_v25 = vadd.f32 %v6486_v60, %v5400_v20  ;;  %v6492_v63 = vsub.f32 1.0, %v9880_v56  ;;  %v6496_v51 = vmul.f32 %v9880_v56, %v13442_v33  ;;  %v5264_v33 = vadd.f32 %v14608_v39, %v13129_v35  ;;  %v14611_v20 = vld [vmem:[#allocation147_spill] sm:$0xff] }
0x131f   :  { %v5270_v60 = vadd.f32 %v14611_v20, %v13142_v9 }
0x1320   :  { %9883 = vtanh.f32 %v6488_v25 }
0x1329   :  { %v9882_v3 = vpop.eup %9881 }
0x132a   :  { %v6493_v24 = vmul.f32 %v9882_v3, %v6491_v38 }
0x132c   :  { %v13496_v15 = vadd.f32 %v6495_v26, %v6493_v24 }
0x132d   :  { %v9884_v1 = vpop.eup %9883 }
0x132e   :  { %v6494_v11 = vmul.f32 %v9884_v1, %v6492_v63 }
0x1330   :  { %v13499_v21 = vadd.f32 %v6496_v51, %v6494_v11  ;;  %v13549_v51 = vld [vmem:[%s13864_s8] ss:$0 sm:$0xff] }
0x1332   :  { %v6505_v50 = vpack.c.bf16 %v13499_v21, %v13496_v15 }
0x1334   :  { %6539 = vmatmul.mubr.bf16.vlgmr.msra.gmra.mxu1 %v6505_v50  ;;  %8942 = vmatmul.mubr.bf16.vlgmr.msra.gmra.mxu0 %v6505_v50 }
0x1335   :  { %6642 = vmatpush1.bf16.msra.mxu1 %v13286_v17  ;;  %8946 = vmatpush3.bf16.msra.mxu0 %v13289_v6 }
0x1336   :  { %6643 = vmatprep.subr.bf16.mxu1 %v13292_v45  ;;  %8947 = vmatprep.subr.bf16.mxu0 %v14192_v61 }
0x1337   :  { %6673 = vmatprep.mubr.bf16.mxu1 %v14193_v55  ;;  %8961 = vmatprep.mubr.msk.bf16.mxu0 %vm10307_vm1, %v14192_v61 }
0x1339   :  { %6644 = vmatpush1.bf16.msra.mxu1 %v13299_v12  ;;  %8948 = vmatpush3.bf16.msra.mxu0 %v13302_v10 }
0x133a   :  { %6645 = vmatprep.subr.bf16.mxu1 %v13305_v48  ;;  %8949 = vmatprep.subr.bf16.mxu0 %v14192_v61 }
0x133d   :  { %6646 = vmatpush1.bf16.msra.mxu1 %v13309_v16  ;;  %8950 = vmatpush3.bf16.msra.mxu0 %v13312_v47 }
0x133e   :  { %6647 = vmatprep.subr.bf16.mxu1 %v13315_v13  ;;  %8951 = vmatprep.subr.bf16.mxu0 %v14192_v61 }
0x1341   :  { %6648 = vmatpush1.bf16.msra.mxu1 %v13376_v43  ;;  %8952 = vmatpush3.bf16.msra.mxu0 %v13379_v27 }
0x1342   :  { %6649 = vmatprep.subr.bf16.mxu1 %v13382_v62  ;;  %8953 = vmatprep.subr.bf16.mxu0 %v14192_v61 }
0x1345   :  { %6650 = vmatpush1.bf16.msra.mxu1 %v13386_v32  ;;  %8954 = vmatpush3.bf16.msra.mxu0 %v13389_v30 }
0x1346   :  { %6651 = vmatprep.subr.bf16.mxu1 %v13392_v18  ;;  %8955 = vmatprep.subr.bf16.mxu0 %v14192_v61 }
0x1349   :  { %6652 = vmatpush1.bf16.msra.mxu1 %v13396_v53  ;;  %8956 = vmatpush3.bf16.msra.mxu0 %v13399_v31 }
0x134a   :  { %6653 = vmatprep.subr.bf16.mxu1 %v13402_v14  ;;  %8957 = vmatprep.subr.bf16.mxu0 %v14192_v61 }
0x134d   :  { %6654 = vmatpush1.bf16.msra.mxu1 %v13406_v42  ;;  %8958 = vmatpush3.bf16.msra.mxu0 %v13409_v41 }
0x134e   :  { %6655 = vmatprep.subr.bf16.mxu1 %v13412_v44  ;;  %8959 = vmatprep.subr.bf16.mxu0 %v14192_v61 }
0x1351   :  { %6656 = vmatpush1.bf16.msra.mxu1 %v13416_v22  ;;  %8960 = vmatpush3.bf16.msra.mxu0 %v13419_v8 }
0x1352   :  { %6776 = vmatprep.subr.bf16.mxu1 %v13260_v46  ;;  %8965 = vmatprep.subr.bf16.mxu0 %v14192_v61 }
0x13f4   :  { %v6540_v4 = vpop.f32.mrf.mxu1  ;;  %v6583_v7 = vpop.f32.mrf.mxu0 }
0x13f5   :  { %v6590_v2 = vadd.f32 %v6540_v4, %v5264_v33  ;;  %v6618_v50 = vadd.f32 %v13549_v51, %v6583_v7  ;;  %v14612_v4 = vld [vmem:[#allocation162_spill] sm:$0xff] }
0x13f6   :  { %v6542_v19 = vpop.f32.mrf.mxu1  ;;  %v8943_v37 = vpop.f32.mrf.mxu0 }
0x13f7   :  { %v7775_v34 = vmul.f32 -1.442695, %v6590_v2  ;;  %v6604_v29 = vadd.f32 %v6542_v19, %v5266_v0  ;;  %v5405_v2 = vadd.f32 %v14612_v4, %v13156_v23 }
0x13f8   :  { %v6544_v57 = vpop.f32.mrf.mxu1  ;;  %v6586_v40 = vpop.f32.mrf.mxu0 }
0x13f9   :  { %9885 = vpow2.f32 %v7775_v34  ;;  %v6591_v28 = vadd.f32 %v6544_v57, %v5268_v5  ;;  %v7777_v59 = vmul.f32 -1.442695, %v6604_v29  ;;  %v6619_v52 = vadd.f32 %v13549_v51, %v6586_v40  ;;  %v14613_v34 = vld [vmem:[#allocation144_spill] sm:$0xff] }
0x13fa   :  { %v8944_v49 = vpop.f32.mrf.mxu0  ;;  %v6546_v54 = vpop.f32.mrf.mxu1  ;;  %v5408_v57 = vadd.f32 %v14613_v34, %v13156_v23 }
0x13fb   :  { %v7776_v58 = vmul.f32 -1.442695, %v6591_v28  ;;  %v6605_v25 = vadd.f32 %v6546_v54, %v5270_v60 }
0x13fd   :  { %9887 = vpow2.f32 %v7776_v58  ;;  %v7778_v56 = vmul.f32 -1.442695, %v6605_v25 }
0x13fe   :  { %9889 = vpow2.f32 %v7777_v59 }
0x13ff   :  { %9891 = vpow2.f32 %v7778_v56 }
0x1406   :  { %v9886_v38 = vpop.eup %9885 }
0x1407   :  { %v6598_v3 = vadd.f32 1.0, %v9886_v38 }
0x1409   :  { %9893 = vrcp.f32 %v6598_v3 }
0x140a   :  { %v9888_v24 = vpop.eup %9887 }
0x140b   :  { %v6599_v26 = vadd.f32 1.0, %v9888_v24  ;;  %v9890_v63 = vpop.eup %9889 }
0x140c   :  { %v9892_v1 = vpop.eup %9891  ;;  %v6612_v11 = vadd.f32 1.0, %v9890_v63 }
0x140d   :  { %9895 = vrcp.f32 %v6599_v26  ;;  %v6613_v33 = vadd.f32 1.0, %v9892_v1 }
0x140e   :  { %9897 = vrcp.f32 %v6612_v11  ;;  %v14615_v11 = vld [vmem:[#allocation63_spill] sm:$0xff] }
0x140f   :  { %9899 = vrcp.f32 %v6613_v33 }
0x1416   :  { %v9894_v39 = vpop.eup %9893 }
0x1417   :  { %v6620_v19 = vmul.f32 %v9894_v39, %v6618_v50  ;;  %v5278_v50 = vadd.f32 %v14615_v11, %v13129_v35 }
0x1419   :  { %v6622_v37 = vadd.f32 %v6620_v19, %v5405_v2  ;;  %v14616_v2 = vld [vmem:[#allocation35_spill] sm:$0xff] }
0x141a   :  { %v9896_v5 = vpop.eup %9895  ;;  %v5276_v19 = vadd.f32 %v14616_v2, %v13142_v9 }
0x141b   :  { %9901 = vtanh.f32 %v6622_v37  ;;  %v6621_v36 = vmul.f32 %v9896_v5, %v6619_v52  ;;  %v9898_v7 = vpop.eup %9897 }
0x141c   :  { %v9900_v28 = vpop.eup %9899  ;;  %v6626_v49 = vsub.f32 1.0, %v9898_v7  ;;  %v6630_v54 = vmul.f32 %v9898_v7, %v13496_v15  ;;  %v14614_v15 = vld [vmem:[#allocation32_spill] sm:$0xff] }
0x141d   :  { %v6623_v0 = vadd.f32 %v6621_v36, %v5408_v57  ;;  %v6627_v20 = vsub.f32 1.0, %v9900_v28  ;;  %v6631_v59 = vmul.f32 %v9900_v28, %v13499_v21  ;;  %v5274_v21 = vadd.f32 %v14614_v15, %v13129_v35  ;;  %v14617_v57 = vld [vmem:[#allocation61_spill] sm:$0xff] }
0x141e   :  { %v5280_v36 = vadd.f32 %v14617_v57, %v13142_v9 }
0x141f   :  { %9903 = vtanh.f32 %v6623_v0 }
0x1428   :  { %v9902_v29 = vpop.eup %9901 }
0x1429   :  { %v6628_v58 = vmul.f32 %v9902_v29, %v6626_v49 }
0x142b   :  { %v13558_v60 = vadd.f32 %v6630_v54, %v6628_v58 }
0x142c   :  { %v9904_v40 = vpop.eup %9903 }
0x142d   :  { %v6629_v25 = vmul.f32 %v9904_v40, %v6627_v20 }
0x142f   :  { %v13561_v56 = vadd.f32 %v6631_v59, %v6629_v25 }
0x1431   :  { %v6640_v38 = vpack.c.bf16 %v13561_v56, %v13558_v60 }
0x1433   :  { %6674 = vmatmul.mubr.bf16.vlgmr.msra.gmra.mxu1 %v6640_v38  ;;  %8962 = vmatmul.mubr.bf16.vlgmr.msra.gmra.mxu0 %v6640_v38 }
0x1434   :  { %6777 = vmatpush1.bf16.msra.mxu1 %v13286_v17  ;;  %8966 = vmatpush3.bf16.msra.mxu0 %v13289_v6 }
0x1435   :  { %6778 = vmatprep.subr.bf16.mxu1 %v13292_v45  ;;  %8967 = vmatprep.subr.bf16.mxu0 %v14192_v61 }
0x1436   :  { %6808 = vmatprep.mubr.bf16.mxu1 %v14193_v55  ;;  %8981 = vmatprep.mubr.msk.bf16.mxu0 %vm10307_vm1, %v14192_v61 }
0x1438   :  { %6779 = vmatpush1.bf16.msra.mxu1 %v13299_v12  ;;  %8968 = vmatpush3.bf16.msra.mxu0 %v13302_v10 }
0x1439   :  { %6780 = vmatprep.subr.bf16.mxu1 %v13305_v48  ;;  %8969 = vmatprep.subr.bf16.mxu0 %v14192_v61 }
0x143c   :  { %6781 = vmatpush1.bf16.msra.mxu1 %v13309_v16  ;;  %8970 = vmatpush3.bf16.msra.mxu0 %v13312_v47 }
0x143d   :  { %6782 = vmatprep.subr.bf16.mxu1 %v13315_v13  ;;  %8971 = vmatprep.subr.bf16.mxu0 %v14192_v61 }
0x1440   :  { %6783 = vmatpush1.bf16.msra.mxu1 %v13376_v43  ;;  %8972 = vmatpush3.bf16.msra.mxu0 %v13379_v27 }
0x1441   :  { %6784 = vmatprep.subr.bf16.mxu1 %v13382_v62  ;;  %8973 = vmatprep.subr.bf16.mxu0 %v14192_v61 }
0x1444   :  { %6785 = vmatpush1.bf16.msra.mxu1 %v13386_v32  ;;  %8974 = vmatpush3.bf16.msra.mxu0 %v13389_v30 }
0x1445   :  { %6786 = vmatprep.subr.bf16.mxu1 %v13392_v18  ;;  %8975 = vmatprep.subr.bf16.mxu0 %v14192_v61 }
0x1448   :  { %6787 = vmatpush1.bf16.msra.mxu1 %v13396_v53  ;;  %8976 = vmatpush3.bf16.msra.mxu0 %v13399_v31 }
0x1449   :  { %6788 = vmatprep.subr.bf16.mxu1 %v13402_v14  ;;  %8977 = vmatprep.subr.bf16.mxu0 %v14192_v61 }
0x144c   :  { %6789 = vmatpush1.bf16.msra.mxu1 %v13406_v42  ;;  %8978 = vmatpush3.bf16.msra.mxu0 %v13409_v41 }
0x144d   :  { %6790 = vmatprep.subr.bf16.mxu1 %v13412_v44  ;;  %8979 = vmatprep.subr.bf16.mxu0 %v14192_v61 }
0x1450   :  { %6791 = vmatpush1.bf16.msra.mxu1 %v13416_v22  ;;  %8980 = vmatpush3.bf16.msra.mxu0 %v13419_v8 }
0x1451   :  { %6911 = vmatprep.subr.bf16.mxu1 %v13260_v46  ;;  %8985 = vmatprep.subr.bf16.mxu0 %v14192_v61 }
0x14f3   :  { %v6675_v3 = vpop.f32.mrf.mxu1  ;;  %v6718_v24 = vpop.f32.mrf.mxu0 }
0x14f4   :  { %v6725_v26 = vadd.f32 %v6675_v3, %v5274_v21  ;;  %v6753_v59 = vadd.f32 %v13549_v51, %v6718_v24  ;;  %v14618_v21 = vld [vmem:[#allocation60_spill] sm:$0xff] }
0x14f5   :  { %v6677_v63 = vpop.f32.mrf.mxu1  ;;  %v8963_v1 = vpop.f32.mrf.mxu0  ;;  %v5413_v3 = vadd.f32 %v14618_v21, %v13156_v23 }
0x14f6   :  { %v7779_v39 = vmul.f32 -1.442695, %v6725_v26  ;;  %v6739_v52 = vadd.f32 %v6677_v63, %v5276_v19 }
0x14f7   :  { %v6679_v33 = vpop.f32.mrf.mxu1  ;;  %v6721_v4 = vpop.f32.mrf.mxu0 }
0x14f8   :  { %9905 = vpow2.f32 %v7779_v39  ;;  %v6726_v46 = vadd.f32 %v6679_v33, %v5278_v50  ;;  %v7781_v7 = vmul.f32 -1.442695, %v6739_v52  ;;  %v6754_v1 = vadd.f32 %v13549_v51, %v6721_v4  ;;  %v14619_v50 = vld [vmem:[#allocation65_spill] sm:$0xff] }
0x14f9   :  { %v8964_v37 = vpop.f32.mrf.mxu0  ;;  %v6681_v34 = vpop.f32.mrf.mxu1  ;;  %v5416_v39 = vadd.f32 %v14619_v50, %v13156_v23 }
0x14fa   :  { %v7780_v5 = vmul.f32 -1.442695, %v6726_v46  ;;  %v6740_v0 = vadd.f32 %v6681_v34, %v5280_v36 }
0x14fc   :  { %9907 = vpow2.f32 %v7780_v5  ;;  %v7782_v28 = vmul.f32 -1.442695, %v6740_v0 }
0x14fd   :  { %9909 = vpow2.f32 %v7781_v7 }
0x14fe   :  { %9911 = vpow2.f32 %v7782_v28 }
0x1505   :  { %v9906_v49 = vpop.eup %9905 }
0x1506   :  { %v6733_v29 = vadd.f32 1.0, %v9906_v49 }
0x1508   :  { %9913 = vrcp.f32 %v6733_v29 }
0x1509   :  { %v9908_v58 = vpop.eup %9907 }
0x150a   :  { %v6734_v54 = vadd.f32 1.0, %v9908_v58  ;;  %v9910_v20 = vpop.eup %9909  ;;  %v14622_v58 = vld [vmem:[#allocation115_spill] sm:$0xff] }
0x150b   :  { %v9912_v40 = vpop.eup %9911  ;;  %v6747_v25 = vadd.f32 1.0, %v9910_v20 }
0x150c   :  { %9915 = vrcp.f32 %v6734_v54  ;;  %v6748_v15 = vadd.f32 1.0, %v9912_v40  ;;  %v5286_v54 = vadd.f32 %v14622_v58, %v13142_v9 }
0x150d   :  { %9917 = vrcp.f32 %v6747_v25 }
0x150e   :  { %9919 = vrcp.f32 %v6748_v15  ;;  %v14623_v15 = vld [vmem:[#allocation51_spill] sm:$0xff] }
0x150f   :  { %v5290_v21 = vadd.f32 %v14623_v15, %v13142_v9  ;;  %v13700_v15 = vld [vmem:[#allocation9 + $0x7c] ss:$12 sps:$4 sm:$0xff]  }
0x1515   :  { %v9914_v38 = vpop.eup %9913 }
0x1516   :  { %v6755_v26 = vmul.f32 %v9914_v38, %v6753_v59 }
0x1518   :  { %v6757_v63 = vadd.f32 %v6755_v26, %v5413_v3 }
0x1519   :  { %v9916_v11 = vpop.eup %9915 }
0x151a   :  { %9921 = vtanh.f32 %v6757_v63  ;;  %v6756_v33 = vmul.f32 %v9916_v11, %v6754_v1  ;;  %v9918_v24 = vpop.eup %9917 }
0x151b   :  { %v9920_v19 = vpop.eup %9919  ;;  %v6761_v46 = vsub.f32 1.0, %v9918_v24  ;;  %v6765_v5 = vmul.f32 %v9918_v24, %v13558_v60 }
0x151c   :  { %v6758_v2 = vadd.f32 %v6756_v33, %v5416_v39  ;;  %v6762_v34 = vsub.f32 1.0, %v9920_v19  ;;  %v6766_v0 = vmul.f32 %v9920_v19, %v13561_v56 }
0x151e   :  { %9923 = vtanh.f32 %v6758_v2 }
0x1527   :  { %v9922_v37 = vpop.eup %9921 }
0x1528   :  { %v6763_v52 = vmul.f32 %v9922_v37, %v6761_v46 }
0x152a   :  { %v13615_v57 = vadd.f32 %v6765_v5, %v6763_v52  ;;  %v14624_v52 = vld [vmem:[#allocation112_spill] sm:$0xff] }
0x152b   :  { %v9924_v4 = vpop.eup %9923  ;;  %v5421_v5 = vadd.f32 %v14624_v52, %v13156_v23 }
0x152c   :  { %v6764_v36 = vmul.f32 %v9924_v4, %v6762_v34 }
0x152e   :  { %v13618_v7 = vadd.f32 %v6766_v0, %v6764_v36 }
0x1530   :  { %v6775_v28 = vpack.c.bf16 %v13618_v7, %v13615_v57 }
0x1532   :  { %6809 = vmatmul.mubr.bf16.vlgmr.msra.gmra.mxu1 %v6775_v28  ;;  %8982 = vmatmul.mubr.bf16.vlgmr.msra.gmra.mxu0 %v6775_v28  ;;  %v14625_v28 = vld [vmem:[#allocation116_spill] sm:$0xff] }
0x1533   :  { %6912 = vmatpush1.bf16.msra.mxu1 %v13286_v17  ;;  %8986 = vmatpush3.bf16.msra.mxu0 %v13289_v6  ;;  %v13655_v17 = vld [vmem:[#allocation9 + $0xac] ss:$12 sps:$4 sm:$0xff]   ;;  %v14620_v6 = vld [vmem:[#allocation110_spill] sm:$0xff] }
0x1534   :  { %6913 = vmatprep.subr.bf16.mxu1 %v13292_v45  ;;  %8987 = vmatprep.subr.bf16.mxu0 %v14192_v61  ;;  %v5284_v45 = vadd.f32 %v14620_v6, %v13129_v35  ;;  %v5424_v6 = vadd.f32 %v14625_v28, %v13156_v23 }
0x1535   :  { %6943 = vmatprep.mubr.bf16.mxu1 %v14193_v55  ;;  %9001 = vmatprep.mubr.msk.bf16.mxu0 %vm10307_vm1, %v14192_v61 }
0x1537   :  { %6914 = vmatpush1.bf16.msra.mxu1 %v13299_v12  ;;  %8988 = vmatpush3.bf16.msra.mxu0 %v13302_v10 }
0x1538   :  { %6915 = vmatprep.subr.bf16.mxu1 %v13305_v48  ;;  %8989 = vmatprep.subr.bf16.mxu0 %v14192_v61 }
0x153b   :  { %6916 = vmatpush1.bf16.msra.mxu1 %v13309_v16  ;;  %8990 = vmatpush3.bf16.msra.mxu0 %v13312_v47 }
0x153c   :  { %6917 = vmatprep.subr.bf16.mxu1 %v13315_v13  ;;  %8991 = vmatprep.subr.bf16.mxu0 %v14192_v61  ;;  %v14621_v13 = vld [vmem:[#allocation48_spill] sm:$0xff] }
0x153d   :  { %v5288_v60 = vadd.f32 %v14621_v13, %v13129_v35 }
0x153f   :  { %6918 = vmatpush1.bf16.msra.mxu1 %v13376_v43  ;;  %8992 = vmatpush3.bf16.msra.mxu0 %v13379_v27 }
0x1540   :  { %6919 = vmatprep.subr.bf16.mxu1 %v13382_v62  ;;  %8993 = vmatprep.subr.bf16.mxu0 %v14192_v61 }
0x1543   :  { %6920 = vmatpush1.bf16.msra.mxu1 %v13386_v32  ;;  %8994 = vmatpush3.bf16.msra.mxu0 %v13389_v30 }
0x1544   :  { %6921 = vmatprep.subr.bf16.mxu1 %v13392_v18  ;;  %8995 = vmatprep.subr.bf16.mxu0 %v14192_v61 }
0x1547   :  { %6922 = vmatpush1.bf16.msra.mxu1 %v13396_v53  ;;  %8996 = vmatpush3.bf16.msra.mxu0 %v13399_v31 }
0x1548   :  { %6923 = vmatprep.subr.bf16.mxu1 %v13402_v14  ;;  %8997 = vmatprep.subr.bf16.mxu0 %v14192_v61 }
0x154b   :  { %6924 = vmatpush1.bf16.msra.mxu1 %v13406_v42  ;;  %8998 = vmatpush3.bf16.msra.mxu0 %v13409_v41 }
0x154c   :  { %6925 = vmatprep.subr.bf16.mxu1 %v13412_v44  ;;  %8999 = vmatprep.subr.bf16.mxu0 %v14192_v61 }
0x154f   :  { %6926 = vmatpush1.bf16.msra.mxu1 %v13416_v22  ;;  %9000 = vmatpush3.bf16.msra.mxu0 %v13419_v8 }
0x1550   :  { %7046 = vmatprep.subr.bf16.mxu1 %v13655_v17  ;;  %9005 = vmatprep.subr.bf16.mxu0 %v14192_v61 }
0x15f2   :  { %v6810_v12 = vpop.f32.mrf.mxu1  ;;  %v6853_v10 = vpop.f32.mrf.mxu0 }
0x15f3   :  { %v6860_v48 = vadd.f32 %v6810_v12, %v5284_v45  ;;  %v6888_v19 = vadd.f32 %v13549_v51, %v6853_v10 }
0x15f4   :  { %v6812_v16 = vpop.f32.mrf.mxu1  ;;  %v8983_v47 = vpop.f32.mrf.mxu0 }
0x15f5   :  { %v7783_v56 = vmul.f32 -1.442695, %v6860_v48  ;;  %v6874_v25 = vadd.f32 %v6812_v16, %v5286_v54 }
0x15f6   :  { %v6814_v49 = vpop.f32.mrf.mxu1  ;;  %v6856_v29 = vpop.f32.mrf.mxu0 }
0x15f7   :  { %9925 = vpow2.f32 %v7783_v56  ;;  %v6861_v20 = vadd.f32 %v6814_v49, %v5288_v60  ;;  %v7785_v26 = vmul.f32 -1.442695, %v6874_v25  ;;  %v6889_v36 = vadd.f32 %v13549_v51, %v6856_v29  ;;  %v13681_v25 = vld [vmem:[#allocation9 + $0xa8] ss:$12 sps:$4 sm:$0xff]  }
0x15f8   :  { %v8984_v40 = vpop.f32.mrf.mxu0  ;;  %v6816_v38 = vpop.f32.mrf.mxu1 }
0x15f9   :  { %v7784_v59 = vmul.f32 -1.442695, %v6861_v20  ;;  %v6875_v3 = vadd.f32 %v6816_v38, %v5290_v21  ;;  %v13697_v38 = vld [vmem:[#allocation9 + $0x98] ss:$12 sps:$4 sm:$0xff]  }
0x15fa   :  { %v13704_v21 = vld [vmem:[#allocation9 + $0x78] ss:$12 sps:$4 sm:$0xff]  }
0x15fb   :  { %9927 = vpow2.f32 %v7784_v59  ;;  %v7786_v63 = vmul.f32 -1.442695, %v6875_v3  ;;  %v13684_v59 = vld [vmem:[#allocation9 + $0xb0] ss:$12 sps:$4 sm:$0xff]   ;;  %v13707_v3 = vld [vmem:[#allocation9 + $0x80] ss:$12 sps:$4 sm:$0xff]  }
0x15fc   :  { %9929 = vpow2.f32 %v7785_v26  ;;  %v13710_v26 = vld [vmem:[#allocation9 + $0x64] ss:$12 sps:$4 sm:$0xff]  }
0x15fd   :  { %9931 = vpow2.f32 %v7786_v63 }
0x1604   :  { %v9926_v1 = vpop.eup %9925 }
0x1605   :  { %v6868_v11 = vadd.f32 1.0, %v9926_v1 }
0x1607   :  { %9933 = vrcp.f32 %v6868_v11 }
0x1608   :  { %v9928_v50 = vpop.eup %9927 }
0x1609   :  { %v6869_v39 = vadd.f32 1.0, %v9928_v50  ;;  %v9930_v33 = vpop.eup %9929 }
0x160a   :  { %v9932_v2 = vpop.eup %9931  ;;  %v6882_v24 = vadd.f32 1.0, %v9930_v33 }
0x160b   :  { %9935 = vrcp.f32 %v6869_v39  ;;  %v6883_v37 = vadd.f32 1.0, %v9932_v2  ;;  %v14629_v39 = vld [vmem:[#allocation163_spill] sm:$0xff] }
0x160c   :  { %9937 = vrcp.f32 %v6882_v24  ;;  %v5300_v33 = vadd.f32 %v14629_v39, %v13142_v9  ;;  %v14633_v39 = vld [vmem:[#allocation15_spill] sm:$0xff] }
0x160d   :  { %9939 = vrcp.f32 %v6883_v37 }
0x1614   :  { %v9934_v46 = vpop.eup %9933 }
0x1615   :  { %v6890_v34 = vmul.f32 %v9934_v46, %v6888_v19 }
0x1617   :  { %v6892_v4 = vadd.f32 %v6890_v34, %v5421_v5 }
0x1618   :  { %v9936_v0 = vpop.eup %9935 }
0x1619   :  { %9941 = vtanh.f32 %v6892_v4  ;;  %v6891_v45 = vmul.f32 %v9936_v0, %v6889_v36  ;;  %v9938_v10 = vpop.eup %9937 }
0x161a   :  { %v9940_v48 = vpop.eup %9939  ;;  %v6896_v16 = vsub.f32 1.0, %v9938_v10  ;;  %v6900_v60 = vmul.f32 %v9938_v10, %v13615_v57  ;;  %v13687_v57 = vld [vmem:[#allocation9 + $0x94] ss:$12 sps:$4 sm:$0xff]  }
0x161b   :  { %v6893_v12 = vadd.f32 %v6891_v45, %v5424_v6  ;;  %v6897_v56 = vsub.f32 1.0, %v9940_v48  ;;  %v6901_v54 = vmul.f32 %v9940_v48, %v13618_v7  ;;  %v13694_v7 = vld [vmem:[#allocation9 + $0x90] ss:$12 sps:$4 sm:$0xff]  }
0x161c   :  { %v14630_v45 = vld [vmem:[#allocation22_spill] sm:$0xff] }
0x161d   :  { %9943 = vtanh.f32 %v6893_v12  ;;  %v5429_v12 = vadd.f32 %v14630_v45, %v13156_v23 }
0x1626   :  { %v9942_v47 = vpop.eup %9941 }
0x1627   :  { %v6898_v13 = vmul.f32 %v9942_v47, %v6896_v16 }
0x1629   :  { %v13674_v49 = vadd.f32 %v6900_v60, %v6898_v13  ;;  %v14631_v13 = vld [vmem:[#allocation23_spill] sm:$0xff] }
0x162a   :  { %v9944_v29 = vpop.eup %9943  ;;  %v5432_v60 = vadd.f32 %v14631_v13, %v13156_v23 }
0x162b   :  { %v6899_v58 = vmul.f32 %v9944_v29, %v6897_v56 }
0x162d   :  { %v13677_v20 = vadd.f32 %v6901_v54, %v6899_v58 }
0x162f   :  { %v6910_v40 = vpack.c.bf16 %v13677_v20, %v13674_v49 }
0x1631   :  { %6944 = vmatmul.mubr.bf16.vlgmr.msra.gmra.mxu1 %v6910_v40  ;;  %9002 = vmatmul.mubr.bf16.vlgmr.msra.gmra.mxu0 %v6910_v40 }
0x1632   :  { %7047 = vmatpush1.bf16.msra.mxu1 %v13681_v25  ;;  %9006 = vmatpush3.bf16.msra.mxu0 %v13684_v59 }
0x1633   :  { %7048 = vmatprep.subr.bf16.mxu1 %v13687_v57  ;;  %9007 = vmatprep.subr.bf16.mxu0 %v14192_v61 }
0x1634   :  { %7078 = vmatprep.mubr.bf16.mxu1 %v14193_v55  ;;  %9021 = vmatprep.mubr.msk.bf16.mxu0 %vm10307_vm1, %v14192_v61 }
0x1636   :  { %7049 = vmatpush1.bf16.msra.mxu1 %v13694_v7  ;;  %9008 = vmatpush3.bf16.msra.mxu0 %v13697_v38 }
0x1637   :  { %7050 = vmatprep.subr.bf16.mxu1 %v13700_v15  ;;  %9009 = vmatprep.subr.bf16.mxu0 %v14192_v61 }
0x163a   :  { %7051 = vmatpush1.bf16.msra.mxu1 %v13704_v21  ;;  %9010 = vmatpush3.bf16.msra.mxu0 %v13707_v3 }
0x163b   :  { %7052 = vmatprep.subr.bf16.mxu1 %v13710_v26  ;;  %9011 = vmatprep.subr.bf16.mxu0 %v14192_v61 }
0x163e   :  { %7053 = vmatpush1.bf16.msra.mxu1 %v13376_v43  ;;  %9012 = vmatpush3.bf16.msra.mxu0 %v13379_v27  ;;  %v14626_v43 = vld [vmem:[#allocation125_spill] sm:$0xff] }
0x163f   :  { %7054 = vmatprep.subr.bf16.mxu1 %v13382_v62  ;;  %9013 = vmatprep.subr.bf16.mxu0 %v14192_v61  ;;  %v5294_v27 = vadd.f32 %v14626_v43, %v13129_v35 }
0x1642   :  { %7055 = vmatpush1.bf16.msra.mxu1 %v13386_v32  ;;  %9014 = vmatpush3.bf16.msra.mxu0 %v13389_v30 }
0x1643   :  { %7056 = vmatprep.subr.bf16.mxu1 %v13392_v18  ;;  %9015 = vmatprep.subr.bf16.mxu0 %v14192_v61 }
0x1646   :  { %7057 = vmatpush1.bf16.msra.mxu1 %v13396_v53  ;;  %9016 = vmatpush3.bf16.msra.mxu0 %v13399_v31  ;;  %v14627_v31 = vld [vmem:[#allocation25_spill] sm:$0xff] }
0x1647   :  { %7058 = vmatprep.subr.bf16.mxu1 %v13402_v14  ;;  %9017 = vmatprep.subr.bf16.mxu0 %v14192_v61  ;;  %v5298_v14 = vadd.f32 %v14627_v31, %v13129_v35 }
0x164a   :  { %7059 = vmatpush1.bf16.msra.mxu1 %v13406_v42  ;;  %9018 = vmatpush3.bf16.msra.mxu0 %v13409_v41 }
0x164b   :  { %7060 = vmatprep.subr.bf16.mxu1 %v13412_v44  ;;  %9019 = vmatprep.subr.bf16.mxu0 %v14192_v61 }
0x164e   :  { %7061 = vmatpush1.bf16.msra.mxu1 %v13416_v22  ;;  %9020 = vmatpush3.bf16.msra.mxu0 %v13419_v8  ;;  %v14628_v22 = vld [vmem:[#allocation129_spill] sm:$0xff] }
0x164f   :  { %7181 = vmatprep.subr.bf16.mxu1 %v13655_v17  ;;  %9025 = vmatprep.subr.bf16.mxu0 %v14192_v61  ;;  %v5296_v8 = vadd.f32 %v14628_v22, %v13142_v9  ;;  %v14632_v22 = vld [vmem:[#allocation12_spill] sm:$0xff] }
0x16f1   :  { %v6945_v62 = vpop.f32.mrf.mxu1  ;;  %v6988_v32 = vpop.f32.mrf.mxu0 }
0x16f2   :  { %v6995_v30 = vadd.f32 %v6945_v62, %v5294_v27  ;;  %v7023_v0 = vadd.f32 %v13549_v51, %v6988_v32 }
0x16f3   :  { %v6947_v18 = vpop.f32.mrf.mxu1  ;;  %v9003_v53 = vpop.f32.mrf.mxu0 }
0x16f4   :  { %v7787_v42 = vmul.f32 -1.442695, %v6995_v30  ;;  %v7009_v1 = vadd.f32 %v6947_v18, %v5296_v8  ;;  %v5304_v8 = vadd.f32 %v14632_v22, %v13129_v35  ;;  %v9279_v22 = vld [vmem:[%s13865_s9 + $0x28] sm:$0xff]  }
0x16f5   :  { %v6949_v41 = vpop.f32.mrf.mxu1  ;;  %v6991_v44 = vpop.f32.mrf.mxu0 }
0x16f6   :  { %9945 = vpow2.f32 %v7787_v42  ;;  %v6996_v17 = vadd.f32 %v6949_v41, %v5298_v14  ;;  %v7789_v24 = vmul.f32 -1.442695, %v7009_v1  ;;  %v7024_v16 = vadd.f32 %v13549_v51, %v6991_v44  ;;  %v10234_v41 = vld [vmem:[#allocation9] ss:$12 sps:$4 sm:$0xff]   ;;  %v10235_v44 = vld [vmem:[#allocation9 + $0x8] ss:$12 sps:$4 sm:$0xff]  }
0x16f7   :  { %v9004_v63 = vpop.f32.mrf.mxu0  ;;  %v6951_v50 = vpop.f32.mrf.mxu1 }
0x16f8   :  { %v7788_v11 = vmul.f32 -1.442695, %v6996_v17  ;;  %v7010_v2 = vadd.f32 %v6951_v50, %v5300_v33  ;;  %v5308_v33 = vadd.f32 %v14633_v39, %v13129_v35 }
0x16fa   :  { %9947 = vpow2.f32 %v7788_v11  ;;  %v7790_v19 = vmul.f32 -1.442695, %v7010_v2 }
0x16fb   :  { %9949 = vpow2.f32 %v7789_v24 }
0x16fc   :  { %9951 = vpow2.f32 %v7790_v19 }
0x1703   :  { %v9946_v46 = vpop.eup %9945 }
0x1704   :  { %v7003_v37 = vadd.f32 1.0, %v9946_v46  ;;  %v14634_v46 = vld [vmem:[#allocation13_spill] sm:$0xff] }
0x1706   :  { %9953 = vrcp.f32 %v7003_v37  ;;  %v5306_v37 = vadd.f32 %v14634_v46, %v13142_v9 }
0x1707   :  { %v9948_v52 = vpop.eup %9947 }
0x1708   :  { %v7004_v5 = vadd.f32 1.0, %v9948_v52  ;;  %v9950_v34 = vpop.eup %9949 }
0x1709   :  { %v9952_v4 = vpop.eup %9951  ;;  %v7017_v36 = vadd.f32 1.0, %v9950_v34 }
0x170a   :  { %9955 = vrcp.f32 %v7004_v5  ;;  %v7018_v6 = vadd.f32 1.0, %v9952_v4 }
0x170b   :  { %9957 = vrcp.f32 %v7017_v36 }
0x170c   :  { %9959 = vrcp.f32 %v7018_v6 }
0x1713   :  { %v9954_v28 = vpop.eup %9953 }
0x1714   :  { %v7025_v10 = vmul.f32 %v9954_v28, %v7023_v0  ;;  %v14635_v0 = vld [vmem:[#allocation36_spill] sm:$0xff] }
0x1715   :  { %v5310_v28 = vadd.f32 %v14635_v0, %v13142_v9 }
0x1716   :  { %v7027_v48 = vadd.f32 %v7025_v10, %v5429_v12 }
0x1717   :  { %v9956_v47 = vpop.eup %9955 }
0x1718   :  { %9961 = vtanh.f32 %v7027_v48  ;;  %v7026_v56 = vmul.f32 %v9956_v47, %v7024_v16  ;;  %v9958_v58 = vpop.eup %9957 }
0x1719   :  { %v9960_v54 = vpop.eup %9959  ;;  %v7031_v40 = vsub.f32 1.0, %v9958_v58  ;;  %v7035_v62 = vmul.f32 %v9958_v58, %v13674_v49  ;;  %v10223_v49 = vld [vmem:[#allocation9 + $0x68] ss:$12 sps:$4 sm:$0xff]  }
0x171a   :  { %v7028_v29 = vadd.f32 %v7026_v56, %v5432_v60  ;;  %v7032_v32 = vsub.f32 1.0, %v9960_v54  ;;  %v7036_v31 = vmul.f32 %v9960_v54, %v13677_v20  ;;  %v10224_v20 = vld [vmem:[#allocation9 + $0x4c] ss:$12 sps:$4 sm:$0xff]  }
0x171c   :  { %9963 = vtanh.f32 %v7028_v29 }
0x1725   :  { %v9962_v43 = vpop.eup %9961 }
0x1726   :  { %v7033_v27 = vmul.f32 %v9962_v43, %v7031_v40  ;;  %v14636_v40 = vld [vmem:[#allocation14_spill] sm:$0xff] }
0x1727   :  { %v5437_v43 = vadd.f32 %v14636_v40, %v13156_v23 }
0x1728   :  { %v13749_v30 = vadd.f32 %v7035_v62, %v7033_v27 }
0x1729   :  { %v9964_v18 = vpop.eup %9963 }
0x172a   :  { %v7034_v53 = vmul.f32 %v9964_v18, %v7032_v32 }
0x172c   :  { %v13752_v14 = vadd.f32 %v7036_v31, %v7034_v53  ;;  %v14637_v53 = vld [vmem:[#allocation68_spill] sm:$0xff] }
0x172d   :  { %v5440_v31 = vadd.f32 %v14637_v53, %v13156_v23 }
0x172e   :  { %v7045_v42 = vpack.c.bf16 %v13752_v14, %v13749_v30 }
0x1730   :  { %7079 = vmatmul.mubr.bf16.vlgmr.msra.gmra.mxu1 %v7045_v42  ;;  %9022 = vmatmul.mubr.bf16.vlgmr.msra.gmra.mxu0 %v7045_v42 }
0x1731   :  { %7182 = vmatpush1.bf16.msra.mxu1 %v13681_v25  ;;  %9026 = vmatpush3.bf16.msra.mxu0 %v13684_v59  ;;  %v10225_v25 = vld [vmem:[#allocation9 + $0x48] ss:$12 sps:$4 sm:$0xff]   ;;  %v10226_v59 = vld [vmem:[#allocation9 + $0x50] ss:$12 sps:$4 sm:$0xff]  }
0x1732   :  { %7183 = vmatprep.subr.bf16.mxu1 %v13687_v57  ;;  %9027 = vmatprep.subr.bf16.mxu0 %v14192_v61  ;;  %v10227_v57 = vld [vmem:[#allocation9 + $0x34] ss:$12 sps:$4 sm:$0xff]  }
0x1733   :  { %7213 = vmatprep.mubr.bf16.mxu1 %v14193_v55  ;;  %9041 = vmatprep.mubr.msk.bf16.mxu0 %vm10307_vm1, %v14192_v61  ;;  %v10222_v55 = vld [vmem:[#allocation9 + $0x60] ss:$12 sps:$4 sm:$0xff]  }
0x1735   :  { %7184 = vmatpush1.bf16.msra.mxu1 %v13694_v7  ;;  %9028 = vmatpush3.bf16.msra.mxu0 %v13697_v38  ;;  %v10228_v7 = vld [vmem:[#allocation9 + $0x30] ss:$12 sps:$4 sm:$0xff]   ;;  %v10229_v38 = vld [vmem:[#allocation9 + $0x38] ss:$12 sps:$4 sm:$0xff]  }
0x1736   :  { %7185 = vmatprep.subr.bf16.mxu1 %v13700_v15  ;;  %9029 = vmatprep.subr.bf16.mxu0 %v14192_v61  ;;  %v10230_v15 = vld [vmem:[#allocation9 + $0x1c] ss:$12 sps:$4 sm:$0xff]  }
0x1739   :  { %7186 = vmatpush1.bf16.msra.mxu1 %v13704_v21  ;;  %9030 = vmatpush3.bf16.msra.mxu0 %v13707_v3  ;;  %v10231_v21 = vld [vmem:[#allocation9 + $0x18] ss:$12 sps:$4 sm:$0xff]   ;;  %v10232_v3 = vld [vmem:[#allocation9 + $0x20] ss:$12 sps:$4 sm:$0xff]  }
0x173a   :  { %7187 = vmatprep.subr.bf16.mxu1 %v13710_v26  ;;  %9031 = vmatprep.subr.bf16.mxu0 %v14192_v61  ;;  %v10233_v26 = vld [vmem:[#allocation9 + $0x4] ss:$12 sps:$4 sm:$0xff]  }
0x173d   :  { %7188 = vmatpush1.bf16.msra.mxu1 %v10222_v55  ;;  %9032 = vmatpush3.bf16.msra.mxu0 %v10223_v49 }
0x173e   :  { %7189 = vmatprep.subr.bf16.mxu1 %v10224_v20  ;;  %9033 = vmatprep.subr.bf16.mxu0 %v14192_v61 }
0x1741   :  { %7190 = vmatpush1.bf16.msra.mxu1 %v10225_v25  ;;  %9034 = vmatpush3.bf16.msra.mxu0 %v10226_v59 }
0x1742   :  { %7191 = vmatprep.subr.bf16.mxu1 %v10227_v57  ;;  %9035 = vmatprep.subr.bf16.mxu0 %v14192_v61 }
0x1745   :  { %7192 = vmatpush1.bf16.msra.mxu1 %v10228_v7  ;;  %9036 = vmatpush3.bf16.msra.mxu0 %v10229_v38 }
0x1746   :  { %7193 = vmatprep.subr.bf16.mxu1 %v10230_v15  ;;  %9037 = vmatprep.subr.bf16.mxu0 %v14192_v61 }
0x1749   :  { %7194 = vmatpush1.bf16.msra.mxu1 %v10231_v21  ;;  %9038 = vmatpush3.bf16.msra.mxu0 %v10232_v3 }
0x174a   :  { %7195 = vmatprep.subr.bf16.mxu1 %v10233_v26  ;;  %9039 = vmatprep.subr.bf16.mxu0 %v14192_v61 }
0x174d   :  { %7196 = vmatpush1.bf16.msra.mxu1 %v10234_v41  ;;  %9040 = vmatpush3.bf16.msra.mxu0 %v10235_v44 }
0x174e   :  { %9045 = vmatprep.subr.bf16.mxu1 %v14192_v61 }
0x17f0   :  { %v7080_v17 = vpop.f32.mrf.mxu1  ;;  %v7123_v63 = vpop.f32.mrf.mxu0 }
0x17f1   :  { %v7130_v1 = vadd.f32 %v7080_v17, %v5304_v8  ;;  %v7158_v29 = vadd.f32 %v13549_v51, %v7123_v63  ;;  %v9280_v8 = vld [vmem:[%s13865_s9 + $0x20] sm:$0xff]   ;;  %v9281_v17 = vld [vmem:[%s13865_s9 + $0x18] sm:$0xff]   ;;  %v9282_v63 = vld [vmem:[%s13865_s9 + $0x10] sm:$0xff]  }
0x17f2   :  { %v7082_v11 = vpop.f32.mrf.mxu1  ;;  %v9023_v50 = vpop.f32.mrf.mxu0 }
0x17f3   :  { %v7791_v2 = vmul.f32 -1.442695, %v7130_v1  ;;  %v7144_v34 = vadd.f32 %v7082_v11, %v5306_v37  ;;  %v9283_v1 = vld [vmem:[%s13865_s9 + $0x8] sm:$0xff]   ;;  %v9284_v11 = vld [vmem:[%s13865_s9] sm:$0xff]  }
0x17f4   :  { %v7084_v24 = vpop.f32.mrf.mxu1  ;;  %v7126_v19 = vpop.f32.mrf.mxu0  ;;  %v14638_v50 = vld [vmem:[#allocation72_spill] sm:$0xff]  ;;  %v14639_v37 = vld [vmem:[#allocation101_spill] sm:$0xff] }
0x17f5   :  { %9965 = vpow2.f32 %v7791_v2  ;;  %v7131_v52 = vadd.f32 %v7084_v24, %v5308_v33  ;;  %v7793_v45 = vmul.f32 -1.442695, %v7144_v34  ;;  %v7159_v32 = vadd.f32 %v13549_v51, %v7126_v19 }
0x17f6   :  { %v9024_v5 = vpop.f32.mrf.mxu0  ;;  %v7086_v36 = vpop.f32.mrf.mxu1  ;;  %v5314_v39 = vadd.f32 %v14638_v50, %v13129_v35 }
0x17f7   :  { %v7792_v4 = vmul.f32 -1.442695, %v7131_v52  ;;  %v7145_v6 = vadd.f32 %v7086_v36, %v5310_v28  ;;  %v5318_v52 = vadd.f32 %v14639_v37, %v13129_v35  ;;  %v14640_v36 = vld [vmem:[#allocation70_spill] sm:$0xff] }
0x17f8   :  { %v5316_v0 = vadd.f32 %v14640_v36, %v13142_v9 }
0x17f9   :  { %9967 = vpow2.f32 %v7792_v4  ;;  %v7794_v12 = vmul.f32 -1.442695, %v7145_v6 }
0x17fa   :  { %9969 = vpow2.f32 %v7793_v45 }
0x17fb   :  { %9971 = vpow2.f32 %v7794_v12 }
0x1802   :  { %v9966_v10 = vpop.eup %9965 }
0x1803   :  { %v7138_v48 = vadd.f32 1.0, %v9966_v10  ;;  %v14641_v10 = vld [vmem:[#allocation106_spill] sm:$0xff] }
0x1805   :  { %9973 = vrcp.f32 %v7138_v48  ;;  %v5320_v48 = vadd.f32 %v14641_v10, %v13142_v9  ;;  %v14642_v9 = vld [vmem:[#allocation74_spill] sm:$0xff] }
0x1806   :  { %v9968_v16 = vpop.eup %9967 }
0x1807   :  { %v7139_v47 = vadd.f32 1.0, %v9968_v16  ;;  %v9970_v13 = vpop.eup %9969 }
0x1808   :  { %v9972_v60 = vpop.eup %9971  ;;  %v7152_v56 = vadd.f32 1.0, %v9970_v13 }
0x1809   :  { %9975 = vrcp.f32 %v7139_v47  ;;  %v7153_v54 = vadd.f32 1.0, %v9972_v60 }
0x180a   :  { %9977 = vrcp.f32 %v7152_v56 }
0x180b   :  { %9979 = vrcp.f32 %v7153_v54 }
0x1812   :  { %v9974_v58 = vpop.eup %9973 }
0x1813   :  { %v7160_v27 = vmul.f32 %v9974_v58, %v7158_v29 }
0x1815   :  { %v7162_v62 = vadd.f32 %v7160_v27, %v5437_v43 }
0x1816   :  { %v9976_v18 = vpop.eup %9975 }
0x1817   :  { %9981 = vtanh.f32 %v7162_v62  ;;  %v7161_v42 = vmul.f32 %v9976_v18, %v7159_v32  ;;  %v9978_v49 = vpop.eup %9977  ;;  %v5445_v32 = vadd.f32 %v14642_v9, %v13156_v23 }
0x1818   :  { %v9980_v20 = vpop.eup %9979  ;;  %v7166_v25 = vsub.f32 1.0, %v9978_v49  ;;  %v7170_v7 = vmul.f32 %v9978_v49, %v13749_v30  ;;  %v9277_v30 = vld [vmem:[%s13865_s9 + $0x38] sm:$0xff]  }
0x1819   :  { %v7163_v55 = vadd.f32 %v7161_v42, %v5440_v31  ;;  %v7167_v38 = vsub.f32 1.0, %v9980_v20  ;;  %v7171_v26 = vmul.f32 %v9980_v20, %v13752_v14  ;;  %v9278_v14 = vld [vmem:[%s13865_s9 + $0x30] sm:$0xff]  }
0x181b   :  { %9983 = vtanh.f32 %v7163_v55  ;;  %v14643_v55 = vld [vmem:[#allocation103_spill] sm:$0xff] }
0x181c   :  { %v5448_v49 = vadd.f32 %v14643_v55, %v13156_v23  ;;  %v7799_v23 = vld [vmem:[%s13866_s10] ss:$0 sm:$0xff] }
0x1824   :  { %v9982_v59 = vpop.eup %9981 }
0x1825   :  { %v7168_v57 = vmul.f32 %v9982_v59, %v7166_v25 }
0x1827   :  { %v13791_v15 = vadd.f32 %v7170_v7, %v7168_v57 }
0x1828   :  { %v9984_v21 = vpop.eup %9983 }
0x1829   :  { %v7169_v3 = vmul.f32 %v9984_v21, %v7167_v38 }
0x182b   :  { %v13794_v41 = vadd.f32 %v7171_v26, %v7169_v3 }
0x182d   :  { %v7180_v44 = vpack.c.bf16 %v13794_v41, %v13791_v15 }
0x182f   :  { %7214 = vmatmul.mubr.bf16.vlgmr.msra.gmra.mxu1 %v7180_v44  ;;  %9042 = vmatmul.mubr.bf16.vlgmr.msra.gmra.mxu0 %v7180_v44 }
0x1830   :  { %9061 = vmatprep.mubr.msk.bf16.mxu1 %vm10307_vm1, %v14192_v61  ;;  %9046 = vmatpush3.bf16.msra.mxu1 %v9277_v30 }
0x1831   :  { %9047 = vmatprep.subr.bf16.mxu1 %v14192_v61 }
0x1834   :  { %9048 = vmatpush3.bf16.msra.mxu1 %v9278_v14 }
0x1835   :  { %9049 = vmatprep.subr.bf16.mxu1 %v14192_v61 }
0x1838   :  { %9050 = vmatpush3.bf16.msra.mxu1 %v9279_v22 }
0x1839   :  { %9051 = vmatprep.subr.bf16.mxu1 %v14192_v61 }
0x183c   :  { %9052 = vmatpush3.bf16.msra.mxu1 %v9280_v8 }
0x183d   :  { %9053 = vmatprep.subr.bf16.mxu1 %v14192_v61 }
0x1840   :  { %9054 = vmatpush3.bf16.msra.mxu1 %v9281_v17 }
0x1841   :  { %9055 = vmatprep.subr.bf16.mxu1 %v14192_v61 }
0x1844   :  { %9056 = vmatpush3.bf16.msra.mxu1 %v9282_v63 }
0x1845   :  { %9057 = vmatprep.subr.bf16.mxu1 %v14192_v61 }
0x1848   :  { %9058 = vmatpush3.bf16.msra.mxu1 %v9283_v1 }
0x1849   :  { %9059 = vmatprep.subr.bf16.mxu1 %v14192_v61 }
0x184c   :  { %9060 = vmatpush3.bf16.msra.mxu1 %v9284_v11 }
0x18ef   :  { %v7215_v33 = vpop.f32.mrf.mxu1  ;;  %v7258_v2 = vpop.f32.mrf.mxu0 }
0x18f0   :  { %v7265_v24 = vadd.f32 %v7215_v33, %v5314_v39  ;;  %v7293_v43 = vadd.f32 %v13549_v51, %v7258_v2 }
0x18f1   :  { %v7217_v19 = vpop.f32.mrf.mxu1  ;;  %v9043_v46 = vpop.f32.mrf.mxu0 }
0x18f2   :  { %v7795_v5 = vmul.f32 -1.442695, %v7265_v24  ;;  %v7279_v6 = vadd.f32 %v7217_v19, %v5316_v0 }
0x18f3   :  { %v7219_v34 = vpop.f32.mrf.mxu1  ;;  %v7261_v4 = vpop.f32.mrf.mxu0 }
0x18f4   :  { %9985 = vpow2.f32 %v7795_v5  ;;  %v7266_v61 = vadd.f32 %v7219_v34, %v5318_v52  ;;  %v7797_v47 = vmul.f32 -1.442695, %v7279_v6  ;;  %v7294_v31 = vadd.f32 %v13549_v51, %v7261_v4 }
0x18f5   :  { %v9044_v28 = vpop.f32.mrf.mxu0  ;;  %v7221_v12 = vpop.f32.mrf.mxu1 }
0x18f6   :  { %v7796_v45 = vmul.f32 -1.442695, %v7266_v61  ;;  %v7280_v16 = vadd.f32 %v7221_v12, %v5320_v48 }
0x18f8   :  { %9987 = vpow2.f32 %v7796_v45  ;;  %v7798_v13 = vmul.f32 -1.442695, %v7280_v16 }
0x18f9   :  { %9989 = vpow2.f32 %v7797_v47 }
0x18fa   :  { %9991 = vpow2.f32 %v7798_v13 }
0x1901   :  { %v9986_v35 = vpop.eup %9985 }
0x1902   :  { %v7273_v60 = vadd.f32 1.0, %v9986_v35 }
0x1904   :  { %9993 = vrcp.f32 %v7273_v60 }
0x1905   :  { %v9988_v56 = vpop.eup %9987 }
0x1906   :  { %v7274_v29 = vadd.f32 1.0, %v9988_v56  ;;  %v9990_v58 = vpop.eup %9989 }
0x1907   :  { %v9992_v54 = vpop.eup %9991  ;;  %v7287_v40 = vadd.f32 1.0, %v9990_v58 }
0x1908   :  { %9995 = vrcp.f32 %v7274_v29  ;;  %v7288_v62 = vadd.f32 1.0, %v9992_v54 }
0x1909   :  { %9997 = vrcp.f32 %v7287_v40 }
0x190a   :  { %9999 = vrcp.f32 %v7288_v62 }
0x1911   :  { %v9994_v27 = vpop.eup %9993 }
0x1912   :  { %v7295_v18 = vmul.f32 %v9994_v27, %v7293_v43 }
0x1914   :  { %v7297_v53 = vadd.f32 %v7295_v18, %v5445_v32 }
0x1915   :  { %v9996_v42 = vpop.eup %9995 }
0x1916   :  { %10001 = vtanh.f32 %v7297_v53  ;;  %v7296_v20 = vmul.f32 %v9996_v42, %v7294_v31  ;;  %v9998_v59 = vpop.eup %9997 }
0x1917   :  { %v10000_v57 = vpop.eup %9999  ;;  %v7301_v7 = vsub.f32 1.0, %v9998_v59  ;;  %v7305_v3 = vmul.f32 %v9998_v59, %v13791_v15 }
0x1918   :  { %v7298_v25 = vadd.f32 %v7296_v20, %v5448_v49  ;;  %v7302_v26 = vsub.f32 1.0, %v10000_v57  ;;  %v7306_v14 = vmul.f32 %v10000_v57, %v13794_v41 }
0x191a   :  { %10003 = vtanh.f32 %v7298_v25 }
0x1923   :  { %v10002_v38 = vpop.eup %10001 }
0x1924   :  { %v7303_v21 = vmul.f32 %v10002_v38, %v7301_v7 }
0x1926   :  { %v7307_v44 = vadd.f32 %v7305_v3, %v7303_v21 }
0x1927   :  { %v10004_v30 = vpop.eup %10003 }
0x1928   :  { %v7304_v51 = vmul.f32 %v10004_v30, %v7302_v26 }
0x192a   :  { %v7308_v22 = vadd.f32 %v7306_v14, %v7304_v51 }
0x192c   :  { %v7309_v8 = vpack.c.bf16 %v7308_v22, %v7307_v44 }
0x192e   :  { %9062 = vmatmul.mubr.bf16.vlgmr.msra.gmra.mxu1 %v7309_v8 }
0x19ee   :  { %v7415_v17 = vpop.f32.mrf.mxu1 }
0x19ef   :  { %v7416_v63 = vadd.f32 %v7799_v23, %v7415_v17 }
0x19f0   :  { %v9063_v1 = vpop.f32.mrf.mxu1 }
0x19f1   :  { %7422 = vst [vmem:[%s13867_s11] sm:$0xff] %v7416_v63 }
0x19f2   :  { %v7418_v15 = vpop.f32.mrf.mxu1 }
0x19f3   :  { %v7419_v11 = vadd.f32 %v7799_v23, %v7418_v15 }
0x19f4   :  { %v9064_v50 = vpop.f32.mrf.mxu1 }
0x19f5   :  { %7423 = vst [vmem:[%s13867_s11 + $0x8] sm:$0xff] %v7419_v11 }
0x19f6   :  { %7428 = vsyncpa [#allocation6], 1 }
0x19f7   :  { %7429 = vsyncpa [#allocation8], 1 }

</bundles_post_ra>
